<compile_context>
chip_gen: v5e
topology: v5e:2x2
jax: 0.10.0
libtpu: 0.0.40
codegen_flags: <defaults>
</compile_context>

<pallas_src>
import functools

import jax
import jax.numpy as jnp
import numpy as np
from jax import lax
from jax.experimental import pallas as pl
from jax.experimental.pallas import tpu as pltpu


def _make_rcab_kernel(H, W, C, Csq, NB, res_scale):
    Wp = W + 2                  # padded width (1-col halo each side)
    Hp = H + 2                  # padded height
    HW = H * W                  # valid spatial positions per image
    Msp = H * Wp                # padded-width conv outputs per image
    MP = (Hp + 1) * Wp          # flat canvas length (+1 zero row absorbs tap overhang)
    inv_hw = 1.0 / float(HW)

    def kernel(x_ref, w1_ref, b1_ref, w2_ref, b2_ref,
               wsq_ref, bsq_ref, wex_ref, bex_ref,
               out_ref, canvas_ref, col_ref):
        # Zero the zero-halo canvas once per grid step (tiny: ~6 bf16 vregs).
        # Not gated on program_id==0 so each TensorCore's private scratch is
        # initialised even when the parallel grid axis is split across cores.
        canvas_ref[...] = jnp.zeros_like(canvas_ref)

        # Lane mask of "valid" padded-width columns (column-within-row < W).
        col_idx = lax.broadcasted_iota(jnp.int32, (1, Msp), 1)
        valid = (col_idx % Wp) < W                         # (1, Msp) bool

        w1c = w1_ref[...]                                  # (C, 9C) bf16
        w2c = w2_ref[...]                                  # (C, 9C) bf16
        b1 = b1_ref[...]                                   # (C, 1) f32
        b2 = b2_ref[...]                                   # (C, 1) f32

        for n in range(NB):
            x = x_ref[n]                                   # (C, H*W) f32

            # ---- embed x into the canvas interior: rows 1..H, cols 1..W ----
            for h in range(H):
                dst = (h + 1) * Wp + 1
                canvas_ref[:, dst:dst + W] = (
                    x[:, h * W:(h + 1) * W].astype(canvas_ref.dtype))

            # ---- conv1: im2col of contiguous shifted slabs, one K=9C matmul ----
            for dy in range(3):
                for dx in range(3):
                    tap = dy * 3 + dx
                    s = dy * Wp + dx
                    col_ref[tap * C:(tap + 1) * C, :] = canvas_ref[:, s:s + Msp]
            h1 = jnp.dot(w1c, col_ref[...],
                         preferred_element_type=jnp.float32)      # (C, Msp) f32
            h1 = jnp.maximum(h1 + b1, 0.0)                         # bias + ReLU

            # Mask out-of-row garbage columns and re-embed h1 for conv2 with a
            # single contiguous shifted store (keeps the halo exactly zero).
            h1m = jnp.where(valid, h1, 0.0).astype(canvas_ref.dtype)
            canvas_ref[:, Wp + 1:Wp + 1 + Msp] = h1m

            # ---- conv2: same im2col + single K=9C matmul ----
            for dy in range(3):
                for dx in range(3):
                    tap = dy * 3 + dx
                    s = dy * Wp + dx
                    col_ref[tap * C:(tap + 1) * C, :] = canvas_ref[:, s:s + Msp]
            h2 = jnp.dot(w2c, col_ref[...],
                         preferred_element_type=jnp.float32) + b2  # (C, Msp) f32

            # ---- channel attention (f32, tiny) ----
            y = jnp.sum(jnp.where(valid, h2, 0.0),
                        axis=1, keepdims=True) * inv_hw            # (C, 1)
            z = jnp.maximum(
                jnp.dot(wsq_ref[...], y,
                        preferred_element_type=jnp.float32) + bsq_ref[...],
                0.0)                                               # (Csq, 1)
            a = jax.nn.sigmoid(
                jnp.dot(wex_ref[...], z,
                        preferred_element_type=jnp.float32) + bex_ref[...])  # (C, 1)

            # ---- scale, drop padded-width garbage columns, residual add ----
            h2s = h2 * (a * res_scale)                             # (C, Msp)
            rows = [h2s[:, h * Wp:h * Wp + W] for h in range(H)]
            res = jnp.concatenate(rows, axis=1)                    # (C, H*W) lane-dense
            out_ref[n] = (res + x).astype(out_ref.dtype)

    return kernel


@functools.partial(jax.jit, static_argnames=("res_scale",))
def rcab_pallas(x_nchw, params, res_scale=1.0):
    """RCAB forward. x_nchw: (N, C, H, W) float32 (PyTorch layout)."""
    w1, b1, w2, b2, wsq, bsq, wex, bex = params
    N, C, H, W = x_nchw.shape
    Csq = wsq.shape[0]

    # Channels-first flat layout: (N, C, H*W).  Pure reshape -- no transpose or
    # pad HBM round trips; halo padding happens inside the kernel.
    x = x_nchw.reshape(N, C, H * W).astype(jnp.float32)

    # Conv weights folded to (C_out, 9*C_in), tap-major ((dy*3+dx)*C + c_in),
    # as bf16 MXU operands.  Attention path stays f32.
    w1c = jnp.transpose(w1, (3, 0, 1, 2)).reshape(C, 9 * C).astype(jnp.bfloat16)
    w2c = jnp.transpose(w2, (3, 0, 1, 2)).reshape(C, 9 * C).astype(jnp.bfloat16)
    b1c = b1.reshape(C, 1).astype(jnp.float32)
    b2c = b2.reshape(C, 1).astype(jnp.float32)
    wsq2 = wsq.astype(jnp.float32)                     # (Csq, C)
    bsq2 = bsq.reshape(Csq, 1).astype(jnp.float32)
    wex2 = wex.astype(jnp.float32)                     # (C, Csq)
    bex2 = bex.reshape(C, 1).astype(jnp.float32)

    # Images per grid step: amortize per-step overhead / keep weights hot, but
    # keep >=2 parallel grid steps when possible so both v7x TCs get work.
    NB = 2 if (N % 2 == 0 and N >= 4) else 1
    grid_n = N // NB

    Wp, Hp = W + 2, H + 2
    Msp = H * Wp
    MP = (Hp + 1) * Wp

    kernel = _make_rcab_kernel(H, W, C, Csq, NB, float(res_scale))

    out = pl.pallas_call(
        kernel,
        out_shape=jax.ShapeDtypeStruct((N, C, H * W), jnp.float32),
        grid_spec=pltpu.PrefetchScalarGridSpec(
            num_scalar_prefetch=0,
            grid=(grid_n,),
            in_specs=[
                pl.BlockSpec((NB, C, H * W), lambda i: (i, 0, 0)),   # x (f32)
                pl.BlockSpec((C, 9 * C), lambda i: (0, 0)),          # w1 folded (bf16)
                pl.BlockSpec((C, 1), lambda i: (0, 0)),              # b1
                pl.BlockSpec((C, 9 * C), lambda i: (0, 0)),          # w2 folded (bf16)
                pl.BlockSpec((C, 1), lambda i: (0, 0)),              # b2
                pl.BlockSpec((Csq, C), lambda i: (0, 0)),            # squeeze W
                pl.BlockSpec((Csq, 1), lambda i: (0, 0)),            # squeeze b
                pl.BlockSpec((C, Csq), lambda i: (0, 0)),            # excite W
                pl.BlockSpec((C, 1), lambda i: (0, 0)),              # excite b
            ],
            out_specs=pl.BlockSpec((NB, C, H * W), lambda i: (i, 0, 0)),
            scratch_shapes=[
                pltpu.VMEM((C, MP), jnp.bfloat16),        # zero-halo flat canvas
                pltpu.VMEM((9 * C, Msp), jnp.bfloat16),   # im2col (K = 9C)
            ],
        ),
        compiler_params=pltpu.CompilerParams(
            dimension_semantics=("parallel",)),
    )(x, w1c, b1c, w2c, b2c, wsq2, bsq2, wex2, bex2)

    return out.reshape(N, C, H, W)


def rcab_reference(x_nchw, params, res_scale=1.0):
    """Pure-JAX reference mirroring the PyTorch RCAB forward."""
    w1, b1, w2, b2, wsq, bsq, wex, bex = params
    x = jnp.transpose(x_nchw, (0, 2, 3, 1))              # NHWC
    dn = ("NHWC", "HWIO", "NHWC")
    h1 = lax.conv_general_dilated(x, w1, (1, 1), "SAME",
                                  dimension_numbers=dn) + b1
    h1 = jnp.maximum(h1, 0.0)
    h2 = lax.conv_general_dilated(h1, w2, (1, 1), "SAME",
                                  dimension_numbers=dn) + b2
    y = jnp.mean(h2, axis=(1, 2), keepdims=True)          # (N,1,1,C)
    z = jnp.maximum(jnp.einsum("nhwc,sc->nhws", y, wsq) + bsq, 0.0)
    a = jax.nn.sigmoid(jnp.einsum("nhws,cs->nhwc", z, wex) + bex)
    out = h2 * a * res_scale + x
    return jnp.transpose(out, (0, 3, 1, 2))


def init_params(key, num_feat, squeeze_factor):
    csq = num_feat // squeeze_factor
    ks = jax.random.split(key, 8)
    # Conv weights in HWIO layout; 1x1 attention convs as plain matrices.
    w1 = 0.1 * jax.random.normal(ks[0], (3, 3, num_feat, num_feat), jnp.float32)
    b1 = 0.05 * jax.random.normal(ks[1], (num_feat,), jnp.float32)
    w2 = 0.1 * jax.random.normal(ks[2], (3, 3, num_feat, num_feat), jnp.float32)
    b2 = 0.05 * jax.random.normal(ks[3], (num_feat,), jnp.float32)
    wsq = 0.1 * jax.random.normal(ks[4], (csq, num_feat), jnp.float32)
    bsq = 0.05 * jax.random.normal(ks[5], (csq,), jnp.float32)
    wex = 0.1 * jax.random.normal(ks[6], (num_feat, csq), jnp.float32)
    bex = 0.05 * jax.random.normal(ks[7], (num_feat,), jnp.float32)
    return (w1, b1, w2, b2, wsq, bsq, wex, bex)


if __name__ == "__main__":
    N, num_feat, H, W = 4, 32, 16, 16
    squeeze_factor = 16
    res_scale = 1.0

    key = jax.random.PRNGKey(0)
    kx, kp = jax.random.split(key)
    x = jax.random.normal(kx, (N, num_feat, H, W), jnp.float32)  # NCHW input
    params = init_params(kp, num_feat, squeeze_factor)

    out = jax.block_until_ready(rcab_pallas(x, params, res_scale=res_scale))
    ref = jax.block_until_ready(rcab_reference(x, params, res_scale=res_scale))

    # bf16 MXU operands with f32 accumulation -> slightly looser tolerance than
    # the pure-f32 variant.
    np.testing.assert_allclose(np.asarray(out), np.asarray(ref),
                               rtol=3e-2, atol=3e-2)
    assert out.shape == x.shape and out.dtype == x.dtype

    print("KERNEL_OK")
</pallas_src>

<mosaic_0001>
module attributes {stable_mosaic.version = 11 : i64} {
  func.func @kernel(%arg0: i32, %arg1: memref<2x32x256xf32, #tpu.memory_space<vmem>>, %arg2: memref<32x288xbf16, #tpu.memory_space<vmem>>, %arg3: memref<32x1xf32, #tpu.memory_space<vmem>>, %arg4: memref<32x288xbf16, #tpu.memory_space<vmem>>, %arg5: memref<32x1xf32, #tpu.memory_space<vmem>>, %arg6: memref<2x32xf32, #tpu.memory_space<vmem>>, %arg7: memref<2x1xf32, #tpu.memory_space<vmem>>, %arg8: memref<32x2xf32, #tpu.memory_space<vmem>>, %arg9: memref<32x1xf32, #tpu.memory_space<vmem>>, %arg10: memref<2x32x256xf32, #tpu.memory_space<vmem>>, %arg11: memref<32x342xbf16, #tpu.memory_space<vmem>>, %arg12: memref<288x288xbf16, #tpu.memory_space<vmem>>) attributes {dimension_semantics = [#tpu.dimension_semantics<parallel>], iteration_bounds = array<i64: 2>, scalar_prefetch = 0 : i64, scratch_operands = 2 : i64, tpu.core_type = #tpu.core_type<tc>, window_params = [{transform_indices = @transform_0, window_bounds = array<i64: 2, 32, 256>}, {pipeline_mode = #tpu.pipeline_mode<synchronous>, transform_indices = @transform_1, window_bounds = array<i64: 32, 288>}, {pipeline_mode = #tpu.pipeline_mode<synchronous>, transform_indices = @transform_2, window_bounds = array<i64: 32, 1>}, {pipeline_mode = #tpu.pipeline_mode<synchronous>, transform_indices = @transform_3, window_bounds = array<i64: 32, 288>}, {pipeline_mode = #tpu.pipeline_mode<synchronous>, transform_indices = @transform_4, window_bounds = array<i64: 32, 1>}, {pipeline_mode = #tpu.pipeline_mode<synchronous>, transform_indices = @transform_5, window_bounds = array<i64: 2, 32>}, {pipeline_mode = #tpu.pipeline_mode<synchronous>, transform_indices = @transform_6, window_bounds = array<i64: 2, 1>}, {pipeline_mode = #tpu.pipeline_mode<synchronous>, transform_indices = @transform_7, window_bounds = array<i64: 32, 2>}, {pipeline_mode = #tpu.pipeline_mode<synchronous>, transform_indices = @transform_8, window_bounds = array<i64: 32, 1>}, {transform_indices = @transform_9, window_bounds = array<i64: 2, 32, 256>}]} {
    %cst = arith.constant 0.000000e+00 : bf16
    %0 = vector.broadcast %cst : bf16 to vector<32x342xbf16>
    %c0 = arith.constant 0 : index
    %c0_0 = arith.constant 0 : index
    %1 = vector.load %arg11[%c0, %c0_0] : memref<32x342xbf16, #tpu.memory_space<vmem>>, vector<32x342xbf16>
    tpu.vector_store %arg11[%c0, %c0_0], %0 {strides = array<i32>} : memref<32x342xbf16, #tpu.memory_space<vmem>>, vector<32x342xbf16>,
    %2 = tpu.iota {dimensions = array<i32: 1>} : vector<1x288xi32>
    %c18_i32 = arith.constant 18 : i32
    %c0_i32 = arith.constant 0 : i32
    %3 = arith.cmpi eq, %c18_i32, %c0_i32 : i32
    %c1_i32 = arith.constant 1 : i32
    %4 = arith.select %3, %c1_i32, %c18_i32 : i32
    %5 = vector.broadcast %4 : i32 to vector<1x288xi32>
    %6 = arith.remsi %2, %5 : vector<1x288xi32>
    %c0_i32_1 = arith.constant 0 : i32
    %7 = vector.broadcast %c0_i32_1 : i32 to vector<1x288xi32>
    %8 = arith.cmpi ne, %6, %7 : vector<1x288xi32>
    %c0_i32_2 = arith.constant 0 : i32
    %9 = vector.broadcast %c0_i32_2 : i32 to vector<1x288xi32>
    %10 = arith.cmpi slt, %6, %9 : vector<1x288xi32>
    %c0_i32_3 = arith.constant 0 : i32
    %11 = arith.cmpi slt, %4, %c0_i32_3 : i32
    %12 = vector.broadcast %11 : i1 to vector<1x288xi1>
    %13 = vector.broadcast %12 : vector<1x288xi1> to vector<1x288xi1>
    %14 = arith.xori %10, %13 : vector<1x288xi1>
    %15 = arith.andi %14, %8 : vector<1x288xi1>
    %16 = vector.broadcast %4 : i32 to vector<1x288xi32>
    %17 = arith.addi %6, %16 : vector<1x288xi32>
    %18 = arith.select %15, %17, %6 : vector<1x288xi1>, vector<1x288xi32>
    %c16_i32 = arith.constant 16 : i32
    %19 = vector.broadcast %c16_i32 : i32 to vector<1x288xi32>
    %20 = arith.cmpi slt, %18, %19 : vector<1x288xi32>
    %c0_4 = arith.constant 0 : index
    %c0_5 = arith.constant 0 : index
    %21 = vector.load %arg2[%c0_4, %c0_5] : memref<32x288xbf16, #tpu.memory_space<vmem>>, vector<32x288xbf16>
    %c0_6 = arith.constant 0 : index
    %c0_7 = arith.constant 0 : index
    %22 = vector.load %arg4[%c0_6, %c0_7] : memref<32x288xbf16, #tpu.memory_space<vmem>>, vector<32x288xbf16>
    %c0_8 = arith.constant 0 : index
    %c0_9 = arith.constant 0 : index
    %23 = vector.load %arg3[%c0_8, %c0_9] : memref<32x1xf32, #tpu.memory_space<vmem>>, vector<32x1xf32>
    %c0_10 = arith.constant 0 : index
    %c0_11 = arith.constant 0 : index
    %24 = vector.load %arg5[%c0_10, %c0_11] : memref<32x1xf32, #tpu.memory_space<vmem>>, vector<32x1xf32>
    %c0_12 = arith.constant 0 : index
    %c0_13 = arith.constant 0 : index
    %c0_14 = arith.constant 0 : index
    %25 = vector.load %arg1[%c0_12, %c0_13, %c0_14] : memref<2x32x256xf32, #tpu.memory_space<vmem>>, vector<1x32x256xf32>
    %26 = vector.shape_cast %25 : vector<1x32x256xf32> to vector<32x256xf32>
    %27 = vector.extract_strided_slice %26 {offsets = [0, 0], sizes = [32, 16], strides = [1, 1]} : vector<32x256xf32> to vector<32x16xf32>
    %28 = arith.truncf %27 : vector<32x16xf32> to vector<32x16xbf16>
    %c0_15 = arith.constant 0 : index
    %c19 = arith.constant 19 : index
    %29 = vector.load %arg11[%c0_15, %c19] : memref<32x342xbf16, #tpu.memory_space<vmem>>, vector<32x16xbf16>
    tpu.vector_store %arg11[%c0_15, %c19], %28 {strides = array<i32>} : memref<32x342xbf16, #tpu.memory_space<vmem>>, vector<32x16xbf16>,
    %30 = vector.extract_strided_slice %26 {offsets = [0, 16], sizes = [32, 16], strides = [1, 1]} : vector<32x256xf32> to vector<32x16xf32>
    %31 = arith.truncf %30 : vector<32x16xf32> to vector<32x16xbf16>
    %c0_16 = arith.constant 0 : index
    %c37 = arith.constant 37 : index
    %32 = vector.load %arg11[%c0_16, %c37] : memref<32x342xbf16, #tpu.memory_space<vmem>>, vector<32x16xbf16>
    tpu.vector_store %arg11[%c0_16, %c37], %31 {strides = array<i32>} : memref<32x342xbf16, #tpu.memory_space<vmem>>, vector<32x16xbf16>,
    %33 = vector.extract_strided_slice %26 {offsets = [0, 32], sizes = [32, 16], strides = [1, 1]} : vector<32x256xf32> to vector<32x16xf32>
    %34 = arith.truncf %33 : vector<32x16xf32> to vector<32x16xbf16>
    %c0_17 = arith.constant 0 : index
    %c55 = arith.constant 55 : index
    %35 = vector.load %arg11[%c0_17, %c55] : memref<32x342xbf16, #tpu.memory_space<vmem>>, vector<32x16xbf16>
    tpu.vector_store %arg11[%c0_17, %c55], %34 {strides = array<i32>} : memref<32x342xbf16, #tpu.memory_space<vmem>>, vector<32x16xbf16>,
    %36 = vector.extract_strided_slice %26 {offsets = [0, 48], sizes = [32, 16], strides = [1, 1]} : vector<32x256xf32> to vector<32x16xf32>
    %37 = arith.truncf %36 : vector<32x16xf32> to vector<32x16xbf16>
    %c0_18 = arith.constant 0 : index
    %c73 = arith.constant 73 : index
    %38 = vector.load %arg11[%c0_18, %c73] : memref<32x342xbf16, #tpu.memory_space<vmem>>, vector<32x16xbf16>
    tpu.vector_store %arg11[%c0_18, %c73], %37 {strides = array<i32>} : memref<32x342xbf16, #tpu.memory_space<vmem>>, vector<32x16xbf16>,
    %39 = vector.extract_strided_slice %26 {offsets = [0, 64], sizes = [32, 16], strides = [1, 1]} : vector<32x256xf32> to vector<32x16xf32>
    %40 = arith.truncf %39 : vector<32x16xf32> to vector<32x16xbf16>
    %c0_19 = arith.constant 0 : index
    %c91 = arith.constant 91 : index
    %41 = vector.load %arg11[%c0_19, %c91] : memref<32x342xbf16, #tpu.memory_space<vmem>>, vector<32x16xbf16>
    tpu.vector_store %arg11[%c0_19, %c91], %40 {strides = array<i32>} : memref<32x342xbf16, #tpu.memory_space<vmem>>, vector<32x16xbf16>,
    %42 = vector.extract_strided_slice %26 {offsets = [0, 80], sizes = [32, 16], strides = [1, 1]} : vector<32x256xf32> to vector<32x16xf32>
    %43 = arith.truncf %42 : vector<32x16xf32> to vector<32x16xbf16>
    %c0_20 = arith.constant 0 : index
    %c109 = arith.constant 109 : index
    %44 = vector.load %arg11[%c0_20, %c109] : memref<32x342xbf16, #tpu.memory_space<vmem>>, vector<32x16xbf16>
    tpu.vector_store %arg11[%c0_20, %c109], %43 {strides = array<i32>} : memref<32x342xbf16, #tpu.memory_space<vmem>>, vector<32x16xbf16>,
    %45 = vector.extract_strided_slice %26 {offsets = [0, 96], sizes = [32, 16], strides = [1, 1]} : vector<32x256xf32> to vector<32x16xf32>
    %46 = arith.truncf %45 : vector<32x16xf32> to vector<32x16xbf16>
    %c0_21 = arith.constant 0 : index
    %c127 = arith.constant 127 : index
    %47 = vector.load %arg11[%c0_21, %c127] : memref<32x342xbf16, #tpu.memory_space<vmem>>, vector<32x16xbf16>
    tpu.vector_store %arg11[%c0_21, %c127], %46 {strides = array<i32>} : memref<32x342xbf16, #tpu.memory_space<vmem>>, vector<32x16xbf16>,
    %48 = vector.extract_strided_slice %26 {offsets = [0, 112], sizes = [32, 16], strides = [1, 1]} : vector<32x256xf32> to vector<32x16xf32>
    %49 = arith.truncf %48 : vector<32x16xf32> to vector<32x16xbf16>
    %c0_22 = arith.constant 0 : index
    %c145 = arith.constant 145 : index
    %50 = vector.load %arg11[%c0_22, %c145] : memref<32x342xbf16, #tpu.memory_space<vmem>>, vector<32x16xbf16>
    tpu.vector_store %arg11[%c0_22, %c145], %49 {strides = array<i32>} : memref<32x342xbf16, #tpu.memory_space<vmem>>, vector<32x16xbf16>,
    %51 = vector.extract_strided_slice %26 {offsets = [0, 128], sizes = [32, 16], strides = [1, 1]} : vector<32x256xf32> to vector<32x16xf32>
    %52 = arith.truncf %51 : vector<32x16xf32> to vector<32x16xbf16>
    %c0_23 = arith.constant 0 : index
    %c163 = arith.constant 163 : index
    %53 = vector.load %arg11[%c0_23, %c163] : memref<32x342xbf16, #tpu.memory_space<vmem>>, vector<32x16xbf16>
    tpu.vector_store %arg11[%c0_23, %c163], %52 {strides = array<i32>} : memref<32x342xbf16, #tpu.memory_space<vmem>>, vector<32x16xbf16>,
    %54 = vector.extract_strided_slice %26 {offsets = [0, 144], sizes = [32, 16], strides = [1, 1]} : vector<32x256xf32> to vector<32x16xf32>
    %55 = arith.truncf %54 : vector<32x16xf32> to vector<32x16xbf16>
    %c0_24 = arith.constant 0 : index
    %c181 = arith.constant 181 : index
    %56 = vector.load %arg11[%c0_24, %c181] : memref<32x342xbf16, #tpu.memory_space<vmem>>, vector<32x16xbf16>
    tpu.vector_store %arg11[%c0_24, %c181], %55 {strides = array<i32>} : memref<32x342xbf16, #tpu.memory_space<vmem>>, vector<32x16xbf16>,
    %57 = vector.extract_strided_slice %26 {offsets = [0, 160], sizes = [32, 16], strides = [1, 1]} : vector<32x256xf32> to vector<32x16xf32>
    %58 = arith.truncf %57 : vector<32x16xf32> to vector<32x16xbf16>
    %c0_25 = arith.constant 0 : index
    %c199 = arith.constant 199 : index
    %59 = vector.load %arg11[%c0_25, %c199] : memref<32x342xbf16, #tpu.memory_space<vmem>>, vector<32x16xbf16>
    tpu.vector_store %arg11[%c0_25, %c199], %58 {strides = array<i32>} : memref<32x342xbf16, #tpu.memory_space<vmem>>, vector<32x16xbf16>,
    %60 = vector.extract_strided_slice %26 {offsets = [0, 176], sizes = [32, 16], strides = [1, 1]} : vector<32x256xf32> to vector<32x16xf32>
    %61 = arith.truncf %60 : vector<32x16xf32> to vector<32x16xbf16>
    %c0_26 = arith.constant 0 : index
    %c217 = arith.constant 217 : index
    %62 = vector.load %arg11[%c0_26, %c217] : memref<32x342xbf16, #tpu.memory_space<vmem>>, vector<32x16xbf16>
    tpu.vector_store %arg11[%c0_26, %c217], %61 {strides = array<i32>} : memref<32x342xbf16, #tpu.memory_space<vmem>>, vector<32x16xbf16>,
    %63 = vector.extract_strided_slice %26 {offsets = [0, 192], sizes = [32, 16], strides = [1, 1]} : vector<32x256xf32> to vector<32x16xf32>
    %64 = arith.truncf %63 : vector<32x16xf32> to vector<32x16xbf16>
    %c0_27 = arith.constant 0 : index
    %c235 = arith.constant 235 : index
    %65 = vector.load %arg11[%c0_27, %c235] : memref<32x342xbf16, #tpu.memory_space<vmem>>, vector<32x16xbf16>
    tpu.vector_store %arg11[%c0_27, %c235], %64 {strides = array<i32>} : memref<32x342xbf16, #tpu.memory_space<vmem>>, vector<32x16xbf16>,
    %66 = vector.extract_strided_slice %26 {offsets = [0, 208], sizes = [32, 16], strides = [1, 1]} : vector<32x256xf32> to vector<32x16xf32>
    %67 = arith.truncf %66 : vector<32x16xf32> to vector<32x16xbf16>
    %c0_28 = arith.constant 0 : index
    %c253 = arith.constant 253 : index
    %68 = vector.load %arg11[%c0_28, %c253] : memref<32x342xbf16, #tpu.memory_space<vmem>>, vector<32x16xbf16>
    tpu.vector_store %arg11[%c0_28, %c253], %67 {strides = array<i32>} : memref<32x342xbf16, #tpu.memory_space<vmem>>, vector<32x16xbf16>,
    %69 = vector.extract_strided_slice %26 {offsets = [0, 224], sizes = [32, 16], strides = [1, 1]} : vector<32x256xf32> to vector<32x16xf32>
    %70 = arith.truncf %69 : vector<32x16xf32> to vector<32x16xbf16>
    %c0_29 = arith.constant 0 : index
    %c271 = arith.constant 271 : index
    %71 = vector.load %arg11[%c0_29, %c271] : memref<32x342xbf16, #tpu.memory_space<vmem>>, vector<32x16xbf16>
    tpu.vector_store %arg11[%c0_29, %c271], %70 {strides = array<i32>} : memref<32x342xbf16, #tpu.memory_space<vmem>>, vector<32x16xbf16>,
    %72 = vector.extract_strided_slice %26 {offsets = [0, 240], sizes = [32, 16], strides = [1, 1]} : vector<32x256xf32> to vector<32x16xf32>
    %73 = arith.truncf %72 : vector<32x16xf32> to vector<32x16xbf16>
    %c0_30 = arith.constant 0 : index
    %c289 = arith.constant 289 : index
    %74 = vector.load %arg11[%c0_30, %c289] : memref<32x342xbf16, #tpu.memory_space<vmem>>, vector<32x16xbf16>
    tpu.vector_store %arg11[%c0_30, %c289], %73 {strides = array<i32>} : memref<32x342xbf16, #tpu.memory_space<vmem>>, vector<32x16xbf16>,
    %c0_31 = arith.constant 0 : index
    %c0_32 = arith.constant 0 : index
    %75 = vector.load %arg11[%c0_31, %c0_32] : memref<32x342xbf16, #tpu.memory_space<vmem>>, vector<32x288xbf16>
    %c0_33 = arith.constant 0 : index
    %c0_34 = arith.constant 0 : index
    %76 = vector.load %arg12[%c0_33, %c0_34] : memref<288x288xbf16, #tpu.memory_space<vmem>>, vector<32x288xbf16>
    tpu.vector_store %arg12[%c0_33, %c0_34], %75 {strides = array<i32>} : memref<288x288xbf16, #tpu.memory_space<vmem>>, vector<32x288xbf16>,
    %c0_35 = arith.constant 0 : index
    %c1 = arith.constant 1 : index
    %77 = vector.load %arg11[%c0_35, %c1] : memref<32x342xbf16, #tpu.memory_space<vmem>>, vector<32x288xbf16>
    %c32 = arith.constant 32 : index
    %c0_36 = arith.constant 0 : index
    %78 = vector.load %arg12[%c32, %c0_36] : memref<288x288xbf16, #tpu.memory_space<vmem>>, vector<32x288xbf16>
    tpu.vector_store %arg12[%c32, %c0_36], %77 {strides = array<i32>} : memref<288x288xbf16, #tpu.memory_space<vmem>>, vector<32x288xbf16>,
    %c0_37 = arith.constant 0 : index
    %c2 = arith.constant 2 : index
    %79 = vector.load %arg11[%c0_37, %c2] : memref<32x342xbf16, #tpu.memory_space<vmem>>, vector<32x288xbf16>
    %c64 = arith.constant 64 : index
    %c0_38 = arith.constant 0 : index
    %80 = vector.load %arg12[%c64, %c0_38] : memref<288x288xbf16, #tpu.memory_space<vmem>>, vector<32x288xbf16>
    tpu.vector_store %arg12[%c64, %c0_38], %79 {strides = array<i32>} : memref<288x288xbf16, #tpu.memory_space<vmem>>, vector<32x288xbf16>,
    %c0_39 = arith.constant 0 : index
    %c18 = arith.constant 18 : index
    %81 = vector.load %arg11[%c0_39, %c18] : memref<32x342xbf16, #tpu.memory_space<vmem>>, vector<32x288xbf16>
    %c96 = arith.constant 96 : index
    %c0_40 = arith.constant 0 : index
    %82 = vector.load %arg12[%c96, %c0_40] : memref<288x288xbf16, #tpu.memory_space<vmem>>, vector<32x288xbf16>
    tpu.vector_store %arg12[%c96, %c0_40], %81 {strides = array<i32>} : memref<288x288xbf16, #tpu.memory_space<vmem>>, vector<32x288xbf16>,
    %c0_41 = arith.constant 0 : index
    %c19_42 = arith.constant 19 : index
    %83 = vector.load %arg11[%c0_41, %c19_42] : memref<32x342xbf16, #tpu.memory_space<vmem>>, vector<32x288xbf16>
    %c128 = arith.constant 128 : index
    %c0_43 = arith.constant 0 : index
    %84 = vector.load %arg12[%c128, %c0_43] : memref<288x288xbf16, #tpu.memory_space<vmem>>, vector<32x288xbf16>
    tpu.vector_store %arg12[%c128, %c0_43], %83 {strides = array<i32>} : memref<288x288xbf16, #tpu.memory_space<vmem>>, vector<32x288xbf16>,
    %c0_44 = arith.constant 0 : index
    %c20 = arith.constant 20 : index
    %85 = vector.load %arg11[%c0_44, %c20] : memref<32x342xbf16, #tpu.memory_space<vmem>>, vector<32x288xbf16>
    %c160 = arith.constant 160 : index
    %c0_45 = arith.constant 0 : index
    %86 = vector.load %arg12[%c160, %c0_45] : memref<288x288xbf16, #tpu.memory_space<vmem>>, vector<32x288xbf16>
    tpu.vector_store %arg12[%c160, %c0_45], %85 {strides = array<i32>} : memref<288x288xbf16, #tpu.memory_space<vmem>>, vector<32x288xbf16>,
    %c0_46 = arith.constant 0 : index
    %c36 = arith.constant 36 : index
    %87 = vector.load %arg11[%c0_46, %c36] : memref<32x342xbf16, #tpu.memory_space<vmem>>, vector<32x288xbf16>
    %c192 = arith.constant 192 : index
    %c0_47 = arith.constant 0 : index
    %88 = vector.load %arg12[%c192, %c0_47] : memref<288x288xbf16, #tpu.memory_space<vmem>>, vector<32x288xbf16>
    tpu.vector_store %arg12[%c192, %c0_47], %87 {strides = array<i32>} : memref<288x288xbf16, #tpu.memory_space<vmem>>, vector<32x288xbf16>,
    %c0_48 = arith.constant 0 : index
    %c37_49 = arith.constant 37 : index
    %89 = vector.load %arg11[%c0_48, %c37_49] : memref<32x342xbf16, #tpu.memory_space<vmem>>, vector<32x288xbf16>
    %c224 = arith.constant 224 : index
    %c0_50 = arith.constant 0 : index
    %90 = vector.load %arg12[%c224, %c0_50] : memref<288x288xbf16, #tpu.memory_space<vmem>>, vector<32x288xbf16>
    tpu.vector_store %arg12[%c224, %c0_50], %89 {strides = array<i32>} : memref<288x288xbf16, #tpu.memory_space<vmem>>, vector<32x288xbf16>,
    %c0_51 = arith.constant 0 : index
    %c38 = arith.constant 38 : index
    %91 = vector.load %arg11[%c0_51, %c38] : memref<32x342xbf16, #tpu.memory_space<vmem>>, vector<32x288xbf16>
    %c256 = arith.constant 256 : index
    %c0_52 = arith.constant 0 : index
    %92 = vector.load %arg12[%c256, %c0_52] : memref<288x288xbf16, #tpu.memory_space<vmem>>, vector<32x288xbf16>
    tpu.vector_store %arg12[%c256, %c0_52], %91 {strides = array<i32>} : memref<288x288xbf16, #tpu.memory_space<vmem>>, vector<32x288xbf16>,
    %c0_53 = arith.constant 0 : index
    %c0_54 = arith.constant 0 : index
    %93 = vector.load %arg12[%c0_53, %c0_54] : memref<288x288xbf16, #tpu.memory_space<vmem>>, vector<288x288xbf16>
    %cst_55 = arith.constant dense<0.000000e+00> : vector<32x288xf32>
    %94 = tpu.matmul %21, %93, %cst_55 {dimension_numbers = #tpu.dot_dimension_numbers<[1], [0], [0], [1], [0, 0, 1, 1], [], []>} : vector<32x288xbf16>, vector<288x288xbf16>, vector<32x288xf32> -> vector<32x288xf32>
    %95 = vector.broadcast %23 : vector<32x1xf32> to vector<32x288xf32>
    %96 = arith.addf %94, %95 : vector<32x288xf32>
    %cst_56 = arith.constant 0.000000e+00 : f32
    %97 = vector.broadcast %cst_56 : f32 to vector<32x288xf32>
    %98 = arith.maximumf %96, %97 : vector<32x288xf32>
    %cst_57 = arith.constant 0.000000e+00 : f32
    %99 = vector.shape_cast %20 : vector<1x288xi1> to vector<1x288xi1>
    %100 = vector.broadcast %99 : vector<1x288xi1> to vector<32x288xi1>
    %101 = vector.broadcast %cst_57 : f32 to vector<32x288xf32>
    %102 = arith.select %100, %98, %101 : vector<32x288xi1>, vector<32x288xf32>
    %103 = arith.truncf %102 : vector<32x288xf32> to vector<32x288xbf16>
    %c0_58 = arith.constant 0 : index
    %c19_59 = arith.constant 19 : index
    %104 = vector.load %arg11[%c0_58, %c19_59] : memref<32x342xbf16, #tpu.memory_space<vmem>>, vector<32x288xbf16>
    tpu.vector_store %arg11[%c0_58, %c19_59], %103 {strides = array<i32>} : memref<32x342xbf16, #tpu.memory_space<vmem>>, vector<32x288xbf16>,
    %c0_60 = arith.constant 0 : index
    %c0_61 = arith.constant 0 : index
    %105 = vector.load %arg11[%c0_60, %c0_61] : memref<32x342xbf16, #tpu.memory_space<vmem>>, vector<32x288xbf16>
    %c0_62 = arith.constant 0 : index
    %c0_63 = arith.constant 0 : index
    %106 = vector.load %arg12[%c0_62, %c0_63] : memref<288x288xbf16, #tpu.memory_space<vmem>>, vector<32x288xbf16>
    tpu.vector_store %arg12[%c0_62, %c0_63], %105 {strides = array<i32>} : memref<288x288xbf16, #tpu.memory_space<vmem>>, vector<32x288xbf16>,
    %c0_64 = arith.constant 0 : index
    %c1_65 = arith.constant 1 : index
    %107 = vector.load %arg11[%c0_64, %c1_65] : memref<32x342xbf16, #tpu.memory_space<vmem>>, vector<32x288xbf16>
    %c32_66 = arith.constant 32 : index
    %c0_67 = arith.constant 0 : index
    %108 = vector.load %arg12[%c32_66, %c0_67] : memref<288x288xbf16, #tpu.memory_space<vmem>>, vector<32x288xbf16>
    tpu.vector_store %arg12[%c32_66, %c0_67], %107 {strides = array<i32>} : memref<288x288xbf16, #tpu.memory_space<vmem>>, vector<32x288xbf16>,
    %c0_68 = arith.constant 0 : index
    %c2_69 = arith.constant 2 : index
    %109 = vector.load %arg11[%c0_68, %c2_69] : memref<32x342xbf16, #tpu.memory_space<vmem>>, vector<32x288xbf16>
    %c64_70 = arith.constant 64 : index
    %c0_71 = arith.constant 0 : index
    %110 = vector.load %arg12[%c64_70, %c0_71] : memref<288x288xbf16, #tpu.memory_space<vmem>>, vector<32x288xbf16>
    tpu.vector_store %arg12[%c64_70, %c0_71], %109 {strides = array<i32>} : memref<288x288xbf16, #tpu.memory_space<vmem>>, vector<32x288xbf16>,
    %c0_72 = arith.constant 0 : index
    %c18_73 = arith.constant 18 : index
    %111 = vector.load %arg11[%c0_72, %c18_73] : memref<32x342xbf16, #tpu.memory_space<vmem>>, vector<32x288xbf16>
    %c96_74 = arith.constant 96 : index
    %c0_75 = arith.constant 0 : index
    %112 = vector.load %arg12[%c96_74, %c0_75] : memref<288x288xbf16, #tpu.memory_space<vmem>>, vector<32x288xbf16>
    tpu.vector_store %arg12[%c96_74, %c0_75], %111 {strides = array<i32>} : memref<288x288xbf16, #tpu.memory_space<vmem>>, vector<32x288xbf16>,
    %c0_76 = arith.constant 0 : index
    %c19_77 = arith.constant 19 : index
    %113 = vector.load %arg11[%c0_76, %c19_77] : memref<32x342xbf16, #tpu.memory_space<vmem>>, vector<32x288xbf16>
    %c128_78 = arith.constant 128 : index
    %c0_79 = arith.constant 0 : index
    %114 = vector.load %arg12[%c128_78, %c0_79] : memref<288x288xbf16, #tpu.memory_space<vmem>>, vector<32x288xbf16>
    tpu.vector_store %arg12[%c128_78, %c0_79], %113 {strides = array<i32>} : memref<288x288xbf16, #tpu.memory_space<vmem>>, vector<32x288xbf16>,
    %c0_80 = arith.constant 0 : index
    %c20_81 = arith.constant 20 : index
    %115 = vector.load %arg11[%c0_80, %c20_81] : memref<32x342xbf16, #tpu.memory_space<vmem>>, vector<32x288xbf16>
    %c160_82 = arith.constant 160 : index
    %c0_83 = arith.constant 0 : index
    %116 = vector.load %arg12[%c160_82, %c0_83] : memref<288x288xbf16, #tpu.memory_space<vmem>>, vector<32x288xbf16>
    tpu.vector_store %arg12[%c160_82, %c0_83], %115 {strides = array<i32>} : memref<288x288xbf16, #tpu.memory_space<vmem>>, vector<32x288xbf16>,
    %c0_84 = arith.constant 0 : index
    %c36_85 = arith.constant 36 : index
    %117 = vector.load %arg11[%c0_84, %c36_85] : memref<32x342xbf16, #tpu.memory_space<vmem>>, vector<32x288xbf16>
    %c192_86 = arith.constant 192 : index
    %c0_87 = arith.constant 0 : index
    %118 = vector.load %arg12[%c192_86, %c0_87] : memref<288x288xbf16, #tpu.memory_space<vmem>>, vector<32x288xbf16>
    tpu.vector_store %arg12[%c192_86, %c0_87], %117 {strides = array<i32>} : memref<288x288xbf16, #tpu.memory_space<vmem>>, vector<32x288xbf16>,
    %c0_88 = arith.constant 0 : index
    %c37_89 = arith.constant 37 : index
    %119 = vector.load %arg11[%c0_88, %c37_89] : memref<32x342xbf16, #tpu.memory_space<vmem>>, vector<32x288xbf16>
    %c224_90 = arith.constant 224 : index
    %c0_91 = arith.constant 0 : index
    %120 = vector.load %arg12[%c224_90, %c0_91] : memref<288x288xbf16, #tpu.memory_space<vmem>>, vector<32x288xbf16>
    tpu.vector_store %arg12[%c224_90, %c0_91], %119 {strides = array<i32>} : memref<288x288xbf16, #tpu.memory_space<vmem>>, vector<32x288xbf16>,
    %c0_92 = arith.constant 0 : index
    %c38_93 = arith.constant 38 : index
    %121 = vector.load %arg11[%c0_92, %c38_93] : memref<32x342xbf16, #tpu.memory_space<vmem>>, vector<32x288xbf16>
    %c256_94 = arith.constant 256 : index
    %c0_95 = arith.constant 0 : index
    %122 = vector.load %arg12[%c256_94, %c0_95] : memref<288x288xbf16, #tpu.memory_space<vmem>>, vector<32x288xbf16>
    tpu.vector_store %arg12[%c256_94, %c0_95], %121 {strides = array<i32>} : memref<288x288xbf16, #tpu.memory_space<vmem>>, vector<32x288xbf16>,
    %c0_96 = arith.constant 0 : index
    %c0_97 = arith.constant 0 : index
    %123 = vector.load %arg12[%c0_96, %c0_97] : memref<288x288xbf16, #tpu.memory_space<vmem>>, vector<288x288xbf16>
    %cst_98 = arith.constant dense<0.000000e+00> : vector<32x288xf32>
    %124 = tpu.matmul %22, %123, %cst_98 {dimension_numbers = #tpu.dot_dimension_numbers<[1], [0], [0], [1], [0, 0, 1, 1], [], []>} : vector<32x288xbf16>, vector<288x288xbf16>, vector<32x288xf32> -> vector<32x288xf32>
    %125 = vector.broadcast %24 : vector<32x1xf32> to vector<32x288xf32>
    %126 = arith.addf %124, %125 : vector<32x288xf32>
    %cst_99 = arith.constant 0.000000e+00 : f32
    %127 = vector.shape_cast %20 : vector<1x288xi1> to vector<1x288xi1>
    %128 = vector.broadcast %127 : vector<1x288xi1> to vector<32x288xi1>
    %129 = vector.broadcast %cst_99 : f32 to vector<32x288xf32>
    %130 = arith.select %128, %126, %129 : vector<32x288xi1>, vector<32x288xf32>
    %cst_100 = arith.constant dense<0.000000e+00> : vector<32xf32>
    %131 = vector.multi_reduction <add>, %130, %cst_100 [1] : vector<32x288xf32> to vector<32xf32>
    %132 = vector.shape_cast %131 : vector<32xf32> to vector<32x1xf32>
    %cst_101 = arith.constant 3.906250e-03 : f32
    %133 = vector.broadcast %cst_101 : f32 to vector<32x1xf32>
    %134 = arith.mulf %132, %133 : vector<32x1xf32>
    %c0_102 = arith.constant 0 : index
    %c0_103 = arith.constant 0 : index
    %135 = vector.load %arg6[%c0_102, %c0_103] : memref<2x32xf32, #tpu.memory_space<vmem>>, vector<2x32xf32>
    %cst_104 = arith.constant dense<0.000000e+00> : vector<2x1xf32>
    %136 = tpu.matmul %135, %134, %cst_104 {dimension_numbers = #tpu.dot_dimension_numbers<[1], [0], [0], [1], [0, 0, 1, 1], [], []>} : vector<2x32xf32>, vector<32x1xf32>, vector<2x1xf32> -> vector<2x1xf32>
    %c0_105 = arith.constant 0 : index
    %c0_106 = arith.constant 0 : index
    %137 = vector.load %arg7[%c0_105, %c0_106] : memref<2x1xf32, #tpu.memory_space<vmem>>, vector<2x1xf32>
    %138 = arith.addf %136, %137 : vector<2x1xf32>
    %cst_107 = arith.constant 0.000000e+00 : f32
    %139 = vector.broadcast %cst_107 : f32 to vector<2x1xf32>
    %140 = arith.maximumf %138, %139 : vector<2x1xf32>
    %c0_108 = arith.constant 0 : index
    %c0_109 = arith.constant 0 : index
    %141 = vector.load %arg8[%c0_108, %c0_109] : memref<32x2xf32, #tpu.memory_space<vmem>>, vector<32x2xf32>
    %cst_110 = arith.constant dense<0.000000e+00> : vector<32x1xf32>
    %142 = tpu.matmul %141, %140, %cst_110 {dimension_numbers = #tpu.dot_dimension_numbers<[1], [0], [0], [1], [0, 0, 1, 1], [], []>} : vector<32x2xf32>, vector<2x1xf32>, vector<32x1xf32> -> vector<32x1xf32>
    %c0_111 = arith.constant 0 : index
    %c0_112 = arith.constant 0 : index
    %143 = vector.load %arg9[%c0_111, %c0_112] : memref<32x1xf32, #tpu.memory_space<vmem>>, vector<32x1xf32>
    %144 = arith.addf %142, %143 : vector<32x1xf32>
    %145 = arith.negf %144 : vector<32x1xf32>
    %146 = math.exp %145 : vector<32x1xf32>
    %cst_113 = arith.constant 1.000000e+00 : f32
    %147 = vector.broadcast %cst_113 : f32 to vector<32x1xf32>
    %148 = arith.addf %147, %146 : vector<32x1xf32>
    %149 = arith.divf %147, %148 : vector<32x1xf32>
    %cst_114 = arith.constant 1.000000e+00 : f32
    %150 = vector.broadcast %cst_114 : f32 to vector<32x1xf32>
    %151 = arith.mulf %149, %150 : vector<32x1xf32>
    %152 = vector.broadcast %151 : vector<32x1xf32> to vector<32x288xf32>
    %153 = arith.mulf %126, %152 : vector<32x288xf32>
    %154 = vector.extract_strided_slice %153 {offsets = [0, 0], sizes = [32, 16], strides = [1, 1]} : vector<32x288xf32> to vector<32x16xf32>
    %155 = vector.extract_strided_slice %153 {offsets = [0, 18], sizes = [32, 16], strides = [1, 1]} : vector<32x288xf32> to vector<32x16xf32>
    %156 = vector.extract_strided_slice %153 {offsets = [0, 36], sizes = [32, 16], strides = [1, 1]} : vector<32x288xf32> to vector<32x16xf32>
    %157 = vector.extract_strided_slice %153 {offsets = [0, 54], sizes = [32, 16], strides = [1, 1]} : vector<32x288xf32> to vector<32x16xf32>
    %158 = vector.extract_strided_slice %153 {offsets = [0, 72], sizes = [32, 16], strides = [1, 1]} : vector<32x288xf32> to vector<32x16xf32>
    %159 = vector.extract_strided_slice %153 {offsets = [0, 90], sizes = [32, 16], strides = [1, 1]} : vector<32x288xf32> to vector<32x16xf32>
    %160 = vector.extract_strided_slice %153 {offsets = [0, 108], sizes = [32, 16], strides = [1, 1]} : vector<32x288xf32> to vector<32x16xf32>
    %161 = vector.extract_strided_slice %153 {offsets = [0, 126], sizes = [32, 16], strides = [1, 1]} : vector<32x288xf32> to vector<32x16xf32>
    %162 = vector.extract_strided_slice %153 {offsets = [0, 144], sizes = [32, 16], strides = [1, 1]} : vector<32x288xf32> to vector<32x16xf32>
    %163 = vector.extract_strided_slice %153 {offsets = [0, 162], sizes = [32, 16], strides = [1, 1]} : vector<32x288xf32> to vector<32x16xf32>
    %164 = vector.extract_strided_slice %153 {offsets = [0, 180], sizes = [32, 16], strides = [1, 1]} : vector<32x288xf32> to vector<32x16xf32>
    %165 = vector.extract_strided_slice %153 {offsets = [0, 198], sizes = [32, 16], strides = [1, 1]} : vector<32x288xf32> to vector<32x16xf32>
    %166 = vector.extract_strided_slice %153 {offsets = [0, 216], sizes = [32, 16], strides = [1, 1]} : vector<32x288xf32> to vector<32x16xf32>
    %167 = vector.extract_strided_slice %153 {offsets = [0, 234], sizes = [32, 16], strides = [1, 1]} : vector<32x288xf32> to vector<32x16xf32>
    %168 = vector.extract_strided_slice %153 {offsets = [0, 252], sizes = [32, 16], strides = [1, 1]} : vector<32x288xf32> to vector<32x16xf32>
    %169 = vector.extract_strided_slice %153 {offsets = [0, 270], sizes = [32, 16], strides = [1, 1]} : vector<32x288xf32> to vector<32x16xf32>
    %170 = tpu.concatenate %154, %155, %156, %157, %158, %159, %160, %161, %162, %163, %164, %165, %166, %167, %168, %169 in 1 : vector<32x16xf32>, vector<32x16xf32>, vector<32x16xf32>, vector<32x16xf32>, vector<32x16xf32>, vector<32x16xf32>, vector<32x16xf32>, vector<32x16xf32>, vector<32x16xf32>, vector<32x16xf32>, vector<32x16xf32>, vector<32x16xf32>, vector<32x16xf32>, vector<32x16xf32>, vector<32x16xf32>, vector<32x16xf32> -> vector<32x256xf32>
    %171 = arith.addf %170, %26 : vector<32x256xf32>
    %c0_115 = arith.constant 0 : index
    %c0_116 = arith.constant 0 : index
    %c0_117 = arith.constant 0 : index
    %172 = vector.load %arg10[%c0_115, %c0_116, %c0_117] : memref<2x32x256xf32, #tpu.memory_space<vmem>>, vector<1x32x256xf32>
    %173 = vector.shape_cast %172 : vector<1x32x256xf32> to vector<32x256xf32>
    %174 = vector.shape_cast %171 : vector<32x256xf32> to vector<1x32x256xf32>
    tpu.vector_store %arg10[%c0_115, %c0_116, %c0_117], %174 {strides = array<i32>} : memref<2x32x256xf32, #tpu.memory_space<vmem>>, vector<1x32x256xf32>,
    %c1_118 = arith.constant 1 : index
    %c0_119 = arith.constant 0 : index
    %c0_120 = arith.constant 0 : index
    %175 = vector.load %arg1[%c1_118, %c0_119, %c0_120] : memref<2x32x256xf32, #tpu.memory_space<vmem>>, vector<1x32x256xf32>
    %176 = vector.shape_cast %175 : vector<1x32x256xf32> to vector<32x256xf32>
    %177 = vector.extract_strided_slice %176 {offsets = [0, 0], sizes = [32, 16], strides = [1, 1]} : vector<32x256xf32> to vector<32x16xf32>
    %178 = arith.truncf %177 : vector<32x16xf32> to vector<32x16xbf16>
    %c0_121 = arith.constant 0 : index
    %c19_122 = arith.constant 19 : index
    %179 = vector.load %arg11[%c0_121, %c19_122] : memref<32x342xbf16, #tpu.memory_space<vmem>>, vector<32x16xbf16>
    tpu.vector_store %arg11[%c0_121, %c19_122], %178 {strides = array<i32>} : memref<32x342xbf16, #tpu.memory_space<vmem>>, vector<32x16xbf16>,
    %180 = vector.extract_strided_slice %176 {offsets = [0, 16], sizes = [32, 16], strides = [1, 1]} : vector<32x256xf32> to vector<32x16xf32>
    %181 = arith.truncf %180 : vector<32x16xf32> to vector<32x16xbf16>
    %c0_123 = arith.constant 0 : index
    %c37_124 = arith.constant 37 : index
    %182 = vector.load %arg11[%c0_123, %c37_124] : memref<32x342xbf16, #tpu.memory_space<vmem>>, vector<32x16xbf16>
    tpu.vector_store %arg11[%c0_123, %c37_124], %181 {strides = array<i32>} : memref<32x342xbf16, #tpu.memory_space<vmem>>, vector<32x16xbf16>,
    %183 = vector.extract_strided_slice %176 {offsets = [0, 32], sizes = [32, 16], strides = [1, 1]} : vector<32x256xf32> to vector<32x16xf32>
    %184 = arith.truncf %183 : vector<32x16xf32> to vector<32x16xbf16>
    %c0_125 = arith.constant 0 : index
    %c55_126 = arith.constant 55 : index
    %185 = vector.load %arg11[%c0_125, %c55_126] : memref<32x342xbf16, #tpu.memory_space<vmem>>, vector<32x16xbf16>
    tpu.vector_store %arg11[%c0_125, %c55_126], %184 {strides = array<i32>} : memref<32x342xbf16, #tpu.memory_space<vmem>>, vector<32x16xbf16>,
    %186 = vector.extract_strided_slice %176 {offsets = [0, 48], sizes = [32, 16], strides = [1, 1]} : vector<32x256xf32> to vector<32x16xf32>
    %187 = arith.truncf %186 : vector<32x16xf32> to vector<32x16xbf16>
    %c0_127 = arith.constant 0 : index
    %c73_128 = arith.constant 73 : index
    %188 = vector.load %arg11[%c0_127, %c73_128] : memref<32x342xbf16, #tpu.memory_space<vmem>>, vector<32x16xbf16>
    tpu.vector_store %arg11[%c0_127, %c73_128], %187 {strides = array<i32>} : memref<32x342xbf16, #tpu.memory_space<vmem>>, vector<32x16xbf16>,
    %189 = vector.extract_strided_slice %176 {offsets = [0, 64], sizes = [32, 16], strides = [1, 1]} : vector<32x256xf32> to vector<32x16xf32>
    %190 = arith.truncf %189 : vector<32x16xf32> to vector<32x16xbf16>
    %c0_129 = arith.constant 0 : index
    %c91_130 = arith.constant 91 : index
    %191 = vector.load %arg11[%c0_129, %c91_130] : memref<32x342xbf16, #tpu.memory_space<vmem>>, vector<32x16xbf16>
    tpu.vector_store %arg11[%c0_129, %c91_130], %190 {strides = array<i32>} : memref<32x342xbf16, #tpu.memory_space<vmem>>, vector<32x16xbf16>,
    %192 = vector.extract_strided_slice %176 {offsets = [0, 80], sizes = [32, 16], strides = [1, 1]} : vector<32x256xf32> to vector<32x16xf32>
    %193 = arith.truncf %192 : vector<32x16xf32> to vector<32x16xbf16>
    %c0_131 = arith.constant 0 : index
    %c109_132 = arith.constant 109 : index
    %194 = vector.load %arg11[%c0_131, %c109_132] : memref<32x342xbf16, #tpu.memory_space<vmem>>, vector<32x16xbf16>
    tpu.vector_store %arg11[%c0_131, %c109_132], %193 {strides = array<i32>} : memref<32x342xbf16, #tpu.memory_space<vmem>>, vector<32x16xbf16>,
    %195 = vector.extract_strided_slice %176 {offsets = [0, 96], sizes = [32, 16], strides = [1, 1]} : vector<32x256xf32> to vector<32x16xf32>
    %196 = arith.truncf %195 : vector<32x16xf32> to vector<32x16xbf16>
    %c0_133 = arith.constant 0 : index
    %c127_134 = arith.constant 127 : index
    %197 = vector.load %arg11[%c0_133, %c127_134] : memref<32x342xbf16, #tpu.memory_space<vmem>>, vector<32x16xbf16>
    tpu.vector_store %arg11[%c0_133, %c127_134], %196 {strides = array<i32>} : memref<32x342xbf16, #tpu.memory_space<vmem>>, vector<32x16xbf16>,
    %198 = vector.extract_strided_slice %176 {offsets = [0, 112], sizes = [32, 16], strides = [1, 1]} : vector<32x256xf32> to vector<32x16xf32>
    %199 = arith.truncf %198 : vector<32x16xf32> to vector<32x16xbf16>
    %c0_135 = arith.constant 0 : index
    %c145_136 = arith.constant 145 : index
    %200 = vector.load %arg11[%c0_135, %c145_136] : memref<32x342xbf16, #tpu.memory_space<vmem>>, vector<32x16xbf16>
    tpu.vector_store %arg11[%c0_135, %c145_136], %199 {strides = array<i32>} : memref<32x342xbf16, #tpu.memory_space<vmem>>, vector<32x16xbf16>,
    %201 = vector.extract_strided_slice %176 {offsets = [0, 128], sizes = [32, 16], strides = [1, 1]} : vector<32x256xf32> to vector<32x16xf32>
    %202 = arith.truncf %201 : vector<32x16xf32> to vector<32x16xbf16>
    %c0_137 = arith.constant 0 : index
    %c163_138 = arith.constant 163 : index
    %203 = vector.load %arg11[%c0_137, %c163_138] : memref<32x342xbf16, #tpu.memory_space<vmem>>, vector<32x16xbf16>
    tpu.vector_store %arg11[%c0_137, %c163_138], %202 {strides = array<i32>} : memref<32x342xbf16, #tpu.memory_space<vmem>>, vector<32x16xbf16>,
    %204 = vector.extract_strided_slice %176 {offsets = [0, 144], sizes = [32, 16], strides = [1, 1]} : vector<32x256xf32> to vector<32x16xf32>
    %205 = arith.truncf %204 : vector<32x16xf32> to vector<32x16xbf16>
    %c0_139 = arith.constant 0 : index
    %c181_140 = arith.constant 181 : index
    %206 = vector.load %arg11[%c0_139, %c181_140] : memref<32x342xbf16, #tpu.memory_space<vmem>>, vector<32x16xbf16>
    tpu.vector_store %arg11[%c0_139, %c181_140], %205 {strides = array<i32>} : memref<32x342xbf16, #tpu.memory_space<vmem>>, vector<32x16xbf16>,
    %207 = vector.extract_strided_slice %176 {offsets = [0, 160], sizes = [32, 16], strides = [1, 1]} : vector<32x256xf32> to vector<32x16xf32>
    %208 = arith.truncf %207 : vector<32x16xf32> to vector<32x16xbf16>
    %c0_141 = arith.constant 0 : index
    %c199_142 = arith.constant 199 : index
    %209 = vector.load %arg11[%c0_141, %c199_142] : memref<32x342xbf16, #tpu.memory_space<vmem>>, vector<32x16xbf16>
    tpu.vector_store %arg11[%c0_141, %c199_142], %208 {strides = array<i32>} : memref<32x342xbf16, #tpu.memory_space<vmem>>, vector<32x16xbf16>,
    %210 = vector.extract_strided_slice %176 {offsets = [0, 176], sizes = [32, 16], strides = [1, 1]} : vector<32x256xf32> to vector<32x16xf32>
    %211 = arith.truncf %210 : vector<32x16xf32> to vector<32x16xbf16>
    %c0_143 = arith.constant 0 : index
    %c217_144 = arith.constant 217 : index
    %212 = vector.load %arg11[%c0_143, %c217_144] : memref<32x342xbf16, #tpu.memory_space<vmem>>, vector<32x16xbf16>
    tpu.vector_store %arg11[%c0_143, %c217_144], %211 {strides = array<i32>} : memref<32x342xbf16, #tpu.memory_space<vmem>>, vector<32x16xbf16>,
    %213 = vector.extract_strided_slice %176 {offsets = [0, 192], sizes = [32, 16], strides = [1, 1]} : vector<32x256xf32> to vector<32x16xf32>
    %214 = arith.truncf %213 : vector<32x16xf32> to vector<32x16xbf16>
    %c0_145 = arith.constant 0 : index
    %c235_146 = arith.constant 235 : index
    %215 = vector.load %arg11[%c0_145, %c235_146] : memref<32x342xbf16, #tpu.memory_space<vmem>>, vector<32x16xbf16>
    tpu.vector_store %arg11[%c0_145, %c235_146], %214 {strides = array<i32>} : memref<32x342xbf16, #tpu.memory_space<vmem>>, vector<32x16xbf16>,
    %216 = vector.extract_strided_slice %176 {offsets = [0, 208], sizes = [32, 16], strides = [1, 1]} : vector<32x256xf32> to vector<32x16xf32>
    %217 = arith.truncf %216 : vector<32x16xf32> to vector<32x16xbf16>
    %c0_147 = arith.constant 0 : index
    %c253_148 = arith.constant 253 : index
    %218 = vector.load %arg11[%c0_147, %c253_148] : memref<32x342xbf16, #tpu.memory_space<vmem>>, vector<32x16xbf16>
    tpu.vector_store %arg11[%c0_147, %c253_148], %217 {strides = array<i32>} : memref<32x342xbf16, #tpu.memory_space<vmem>>, vector<32x16xbf16>,
    %219 = vector.extract_strided_slice %176 {offsets = [0, 224], sizes = [32, 16], strides = [1, 1]} : vector<32x256xf32> to vector<32x16xf32>
    %220 = arith.truncf %219 : vector<32x16xf32> to vector<32x16xbf16>
    %c0_149 = arith.constant 0 : index
    %c271_150 = arith.constant 271 : index
    %221 = vector.load %arg11[%c0_149, %c271_150] : memref<32x342xbf16, #tpu.memory_space<vmem>>, vector<32x16xbf16>
    tpu.vector_store %arg11[%c0_149, %c271_150], %220 {strides = array<i32>} : memref<32x342xbf16, #tpu.memory_space<vmem>>, vector<32x16xbf16>,
    %222 = vector.extract_strided_slice %176 {offsets = [0, 240], sizes = [32, 16], strides = [1, 1]} : vector<32x256xf32> to vector<32x16xf32>
    %223 = arith.truncf %222 : vector<32x16xf32> to vector<32x16xbf16>
    %c0_151 = arith.constant 0 : index
    %c289_152 = arith.constant 289 : index
    %224 = vector.load %arg11[%c0_151, %c289_152] : memref<32x342xbf16, #tpu.memory_space<vmem>>, vector<32x16xbf16>
    tpu.vector_store %arg11[%c0_151, %c289_152], %223 {strides = array<i32>} : memref<32x342xbf16, #tpu.memory_space<vmem>>, vector<32x16xbf16>,
    %c0_153 = arith.constant 0 : index
    %c0_154 = arith.constant 0 : index
    %225 = vector.load %arg11[%c0_153, %c0_154] : memref<32x342xbf16, #tpu.memory_space<vmem>>, vector<32x288xbf16>
    %c0_155 = arith.constant 0 : index
    %c0_156 = arith.constant 0 : index
    %226 = vector.load %arg12[%c0_155, %c0_156] : memref<288x288xbf16, #tpu.memory_space<vmem>>, vector<32x288xbf16>
    tpu.vector_store %arg12[%c0_155, %c0_156], %225 {strides = array<i32>} : memref<288x288xbf16, #tpu.memory_space<vmem>>, vector<32x288xbf16>,
    %c0_157 = arith.constant 0 : index
    %c1_158 = arith.constant 1 : index
    %227 = vector.load %arg11[%c0_157, %c1_158] : memref<32x342xbf16, #tpu.memory_space<vmem>>, vector<32x288xbf16>
    %c32_159 = arith.constant 32 : index
    %c0_160 = arith.constant 0 : index
    %228 = vector.load %arg12[%c32_159, %c0_160] : memref<288x288xbf16, #tpu.memory_space<vmem>>, vector<32x288xbf16>
    tpu.vector_store %arg12[%c32_159, %c0_160], %227 {strides = array<i32>} : memref<288x288xbf16, #tpu.memory_space<vmem>>, vector<32x288xbf16>,
    %c0_161 = arith.constant 0 : index
    %c2_162 = arith.constant 2 : index
    %229 = vector.load %arg11[%c0_161, %c2_162] : memref<32x342xbf16, #tpu.memory_space<vmem>>, vector<32x288xbf16>
    %c64_163 = arith.constant 64 : index
    %c0_164 = arith.constant 0 : index
    %230 = vector.load %arg12[%c64_163, %c0_164] : memref<288x288xbf16, #tpu.memory_space<vmem>>, vector<32x288xbf16>
    tpu.vector_store %arg12[%c64_163, %c0_164], %229 {strides = array<i32>} : memref<288x288xbf16, #tpu.memory_space<vmem>>, vector<32x288xbf16>,
    %c0_165 = arith.constant 0 : index
    %c18_166 = arith.constant 18 : index
    %231 = vector.load %arg11[%c0_165, %c18_166] : memref<32x342xbf16, #tpu.memory_space<vmem>>, vector<32x288xbf16>
    %c96_167 = arith.constant 96 : index
    %c0_168 = arith.constant 0 : index
    %232 = vector.load %arg12[%c96_167, %c0_168] : memref<288x288xbf16, #tpu.memory_space<vmem>>, vector<32x288xbf16>
    tpu.vector_store %arg12[%c96_167, %c0_168], %231 {strides = array<i32>} : memref<288x288xbf16, #tpu.memory_space<vmem>>, vector<32x288xbf16>,
    %c0_169 = arith.constant 0 : index
    %c19_170 = arith.constant 19 : index
    %233 = vector.load %arg11[%c0_169, %c19_170] : memref<32x342xbf16, #tpu.memory_space<vmem>>, vector<32x288xbf16>
    %c128_171 = arith.constant 128 : index
    %c0_172 = arith.constant 0 : index
    %234 = vector.load %arg12[%c128_171, %c0_172] : memref<288x288xbf16, #tpu.memory_space<vmem>>, vector<32x288xbf16>
    tpu.vector_store %arg12[%c128_171, %c0_172], %233 {strides = array<i32>} : memref<288x288xbf16, #tpu.memory_space<vmem>>, vector<32x288xbf16>,
    %c0_173 = arith.constant 0 : index
    %c20_174 = arith.constant 20 : index
    %235 = vector.load %arg11[%c0_173, %c20_174] : memref<32x342xbf16, #tpu.memory_space<vmem>>, vector<32x288xbf16>
    %c160_175 = arith.constant 160 : index
    %c0_176 = arith.constant 0 : index
    %236 = vector.load %arg12[%c160_175, %c0_176] : memref<288x288xbf16, #tpu.memory_space<vmem>>, vector<32x288xbf16>
    tpu.vector_store %arg12[%c160_175, %c0_176], %235 {strides = array<i32>} : memref<288x288xbf16, #tpu.memory_space<vmem>>, vector<32x288xbf16>,
    %c0_177 = arith.constant 0 : index
    %c36_178 = arith.constant 36 : index
    %237 = vector.load %arg11[%c0_177, %c36_178] : memref<32x342xbf16, #tpu.memory_space<vmem>>, vector<32x288xbf16>
    %c192_179 = arith.constant 192 : index
    %c0_180 = arith.constant 0 : index
    %238 = vector.load %arg12[%c192_179, %c0_180] : memref<288x288xbf16, #tpu.memory_space<vmem>>, vector<32x288xbf16>
    tpu.vector_store %arg12[%c192_179, %c0_180], %237 {strides = array<i32>} : memref<288x288xbf16, #tpu.memory_space<vmem>>, vector<32x288xbf16>,
    %c0_181 = arith.constant 0 : index
    %c37_182 = arith.constant 37 : index
    %239 = vector.load %arg11[%c0_181, %c37_182] : memref<32x342xbf16, #tpu.memory_space<vmem>>, vector<32x288xbf16>
    %c224_183 = arith.constant 224 : index
    %c0_184 = arith.constant 0 : index
    %240 = vector.load %arg12[%c224_183, %c0_184] : memref<288x288xbf16, #tpu.memory_space<vmem>>, vector<32x288xbf16>
    tpu.vector_store %arg12[%c224_183, %c0_184], %239 {strides = array<i32>} : memref<288x288xbf16, #tpu.memory_space<vmem>>, vector<32x288xbf16>,
    %c0_185 = arith.constant 0 : index
    %c38_186 = arith.constant 38 : index
    %241 = vector.load %arg11[%c0_185, %c38_186] : memref<32x342xbf16, #tpu.memory_space<vmem>>, vector<32x288xbf16>
    %c256_187 = arith.constant 256 : index
    %c0_188 = arith.constant 0 : index
    %242 = vector.load %arg12[%c256_187, %c0_188] : memref<288x288xbf16, #tpu.memory_space<vmem>>, vector<32x288xbf16>
    tpu.vector_store %arg12[%c256_187, %c0_188], %241 {strides = array<i32>} : memref<288x288xbf16, #tpu.memory_space<vmem>>, vector<32x288xbf16>,
    %c0_189 = arith.constant 0 : index
    %c0_190 = arith.constant 0 : index
    %243 = vector.load %arg12[%c0_189, %c0_190] : memref<288x288xbf16, #tpu.memory_space<vmem>>, vector<288x288xbf16>
    %cst_191 = arith.constant dense<0.000000e+00> : vector<32x288xf32>
    %244 = tpu.matmul %21, %243, %cst_191 {dimension_numbers = #tpu.dot_dimension_numbers<[1], [0], [0], [1], [0, 0, 1, 1], [], []>} : vector<32x288xbf16>, vector<288x288xbf16>, vector<32x288xf32> -> vector<32x288xf32>
    %245 = vector.broadcast %23 : vector<32x1xf32> to vector<32x288xf32>
    %246 = arith.addf %244, %245 : vector<32x288xf32>
    %cst_192 = arith.constant 0.000000e+00 : f32
    %247 = vector.broadcast %cst_192 : f32 to vector<32x288xf32>
    %248 = arith.maximumf %246, %247 : vector<32x288xf32>
    %cst_193 = arith.constant 0.000000e+00 : f32
    %249 = vector.shape_cast %20 : vector<1x288xi1> to vector<1x288xi1>
    %250 = vector.broadcast %249 : vector<1x288xi1> to vector<32x288xi1>
    %251 = vector.broadcast %cst_193 : f32 to vector<32x288xf32>
    %252 = arith.select %250, %248, %251 : vector<32x288xi1>, vector<32x288xf32>
    %253 = arith.truncf %252 : vector<32x288xf32> to vector<32x288xbf16>
    %c0_194 = arith.constant 0 : index
    %c19_195 = arith.constant 19 : index
    %254 = vector.load %arg11[%c0_194, %c19_195] : memref<32x342xbf16, #tpu.memory_space<vmem>>, vector<32x288xbf16>
    tpu.vector_store %arg11[%c0_194, %c19_195], %253 {strides = array<i32>} : memref<32x342xbf16, #tpu.memory_space<vmem>>, vector<32x288xbf16>,
    %c0_196 = arith.constant 0 : index
    %c0_197 = arith.constant 0 : index
    %255 = vector.load %arg11[%c0_196, %c0_197] : memref<32x342xbf16, #tpu.memory_space<vmem>>, vector<32x288xbf16>
    %c0_198 = arith.constant 0 : index
    %c0_199 = arith.constant 0 : index
    %256 = vector.load %arg12[%c0_198, %c0_199] : memref<288x288xbf16, #tpu.memory_space<vmem>>, vector<32x288xbf16>
    tpu.vector_store %arg12[%c0_198, %c0_199], %255 {strides = array<i32>} : memref<288x288xbf16, #tpu.memory_space<vmem>>, vector<32x288xbf16>,
    %c0_200 = arith.constant 0 : index
    %c1_201 = arith.constant 1 : index
    %257 = vector.load %arg11[%c0_200, %c1_201] : memref<32x342xbf16, #tpu.memory_space<vmem>>, vector<32x288xbf16>
    %c32_202 = arith.constant 32 : index
    %c0_203 = arith.constant 0 : index
    %258 = vector.load %arg12[%c32_202, %c0_203] : memref<288x288xbf16, #tpu.memory_space<vmem>>, vector<32x288xbf16>
    tpu.vector_store %arg12[%c32_202, %c0_203], %257 {strides = array<i32>} : memref<288x288xbf16, #tpu.memory_space<vmem>>, vector<32x288xbf16>,
    %c0_204 = arith.constant 0 : index
    %c2_205 = arith.constant 2 : index
    %259 = vector.load %arg11[%c0_204, %c2_205] : memref<32x342xbf16, #tpu.memory_space<vmem>>, vector<32x288xbf16>
    %c64_206 = arith.constant 64 : index
    %c0_207 = arith.constant 0 : index
    %260 = vector.load %arg12[%c64_206, %c0_207] : memref<288x288xbf16, #tpu.memory_space<vmem>>, vector<32x288xbf16>
    tpu.vector_store %arg12[%c64_206, %c0_207], %259 {strides = array<i32>} : memref<288x288xbf16, #tpu.memory_space<vmem>>, vector<32x288xbf16>,
    %c0_208 = arith.constant 0 : index
    %c18_209 = arith.constant 18 : index
    %261 = vector.load %arg11[%c0_208, %c18_209] : memref<32x342xbf16, #tpu.memory_space<vmem>>, vector<32x288xbf16>
    %c96_210 = arith.constant 96 : index
    %c0_211 = arith.constant 0 : index
    %262 = vector.load %arg12[%c96_210, %c0_211] : memref<288x288xbf16, #tpu.memory_space<vmem>>, vector<32x288xbf16>
    tpu.vector_store %arg12[%c96_210, %c0_211], %261 {strides = array<i32>} : memref<288x288xbf16, #tpu.memory_space<vmem>>, vector<32x288xbf16>,
    %c0_212 = arith.constant 0 : index
    %c19_213 = arith.constant 19 : index
    %263 = vector.load %arg11[%c0_212, %c19_213] : memref<32x342xbf16, #tpu.memory_space<vmem>>, vector<32x288xbf16>
    %c128_214 = arith.constant 128 : index
    %c0_215 = arith.constant 0 : index
    %264 = vector.load %arg12[%c128_214, %c0_215] : memref<288x288xbf16, #tpu.memory_space<vmem>>, vector<32x288xbf16>
    tpu.vector_store %arg12[%c128_214, %c0_215], %263 {strides = array<i32>} : memref<288x288xbf16, #tpu.memory_space<vmem>>, vector<32x288xbf16>,
    %c0_216 = arith.constant 0 : index
    %c20_217 = arith.constant 20 : index
    %265 = vector.load %arg11[%c0_216, %c20_217] : memref<32x342xbf16, #tpu.memory_space<vmem>>, vector<32x288xbf16>
    %c160_218 = arith.constant 160 : index
    %c0_219 = arith.constant 0 : index
    %266 = vector.load %arg12[%c160_218, %c0_219] : memref<288x288xbf16, #tpu.memory_space<vmem>>, vector<32x288xbf16>
    tpu.vector_store %arg12[%c160_218, %c0_219], %265 {strides = array<i32>} : memref<288x288xbf16, #tpu.memory_space<vmem>>, vector<32x288xbf16>,
    %c0_220 = arith.constant 0 : index
    %c36_221 = arith.constant 36 : index
    %267 = vector.load %arg11[%c0_220, %c36_221] : memref<32x342xbf16, #tpu.memory_space<vmem>>, vector<32x288xbf16>
    %c192_222 = arith.constant 192 : index
    %c0_223 = arith.constant 0 : index
    %268 = vector.load %arg12[%c192_222, %c0_223] : memref<288x288xbf16, #tpu.memory_space<vmem>>, vector<32x288xbf16>
    tpu.vector_store %arg12[%c192_222, %c0_223], %267 {strides = array<i32>} : memref<288x288xbf16, #tpu.memory_space<vmem>>, vector<32x288xbf16>,
    %c0_224 = arith.constant 0 : index
    %c37_225 = arith.constant 37 : index
    %269 = vector.load %arg11[%c0_224, %c37_225] : memref<32x342xbf16, #tpu.memory_space<vmem>>, vector<32x288xbf16>
    %c224_226 = arith.constant 224 : index
    %c0_227 = arith.constant 0 : index
    %270 = vector.load %arg12[%c224_226, %c0_227] : memref<288x288xbf16, #tpu.memory_space<vmem>>, vector<32x288xbf16>
    tpu.vector_store %arg12[%c224_226, %c0_227], %269 {strides = array<i32>} : memref<288x288xbf16, #tpu.memory_space<vmem>>, vector<32x288xbf16>,
    %c0_228 = arith.constant 0 : index
    %c38_229 = arith.constant 38 : index
    %271 = vector.load %arg11[%c0_228, %c38_229] : memref<32x342xbf16, #tpu.memory_space<vmem>>, vector<32x288xbf16>
    %c256_230 = arith.constant 256 : index
    %c0_231 = arith.constant 0 : index
    %272 = vector.load %arg12[%c256_230, %c0_231] : memref<288x288xbf16, #tpu.memory_space<vmem>>, vector<32x288xbf16>
    tpu.vector_store %arg12[%c256_230, %c0_231], %271 {strides = array<i32>} : memref<288x288xbf16, #tpu.memory_space<vmem>>, vector<32x288xbf16>,
    %c0_232 = arith.constant 0 : index
    %c0_233 = arith.constant 0 : index
    %273 = vector.load %arg12[%c0_232, %c0_233] : memref<288x288xbf16, #tpu.memory_space<vmem>>, vector<288x288xbf16>
    %cst_234 = arith.constant dense<0.000000e+00> : vector<32x288xf32>
    %274 = tpu.matmul %22, %273, %cst_234 {dimension_numbers = #tpu.dot_dimension_numbers<[1], [0], [0], [1], [0, 0, 1, 1], [], []>} : vector<32x288xbf16>, vector<288x288xbf16>, vector<32x288xf32> -> vector<32x288xf32>
    %275 = vector.broadcast %24 : vector<32x1xf32> to vector<32x288xf32>
    %276 = arith.addf %274, %275 : vector<32x288xf32>
    %cst_235 = arith.constant 0.000000e+00 : f32
    %277 = vector.shape_cast %20 : vector<1x288xi1> to vector<1x288xi1>
    %278 = vector.broadcast %277 : vector<1x288xi1> to vector<32x288xi1>
    %279 = vector.broadcast %cst_235 : f32 to vector<32x288xf32>
    %280 = arith.select %278, %276, %279 : vector<32x288xi1>, vector<32x288xf32>
    %cst_236 = arith.constant dense<0.000000e+00> : vector<32xf32>
    %281 = vector.multi_reduction <add>, %280, %cst_236 [1] : vector<32x288xf32> to vector<32xf32>
    %282 = vector.shape_cast %281 : vector<32xf32> to vector<32x1xf32>
    %cst_237 = arith.constant 3.906250e-03 : f32
    %283 = vector.broadcast %cst_237 : f32 to vector<32x1xf32>
    %284 = arith.mulf %282, %283 : vector<32x1xf32>
    %c0_238 = arith.constant 0 : index
    %c0_239 = arith.constant 0 : index
    %285 = vector.load %arg6[%c0_238, %c0_239] : memref<2x32xf32, #tpu.memory_space<vmem>>, vector<2x32xf32>
    %cst_240 = arith.constant dense<0.000000e+00> : vector<2x1xf32>
    %286 = tpu.matmul %285, %284, %cst_240 {dimension_numbers = #tpu.dot_dimension_numbers<[1], [0], [0], [1], [0, 0, 1, 1], [], []>} : vector<2x32xf32>, vector<32x1xf32>, vector<2x1xf32> -> vector<2x1xf32>
    %c0_241 = arith.constant 0 : index
    %c0_242 = arith.constant 0 : index
    %287 = vector.load %arg7[%c0_241, %c0_242] : memref<2x1xf32, #tpu.memory_space<vmem>>, vector<2x1xf32>
    %288 = arith.addf %286, %287 : vector<2x1xf32>
    %cst_243 = arith.constant 0.000000e+00 : f32
    %289 = vector.broadcast %cst_243 : f32 to vector<2x1xf32>
    %290 = arith.maximumf %288, %289 : vector<2x1xf32>
    %c0_244 = arith.constant 0 : index
    %c0_245 = arith.constant 0 : index
    %291 = vector.load %arg8[%c0_244, %c0_245] : memref<32x2xf32, #tpu.memory_space<vmem>>, vector<32x2xf32>
    %cst_246 = arith.constant dense<0.000000e+00> : vector<32x1xf32>
    %292 = tpu.matmul %291, %290, %cst_246 {dimension_numbers = #tpu.dot_dimension_numbers<[1], [0], [0], [1], [0, 0, 1, 1], [], []>} : vector<32x2xf32>, vector<2x1xf32>, vector<32x1xf32> -> vector<32x1xf32>
    %c0_247 = arith.constant 0 : index
    %c0_248 = arith.constant 0 : index
    %293 = vector.load %arg9[%c0_247, %c0_248] : memref<32x1xf32, #tpu.memory_space<vmem>>, vector<32x1xf32>
    %294 = arith.addf %292, %293 : vector<32x1xf32>
    %295 = arith.negf %294 : vector<32x1xf32>
    %296 = math.exp %295 : vector<32x1xf32>
    %cst_249 = arith.constant 1.000000e+00 : f32
    %297 = vector.broadcast %cst_249 : f32 to vector<32x1xf32>
    %298 = arith.addf %297, %296 : vector<32x1xf32>
    %299 = arith.divf %297, %298 : vector<32x1xf32>
    %cst_250 = arith.constant 1.000000e+00 : f32
    %300 = vector.broadcast %cst_250 : f32 to vector<32x1xf32>
    %301 = arith.mulf %299, %300 : vector<32x1xf32>
    %302 = vector.broadcast %301 : vector<32x1xf32> to vector<32x288xf32>
    %303 = arith.mulf %276, %302 : vector<32x288xf32>
    %304 = vector.extract_strided_slice %303 {offsets = [0, 0], sizes = [32, 16], strides = [1, 1]} : vector<32x288xf32> to vector<32x16xf32>
    %305 = vector.extract_strided_slice %303 {offsets = [0, 18], sizes = [32, 16], strides = [1, 1]} : vector<32x288xf32> to vector<32x16xf32>
    %306 = vector.extract_strided_slice %303 {offsets = [0, 36], sizes = [32, 16], strides = [1, 1]} : vector<32x288xf32> to vector<32x16xf32>
    %307 = vector.extract_strided_slice %303 {offsets = [0, 54], sizes = [32, 16], strides = [1, 1]} : vector<32x288xf32> to vector<32x16xf32>
    %308 = vector.extract_strided_slice %303 {offsets = [0, 72], sizes = [32, 16], strides = [1, 1]} : vector<32x288xf32> to vector<32x16xf32>
    %309 = vector.extract_strided_slice %303 {offsets = [0, 90], sizes = [32, 16], strides = [1, 1]} : vector<32x288xf32> to vector<32x16xf32>
    %310 = vector.extract_strided_slice %303 {offsets = [0, 108], sizes = [32, 16], strides = [1, 1]} : vector<32x288xf32> to vector<32x16xf32>
    %311 = vector.extract_strided_slice %303 {offsets = [0, 126], sizes = [32, 16], strides = [1, 1]} : vector<32x288xf32> to vector<32x16xf32>
    %312 = vector.extract_strided_slice %303 {offsets = [0, 144], sizes = [32, 16], strides = [1, 1]} : vector<32x288xf32> to vector<32x16xf32>
    %313 = vector.extract_strided_slice %303 {offsets = [0, 162], sizes = [32, 16], strides = [1, 1]} : vector<32x288xf32> to vector<32x16xf32>
    %314 = vector.extract_strided_slice %303 {offsets = [0, 180], sizes = [32, 16], strides = [1, 1]} : vector<32x288xf32> to vector<32x16xf32>
    %315 = vector.extract_strided_slice %303 {offsets = [0, 198], sizes = [32, 16], strides = [1, 1]} : vector<32x288xf32> to vector<32x16xf32>
    %316 = vector.extract_strided_slice %303 {offsets = [0, 216], sizes = [32, 16], strides = [1, 1]} : vector<32x288xf32> to vector<32x16xf32>
    %317 = vector.extract_strided_slice %303 {offsets = [0, 234], sizes = [32, 16], strides = [1, 1]} : vector<32x288xf32> to vector<32x16xf32>
    %318 = vector.extract_strided_slice %303 {offsets = [0, 252], sizes = [32, 16], strides = [1, 1]} : vector<32x288xf32> to vector<32x16xf32>
    %319 = vector.extract_strided_slice %303 {offsets = [0, 270], sizes = [32, 16], strides = [1, 1]} : vector<32x288xf32> to vector<32x16xf32>
    %320 = tpu.concatenate %304, %305, %306, %307, %308, %309, %310, %311, %312, %313, %314, %315, %316, %317, %318, %319 in 1 : vector<32x16xf32>, vector<32x16xf32>, vector<32x16xf32>, vector<32x16xf32>, vector<32x16xf32>, vector<32x16xf32>, vector<32x16xf32>, vector<32x16xf32>, vector<32x16xf32>, vector<32x16xf32>, vector<32x16xf32>, vector<32x16xf32>, vector<32x16xf32>, vector<32x16xf32>, vector<32x16xf32>, vector<32x16xf32> -> vector<32x256xf32>
    %321 = arith.addf %320, %176 : vector<32x256xf32>
    %c1_251 = arith.constant 1 : index
    %c0_252 = arith.constant 0 : index
    %c0_253 = arith.constant 0 : index
    %322 = vector.load %arg10[%c1_251, %c0_252, %c0_253] : memref<2x32x256xf32, #tpu.memory_space<vmem>>, vector<1x32x256xf32>
    %323 = vector.shape_cast %322 : vector<1x32x256xf32> to vector<32x256xf32>
    %324 = vector.shape_cast %321 : vector<32x256xf32> to vector<1x32x256xf32>
    tpu.vector_store %arg10[%c1_251, %c0_252, %c0_253], %324 {strides = array<i32>} : memref<2x32x256xf32, #tpu.memory_space<vmem>>, vector<1x32x256xf32>,
    return
  }
  func.func @transform_0(%arg0: i32) -> (i32, i32, i32) {
    %c0_i32 = arith.constant 0 : i32
    %c0_i32_0 = arith.constant 0 : i32
    %c0_i32_1 = arith.constant 0 : i32
    return %arg0, %c0_i32, %c0_i32_0 : i32, i32, i32
  }
  func.func @transform_1(%arg0: i32) -> (i32, i32) {
    %c0_i32 = arith.constant 0 : i32
    %c0_i32_0 = arith.constant 0 : i32
    %c0_i32_1 = arith.constant 0 : i32
    return %c0_i32, %c0_i32_0 : i32, i32
  }
  func.func @transform_2(%arg0: i32) -> (i32, i32) {
    %c0_i32 = arith.constant 0 : i32
    %c0_i32_0 = arith.constant 0 : i32
    %c0_i32_1 = arith.constant 0 : i32
    return %c0_i32, %c0_i32_0 : i32, i32
  }
  func.func @transform_3(%arg0: i32) -> (i32, i32) {
    %c0_i32 = arith.constant 0 : i32
    %c0_i32_0 = arith.constant 0 : i32
    %c0_i32_1 = arith.constant 0 : i32
    return %c0_i32, %c0_i32_0 : i32, i32
  }
  func.func @transform_4(%arg0: i32) -> (i32, i32) {
    %c0_i32 = arith.constant 0 : i32
    %c0_i32_0 = arith.constant 0 : i32
    %c0_i32_1 = arith.constant 0 : i32
    return %c0_i32, %c0_i32_0 : i32, i32
  }
  func.func @transform_5(%arg0: i32) -> (i32, i32) {
    %c0_i32 = arith.constant 0 : i32
    %c0_i32_0 = arith.constant 0 : i32
    %c0_i32_1 = arith.constant 0 : i32
    return %c0_i32, %c0_i32_0 : i32, i32
  }
  func.func @transform_6(%arg0: i32) -> (i32, i32) {
    %c0_i32 = arith.constant 0 : i32
    %c0_i32_0 = arith.constant 0 : i32
    %c0_i32_1 = arith.constant 0 : i32
    return %c0_i32, %c0_i32_0 : i32, i32
  }
  func.func @transform_7(%arg0: i32) -> (i32, i32) {
    %c0_i32 = arith.constant 0 : i32
    %c0_i32_0 = arith.constant 0 : i32
    %c0_i32_1 = arith.constant 0 : i32
    return %c0_i32, %c0_i32_0 : i32, i32
  }
  func.func @transform_8(%arg0: i32) -> (i32, i32) {
    %c0_i32 = arith.constant 0 : i32
    %c0_i32_0 = arith.constant 0 : i32
    %c0_i32_1 = arith.constant 0 : i32
    return %c0_i32, %c0_i32_0 : i32, i32
  }
  func.func @transform_9(%arg0: i32) -> (i32, i32, i32) {
    %c0_i32 = arith.constant 0 : i32
    %c0_i32_0 = arith.constant 0 : i32
    %c0_i32_1 = arith.constant 0 : i32
    return %arg0, %c0_i32, %c0_i32_0 : i32, i32, i32
  }
}

</mosaic_0001>

<bundles_post_ra>
// kernel: rcab_pallas.1
= control target key start
LH: loop header
LB: loop body
LE: loop exit
PB: predicated region body
PF: predicated region fallthrough
CT: control target
= control target key end

     0   :  { %s8140_s30 = smov 0   ;;  %s10992_s0 = inlined_call_operand.vmem [shape: f32[4,32,256], index: 0, kind: input, shape index: {}]   ;;  %s10993_s1 = inlined_call_operand.vmem [shape: bf16[32,288], index: 1, kind: input, shape index: {}]   ;;  %s10994_s2 = inlined_call_operand.vmem [shape: f32[32,1], index: 2, kind: input, shape index: {}]   ;;  %s10995_s3 = inlined_call_operand.vmem [shape: bf16[32,288], index: 3, kind: input, shape index: {}]   ;;  %s10996_s4 = inlined_call_operand.vmem [shape: f32[32,1], index: 4, kind: input, shape index: {}]   ;;  %s10997_s5 = inlined_call_operand.vmem [shape: f32[2,32], index: 5, kind: input, shape index: {}]   ;;  %s10998_s6 = inlined_call_operand.vmem [shape: f32[2,1], index: 6, kind: input, shape index: {}]   ;;  %s10999_s7 = inlined_call_operand.vmem [shape: f32[32,2], index: 7, kind: input, shape index: {}]   ;;  %s11000_s8 = inlined_call_operand.vmem [shape: f32[32,1], index: 8, kind: input, shape index: {}]   ;;  %s11001_s9 = inlined_call_operand.vmem [shape: f32[4,32,256], index: 9, kind: output, shape index: {}]  }
   0x1 LB: > { %s6726_s10 = sadd.s32 4294967295, %s8051_s30   ;;  %p6730_p0 = scmp.ge.s32.totalorder %s8051_s30, 1  ;;  %s8051_s30 = sphi %s8140_s30, %s19_s30  }
   0x2   : > { %p289_p1 = scmp.lt.s32.totalorder %s8051_s30, 3 }
   0x4   : > { %p290_p2 = pnand %p6730_p0, %p289_p1 }
   0x6   : > { %293 = sbr.rel (%p290_p2) target bundleno = 3276 (0xccc), region = 56 }
   0xb   : > { %s6731_s11 = sshll.u32 %s6726_s10, 1  ;;  %s8053_s16 = smov 21   ;;  %v8063_v12 = vmov 0   ;;  %vm11043_vm0 = vcmask 281752   ;;  %vm11041_vm1 = vcmask 429352   ;;  %vm11040_vm2 = vcmask 576952  }
   0xc   : > { %p328_p3 = scmp.lt.s32.totalorder %s6731_s11, 3  ;;  %s11048_s17 = smov 19   ;;  %347 = vst [vmem:[#allocation2 + $0x18] sm:$0xff] %v8063_v12  ;;  %7996 = vset.pattern.permute.xlu1 %v8063_v12  ;;  %7995 = vset.pattern.permute.xlu0 %v8063_v12  ;;  %vm11035_vm3 = vcmask 724552   ;;  %vm11034_vm4 = vcmask 872152   ;;  %vm623_vm5 = vcmask 1044472  }
   0xd   : > { %s8055_s18 = smov 23   ;;  %s8056_s19 = smov 25   ;;  %342 = vst [vmem:[#allocation2] sm:$0xff] %v8063_v12  ;;  %7994 = vset.pattern.permute.xlu2 %v8063_v12  ;;  %vm624_vm6 = vcmask 121860   ;;  %vm11002_vm7 = vcmask 1019752   ;;  %vm11003_vm9 = vcmask 252928  }
   0xe   : > { %s11312_s11 = smov (!%p328_p3, %s6731_s11), 3  ;;  %s11038_s20 = smov 31   ;;  %345 = vst [vmem:[#allocation2 + $0xc] sm:$0xff] %v8063_v12  ;;  %vm8277_vm8 = vmor %vm624_vm6, %vm623_vm5  ;;  %vm11033_vm10 = vcmask 265352   ;;  %vm11024_vm11 = vcmask 412952   ;;  %vm11023_vm12 = vcmask 560552  }
   0xf   : > { %s11005_s12 = sshll.u32 %s11312_s11, 6  ;;  %s11036_s21 = smov 27   ;;  %349 = vst [vmem:[#allocation2 + $0x24] sm:$0xff] %v8063_v12  ;;  %vm343_vm13 = vcmask 699392   ;;  %vm11004_vm14 = vcmask 708152   ;;  %vm11022_vm15 = vcmask 855752  }
  0x10   : > { %s8156_s15 = scalar_lea.vmem %s10992_s0, %s11005_s12  ;;  %s11031_s22 = smov 29   ;;  %348 = vst.msk [vmem:[#allocation2 + $0x20] sm:$0xf] %vm343_vm13, %v8063_v12  ;;  %vm761_vm5 = vcmask 1044456   ;;  %vm762_vm6 = vcmask 105476  }
  0x11   : > { %v488_v0 = vld [vmem:[%s8156_s15 + $0x20] sm:$0xff]  ;;  %v490_v2 = vld [vmem:[%s8156_s15 + $0x30] sm:$0xff]  ;;  %s11029_s23 = smov 33   ;;  %v489_v8 = vld [vmem:[%s8156_s15 + $0x28] sm:$0xff]  ;;  %s11027_s24 = smov 35  }
  0x12   : > { %v494_v1 = vpack.c.bf16 %v488_v0, %v488_v0  ;;  %v495_v3 = vpack.c.bf16 %v490_v2, %v490_v2  ;;  %v484_v4 = vld [vmem:[%s8156_s15] sm:$0xff]  ;;  %v486_v5 = vld [vmem:[%s8156_s15 + $0x10] sm:$0xff]  ;;  %v491_v9 = vld [vmem:[%s8156_s15 + $0x38] sm:$0xff]  ;;  %v8191_v10 = vpack.c.bf16 %v489_v8, %v489_v8  ;;  %s11025_s25 = smov 37   ;;  %s11020_s26 = smov 39  }
  0x13   : > { %v492_v6 = vpack.c.bf16 %v484_v4, %v484_v4  ;;  %v493_v7 = vpack.c.bf16 %v486_v5, %v486_v5  ;;  %v8193_v11 = vpack.c.bf16 %v491_v9, %v491_v9  ;;  %s11016_s27 = smov 45   ;;  %s11014_s28 = smov 41   ;;  %v485_v15 = vld [vmem:[%s8156_s15 + $0x8] sm:$0xff]  ;;  %v487_v16 = vld [vmem:[%s8156_s15 + $0x18] sm:$0xff]  ;;  %344 = vst.msk [vmem:[#allocation2 + $0x8] sm:$0xf] %vm343_vm13, %v8063_v12 }
  0x14   : > { %521 = vrot.lane.b32.xlu1 %v494_v1, %s8053_s16  ;;  %504 = vrot.lane.b32.xlu0 %v494_v1, %s11048_s17  ;;  %v8231_v18 = vpack.c.bf16 %v485_v15, %v485_v15  ;;  %v8233_v19 = vpack.c.bf16 %v487_v16, %v487_v16  ;;  %s11010_s29 = smov 43   ;;  %s11008_s10 = smov 47   ;;  %346 = vst.msk [vmem:[#allocation2 + $0x14] sm:$0xf] %vm343_vm13, %v8063_v12 }
  0x15   : > { %538 = vrot.lane.b32.xlu2 %v494_v1, %s8055_s18  ;;  %s11006_s13 = smov 49   ;;  %350 = vst.msk [vmem:[#allocation2 + $0x2c] sm:$0xf] %vm343_vm13, %v8063_v12  ;;  %vm11019_vm13 = vcmask 367616   ;;  %s8070_s14 = smov 90  }
  0x16   : > { %s8071_s12 = smov 110  }
  0x1c   : > { %523 = vrot.lane.b32.xlu1 %v495_v3, %s8053_s16  ;;  %506 = vrot.lane.b32.xlu0 %v495_v3, %s11048_s17 }
  0x1d   : > { %540 = vrot.lane.b32.xlu2 %v495_v3, %s8055_s18 }
  0x24   : > { %557 = vrot.lane.b32.xlu1 %v495_v3, %s8056_s19  ;;  %555 = vrot.lane.b32.xlu0 %v494_v1, %s8056_s19 }
  0x25   : > { %606 = vrot.lane.b32.xlu2 %v494_v1, %s11038_s20 }
  0x2c   : > { %608 = vrot.lane.b32.xlu0 %v495_v3, %s11038_s20  ;;  %500 = vrot.lane.b32.xlu1 %v492_v6, %s11048_s17 }
  0x2d   : > { %502 = vrot.lane.b32.xlu2 %v493_v7, %s11048_s17 }
  0x34   : > { %572 = vrot.lane.b32.xlu0 %v494_v1, %s11036_s21  ;;  %574 = vrot.lane.b32.xlu1 %v495_v3, %s11036_s21 }
  0x35   : > { %517 = vrot.lane.b32.xlu2 %v492_v6, %s8053_s16 }
  0x3c   : > { %519 = vrot.lane.b32.xlu0 %v493_v7, %s8053_s16  ;;  %589 = vrot.lane.b32.xlu1 %v494_v1, %s11031_s22 }
  0x3d   : > { %591 = vrot.lane.b32.xlu2 %v495_v3, %s11031_s22 }
  0x44   : > { %534 = vrot.lane.b32.xlu0 %v492_v6, %s8055_s18  ;;  %536 = vrot.lane.b32.xlu1 %v493_v7, %s8055_s18 }
  0x45   : > { %551 = vrot.lane.b32.xlu2 %v492_v6, %s8056_s19 }
  0x4c   : > { %553 = vrot.lane.b32.xlu0 %v493_v7, %s8056_s19  ;;  %602 = vrot.lane.b32.xlu1 %v492_v6, %s11038_s20 }
  0x4d   : > { %604 = vrot.lane.b32.xlu2 %v493_v7, %s11038_s20  ;;  %s11097_s20 = smov 29  }
  0x54   : > { %634 = vrot.lane.b32.xlu0 %v494_v1, %s11029_s23  ;;  %636 = vrot.lane.b32.xlu1 %v495_v3, %s11029_s23 }
  0x55   : > { %568 = vrot.lane.b32.xlu2 %v492_v6, %s11036_s21 }
  0x5c   : > { %570 = vrot.lane.b32.xlu0 %v493_v7, %s11036_s21  ;;  %659 = vrot.lane.b32.xlu1 %v8191_v10, %s11027_s24  ;;  %s11116_s21 = smov 41  }
  0x5d   : > { %661 = vrot.lane.b32.xlu2 %v8193_v11, %s11027_s24 }
  0x64   : > { %585 = vrot.lane.b32.xlu0 %v492_v6, %s11031_s22  ;;  %587 = vrot.lane.b32.xlu1 %v493_v7, %s11031_s22  ;;  %s11094_s22 = smov 31  }
  0x65   : > { %676 = vrot.lane.b32.xlu2 %v8191_v10, %s11025_s25 }
  0x6c   : > { %678 = vrot.lane.b32.xlu0 %v8193_v11, %s11025_s25  ;;  %693 = vrot.lane.b32.xlu1 %v8191_v10, %s11020_s26 }
  0x6d   : > { %695 = vrot.lane.b32.xlu2 %v8193_v11, %s11020_s26 }
  0x6f   : > { %v539_v13 = vpop.permute.xlu2 %538 }
  0x74   : > { %744 = vrot.lane.b32.xlu0 %v8191_v10, %s11016_s27  ;;  %746 = vrot.lane.b32.xlu1 %v8193_v11, %s11016_s27 }
  0x75   : > { %630 = vrot.lane.b32.xlu2 %v492_v6, %s11029_s23 }
  0x77   : > { %v541_v14 = vpop.permute.xlu2 %540 }
  0x7c   : > { %632 = vrot.lane.b32.xlu0 %v493_v7, %s11029_s23  ;;  %710 = vrot.lane.b32.xlu1 %v8191_v10, %s11014_s28  ;;  %s11095_s23 = smov 27  }
  0x7d   : > { %712 = vrot.lane.b32.xlu2 %v8193_v11, %s11014_s28 }
  0x7f   : > { %v8229_v17 = vpop.permute.xlu2 %606 }
  0x80   : > { %v612_v38 = vrot.slane %v8229_v17, 4 }
  0x82   : > { %v617_v42 = vsel %vm11003_vm9, %v612_v38, %v8229_v17 }
  0x84   : > { %655 = vrot.lane.b32.xlu0 %v8231_v18, %s11027_s24  ;;  %657 = vrot.lane.b32.xlu1 %v8233_v19, %s11027_s24  ;;  %s11102_s24 = smov 33  }
  0x85   : > { %727 = vrot.lane.b32.xlu2 %v8191_v10, %s11010_s29 }
  0x86   : > { %v522_v20 = vpop.permute.xlu1 %521  ;;  %v505_v21 = vpop.permute.xlu0 %504 }
  0x87   : > { %515 = vst.msk [vmem:[#allocation2 + $0x18] sm:$0xf] %vm11043_vm0, %v505_v21  ;;  %v503_v22 = vpop.permute.xlu2 %502 }
  0x88   : > { %532 = vst.msk [vmem:[#allocation2 + $0x18] sm:$0xf] %vm11041_vm1, %v522_v20 }
  0x89   : > { %549 = vst.msk [vmem:[#allocation2 + $0x18] sm:$0xf] %vm11040_vm2, %v539_v13 }
  0x8a   : > { %514 = vst.msk [vmem:[#allocation2 + $0xc] sm:$0xf] %vm11043_vm0, %v503_v22 }
  0x8c   : > { %729 = vrot.lane.b32.xlu0 %v8193_v11, %s11010_s29  ;;  %672 = vrot.lane.b32.xlu1 %v8231_v18, %s11025_s25 }
  0x8d   : > { %674 = vrot.lane.b32.xlu2 %v8233_v19, %s11025_s25  ;;  %s11105_s25 = smov 35  }
  0x8e   : > { %v524_v23 = vpop.permute.xlu1 %523  ;;  %v507_v24 = vpop.permute.xlu0 %506 }
  0x8f   : > { %516 = vst.msk [vmem:[#allocation2 + $0x24] sm:$0xf] %vm11043_vm0, %v507_v24  ;;  %v518_v25 = vpop.permute.xlu2 %517 }
  0x90   : > { %533 = vst.msk [vmem:[#allocation2 + $0x24] sm:$0xf] %vm11041_vm1, %v524_v23 }
  0x91   : > { %550 = vst.msk [vmem:[#allocation2 + $0x24] sm:$0xf] %vm11040_vm2, %v541_v14 }
  0x94   : > { %689 = vrot.lane.b32.xlu0 %v8231_v18, %s11020_s26  ;;  %691 = vrot.lane.b32.xlu1 %v8233_v19, %s11020_s26  ;;  %s11050_s26 = smov 109  }
  0x95   : > { %740 = vrot.lane.b32.xlu2 %v8231_v18, %s11016_s27 }
  0x96   : > { %v558_v26 = vpop.permute.xlu1 %557  ;;  %v556_v27 = vpop.permute.xlu0 %555 }
  0x97   : > { %567 = vst.msk [vmem:[#allocation2 + $0x24] sm:$0xf] %vm11035_vm3, %v558_v26  ;;  %v592_v28 = vpop.permute.xlu2 %591 }
  0x98   : > { %566 = vst.msk [vmem:[#allocation2 + $0x18] sm:$0xf] %vm11035_vm3, %v556_v27 }
  0x9c   : > { %742 = vrot.lane.b32.xlu0 %v8233_v19, %s11016_s27  ;;  %772 = vrot.lane.b32.xlu1 %v8191_v10, %s11008_s10  ;;  %s8076_s27 = smov 108  }
  0x9d   : > { %774 = vrot.lane.b32.xlu2 %v8193_v11, %s11008_s10 }
  0x9e   : > { %v609_v29 = vpop.permute.xlu0 %608  ;;  %v501_v30 = vpop.permute.xlu1 %500 }
  0x9f   : > { %513 = vst.msk [vmem:[#allocation2] sm:$0xf] %vm11043_vm0, %v501_v30  ;;  %v552_v31 = vpop.permute.xlu2 %551  ;;  %v613_v32 = vrot.slane %v609_v29, 4 }
  0xa0   : > { %530 = vst.msk [vmem:[#allocation2] sm:$0xf] %vm11041_vm1, %v518_v25 }
  0xa1   : > { %v618_v37 = vsel %vm11003_vm9, %v613_v32, %v609_v29 }
  0xa4   : > { %706 = vrot.lane.b32.xlu0 %v8231_v18, %s11014_s28  ;;  %708 = vrot.lane.b32.xlu1 %v8233_v19, %s11014_s28  ;;  %s8075_s28 = smov 127  }
  0xa5   : > { %789 = vrot.lane.b32.xlu2 %v8191_v10, %s11006_s13 }
  0xa6   : > { %v573_v33 = vpop.permute.xlu0 %572  ;;  %v575_v34 = vpop.permute.xlu1 %574 }
  0xa7   : > { %583 = vst.msk [vmem:[#allocation2 + $0x18] sm:$0xf] %vm11034_vm4, %v573_v33  ;;  %v605_v36 = vpop.permute.xlu2 %604 }
  0xa8   : > { %584 = vst.msk [vmem:[#allocation2 + $0x24] sm:$0xf] %vm11034_vm4, %v575_v34  ;;  %v611_v56 = vrot.slane %v605_v36, 4 }
  0xa9   : > { %601 = vst.msk [vmem:[#allocation2 + $0x24] sm:$0xf] %vm11002_vm7, %v592_v28 }
  0xaa   : > { %629 = vst.msk [vmem:[#allocation2 + $0x24] sm:$0xff] %vm8277_vm8, %v618_v37  ;;  %v616_v60 = vsel %vm11003_vm9, %v611_v56, %v605_v36 }
  0xac   : > { %791 = vrot.lane.b32.xlu0 %v8193_v11, %s11006_s13  ;;  %723 = vrot.lane.b32.xlu1 %v8231_v18, %s11010_s29 }
  0xad   : > { %725 = vrot.lane.b32.xlu2 %v8233_v19, %s11010_s29  ;;  %s8074_s29 = smov 92  }
  0xae   : > { %v520_v39 = vpop.permute.xlu0 %519  ;;  %v590_v40 = vpop.permute.xlu1 %589 }
  0xaf   : > { %531 = vst.msk [vmem:[#allocation2 + $0xc] sm:$0xf] %vm11041_vm1, %v520_v39  ;;  %v569_v41 = vpop.permute.xlu2 %568 }
  0xb0   : > { %600 = vst.msk [vmem:[#allocation2 + $0x18] sm:$0xf] %vm11002_vm7, %v590_v40 }
  0xb1   : > { %628 = vst.msk [vmem:[#allocation2 + $0x18] sm:$0xff] %vm8277_vm8, %v617_v42 }
  0xb4   : > { %768 = vrot.lane.b32.xlu0 %v8231_v18, %s11008_s10  ;;  %770 = vrot.lane.b32.xlu1 %v8233_v19, %s11008_s10  ;;  %s8073_s10 = smov 126  }
  0xb5   : > { %785 = vrot.lane.b32.xlu2 %v8231_v18, %s11006_s13 }
  0xb6   : > { %v535_v43 = vpop.permute.xlu0 %534  ;;  %v537_v44 = vpop.permute.xlu1 %536 }
  0xb7   : > { %547 = vst.msk [vmem:[#allocation2] sm:$0xf] %vm11040_vm2, %v535_v43  ;;  %v662_v45 = vpop.permute.xlu2 %661 }
  0xb8   : > { %564 = vst.msk [vmem:[#allocation2] sm:$0xf] %vm11035_vm3, %v552_v31 }
  0xb9   : > { %548 = vst.msk [vmem:[#allocation2 + $0xc] sm:$0xf] %vm11040_vm2, %v537_v44 }
  0xba   : > { %581 = vst.msk [vmem:[#allocation2] sm:$0xf] %vm11034_vm4, %v569_v41 }
  0xbc   : > { %787 = vrot.lane.b32.xlu0 %v8233_v19, %s11006_s13  ;;  %s8072_s13 = smov 91  }
  0xbe   : > { %v554_v46 = vpop.permute.xlu0 %553  ;;  %v603_v47 = vpop.permute.xlu1 %602 }
  0xbf   : > { %565 = vst.msk [vmem:[#allocation2 + $0xc] sm:$0xf] %vm11035_vm3, %v554_v46  ;;  %v677_v48 = vpop.permute.xlu2 %676  ;;  %v610_v55 = vrot.slane %v603_v47, 4  ;;  %vm11045_vm3 = vcmask 891904  }
  0xc1   : > { %v615_v59 = vsel %vm11003_vm9, %v610_v55, %v603_v47  ;;  %vm8336_vm9 = vmor %vm762_vm6, %vm761_vm5  ;;  %vm11013_vm5 = vcmask 248952   ;;  %vm11012_vm6 = vcmask 396552  }
  0xc6   : > { %v635_v49 = vpop.permute.xlu0 %634  ;;  %v637_v50 = vpop.permute.xlu1 %636 }
  0xc7   : > { %645 = vst.msk [vmem:[#allocation2 + $0x1c] sm:$0xf] %vm11033_vm10, %v635_v49  ;;  %v696_v51 = vpop.permute.xlu2 %695 }
  0xc8   : > { %646 = vst.msk [vmem:[#allocation2 + $0x28] sm:$0xf] %vm11033_vm10, %v637_v50 }
  0xc9   : > { %671 = vst.msk [vmem:[#allocation2 + $0x28] sm:$0xf] %vm11024_vm11, %v662_v45 }
  0xce   : > { %v571_v52 = vpop.permute.xlu0 %570  ;;  %v660_v53 = vpop.permute.xlu1 %659 }
  0xcf   : > { %582 = vst.msk [vmem:[#allocation2 + $0xc] sm:$0xf] %vm11034_vm4, %v571_v52  ;;  %v631_v54 = vpop.permute.xlu2 %630  ;;  %vm11046_vm4 = vcmask 883712  }
  0xd0   : > { %670 = vst.msk [vmem:[#allocation2 + $0x1c] sm:$0xf] %vm11024_vm11, %v660_v53 }
  0xd1   : > { %687 = vst.msk [vmem:[#allocation2 + $0x1c] sm:$0xf] %vm11023_vm12, %v677_v48 }
  0xd6   : > { %v586_v57 = vpop.permute.xlu0 %585  ;;  %v588_v58 = vpop.permute.xlu1 %587 }
  0xd7   : > { %598 = vst.msk [vmem:[#allocation2] sm:$0xf] %vm11002_vm7, %v586_v57  ;;  %v713_v61 = vpop.permute.xlu2 %712 }
  0xd8   : > { %626 = vst.msk [vmem:[#allocation2] sm:$0xff] %vm8277_vm8, %v615_v59 }
  0xd9   : > { %599 = vst.msk [vmem:[#allocation2 + $0xc] sm:$0xf] %vm11002_vm7, %v588_v58  ;;  %vm11018_vm7 = vcmask 1003352  }
  0xda   : > { %627 = vst.msk [vmem:[#allocation2 + $0xc] sm:$0xff] %vm8277_vm8, %v616_v60 }
  0xdb   : > { %643 = vst.msk [vmem:[#allocation2 + $0x4] sm:$0xf] %vm11033_vm10, %v631_v54 }
  0xde   : > { %v679_v62 = vpop.permute.xlu0 %678  ;;  %v694_v63 = vpop.permute.xlu1 %693 }
  0xdf   : > { %688 = vst.msk [vmem:[#allocation2 + $0x28] sm:$0xf] %vm11023_vm12, %v679_v62  ;;  %v728_v0 = vpop.permute.xlu2 %727 }
  0xe0   : > { %704 = vst.msk [vmem:[#allocation2 + $0x1c] sm:$0xf] %vm11004_vm14, %v694_v63 }
  0xe1   : > { %705 = vst.msk [vmem:[#allocation2 + $0x28] sm:$0xf] %vm11004_vm14, %v696_v51 }
  0xe2   : > { %722 = vst.msk [vmem:[#allocation2 + $0x28] sm:$0xf] %vm11022_vm15, %v713_v61 }
  0xe6   : > { %v745_v1 = vpop.permute.xlu0 %744  ;;  %v747_v2 = vpop.permute.xlu1 %746 }
  0xe7   : > { %v750_v3 = vrot.slane %v745_v1, 4  ;;  %v675_v4 = vpop.permute.xlu2 %674  ;;  %v751_v15 = vrot.slane %v747_v2, 4 }
  0xe9   : > { %v755_v8 = vsel %vm11019_vm13, %v750_v3, %v745_v1  ;;  %v756_v18 = vsel %vm11019_vm13, %v751_v15, %v747_v2 }
  0xee   : > { %v633_v5 = vpop.permute.xlu0 %632  ;;  %v711_v6 = vpop.permute.xlu1 %710 }
  0xef   : > { %644 = vst.msk [vmem:[#allocation2 + $0x10] sm:$0xf] %vm11033_vm10, %v633_v5  ;;  %v741_v11 = vpop.permute.xlu2 %740  ;;  %vm11042_vm10 = vcmask 261120  }
  0xf0   : > { %721 = vst.msk [vmem:[#allocation2 + $0x1c] sm:$0xf] %vm11022_vm15, %v711_v6  ;;  %v748_v34 = vrot.slane %v741_v11, 4 }
  0xf1   : > { %738 = vst.msk [vmem:[#allocation2 + $0x1c] sm:$0xf] %vm11018_vm7, %v728_v0 }
  0xf2   : > { %766 = vst.msk [vmem:[#allocation2 + $0x1c] sm:$0xff] %vm8336_vm9, %v755_v8  ;;  %v753_v38 = vsel %vm11019_vm13, %v748_v34, %v741_v11 }
  0xf6   : > { %v656_v9 = vpop.permute.xlu0 %655  ;;  %v658_v10 = vpop.permute.xlu1 %657 }
  0xf7   : > { %668 = vst.msk [vmem:[#allocation2 + $0x4] sm:$0xf] %vm11024_vm11, %v656_v9  ;;  %v775_v19 = vpop.permute.xlu2 %774 }
  0xf8   : > { %669 = vst.msk [vmem:[#allocation2 + $0x10] sm:$0xf] %vm11024_vm11, %v658_v10  ;;  %vm11054_vm11 = vcmask 1039360  }
  0xf9   : > { %686 = vst.msk [vmem:[#allocation2 + $0x10] sm:$0xf] %vm11023_vm12, %v675_v4  ;;  %v8348_v13 = vld [vmem:[#allocation2 + $0x18] sm:$0xff] }
  0xfa   : > { %v806_v14 = vld [vmem:[#allocation2 + $0x18] sm:$0xff]  ;;  %1299 = vrot.lane.b32.xlu1 %v8348_v13, %s8070_s14 }
  0xfb   : > { %815 = vst [vmem:[#allocation3 + $0x18] sm:$0xff] %v806_v14 }
  0xfe   : > { %v730_v16 = vpop.permute.xlu0 %729  ;;  %v673_v17 = vpop.permute.xlu1 %672 }
  0xff   : > { %739 = vst.msk [vmem:[#allocation2 + $0x28] sm:$0xf] %vm11018_vm7, %v730_v16  ;;  %v790_v24 = vpop.permute.xlu2 %789 }
 0x100   : > { %767 = vst.msk [vmem:[#allocation2 + $0x28] sm:$0xff] %vm8336_vm9, %v756_v18 }
 0x101   : > { %685 = vst.msk [vmem:[#allocation2 + $0x4] sm:$0xf] %vm11023_vm12, %v673_v17  ;;  %vm11047_vm12 = vcmask 752640  }
 0x102   : > { %784 = vst.msk [vmem:[#allocation2 + $0x2c] sm:$0xf] %vm11013_vm5, %v775_v19 }
 0x106   : > { %v690_v20 = vpop.permute.xlu0 %689  ;;  %v692_v21 = vpop.permute.xlu1 %691 }
 0x107   : > { %702 = vst.msk [vmem:[#allocation2 + $0x4] sm:$0xf] %vm11004_vm14, %v690_v20  ;;  %v8359_v22 = vld [vmem:[#allocation2 + $0x24] sm:$0xff]  ;;  %v726_v28 = vpop.permute.xlu2 %725 }
 0x108   : > { %v808_v23 = vld [vmem:[#allocation2 + $0x24] sm:$0xff]  ;;  %703 = vst.msk [vmem:[#allocation2 + $0x10] sm:$0xf] %vm11004_vm14, %v692_v21  ;;  %1303 = vrot.lane.b32.xlu0 %v8359_v22, %s8070_s14  ;;  %vm811_vm14 = vcmask 257024  }
 0x109   : > { %817 = vst [vmem:[#allocation3 + $0x24] sm:$0xff] %v808_v23 }
 0x10e   : > { %v743_v25 = vpop.permute.xlu0 %742  ;;  %v773_v26 = vpop.permute.xlu1 %772 }
 0x10f   : > { %783 = vst.msk [vmem:[#allocation2 + $0x20] sm:$0xf] %vm11013_vm5, %v773_v26  ;;  %v749_v27 = vrot.slane %v743_v25, 4  ;;  %v786_v40 = vpop.permute.xlu2 %785 }
 0x110   : > { %800 = vst.msk [vmem:[#allocation2 + $0x20] sm:$0xf] %vm11012_vm6, %v790_v24 }
 0x111   : > { %v754_v33 = vsel %vm11019_vm13, %v749_v27, %v743_v25  ;;  %vm11056_vm13 = vcmask 744448  }
 0x116   : > { %v707_v29 = vpop.permute.xlu0 %706  ;;  %v709_v30 = vpop.permute.xlu1 %708 }
 0x117   : > { %719 = vst.msk [vmem:[#allocation2 + $0x4] sm:$0xf] %vm11022_vm15, %v707_v29  ;;  %v1280_v31 = vld [vmem:[#allocation2 + $0x20] sm:$0xf] }
 0x118   : > { %v807_v32 = vld [vmem:[#allocation2 + $0x20] sm:$0xf]  ;;  %720 = vst.msk [vmem:[#allocation2 + $0x10] sm:$0xf] %vm11022_vm15, %v709_v30  ;;  %1301 = vrot.lane.b32.xlu2 %v1280_v31, %s8070_s14  ;;  %vm11055_vm15 = vcmask 1031168  }
 0x119   : > { %737 = vst.msk [vmem:[#allocation2 + $0x10] sm:$0xf] %vm11018_vm7, %v726_v28  ;;  %v955_v50 = vld [vmem:[#allocation2 + $0x20] sm:$0xf] }
 0x11a   : > { %765 = vst.msk [vmem:[#allocation2 + $0x10] sm:$0xff] %vm8336_vm9, %v754_v33  ;;  %v1215_v54 = vld [vmem:[#allocation2 + $0x20] sm:$0xf] }
 0x11b   : > { %816 = vst.msk [vmem:[#allocation3 + $0x20] sm:$0xf] %vm811_vm14, %v807_v32  ;;  %v890_v60 = vld [vmem:[#allocation2 + $0x20] sm:$0xf] }
 0x11c   : > { %v1150_v61 = vld [vmem:[#allocation2 + $0x20] sm:$0xf] }
 0x11d   : > { %v824_v11 = vld [vmem:[#allocation2 + $0x20] sm:$0xf] }
 0x11e   : > { %v792_v36 = vpop.permute.xlu0 %791  ;;  %v724_v37 = vpop.permute.xlu1 %723  ;;  %v1085_v15 = vld [vmem:[#allocation2 + $0x20] sm:$0xf] }
 0x11f   : > { %801 = vst.msk [vmem:[#allocation2 + $0x2c] sm:$0xf] %vm11012_vm6, %v792_v36 }
 0x120   : > { %736 = vst.msk [vmem:[#allocation2 + $0x4] sm:$0xf] %vm11018_vm7, %v724_v37  ;;  %vm991_vm7 = vcmask 900096  }
 0x121   : > { %764 = vst.msk [vmem:[#allocation2 + $0x4] sm:$0xff] %vm8336_vm9, %v753_v38  ;;  %v8379_v39 = vld [vmem:[#allocation2 + $0xc] sm:$0xff] }
 0x122   : > { %813 = vst [vmem:[#allocation3 + $0xc] sm:$0xff] %v8379_v39 }
 0x126   : > { %v769_v41 = vpop.permute.xlu0 %768  ;;  %v1282_v42 = vld [vmem:[#allocation2 + $0x2c] sm:$0xf]  ;;  %v771_v43 = vpop.permute.xlu1 %770 }
 0x127   : > { %v809_v44 = vld [vmem:[#allocation2 + $0x2c] sm:$0xf]  ;;  %781 = vst.msk [vmem:[#allocation2 + $0x8] sm:$0xf] %vm11013_vm5, %v769_v41  ;;  %1305 = vrot.lane.b32.xlu1 %v1282_v42, %s8070_s14 }
 0x128   : > { %798 = vst.msk [vmem:[#allocation2 + $0x8] sm:$0xf] %vm11012_vm6, %v786_v40  ;;  %v8385_v45 = vld [vmem:[#allocation2] sm:$0xff]  ;;  %v957_v52 = vld [vmem:[#allocation2 + $0x2c] sm:$0xf] }
 0x129   : > { %1291 = vrot.lane.b32.xlu2 %v8385_v45, %s8070_s14  ;;  %782 = vst.msk [vmem:[#allocation2 + $0x14] sm:$0xf] %vm11013_vm5, %v771_v43  ;;  %v1217_v53 = vld [vmem:[#allocation2 + $0x2c] sm:$0xf]  ;;  %vm11044_vm5 = vcmask 736256  }
 0x12a   : > { %818 = vst.msk [vmem:[#allocation3 + $0x2c] sm:$0xf] %vm811_vm14, %v809_v44  ;;  %v892_v59 = vld [vmem:[#allocation2 + $0x2c] sm:$0xf] }
 0x12b   : > { %810 = vst [vmem:[#allocation3] sm:$0xff] %v8385_v45  ;;  %v1152_v5 = vld [vmem:[#allocation2 + $0x2c] sm:$0xf] }
 0x12c   : > { %v826_v16 = vld [vmem:[#allocation2 + $0x2c] sm:$0xf] }
 0x12d   : > { %v1087_v25 = vld [vmem:[#allocation2 + $0x2c] sm:$0xf] }
 0x12e   : > { %v788_v46 = vpop.permute.xlu0 %787 }
 0x12f   : > { %v803_v47 = vld [vmem:[#allocation2 + $0x8] sm:$0xf]  ;;  %799 = vst.msk [vmem:[#allocation2 + $0x14] sm:$0xf] %vm11012_vm6, %v788_v46  ;;  %1295 = vrot.lane.b32.xlu1 %v8379_v39, %s8070_s14  ;;  %vm859_vm6 = vcmask 1043456  }
 0x130   : > { %v1276_v48 = vld [vmem:[#allocation2 + $0x8] sm:$0xf]  ;;  %812 = vst.msk [vmem:[#allocation3 + $0x8] sm:$0xf] %vm811_vm14, %v803_v47 }
 0x131   : > { %1293 = vrot.lane.b32.xlu0 %v1276_v48, %s8070_s14  ;;  %v951_v55 = vld [vmem:[#allocation2 + $0x8] sm:$0xf] }
 0x132   : > { %v1211_v56 = vld [vmem:[#allocation2 + $0x8] sm:$0xf] }
 0x133   : > { %v886_v4 = vld [vmem:[#allocation2 + $0x8] sm:$0xf] }
 0x134   : > { %v1146_v9 = vld [vmem:[#allocation2 + $0x8] sm:$0xf] }
 0x135   : > { %v820_v41 = vld [vmem:[#allocation2 + $0x8] sm:$0xf] }
 0x136   : > { %v805_v49 = vld [vmem:[#allocation2 + $0x14] sm:$0xf] }
 0x137   : > { %v1278_v51 = vld [vmem:[#allocation2 + $0x14] sm:$0xf]  ;;  %976 = vrot.lane.b32.xlu1 %v955_v50, %s8071_s12  ;;  %814 = vst.msk [vmem:[#allocation3 + $0x14] sm:$0xf] %vm811_vm14, %v805_v49 }
 0x138   : > { %1297 = vrot.lane.b32.xlu2 %v1278_v51, %s8070_s14  ;;  %v953_v57 = vld [vmem:[#allocation2 + $0x14] sm:$0xf] }
 0x139   : > { %974 = vrot.lane.b32.xlu0 %v8348_v13, %s8071_s12  ;;  %v1213_v58 = vld [vmem:[#allocation2 + $0x14] sm:$0xf] }
 0x13a   : > { %v888_v6 = vld [vmem:[#allocation2 + $0x14] sm:$0xf] }
 0x13b   : > { %v1148_v8 = vld [vmem:[#allocation2 + $0x14] sm:$0xf] }
 0x13c   : > { %v822_v42 = vld [vmem:[#allocation2 + $0x14] sm:$0xf] }
 0x13f   : > { %1234 = vrot.lane.b32.xlu1 %v8348_v13, %s8072_s13 }
 0x140   : > { %978 = vrot.lane.b32.xlu2 %v8359_v22, %s8071_s12 }
 0x141   : > { %980 = vrot.lane.b32.xlu0 %v957_v52, %s8071_s12 }
 0x147   : > { %1240 = vrot.lane.b32.xlu1 %v1217_v53, %s8072_s13 }
 0x148   : > { %1236 = vrot.lane.b32.xlu2 %v1215_v54, %s8072_s13  ;;  %v1081_v54 = vld [vmem:[#allocation2 + $0x8] sm:$0xf] }
 0x149   : > { %1238 = vrot.lane.b32.xlu0 %v8359_v22, %s8072_s13 }
 0x14f   : > { %970 = vrot.lane.b32.xlu1 %v8379_v39, %s8071_s12 }
 0x150   : > { %966 = vrot.lane.b32.xlu2 %v8385_v45, %s8071_s12 }
 0x151   : > { %968 = vrot.lane.b32.xlu0 %v951_v55, %s8071_s12 }
 0x157   : > { %1228 = vrot.lane.b32.xlu1 %v1211_v56, %s8072_s13 }
 0x158   : > { %972 = vrot.lane.b32.xlu2 %v953_v57, %s8071_s12 }
 0x159   : > { %1226 = vrot.lane.b32.xlu0 %v8385_v45, %s8072_s13 }
 0x15f   : > { %909 = vrot.lane.b32.xlu1 %v8348_v13, %s8073_s10 }
 0x160   : > { %1230 = vrot.lane.b32.xlu2 %v8379_v39, %s8072_s13 }
 0x161   : > { %1232 = vrot.lane.b32.xlu0 %v1213_v58, %s8072_s13 }
 0x167   : > { %915 = vrot.lane.b32.xlu1 %v892_v59, %s8073_s10 }
 0x168   : > { %911 = vrot.lane.b32.xlu2 %v890_v60, %s8073_s10 }
 0x169   : > { %913 = vrot.lane.b32.xlu0 %v8359_v22, %s8073_s10 }
 0x16c   : > { %v1300_v62 = vpop.permute.xlu1 %1299 }
 0x16d   : > { %v1311_v0 = vrot.slane %v1300_v62, 4 }
 0x16f   : > { %1173 = vrot.lane.b32.xlu1 %v8359_v22, %s8074_s29 }
 0x170   : > { %1169 = vrot.lane.b32.xlu2 %v8348_v13, %s8074_s29 }
 0x171   : > { %1171 = vrot.lane.b32.xlu0 %v1150_v61, %s8074_s29 }
 0x172   : > { %v1302_v63 = vpop.permute.xlu2 %1301 }
 0x173   : > { %v1312_v1 = vrot.slane %v1302_v63, 4  ;;  %1337 = vst.msk [vmem:[#allocation3 + $0x1a0] sm:$0xf] %vm811_vm14, %v1302_v63 }
 0x175   : > { %v1320_v2 = vsel %vm859_vm6, %v1311_v0, %v1312_v1 }
 0x176   : > { %v1321_v3 = vsel %vm11044_vm5, %v1300_v62, %v1320_v2 }
 0x177   : > { %1336 = vst [vmem:[#allocation3 + $0x198] sm:$0xff] %v1321_v3  ;;  %903 = vrot.lane.b32.xlu1 %v886_v4, %s8073_s10  ;;  %v1083_v3 = vld [vmem:[#allocation2 + $0x14] sm:$0xf]  ;;  %v1020_v4 = vld [vmem:[#allocation2 + $0x20] sm:$0xf] }
 0x178   : > { %1175 = vrot.lane.b32.xlu2 %v1152_v5, %s8074_s29 }
 0x179   : > { %901 = vrot.lane.b32.xlu0 %v8385_v45, %s8073_s10 }
 0x17a   : > { %v1304_v17 = vpop.permute.xlu0 %1303 }
 0x17b   : > { %v1313_v20 = vrot.slane %v1304_v17, 4 }
 0x17e   : > { %v6967_v37 = vld [vmem:[#allocation3 + $0x198] sm:$0xf] }
 0x17f   : > { %1161 = vrot.lane.b32.xlu1 %v8385_v45, %s8074_s29 }
 0x180   : > { %905 = vrot.lane.b32.xlu2 %v8379_v39, %s8073_s10 }
 0x181   : > { %907 = vrot.lane.b32.xlu0 %v888_v6, %s8073_s10 }
 0x183   : > { %v1292_v10 = vpop.permute.xlu2 %1291 }
 0x184   : > { %v1307_v31 = vrot.slane %v1292_v10, 4 }
 0x187   : > { %1167 = vrot.lane.b32.xlu1 %v1148_v8, %s8074_s29 }
 0x188   : > { %1163 = vrot.lane.b32.xlu2 %v1146_v9, %s8074_s29 }
 0x189   : > { %1165 = vrot.lane.b32.xlu0 %v8379_v39, %s8074_s29 }
 0x18f   : > { %847 = vrot.lane.b32.xlu1 %v8359_v22, %s8075_s28 }
 0x190   : > { %843 = vrot.lane.b32.xlu2 %v8348_v13, %s8075_s28 }
 0x191   : > { %845 = vrot.lane.b32.xlu0 %v824_v11, %s8075_s28 }
 0x192   : > { %v1298_v14 = vpop.permute.xlu2 %1297 }
 0x193   : > { %1335 = vst.msk [vmem:[#allocation3 + $0x194] sm:$0xf] %vm811_vm14, %v1298_v14  ;;  %v1310_v26 = vrot.slane %v1298_v14, 4 }
 0x197   : > { %1106 = vrot.lane.b32.xlu1 %v1085_v15, %s8076_s27 }
 0x198   : > { %849 = vrot.lane.b32.xlu2 %v826_v16, %s8075_s28 }
 0x199   : > { %1104 = vrot.lane.b32.xlu0 %v8348_v13, %s8076_s27  ;;  %v1306_v19 = vpop.permute.xlu1 %1305 }
 0x19a   : > { %v8460_v18 = vpop.permute.xlu2 %978  ;;  %v1314_v21 = vrot.slane %v1306_v19, 4  ;;  %1339 = vst.msk [vmem:[#allocation3 + $0x1ac] sm:$0xf] %vm811_vm14, %v1306_v19 }
 0x19b   : > { %v988_v61 = vrot.slane %v8460_v18, 4 }
 0x19c   : > { %v1322_v23 = vsel %vm859_vm6, %v1313_v20, %v1314_v21 }
 0x19d   : > { %v1323_v24 = vsel %vm11044_vm5, %v1304_v17, %v1322_v23 }
 0x19e   : > { %1338 = vst [vmem:[#allocation3 + $0x1a4] sm:$0xff] %v1323_v24 }
 0x19f   : > { %835 = vrot.lane.b32.xlu1 %v8385_v45, %s8075_s28 }
 0x1a0   : > { %1108 = vrot.lane.b32.xlu2 %v8359_v22, %s8076_s27 }
 0x1a1   : > { %1110 = vrot.lane.b32.xlu0 %v1087_v25, %s8076_s27  ;;  %v1296_v28 = vpop.permute.xlu1 %1295 }
 0x1a2   : > { %v1237_v27 = vpop.permute.xlu2 %1236  ;;  %v1309_v29 = vrot.slane %v1296_v28, 4 }
 0x1a3   : > { %1272 = vst.msk [vmem:[#allocation3 + $0x170] sm:$0xf] %vm811_vm14, %v1237_v27  ;;  %v1294_v30 = vpop.permute.xlu0 %1293  ;;  %v1247_v58 = vrot.slane %v1237_v27, 4 }
 0x1a4   : > { %v1308_v32 = vrot.slane %v1294_v30, 4  ;;  %1333 = vst.msk [vmem:[#allocation3 + $0x188] sm:$0xf] %vm811_vm14, %v1294_v30  ;;  %v1318_v33 = vsel %vm859_vm6, %v1309_v29, %v1310_v26 }
 0x1a5   : > { %v1319_v34 = vsel %vm11044_vm5, %v1296_v28, %v1318_v33  ;;  %v7777_v38 = vld [vmem:[#allocation3 + $0x1a0] sm:$0xf0]  ;;  %v1016_v28 = vld [vmem:[#allocation2 + $0x8] sm:$0xf] }
 0x1a6   : > { %v1315_v36 = vsel %vm859_vm6, %v1307_v31, %v1308_v32  ;;  %1334 = vst [vmem:[#allocation3 + $0x18c] sm:$0xff] %v1319_v34  ;;  %v6968_v43 = vor.u32 %v7777_v38, %v6967_v37  ;;  %v1018_v31 = vld [vmem:[#allocation2 + $0x14] sm:$0xf] }
 0x1a7   : > { %v1317_v40 = vsel %vm11044_vm5, %v1292_v10, %v1315_v36  ;;  %841 = vrot.lane.b32.xlu1 %v822_v42, %s8075_s28 }
 0x1a8   : > { %1332 = vst [vmem:[#allocation3 + $0x180] sm:$0xff] %v1317_v40  ;;  %837 = vrot.lane.b32.xlu2 %v820_v41, %s8075_s28  ;;  %1801 = vmatpush.bf16.msra.mxu2 %v6968_v43 }
 0x1a9   : > { %839 = vrot.lane.b32.xlu0 %v8379_v39, %s8075_s28  ;;  %v977_v46 = vpop.permute.xlu1 %976 }
 0x1aa   : > { %v8480_v44 = vpop.permute.xlu2 %966  ;;  %v987_v47 = vrot.slane %v977_v46, 4  ;;  %1012 = vst.msk [vmem:[#allocation3 + $0xb0] sm:$0xf] %vm811_vm14, %v977_v46 }
 0x1ab   : > { %v975_v48 = vpop.permute.xlu0 %974  ;;  %v982_v27 = vrot.slane %v8480_v44, 4 }
 0x1ac   : > { %v986_v49 = vrot.slane %v975_v48, 4 }
 0x1ad   : > { %v7774_v51 = vld [vmem:[#allocation3 + $0x188] sm:$0xf0] }
 0x1ae   : > { %v995_v50 = vsel %vm859_vm6, %v986_v49, %v987_v47 }
 0x1af   : > { %v996_v52 = vsel %vm991_vm7, %v975_v48, %v995_v50  ;;  %v6955_v53 = vld [vmem:[#allocation3 + $0x180] sm:$0xf]  ;;  %1100 = vrot.lane.b32.xlu1 %v8379_v39, %s8076_s27 }
 0x1b0   : > { %1011 = vst [vmem:[#allocation3 + $0xa8] sm:$0xff] %v996_v52  ;;  %1096 = vrot.lane.b32.xlu2 %v8385_v45, %s8076_s27  ;;  %v6956_v55 = vor.u32 %v7774_v51, %v6955_v53 }
 0x1b1   : > { %1098 = vrot.lane.b32.xlu0 %v1081_v54, %s8076_s27  ;;  %v1235_v57 = vpop.permute.xlu1 %1234 }
 0x1b2   : > { %v973_v56 = vpop.permute.xlu2 %972  ;;  %1802 = vmatpush.bf16.msra.mxu2 %v6956_v55  ;;  %v1246_v59 = vrot.slane %v1235_v57, 4 }
 0x1b3   : > { %1010 = vst.msk [vmem:[#allocation3 + $0xa4] sm:$0xf] %vm811_vm14, %v973_v56  ;;  %v981_v60 = vpop.permute.xlu0 %980  ;;  %v985_v24 = vrot.slane %v973_v56, 4 }
 0x1b4   : > { %v989_v62 = vrot.slane %v981_v60, 4  ;;  %1014 = vst.msk [vmem:[#allocation3 + $0xbc] sm:$0xf] %vm811_vm14, %v981_v60  ;;  %v1255_v63 = vsel %vm859_vm6, %v1246_v59, %v1247_v58 }
 0x1b5   : > { %v1256_v0 = vsel %vm11056_vm13, %v1235_v57, %v1255_v63 }
 0x1b6   : > { %v997_v1 = vsel %vm859_vm6, %v988_v61, %v989_v62  ;;  %1271 = vst [vmem:[#allocation3 + $0x168] sm:$0xff] %v1256_v0 }
 0x1b7   : > { %v998_v2 = vsel %vm991_vm7, %v8460_v18, %v997_v1  ;;  %1041 = vrot.lane.b32.xlu1 %v1020_v4, %s11050_s26  ;;  %v6847_v14 = vld [vmem:[#allocation3 + $0xa8] sm:$0xf]  ;;  %v7746_v17 = vld [vmem:[#allocation3 + $0xac] sm:$0xf] }
 0x1b8   : > { %1013 = vst [vmem:[#allocation3 + $0xb4] sm:$0xff] %v998_v2  ;;  %1102 = vrot.lane.b32.xlu2 %v1083_v3, %s8076_s27 }
 0x1b9   : > { %1039 = vrot.lane.b32.xlu0 %v8348_v13, %s11050_s26  ;;  %v1241_v6 = vpop.permute.xlu1 %1240  ;;  %v1022_v13 = vld [vmem:[#allocation2 + $0x2c] sm:$0xf] }
 0x1ba   : > { %v8502_v5 = vpop.permute.xlu2 %1230  ;;  %v1249_v8 = vrot.slane %v1241_v6, 4  ;;  %1274 = vst.msk [vmem:[#allocation3 + $0x17c] sm:$0xf] %vm811_vm14, %v1241_v6 }
 0x1bb   : > { %v1239_v9 = vpop.permute.xlu0 %1238  ;;  %v1244_v59 = vrot.slane %v8502_v5, 4 }
 0x1bc   : > { %v1248_v10 = vrot.slane %v1239_v9, 4 }
 0x1bd   : > { %v6943_v32 = vld [vmem:[#allocation3 + $0x168] sm:$0xf]  ;;  %v7770_v33 = vld [vmem:[#allocation3 + $0x16c] sm:$0xf] }
 0x1be   : > { %v1257_v11 = vsel %vm859_vm6, %v1248_v10, %v1249_v8 }
 0x1bf   : > { %v1258_v15 = vsel %vm11056_vm13, %v1239_v9, %v1257_v11  ;;  %v7747_v16 = vld [vmem:[#allocation3 + $0xb0] sm:$0xf0]  ;;  %v6849_v18 = vld [vmem:[#allocation3 + $0xb4] sm:$0xf0]  ;;  %1031 = vrot.lane.b32.xlu1 %v8385_v45, %s11050_s26 }
 0x1c0   : > { %1273 = vst [vmem:[#allocation3 + $0x174] sm:$0xff] %v1258_v15  ;;  %1043 = vrot.lane.b32.xlu2 %v8359_v22, %s11050_s26  ;;  %v6848_v19 = vor.u32 %v7747_v16, %v6847_v14  ;;  %v6852_v20 = vor.u32 %v7746_v17, %v6849_v18 }
 0x1c1   : > { %1045 = vrot.lane.b32.xlu0 %v1022_v13, %s11050_s26  ;;  %v971_v23 = vpop.permute.xlu1 %970 }
 0x1c2   : > { %v912_v21 = vpop.permute.xlu2 %911  ;;  %1757 = vmatpush.bf16.msra.mxu0 %v6848_v19  ;;  %1814 = vmatpush.bf16.msra.mxu3 %v6852_v20  ;;  %v984_v25 = vrot.slane %v971_v23, 4 }
 0x1c3   : > { %947 = vst.msk [vmem:[#allocation3 + $0x80] sm:$0xf] %vm811_vm14, %v912_v21  ;;  %v969_v26 = vpop.permute.xlu0 %968  ;;  %v922_v56 = vrot.slane %v912_v21, 4 }
 0x1c4   : > { %v983_v22 = vrot.slane %v969_v26, 4  ;;  %1008 = vst.msk [vmem:[#allocation3 + $0x98] sm:$0xf] %vm811_vm14, %v969_v26  ;;  %v993_v45 = vsel %vm859_vm6, %v984_v25, %v985_v24 }
 0x1c5   : > { %v994_v29 = vsel %vm991_vm7, %v971_v23, %v993_v45 }
 0x1c6   : > { %v990_v30 = vsel %vm859_vm6, %v982_v27, %v983_v22  ;;  %1009 = vst [vmem:[#allocation3 + $0x9c] sm:$0xff] %v994_v29 }
 0x1c7   : > { %v992_v34 = vsel %vm991_vm7, %v8480_v44, %v990_v30  ;;  %v7771_v36 = vld [vmem:[#allocation3 + $0x170] sm:$0xf0]  ;;  %v6945_v37 = vld [vmem:[#allocation3 + $0x174] sm:$0xf0]  ;;  %1037 = vrot.lane.b32.xlu1 %v1018_v31, %s11050_s26 }
 0x1c8   : > { %1007 = vst [vmem:[#allocation3 + $0x90] sm:$0xff] %v992_v34  ;;  %1033 = vrot.lane.b32.xlu2 %v1016_v28, %s11050_s26  ;;  %v6944_v38 = vor.u32 %v7771_v36, %v6943_v32  ;;  %v6948_v40 = vor.u32 %v7770_v33, %v6945_v37 }
 0x1c9   : > { %1035 = vrot.lane.b32.xlu0 %v8379_v39, %s11050_s26  ;;  %v1229_v42 = vpop.permute.xlu1 %1228 }
 0x1ca   : > { %v8524_v41 = vpop.permute.xlu2 %1169  ;;  %1776 = vmatpush.bf16.msra.mxu1 %v6944_v38  ;;  %1833 = vmatpush.bf16.msrb.mxu2 %v6948_v40  ;;  %v1243_v43 = vrot.slane %v1229_v42, 4  ;;  %1268 = vst.msk [vmem:[#allocation3 + $0x158] sm:$0xf] %vm811_vm14, %v1229_v42 }
 0x1cb   : > { %v1227_v44 = vpop.permute.xlu0 %1226  ;;  %v1181_v21 = vrot.slane %v8524_v41, 4 }
 0x1cc   : > { %v1242_v46 = vrot.slane %v1227_v44, 4 }
 0x1cd   : > { %v7744_v48 = vld [vmem:[#allocation3 + $0x98] sm:$0xf0]  ;;  %v6837_v49 = vld [vmem:[#allocation3 + $0x9c] sm:$0xf0] }
 0x1ce   : > { %v1250_v47 = vsel %vm859_vm6, %v1242_v46, %v1243_v43 }
 0x1cf   : > { %v1252_v50 = vsel %vm11056_vm13, %v1227_v44, %v1250_v47  ;;  %v6835_v51 = vld [vmem:[#allocation3 + $0x90] sm:$0xf]  ;;  %v7743_v52 = vld [vmem:[#allocation3 + $0x94] sm:$0xf] }
 0x1d0   : > { %1267 = vst [vmem:[#allocation3 + $0x150] sm:$0xff] %v1252_v50  ;;  %v6836_v39 = vor.u32 %v7744_v48, %v6835_v51  ;;  %v6840_v53 = vor.u32 %v7743_v52, %v6837_v49 }
 0x1d1   : > { %v910_v55 = vpop.permute.xlu1 %909 }
 0x1d2   : > { %v1176_v54 = vpop.permute.xlu2 %1175  ;;  %1758 = vmatpush.bf16.msra.mxu0 %v6836_v39  ;;  %1815 = vmatpush.bf16.msra.mxu3 %v6840_v53  ;;  %v921_v57 = vrot.slane %v910_v55, 4 }
 0x1d3   : > { %1209 = vst.msk [vmem:[#allocation3 + $0x14c] sm:$0xf] %vm811_vm14, %v1176_v54  ;;  %v1233_v58 = vpop.permute.xlu0 %1232  ;;  %v1184_v13 = vrot.slane %v1176_v54, 4 }
 0x1d4   : > { %v1245_v60 = vrot.slane %v1233_v58, 4  ;;  %1270 = vst.msk [vmem:[#allocation3 + $0x164] sm:$0xf] %vm811_vm14, %v1233_v58  ;;  %v930_v61 = vsel %vm859_vm6, %v921_v57, %v922_v56 }
 0x1d5   : > { %v931_v62 = vsel %vm11055_vm15, %v910_v55, %v930_v61 }
 0x1d6   : > { %v1253_v63 = vsel %vm859_vm6, %v1244_v59, %v1245_v60  ;;  %946 = vst [vmem:[#allocation3 + $0x78] sm:$0xff] %v931_v62 }
 0x1d7   : > { %v1254_v0 = vsel %vm11056_vm13, %v8502_v5, %v1253_v63  ;;  %v6931_v9 = vld [vmem:[#allocation3 + $0x150] sm:$0xf]  ;;  %v7767_v14 = vld [vmem:[#allocation3 + $0x154] sm:$0xf] }
 0x1d8   : > { %1269 = vst [vmem:[#allocation3 + $0x15c] sm:$0xff] %v1254_v0 }
 0x1d9   : > { %v916_v2 = vpop.permute.xlu1 %915 }
 0x1da   : > { %v8537_v1 = vpop.permute.xlu2 %905  ;;  %v924_v3 = vrot.slane %v916_v2, 4  ;;  %949 = vst.msk [vmem:[#allocation3 + $0x8c] sm:$0xf] %vm811_vm14, %v916_v2 }
 0x1db   : > { %v914_v4 = vpop.permute.xlu0 %913  ;;  %v919_v39 = vrot.slane %v8537_v1, 4 }
 0x1dc   : > { %v923_v6 = vrot.slane %v914_v4, 4 }
 0x1dd   : > { %v6823_v27 = vld [vmem:[#allocation3 + $0x78] sm:$0xf]  ;;  %v7740_v22 = vld [vmem:[#allocation3 + $0x7c] sm:$0xf] }
 0x1de   : > { %v932_v8 = vsel %vm859_vm6, %v923_v6, %v924_v3 }
 0x1df   : > { %v933_v10 = vsel %vm11055_vm15, %v914_v4, %v932_v8  ;;  %v7768_v11 = vld [vmem:[#allocation3 + $0x158] sm:$0xf0]  ;;  %v6933_v15 = vld [vmem:[#allocation3 + $0x15c] sm:$0xf0] }
 0x1e0   : > { %948 = vst [vmem:[#allocation3 + $0x84] sm:$0xff] %v933_v10  ;;  %v6932_v16 = vor.u32 %v7768_v11, %v6931_v9  ;;  %v6936_v5 = vor.u32 %v7767_v14, %v6933_v15 }
 0x1e1   : > { %v1174_v18 = vpop.permute.xlu1 %1173 }
 0x1e2   : > { %v1164_v17 = vpop.permute.xlu2 %1163  ;;  %1777 = vmatpush.bf16.msra.mxu1 %v6932_v16  ;;  %1834 = vmatpush.bf16.msrb.mxu2 %v6936_v5  ;;  %v1183_v19 = vrot.slane %v1174_v18, 4 }
 0x1e3   : > { %1203 = vst.msk [vmem:[#allocation3 + $0x128] sm:$0xf] %vm811_vm14, %v1164_v17  ;;  %v1172_v20 = vpop.permute.xlu0 %1171  ;;  %v1178_v50 = vrot.slane %v1164_v17, 4 }
 0x1e4   : > { %v1182_v23 = vrot.slane %v1172_v20, 4  ;;  %1207 = vst.msk [vmem:[#allocation3 + $0x140] sm:$0xf] %vm811_vm14, %v1172_v20  ;;  %v1192_v24 = vsel %vm859_vm6, %v1183_v19, %v1184_v13 }
 0x1e5   : > { %v1193_v25 = vsel %vm11047_vm12, %v1174_v18, %v1192_v24 }
 0x1e6   : > { %v1190_v26 = vsel %vm859_vm6, %v1181_v21, %v1182_v23  ;;  %1208 = vst [vmem:[#allocation3 + $0x144] sm:$0xff] %v1193_v25  ;;  %v6747_v21 = vld [vmem:[%s10993_s1 + $0x8] sm:$0xf]  ;;  %v7715_v23 = vld [vmem:[%s10993_s1 + $0x10] sm:$0xf0] }
 0x1e7   : > { %v1191_v45 = vsel %vm11047_vm12, %v8524_v41, %v1190_v26  ;;  %v7741_v28 = vld [vmem:[#allocation3 + $0x80] sm:$0xf0]  ;;  %v6825_v29 = vld [vmem:[#allocation3 + $0x84] sm:$0xf0] }
 0x1e8   : > { %1206 = vst [vmem:[#allocation3 + $0x138] sm:$0xff] %v1191_v45  ;;  %v6824_v30 = vor.u32 %v7741_v28, %v6823_v27  ;;  %v6828_v31 = vor.u32 %v7740_v22, %v6825_v29  ;;  %v8582_v27 = vor.u32 %v7715_v23, %v6747_v21 }
 0x1e9   : > { %v904_v33 = vpop.permute.xlu1 %903 }
 0x1ea   : > { %v8550_v32 = vpop.permute.xlu2 %843  ;;  %1759 = vmatpush.bf16.msra.mxu0 %v6824_v30  ;;  %1816 = vmatpush.bf16.msra.mxu3 %v6828_v31  ;;  %v918_v34 = vrot.slane %v904_v33, 4  ;;  %943 = vst.msk [vmem:[#allocation3 + $0x68] sm:$0xf] %vm811_vm14, %v904_v33 }
 0x1eb   : > { %v902_v36 = vpop.permute.xlu0 %901  ;;  %v855_v16 = vrot.slane %v8550_v32, 4  ;;  %6977 = vmatmul.msk.bf16.vlgmr.msra.gmra.mxu2 %vm11042_vm10, %v8582_v27 }
 0x1ec   : > { %v917_v37 = vrot.slane %v902_v36, 4 }
 0x1ed   : > { %v7765_v40 = vld [vmem:[#allocation3 + $0x140] sm:$0xf0]  ;;  %v6921_v42 = vld [vmem:[#allocation3 + $0x144] sm:$0xf0] }
 0x1ee   : > { %v925_v38 = vsel %vm859_vm6, %v917_v37, %v918_v34 }
 0x1ef   : > { %v927_v41 = vsel %vm11055_vm15, %v902_v36, %v925_v38  ;;  %v6919_v43 = vld [vmem:[#allocation3 + $0x138] sm:$0xf]  ;;  %v7764_v44 = vld [vmem:[#allocation3 + $0x13c] sm:$0xf] }
 0x1f0   : > { %942 = vst [vmem:[#allocation3 + $0x60] sm:$0xff] %v927_v41  ;;  %v6920_v46 = vor.u32 %v7765_v40, %v6919_v43  ;;  %v6924_v47 = vor.u32 %v7764_v44, %v6921_v42 }
 0x1f1   : > { %v1162_v49 = vpop.permute.xlu1 %1161 }
 0x1f2   : > { %v850_v48 = vpop.permute.xlu2 %849  ;;  %1778 = vmatpush.bf16.msra.mxu1 %v6920_v46  ;;  %1835 = vmatpush.bf16.msrb.mxu2 %v6924_v47  ;;  %v1177_v51 = vrot.slane %v1162_v49, 4 }
 0x1f3   : > { %884 = vst.msk [vmem:[#allocation3 + $0x5c] sm:$0xf] %vm811_vm14, %v850_v48  ;;  %v908_v52 = vpop.permute.xlu0 %907  ;;  %v858_v11 = vrot.slane %v850_v48, 4 }
 0x1f4   : > { %v920_v53 = vrot.slane %v908_v52, 4  ;;  %945 = vst.msk [vmem:[#allocation3 + $0x74] sm:$0xf] %vm811_vm14, %v908_v52  ;;  %v1185_v54 = vsel %vm859_vm6, %v1177_v51, %v1178_v50 }
 0x1f5   : > { %v1187_v55 = vsel %vm11047_vm12, %v1162_v49, %v1185_v54 }
 0x1f6   : > { %v928_v56 = vsel %vm859_vm6, %v919_v39, %v920_v53  ;;  %1202 = vst [vmem:[#allocation3 + $0x120] sm:$0xff] %v1187_v55  ;;  %v6759_v53 = vld [vmem:[%s10993_s1 + $0x20] sm:$0xf]  ;;  %v7718_v55 = vld [vmem:[%s10993_s1 + $0x28] sm:$0xf0] }
 0x1f7   : > { %v929_v57 = vsel %vm11055_vm15, %v8537_v1, %v928_v56  ;;  %v6811_v0 = vld [vmem:[#allocation3 + $0x60] sm:$0xf]  ;;  %v7737_v4 = vld [vmem:[#allocation3 + $0x64] sm:$0xf]  ;;  %v8605_v56 = vor.u32 %v7718_v55, %v6759_v53  ;;  %v6765_v53 = vld [vmem:[#allocation3 + $0xc] sm:$0xf0] }
 0x1f8   : > { %944 = vst [vmem:[#allocation3 + $0x6c] sm:$0xff] %v929_v57 }
 0x1f9   : > { %v1168_v59 = vpop.permute.xlu1 %1167 }
 0x1fa   : > { %v8563_v58 = vpop.permute.xlu2 %1108  ;;  %v1180_v60 = vrot.slane %v1168_v59, 4  ;;  %1205 = vst.msk [vmem:[#allocation3 + $0x134] sm:$0xf] %vm811_vm14, %v1168_v59 }
 0x1fb   : > { %v1166_v61 = vpop.permute.xlu0 %1165  ;;  %v1118_v49 = vrot.slane %v8563_v58, 4  ;;  %6978 = vmatmul.msk.bf16.gmra.mxu2 %vm11042_vm10, %v8605_v56 }
 0x1fc   : > { %v1179_v62 = vrot.slane %v1166_v61, 4 }
 0x1fd   : > { %v6907_v18 = vld [vmem:[#allocation3 + $0x120] sm:$0xf]  ;;  %v7761_v20 = vld [vmem:[#allocation3 + $0x124] sm:$0xf] }
 0x1fe   : > { %v1188_v63 = vsel %vm859_vm6, %v1179_v62, %v1180_v60 }
 0x1ff   : > { %v1189_v2 = vsel %vm11047_vm12, %v1166_v61, %v1188_v63  ;;  %v7738_v3 = vld [vmem:[#allocation3 + $0x68] sm:$0xf0]  ;;  %v6813_v6 = vld [vmem:[#allocation3 + $0x6c] sm:$0xf0] }
 0x200   : > { %1204 = vst [vmem:[#allocation3 + $0x12c] sm:$0xff] %v1189_v2  ;;  %v6812_v8 = vor.u32 %v7738_v3, %v6811_v0  ;;  %v6816_v1 = vor.u32 %v7737_v4, %v6813_v6 }
 0x201   : > { %v848_v10 = vpop.permute.xlu1 %847 }
 0x202   : > { %v838_v9 = vpop.permute.xlu2 %837  ;;  %1760 = vmatpush.bf16.msra.mxu0 %v6812_v8  ;;  %1817 = vmatpush.bf16.msra.mxu3 %v6816_v1  ;;  %v857_v14 = vrot.slane %v848_v10, 4 }
 0x203   : > { %878 = vst.msk [vmem:[#allocation3 + $0x38] sm:$0xf] %vm811_vm14, %v838_v9  ;;  %v846_v15 = vpop.permute.xlu0 %845  ;;  %v852_v46 = vrot.slane %v838_v9, 4 }
 0x204   : > { %v856_v5 = vrot.slane %v846_v15, 4  ;;  %882 = vst.msk [vmem:[#allocation3 + $0x50] sm:$0xf] %vm811_vm14, %v846_v15  ;;  %v867_v17 = vsel %vm859_vm6, %v857_v14, %v858_v11 }
 0x205   : > { %v868_v13 = vsel %vm11054_vm11, %v848_v10, %v867_v17  ;;  %v476_v17 = vld [vmem:[%s10994_s2] sm:$0xff] }
 0x206   : > { %v865_v19 = vsel %vm859_vm6, %v855_v16, %v856_v5  ;;  %883 = vst [vmem:[#allocation3 + $0x54] sm:$0xff] %v868_v13  ;;  %1414 = vperm.xlu1 %7996, %v476_v17  }
 0x207   : > { %v866_v24 = vsel %vm11054_vm11, %v8550_v32, %v865_v19  ;;  %v7762_v25 = vld [vmem:[#allocation3 + $0x128] sm:$0xf0]  ;;  %v6909_v26 = vld [vmem:[#allocation3 + $0x12c] sm:$0xf0] }
 0x208   : > { %881 = vst [vmem:[#allocation3 + $0x48] sm:$0xff] %v866_v24  ;;  %v6908_v22 = vor.u32 %v7762_v25, %v6907_v18  ;;  %v6912_v45 = vor.u32 %v7761_v20, %v6909_v26 }
 0x209   : > { %v1107_v29 = vpop.permute.xlu1 %1106 }
 0x20a   : > { %v8586_v28 = vpop.permute.xlu2 %1096  ;;  %1779 = vmatpush.bf16.msra.mxu1 %v6908_v22  ;;  %1836 = vmatpush.bf16.msrb.mxu2 %v6912_v45  ;;  %v1117_v30 = vrot.slane %v1107_v29, 4  ;;  %1142 = vst.msk [vmem:[#allocation3 + $0x110] sm:$0xf] %vm811_vm14, %v1107_v29  ;;  %v7729_v22 = vld [vmem:[#allocation3 + $0x20] sm:$0xf0] }
 0x20b   : > { %v1105_v31 = vpop.permute.xlu0 %1104  ;;  %v1112_v15 = vrot.slane %v8586_v28, 4  ;;  %v6777_v45 = vld [vmem:[#allocation3 + $0x24] sm:$0xf0] }
 0x20c   : > { %v1116_v32 = vrot.slane %v1105_v31, 4 }
 0x20d   : > { %v7735_v34 = vld [vmem:[#allocation3 + $0x50] sm:$0xf0]  ;;  %v6801_v36 = vld [vmem:[#allocation3 + $0x54] sm:$0xf0] }
 0x20e   : > { %v1125_v33 = vsel %vm859_vm6, %v1116_v32, %v1117_v30  ;;  %v6775_v30 = vld [vmem:[#allocation3 + $0x18] sm:$0xf] }
 0x20f   : > { %v1126_v37 = vsel %vm11046_vm4, %v1105_v31, %v1125_v33  ;;  %v6799_v38 = vld [vmem:[#allocation3 + $0x48] sm:$0xf]  ;;  %v7734_v40 = vld [vmem:[#allocation3 + $0x4c] sm:$0xf]  ;;  %v7728_v33 = vld [vmem:[#allocation3 + $0x1c] sm:$0xf] }
 0x210   : > { %1141 = vst [vmem:[#allocation3 + $0x108] sm:$0xff] %v1126_v37  ;;  %v6800_v42 = vor.u32 %v7735_v34, %v6799_v38  ;;  %v6804_v41 = vor.u32 %v7734_v40, %v6801_v36  ;;  %v6776_v36 = vor.u32 %v7729_v22, %v6775_v30  ;;  %v6763_v37 = vld [vmem:[#allocation3] sm:$0xf]  ;;  %v7726_v38 = vld [vmem:[#allocation3 + $0x8] sm:$0xf0] }
 0x211   : > { %v836_v44 = vpop.permute.xlu1 %835  ;;  %v7725_v40 = vld [vmem:[#allocation3 + $0x4] sm:$0xf]  ;;  %v6915_v22 = vld [vmem:[#allocation3 + $0x128] sm:$0xf] }
 0x212   : > { %v1103_v43 = vpop.permute.xlu2 %1102  ;;  %1761 = vmatpush.bf16.msra.mxu0 %v6800_v42  ;;  %1818 = vmatpush.bf16.msra.mxu3 %v6804_v41  ;;  %v851_v47 = vrot.slane %v836_v44, 4  ;;  %v6969_v42 = vld [vmem:[#allocation3 + $0x1a4] sm:$0xf0]  ;;  %v6739_v41 = vld [vmem:[%s10993_s1] sm:$0xf]  ;;  %v6768_v55 = vor.u32 %v7725_v40, %v6765_v53 }
 0x213   : > { %1140 = vst.msk [vmem:[#allocation3 + $0x104] sm:$0xf] %vm811_vm14, %v1103_v43  ;;  %v1111_v48 = vpop.permute.xlu0 %1110  ;;  %v1115_v10 = vrot.slane %v1103_v43, 4  ;;  %v6741_v53 = vld [vmem:[%s10993_s1 + $0xc] sm:$0xf0] }
 0x214   : > { %v1119_v50 = vrot.slane %v1111_v48, 4  ;;  %1144 = vst.msk [vmem:[#allocation3 + $0x11c] sm:$0xf] %vm811_vm14, %v1111_v48  ;;  %v860_v51 = vsel %vm859_vm6, %v851_v47, %v852_v46  ;;  %v7714_v47 = vld [vmem:[%s10993_s1 + $0x8] sm:$0xf0] }
 0x215   : > { %v862_v52 = vsel %vm11054_vm11, %v836_v44, %v860_v51  ;;  %v7772_v51 = vld [vmem:[#allocation3 + $0x178] sm:$0xf0] }
 0x216   : > { %v1127_v39 = vsel %vm859_vm6, %v1118_v49, %v1119_v50  ;;  %877 = vst [vmem:[#allocation3 + $0x30] sm:$0xff] %v862_v52  ;;  %v6764_v52 = vor.u32 %v7726_v38, %v6763_v37  ;;  %v477_v38 = vld [vmem:[%s10994_s2 + $0x8] sm:$0xff] }
 0x217   : > { %v1128_v54 = vsel %vm11046_vm4, %v8563_v58, %v1127_v39  ;;  %v6895_v63 = vld [vmem:[#allocation3 + $0x108] sm:$0xf]  ;;  %v7758_v3 = vld [vmem:[#allocation3 + $0x10c] sm:$0xf] }
 0x218   : > { %1143 = vst [vmem:[#allocation3 + $0x114] sm:$0xff] %v1128_v54 }
 0x219   : > { %v842_v59 = vpop.permute.xlu1 %841 }
 0x21a   : > { %v8607_v57 = vpop.permute.xlu2 %1043  ;;  %v854_v60 = vrot.slane %v842_v59, 4  ;;  %880 = vst.msk [vmem:[#allocation3 + $0x44] sm:$0xf] %vm811_vm14, %v842_v59  ;;  %v7776_v59 = vld [vmem:[#allocation3 + $0x19c] sm:$0xf] }
 0x21b   : > { %v840_v61 = vpop.permute.xlu0 %839 }
 0x21c   : > { %v853_v62 = vrot.slane %v840_v61, 4 }
 0x21d   : > { %v6787_v19 = vld [vmem:[#allocation3 + $0x30] sm:$0xf]  ;;  %v7731_v20 = vld [vmem:[#allocation3 + $0x34] sm:$0xf] }
 0x21e   : > { %v863_v58 = vsel %vm859_vm6, %v853_v62, %v854_v60  ;;  %v6951_v60 = vld [vmem:[#allocation3 + $0x170] sm:$0xf] }
 0x21f   : > { %v864_v0 = vsel %vm11054_vm11, %v840_v61, %v863_v58  ;;  %v7759_v2 = vld [vmem:[#allocation3 + $0x110] sm:$0xf0]  ;;  %v6897_v4 = vld [vmem:[#allocation3 + $0x114] sm:$0xf0]  ;;  %v8637_v61 = vor.u32 %v7714_v47, %v6739_v41  ;;  %v6972_v58 = vor.u32 %v7776_v59, %v6969_v42  ;;  %v6903_v41 = vld [vmem:[#allocation3 + $0x110] sm:$0xf] }
 0x220   : > { %879 = vst [vmem:[#allocation3 + $0x3c] sm:$0xff] %v864_v0  ;;  %v6896_v6 = vor.u32 %v7759_v2, %v6895_v63  ;;  %v6900_v8 = vor.u32 %v7758_v3, %v6897_v4  ;;  %v6952_v63 = vor.u32 %v7772_v51, %v6951_v60  ;;  %v6957_v0 = vld [vmem:[#allocation3 + $0x18c] sm:$0xf0]  ;;  %v7778_v47 = vld [vmem:[#allocation3 + $0x1a8] sm:$0xf0] }
 0x221   : > { %v1101_v9 = vpop.permute.xlu1 %1100 }
 0x222   : > { %v8614_v1 = vpop.permute.xlu2 %1033  ;;  %1780 = vmatpush.bf16.msra.mxu1 %v6896_v6  ;;  %1837 = vmatpush.bf16.msrb.mxu2 %v6900_v8  ;;  %v1114_v11 = vrot.slane %v1101_v9, 4  ;;  %v7773_v6 = vld [vmem:[#allocation3 + $0x184] sm:$0xf] }
 0x223   : > { %1073 = vst.msk [vmem:[#allocation3 + $0xc8] sm:$0xf] %vm811_vm14, %v8614_v1  ;;  %v1099_v14 = vpop.permute.xlu0 %1098  ;;  %v1048_v2 = vrot.slane %v8614_v1, 4  ;;  %v7769_v8 = vld [vmem:[#allocation3 + $0x160] sm:$0xf0] }
 0x224   : > { %v1113_v16 = vrot.slane %v1099_v14, 4  ;;  %1138 = vst.msk [vmem:[#allocation3 + $0xf8] sm:$0xf] %vm811_vm14, %v1099_v14  ;;  %v1123_v5 = vsel %vm859_vm6, %v1114_v11, %v1115_v10  ;;  %v6939_v14 = vld [vmem:[#allocation3 + $0x158] sm:$0xf] }
 0x225   : > { %v1124_v18 = vsel %vm11046_vm4, %v1101_v9, %v1123_v5  ;;  %v1053_v9 = vrot.slane %v8607_v57, 4  ;;  %v6940_v5 = vor.u32 %v7769_v8, %v6939_v14  ;;  %v6843_v8 = vld [vmem:[#allocation3 + $0x98] sm:$0xf]  ;;  %v7745_v14 = vld [vmem:[#allocation3 + $0xa0] sm:$0xf0] }
 0x226   : > { %v1120_v13 = vsel %vm859_vm6, %v1112_v15, %v1113_v16  ;;  %1139 = vst [vmem:[#allocation3 + $0xfc] sm:$0xff] %v1124_v18  ;;  %v6960_v16 = vor.u32 %v7773_v6, %v6957_v0  ;;  %v6927_v18 = vld [vmem:[#allocation3 + $0x140] sm:$0xf] }
 0x227   : > { %v1122_v21 = vsel %vm11046_vm4, %v8586_v28, %v1120_v13  ;;  %v7732_v23 = vld [vmem:[#allocation3 + $0x38] sm:$0xf0]  ;;  %v6789_v24 = vld [vmem:[#allocation3 + $0x3c] sm:$0xf0]  ;;  %v6780_v28 = vor.u32 %v7728_v33, %v6777_v45 }
 0x228   : > { %1137 = vst [vmem:[#allocation3 + $0xf0] sm:$0xff] %v1122_v21  ;;  %v6788_v25 = vor.u32 %v7732_v23, %v6787_v19  ;;  %v6792_v26 = vor.u32 %v7731_v20, %v6789_v24  ;;  %v478_v13 = vld [vmem:[%s10994_s2 + $0x10] sm:$0xff]  ;;  %v479_v19 = vld [vmem:[%s10994_s2 + $0x18] sm:$0xff]  ;;  %v7760_v45 = vld [vmem:[#allocation3 + $0x118] sm:$0xf0] }
 0x229   : > { %v1042_v29 = vpop.permute.xlu1 %1041  ;;  %v7766_v20 = vld [vmem:[#allocation3 + $0x148] sm:$0xf0]  ;;  %1424 = vperm.xlu2 %7994, %v478_v13   ;;  %1429 = vperm.xlu0 %7995, %v479_v19   ;;  %v7739_v19 = vld [vmem:[#allocation3 + $0x70] sm:$0xf0] }
 0x22a   : > { %1762 = vmatpush.bf16.msra.mxu0 %v6788_v25  ;;  %1819 = vmatpush.bf16.msra.mxu3 %v6792_v26  ;;  %v1052_v31 = vrot.slane %v1042_v29, 4  ;;  %1077 = vst.msk [vmem:[#allocation3 + $0xe0] sm:$0xf] %vm811_vm14, %v1042_v29  ;;  %v6928_v23 = vor.u32 %v7766_v20, %v6927_v18  ;;  %v7763_v25 = vld [vmem:[#allocation3 + $0x130] sm:$0xf0] }
 0x22b   : > { %v1040_v32 = vpop.permute.xlu0 %1039  ;;  %v6751_v29 = vld [vmem:[%s10993_s1 + $0x18] sm:$0xf]  ;;  %v6831_v18 = vld [vmem:[#allocation3 + $0x80] sm:$0xf] }
 0x22c   : > { %v1051_v34 = vrot.slane %v1040_v32, 4  ;;  %v6819_v20 = vld [vmem:[#allocation3 + $0x68] sm:$0xf] }
 0x22d   : > { %v7756_v44 = vld [vmem:[#allocation3 + $0xf8] sm:$0xf0]  ;;  %v6885_v46 = vld [vmem:[#allocation3 + $0xfc] sm:$0xf0] }
 0x22e   : > { %v1060_v43 = vsel %vm859_vm6, %v1051_v34, %v1052_v31  ;;  %1763 = vmatpush.bf16.msra.mxu0 %v6776_v36  ;;  %1820 = vmatpush.bf16.msra.mxu3 %v6780_v28  ;;  %v6916_v31 = vor.u32 %v7763_v25, %v6915_v22  ;;  %v7717_v34 = vld [vmem:[%s10993_s1 + $0x20] sm:$0xf0]  ;;  %v7736_v25 = vld [vmem:[#allocation3 + $0x58] sm:$0xf0] }
 0x22f   : > { %v1061_v48 = vsel %vm11045_vm3, %v1040_v32, %v1060_v43  ;;  %v6883_v49 = vld [vmem:[#allocation3 + $0xf0] sm:$0xf]  ;;  %v7755_v50 = vld [vmem:[#allocation3 + $0xf4] sm:$0xf]  ;;  %v8667_v43 = vor.u32 %v7717_v34, %v6751_v29  ;;  %v6795_v29 = vld [vmem:[#allocation3 + $0x38] sm:$0xf] }
 0x230   : > { %1076 = vst [vmem:[#allocation3 + $0xd8] sm:$0xff] %v1061_v48  ;;  %v6884_v39 = vor.u32 %v7756_v44, %v6883_v49  ;;  %v6888_v54 = vor.u32 %v7755_v50, %v6885_v46  ;;  %v6904_v44 = vor.u32 %v7760_v45, %v6903_v41  ;;  %v6891_v46 = vld [vmem:[#allocation3 + $0xf8] sm:$0xf]  ;;  %v7757_v48 = vld [vmem:[#allocation3 + $0x100] sm:$0xf0] }
 0x231   : > { %v1032_v62 = vpop.permute.xlu1 %1031  ;;  %1419 = vperm.xlu2 %7994, %v477_v38   ;;  %v7748_v49 = vld [vmem:[#allocation3 + $0xb8] sm:$0xf0]  ;;  %v7713_v50 = vld [vmem:[%s10993_s1 + $0x4] sm:$0xf]  ;;  %v6892_v51 = vor.u32 %v7757_v48, %v6891_v46  ;;  %v7733_v45 = vld [vmem:[#allocation3 + $0x40] sm:$0xf0] }
 0x232   : > { %1764 = vmatpush.bf16.msra.mxu0 %v6764_v52  ;;  %1781 = vmatpush.bf16.msra.mxu1 %v6884_v39  ;;  %v1047_v3 = vrot.slane %v1032_v62, 4  ;;  %v7727_v34 = vld [vmem:[#allocation3 + $0x10] sm:$0xf0] }
 0x233   : > { %1821 = vmatpush.bf16.msra.mxu3 %v6768_v55  ;;  %1838 = vmatpush.bf16.msrb.mxu2 %v6888_v54  ;;  %v1046_v4 = vpop.permute.xlu0 %1045 }
 0x234   : > { %v1054_v10 = vrot.slane %v1046_v4, 4  ;;  %1079 = vst.msk [vmem:[#allocation3 + $0xec] sm:$0xf] %vm811_vm14, %v1046_v4  ;;  %v1055_v11 = vsel %vm859_vm6, %v1047_v3, %v1048_v2  ;;  %v6879_v2 = vld [vmem:[#allocation3 + $0xe0] sm:$0xf]  ;;  %v8677_v4 = vor.u32 %v7713_v50, %v6741_v53 }
 0x235   : > { %1765 = vmatmul.bf16.vlgmr.msra.gmra.mxu0 %v8637_v61  ;;  %v1057_v1 = vsel %vm11045_vm3, %v1032_v62, %v1055_v11 }
 0x236   : > { %1858 = vmatpush.bf16.msrb.mxu0 %v6972_v58  ;;  %v1062_v15 = vsel %vm859_vm6, %v1053_v9, %v1054_v10  ;;  %1822 = vmatmul.bf16.vlgmr.msra.gmra.mxu3 %v8637_v61  ;;  %1072 = vst [vmem:[#allocation3 + $0xc0] sm:$0xff] %v1057_v1  ;;  %v6855_v58 = vld [vmem:[#allocation3 + $0xb0] sm:$0xf]  ;;  %v6963_v9 = vld [vmem:[#allocation3 + $0x188] sm:$0xf]  ;;  %v6844_v1 = vor.u32 %v7745_v14, %v6843_v8 }
 0x237   : > { %1890 = vmatpush.bf16.msrb.mxu3 %v6952_v63  ;;  %v1063_v17 = vsel %vm11045_vm3, %v8607_v57, %v1062_v15  ;;  %v6871_v32 = vld [vmem:[#allocation3 + $0xd8] sm:$0xf]  ;;  %v7752_v33 = vld [vmem:[#allocation3 + $0xdc] sm:$0xf]  ;;  %v6975_v63 = vld [vmem:[#allocation3 + $0x1a0] sm:$0xf]  ;;  %v6856_v0 = vor.u32 %v7748_v49, %v6855_v58 }
 0x238   : > { %1078 = vst [vmem:[#allocation3 + $0xe4] sm:$0xff] %v1063_v17  ;;  %v6976_v3 = vor.u32 %v7778_v47, %v6975_v63  ;;  %v7775_v10 = vld [vmem:[#allocation3 + $0x190] sm:$0xf0]  ;;  %v6867_v15 = vld [vmem:[#allocation3 + $0xc8] sm:$0xf] }
 0x239   : > { %v1038_v21 = vpop.permute.xlu1 %1037  ;;  %v7742_v17 = vld [vmem:[#allocation3 + $0x88] sm:$0xf0] }
 0x23a   : > { %1859 = vmatpush.bf16.msrb.mxu0 %v6960_v16  ;;  %v1050_v24 = vrot.slane %v1038_v21, 4  ;;  %1075 = vst.msk [vmem:[#allocation3 + $0xd4] sm:$0xf] %vm811_vm14, %v1038_v21  ;;  %v6964_v16 = vor.u32 %v7775_v10, %v6963_v9  ;;  %v6832_v13 = vor.u32 %v7742_v17, %v6831_v18  ;;  %v6820_v21 = vor.u32 %v7739_v19, %v6819_v20 }
 0x23b   : > { %1891 = vmatpush.bf16.msrb.mxu3 %v6940_v5  ;;  %v1036_v57 = vpop.permute.xlu0 %1035  ;;  %v7754_v39 = vld [vmem:[#allocation3 + $0xe8] sm:$0xf0] }
 0x23c   : > { %v1049_v26 = vrot.slane %v1036_v57, 4  ;;  %v6880_v6 = vor.u32 %v7754_v39, %v6879_v2 }
 0x23d   : > { %v6859_v52 = vld [vmem:[#allocation3 + $0xc0] sm:$0xf]  ;;  %v7749_v55 = vld [vmem:[#allocation3 + $0xc4] sm:$0xf] }
 0x23e   : > { %v1058_v30 = vsel %vm859_vm6, %v1049_v26, %v1050_v24  ;;  %v7716_v24 = vld [vmem:[%s10993_s1 + $0x1c] sm:$0xf] }
 0x23f   : > { %1892 = vmatpush.bf16.msrb.mxu3 %v6928_v23  ;;  %v1059_v36 = vsel %vm11045_vm3, %v1036_v57, %v1058_v30  ;;  %v7753_v28 = vld [vmem:[#allocation3 + $0xe0] sm:$0xf0]  ;;  %v6873_v37 = vld [vmem:[#allocation3 + $0xe4] sm:$0xf0]  ;;  %v6807_v23 = vld [vmem:[#allocation3 + $0x50] sm:$0xf]  ;;  %v6796_v30 = vor.u32 %v7733_v45, %v6795_v29 }
 0x240   : > { %1074 = vst [vmem:[#allocation3 + $0xcc] sm:$0xff] %v1059_v36  ;;  %v6872_v40 = vor.u32 %v7753_v28, %v6871_v32  ;;  %v6876_v42 = vor.u32 %v7752_v33, %v6873_v37  ;;  %v6753_v57 = vld [vmem:[%s10993_s1 + $0x24] sm:$0xf0]  ;;  %v6808_v26 = vor.u32 %v7736_v25, %v6807_v23  ;;  %v6783_v32 = vld [vmem:[#allocation3 + $0x20] sm:$0xf]  ;;  %v351_v37 = vlaneseq }
 0x241   : > { %v7751_v11 = vld [vmem:[#allocation3 + $0xd0] sm:$0xf0]  ;;  %v8690_v22 = vor.u32 %v7716_v24, %v6753_v57  ;;  %v6771_v36 = vld [vmem:[#allocation3 + $0x8] sm:$0xf] }
 0x242   : > { %1782 = vmatpush.bf16.msra.mxu1 %v6872_v40  ;;  %1839 = vmatpush.bf16.msrb.mxu2 %v6876_v42  ;;  %v6868_v5 = vor.u32 %v7751_v11, %v6867_v15  ;;  %v6772_v28 = vor.u32 %v7727_v34, %v6771_v36  ;;  %v352_v38 = vand.u32 127, %v351_v37 }
 0x243   : > { %1893 = vmatpush.bf16.msrb.mxu3 %v6916_v31  ;;  %v7730_v31 = vld [vmem:[#allocation3 + $0x28] sm:$0xf0] }
 0x244   : > { %v6784_v33 = vor.u32 %v7730_v31, %v6783_v32  ;;  %v358_v40 = vand.u32 65535, %v352_v38  ;;  %v359_v42 = vshrl.u32 %v352_v38, 16  ;;  %v8713_v25 = vadd.s32 256, %v352_v38 }
 0x245   : > { %1770 = vmatmul.bf16.gmra.mxu0 %v8667_v43 }
 0x246   : > { %1827 = vmatmul.bf16.gmra.mxu3 %v8667_v43  ;;  %v362_v41 = vmul.u32 58254, %v358_v40  ;;  %v361_v47 = vmul.u32 14564, %v358_v40  ;;  %v363_v48 = vmul.u32 14564, %v359_v42  ;;  %v417_v32 = vshrl.u32 %v8713_v25, 16 }
 0x247   : > { %1894 = vmatpush.bf16.msrb.mxu3 %v6904_v44  ;;  %v7750_v54 = vld [vmem:[#allocation3 + $0xc8] sm:$0xf0]  ;;  %v6861_v59 = vld [vmem:[#allocation3 + $0xcc] sm:$0xf0]  ;;  %v353_v44 = vadd.s32 128, %v352_v38 }
 0x248   : > { %v6860_v60 = vor.u32 %v7750_v54, %v6859_v52  ;;  %v6864_v62 = vor.u32 %v7749_v55, %v6861_v59  ;;  %v365_v49 = vshll.u32 %v362_v41, 16  ;;  %v367_v54 = vshll.u32 %v363_v48, 16 }
 0x249   : > { %v387_v46 = vand.u32 65535, %v353_v44  ;;  %v388_v50 = vshrl.u32 %v353_v44, 16  ;;  %v366_v10 = vshrl.u32 %v362_v41, 16 }
 0x24a   : > { %1783 = vmatpush.bf16.msra.mxu1 %v6860_v60  ;;  %1840 = vmatpush.bf16.msrb.mxu2 %v6864_v62  ;;  %vm369_vm2 = vc.u32 %v361_v47, %v365_v49  ;;  %v371_v55 = vadd.s32 %v365_v49, %v361_v47  ;;  %v364_v62 = vmul.u32 58254, %v359_v42 }
 0x24b   : > { %1895 = vmatpush.bf16.msrb.mxu3 %v6892_v51  ;;  %v391_v51 = vmul.u32 58254, %v387_v46  ;;  %v390_v52 = vmul.u32 14564, %v387_v46  ;;  %v392_v39 = vmul.u32 14564, %v388_v50  ;;  %v393_v63 = vmul.u32 58254, %v388_v50 }
 0x24c   : > { %v422_v50 = vmul.u32 58254, %v417_v32 }
 0x24d   : > { %1784 = vmatmul.bf16.vlgmr.msra.gmra.mxu1 %v8677_v4  ;;  %1841 = vmatmul.bf16.vlgmr.msrb.gmra.mxu2 %v8677_v4  ;;  %v394_v53 = vshll.u32 %v391_v51, 16  ;;  %v396_v59 = vshll.u32 %v392_v39, 16  ;;  %v397_v18 = vshrl.u32 %v392_v39, 16 }
 0x24e   : > { %1871 = vmatpush.bf16.msrb.mxu1 %v6856_v0  ;;  %1915 = vmatpush.bf16.msra.mxu2 %v6976_v3  ;;  %v370_v0 = vsel %vm369_vm2, 1, %v8063_v12 }
 0x24f   : > { %1896 = vmatpush.bf16.msrb.mxu3 %v6880_v6  ;;  %vm398_vm1 = vc.u32 %v390_v52, %v394_v53  ;;  %v400_v60 = vadd.s32 %v394_v53, %v390_v52  ;;  %v372_v3 = vadd.s32 %v370_v0, %v364_v62 }
 0x250   : > { %v399_v2 = vsel %vm398_vm1, 1, %v8063_v12 }
 0x251   : > { %vm402_vm0 = vc.u32 %v400_v60, %v396_v59  ;;  %v401_v6 = vadd.s32 %v399_v2, %v393_v63 }
 0x252   : > { %1872 = vmatpush.bf16.msrb.mxu1 %v6844_v1  ;;  %1916 = vmatpush.bf16.msra.mxu2 %v6964_v16  ;;  %v403_v9 = vsel %vm402_vm0, 1, %v8063_v12  ;;  %v395_v1 = vshrl.u32 %v391_v51, 16 }
 0x253   : > { %1897 = vmatpush.bf16.msrb.mxu3 %v6868_v5  ;;  %v405_v15 = vadd.s32 %v403_v9, %v401_v6  ;;  %v368_v5 = vshrl.u32 %v363_v48, 16 }
 0x255   : > { %6979 = vmatmul.msk.bf16.vlgmr.msrb.gmra.mxu0 %vm11042_vm10, %v8582_v27 }
 0x256   : > { %1873 = vmatpush.bf16.msrb.mxu1 %v6832_v13  ;;  %1898 = vmatmul.bf16.vlgmr.msrb.gmra.mxu3 %v8677_v4  ;;  %v406_v13 = vadd.s32 %v405_v15, %v395_v1 }
 0x25a   : > { %1874 = vmatpush.bf16.msrb.mxu1 %v6820_v21  ;;  %v407_v21 = vadd.s32 %v406_v13, %v397_v18 }
 0x25c   : > { %v408_v57 = vshrl.u32 %v407_v21, 4 }
 0x25d   : > { %1789 = vmatmul.bf16.gmra.mxu1 %v8690_v22  ;;  %1846 = vmatmul.bf16.gmra.mxu2 %v8690_v22 }
 0x25e   : > { %1875 = vmatpush.bf16.msrb.mxu1 %v6808_v26  ;;  %v416_v26 = vand.u32 65535, %v8713_v25  ;;  %v409_v31 = vmul.u32 18, %v408_v57 }
 0x260   : > { %v419_v36 = vmul.u32 14564, %v416_v26  ;;  %v410_v41 = vsub.s32 %v353_v44, %v409_v31 }
 0x262   : > { %1876 = vmatpush.bf16.msrb.mxu1 %v6796_v30  ;;  %vm446_vm5 = vcmp.lt.s32.totalorder %v410_v41, 0  ;;  %v452_v53 = vadd.s32 18, %v410_v41 }
 0x265   : > { %6980 = vmatmul.msk.bf16.gmra.mxu0 %vm11042_vm10, %v8605_v56 }
 0x266   : > { %1877 = vmatpush.bf16.msrb.mxu1 %v6784_v33  ;;  %1903 = vmatmul.bf16.gmra.mxu3 %v8690_v22  ;;  %v420_v33 = vmul.u32 58254, %v416_v26 }
 0x268   : > { %v423_v37 = vshll.u32 %v420_v33, 16 }
 0x26a   : > { %1878 = vmatpush.bf16.msrb.mxu1 %v6772_v28  ;;  %v421_v28 = vmul.u32 14564, %v417_v32  ;;  %vm427_vm0 = vc.u32 %v419_v36, %v423_v37  ;;  %v429_v47 = vadd.s32 %v423_v37, %v419_v36 }
 0x26c   : > { %v425_v46 = vshll.u32 %v421_v28, 16 }
 0x26d   : > { %1879 = vmatmul.bf16.vlgmr.msrb.gmra.mxu1 %v8637_v61  ;;  %6981 = vmatmul.msk.bf16.vlgmr.msra.gmra.mxu2 %vm11042_vm10, %v8582_v27 }
 0x26e   : > { %v8703_v58 = vpop.f32.mrf.mxu2  ;;  %vm431_vm3 = vc.u32 %v429_v47, %v425_v46 }
 0x26f   : > { %v432_v0 = vsel %vm431_vm3, 1, %v8063_v12 }
 0x276   : > { %v8709_v16 = vpop.f32.mrf.mxu2 }
 0x278   : > { %v8721_v42 = vpop.permute.xlu1 %1414 }
 0x27d   : > { %1884 = vmatmul.bf16.gmra.mxu1 %v8667_v43  ;;  %6982 = vmatmul.msk.bf16.gmra.mxu2 %vm11042_vm10, %v8605_v56  ;;  %vm373_vm10 = vc.u32 %v371_v55, %v367_v54 }
 0x27e   : > { %v374_v8 = vsel %vm373_vm10, 1, %v8063_v12  ;;  %v8711_v24 = vpop.f32.mrf.mxu2  ;;  %vm443_vm10 = vcmp.ne.s32.totalorder %v410_v41, 0 }
 0x27f   : > { %v376_v11 = vadd.s32 %v374_v8, %v372_v3  ;;  %vm8734_vm12 = vmand %vm446_vm5, %vm443_vm10  ;;  %vm2012_vm10 = vcmask 1047556  }
 0x280   : > { %v455_v6 = vsel %vm8734_vm12, %v452_v53, %v410_v41 }
 0x281   : > { %v377_v17 = vadd.s32 %v376_v11, %v366_v10  ;;  %v424_v11 = vshrl.u32 %v420_v33, 16  ;;  %vm8747_vm3 = vcmp.lt.s32.totalorder %v455_v6, 16 }
 0x283   : > { %v378_v19 = vadd.s32 %v377_v17, %v368_v5  ;;  %v8719_v34 = vpop.permute.xlu2 %1424 }
 0x285   : > { %v379_v23 = vshrl.u32 %v378_v19, 4  ;;  %v426_v19 = vshrl.u32 %v421_v28, 16 }
 0x286   : > { %v8723_v48 = vpop.f32.mrf.mxu2 }
 0x287   : > { %v380_v45 = vmul.u32 18, %v379_v23 }
 0x289   : > { %v381_v40 = vsub.s32 %v352_v38, %v380_v45  ;;  %v428_v38 = vsel %vm427_vm0, 1, %v8063_v12 }
 0x28a   : > { %v430_v62 = vadd.s32 %v428_v38, %v422_v50 }
 0x28b   : > { %vm442_vm1 = vcmp.ne.s32.totalorder %v381_v40, 0  ;;  %vm445_vm2 = vcmp.lt.s32.totalorder %v381_v40, 0  ;;  %v451_v55 = vadd.s32 18, %v381_v40  ;;  %v8738_v63 = vpop.permute.xlu2 %1419 }
 0x28c   : > { %vm8729_vm4 = vmand %vm445_vm2, %vm442_vm1  ;;  %vm2011_vm2 = vcmask 1043608  }
 0x28d   : > { %v454_v8 = vsel %vm8729_vm4, %v451_v55, %v381_v40 }
 0x28e   : > { %vm8751_vm5 = vcmp.lt.s32.totalorder %v454_v8, 16 }
 0x2b2   : > { %v1766_v14 = vpop.f32.mrf.mxu0 }
 0x2b3   : > { %v1767_v49 = vadd.f32 %v1766_v14, %v8721_v42  ;;  %v434_v14 = vadd.s32 %v432_v0, %v430_v62 }
 0x2b5   : > { %v435_v21 = vadd.s32 %v434_v14, %v424_v11 }
 0x2b7   : > { %v436_v33 = vadd.s32 %v435_v21, %v426_v19 }
 0x2b9   : > { %v1823_v30 = vpop.f32.mrf.mxu3  ;;  %v437_v46 = vshrl.u32 %v436_v33, 4 }
 0x2ba   : > { %v1768_v20 = vpop.f32.mrf.mxu0  ;;  %v1824_v59 = vadd.f32 %v1823_v30, %v8721_v42 }
 0x2bb   : > { %v1769_v9 = vadd.f32 %v1768_v20, %v8738_v63  ;;  %v438_v38 = vmul.u32 18, %v437_v46 }
 0x2c1   : > { %v1825_v44 = vpop.f32.mrf.mxu3 }
 0x2c2   : > { %v8716_v29 = vpop.f32.mrf.mxu0  ;;  %v1826_v23 = vadd.f32 %v1825_v44, %v8738_v63  ;;  %v439_v44 = vsub.s32 %v8713_v25, %v438_v38 }
 0x2c4   : > { %vm444_vm4 = vcmp.ne.s32.totalorder %v439_v44, 0  ;;  %vm447_vm12 = vcmp.lt.s32.totalorder %v439_v44, 0  ;;  %v453_v60 = vadd.s32 18, %v439_v44 }
 0x2c5   : > { %vm450_vm0 = vmand %vm447_vm12, %vm444_vm4  ;;  %vm11053_vm4 = vcmask 154624  }
 0x2c6   : > { %v456_v6 = vsel %vm450_vm0, %v453_v60, %v439_v44  ;;  %vm8808_vm12 = vmor %vm2012_vm10, %vm2011_vm2  ;;  %vm11052_vm0 = vcmask 412672   ;;  %vm11092_vm2 = vcmask 752640  }
 0x2c7   : > { %vm8772_vm1 = vcmp.lt.s32.totalorder %v456_v6, 16  ;;  %vm11093_vm10 = vmmov %vm11092_vm2 }
 0x2c9   : > { %v1828_v20 = vpop.f32.mrf.mxu3 }
 0x2ca   : > { %v8726_v51 = vpop.f32.mrf.mxu0  ;;  %v1785_v52 = vpop.f32.mrf.mxu1  ;;  %v1829_v62 = vadd.f32 %v1828_v20, %v8719_v34 }
 0x2cb   : > { %v1786_v39 = vadd.f32 %v1785_v52, %v1767_v49 }
 0x2cd   : > { %v1805_v2 = vadd.f32 %v8703_v58, %v1786_v39 }
 0x2cf   : > { %v1928_v5 = vmax.f32 %v1805_v2, 0.0  ;;  %v1772_v2 = vadd.f32 %v8716_v29, %v8719_v34 }
 0x2d0   : > { %v1842_v3 = vpop.f32.mrf.mxu2 }
 0x2d1   : > { %v1843_v10 = vadd.f32 %v1842_v3, %v1824_v59  ;;  %v1946_v45 = vsel %vm8751_vm5, %v1928_v5, 0.0  ;;  %v1830_v47 = vpop.f32.mrf.mxu3 }
 0x2d2   : > { %v1787_v1 = vpop.f32.mrf.mxu1  ;;  %v1861_v15 = vpop.f32.mrf.mxu0 }
 0x2d3   : > { %v1788_v17 = vadd.f32 %v1787_v1, %v1769_v9  ;;  %v1862_v18 = vadd.f32 %v1861_v15, %v1843_v10 }
 0x2d5   : > { %v1929_v13 = vmax.f32 %v1862_v18, 0.0  ;;  %v1807_v57 = vadd.f32 %v8709_v16, %v1788_v17  ;;  %v8777_v18 = vpop.permute.xlu0 %1429 }
 0x2d6   : > { %v1774_v20 = vadd.f32 %v8726_v51, %v8777_v18 }
 0x2d7   : > { %v1947_v26 = vsel %vm8747_vm3, %v1929_v13, 0.0  ;;  %v1931_v28 = vmax.f32 %v1807_v57, 0.0  ;;  %v1831_v13 = vadd.f32 %v1830_v47, %v8777_v18 }
 0x2d8   : > { %v1844_v30 = vpop.f32.mrf.mxu2  ;;  %v1958_v31 = vpack.c.bf16 %v1947_v26, %v1946_v45 }
 0x2d9   : > { %v1845_v32 = vadd.f32 %v1844_v30, %v1826_v23  ;;  %v1949_v49 = vsel %vm8751_vm5, %v1931_v28, 0.0  ;;  %v1899_v53 = vpop.f32.mrf.mxu3 }
 0x2da   : > { %v1790_v36 = vpop.f32.mrf.mxu1  ;;  %v1863_v37 = vpop.f32.mrf.mxu0  ;;  %1974 = vrot.lane.b32.xlu2 %v1958_v31, %s11048_s17 }
 0x2db   : > { %v1864_v40 = vadd.f32 %v1863_v37, %v1845_v32  ;;  %v1791_v25 = vadd.f32 %v1790_v36, %v1772_v2 }
 0x2dd   : > { %v1932_v41 = vmax.f32 %v1864_v40, 0.0  ;;  %v1810_v29 = vadd.f32 %v8711_v24, %v1791_v25 }
 0x2df   : > { %v1950_v16 = vsel %vm8747_vm3, %v1932_v41, 0.0  ;;  %v1934_v31 = vmax.f32 %v1810_v29, 0.0 }
 0x2e0   : > { %v1847_v50 = vpop.f32.mrf.mxu2  ;;  %v1960_v52 = vpack.c.bf16 %v1950_v16, %v1949_v49 }
 0x2e1   : > { %v1848_v3 = vadd.f32 %v1847_v50, %v1829_v62  ;;  %v1901_v11 = vpop.f32.mrf.mxu3  ;;  %v1952_v46 = vsel %vm8751_vm5, %v1934_v31, 0.0 }
 0x2e2   : > { %v1792_v39 = vpop.f32.mrf.mxu1  ;;  %1978 = vrot.lane.b32.xlu0 %v1960_v52, %s11048_s17  ;;  %v1866_v0 = vpop.f32.mrf.mxu0 }
 0x2e3   : > { %v1867_v15 = vadd.f32 %v1866_v0, %v1848_v3  ;;  %v1793_v32 = vadd.f32 %v1792_v39, %v1774_v20 }
 0x2e5   : > { %v1935_v23 = vmax.f32 %v1867_v15, 0.0  ;;  %v1812_v51 = vadd.f32 %v8723_v48, %v1793_v32 }
 0x2e7   : > { %v1953_v37 = vsel %vm8747_vm3, %v1935_v23, 0.0  ;;  %v1937_v39 = vmax.f32 %v1812_v51, 0.0 }
 0x2e8   : > { %v1849_v54 = vpop.f32.mrf.mxu2  ;;  %v1962_v16 = vpack.c.bf16 %v1953_v37, %v1952_v46 }
 0x2e9   : > { %v1850_v57 = vadd.f32 %v1849_v54, %v1831_v13  ;;  %v1904_v36 = vpop.f32.mrf.mxu3  ;;  %v1955_v0 = vsel %vm8751_vm5, %v1937_v39, 0.0 }
 0x2ea   : > { %v1880_v55 = vpop.f32.mrf.mxu1  ;;  %v1868_v45 = vpop.f32.mrf.mxu0 }
 0x2eb   : > { %v1881_v59 = vadd.f32 %v1880_v55, %v8721_v42  ;;  %v1869_v28 = vadd.f32 %v1868_v45, %v1850_v57 }
 0x2ed   : > { %v1900_v8 = vadd.f32 %v1899_v53, %v1881_v59  ;;  %v1938_v50 = vmax.f32 %v1869_v28, 0.0 }
 0x2ef   : > { %v1956_v48 = vsel %vm8747_vm3, %v1938_v50, 0.0 }
 0x2f0   : > { %v1918_v9 = vpop.f32.mrf.mxu2  ;;  %v1964_v3 = vpack.c.bf16 %v1956_v48, %v1955_v0 }
 0x2f1   : > { %v1919_v10 = vadd.f32 %v1918_v9, %v1900_v8  ;;  %v1906_v54 = vpop.f32.mrf.mxu3 }
 0x2f2   : > { %v1882_v1 = vpop.f32.mrf.mxu1 }
 0x2f3   : > { %v1930_v5 = vmax.f32 %v1919_v10, 0.0  ;;  %v1883_v17 = vadd.f32 %v1882_v1, %v8738_v63 }
 0x2f5   : > { %v1948_v19 = vsel %vm8772_vm1, %v1930_v5, 0.0  ;;  %v1902_v26 = vadd.f32 %v1901_v11, %v1883_v17 }
 0x2f6   : > { %v1959_v21 = vpack.c.bf16 %v1948_v19, %v1948_v19 }
 0x2f8   : > { %v1920_v30 = vpop.f32.mrf.mxu2  ;;  %1976 = vrot.lane.b32.xlu1 %v1959_v21, %s11048_s17 }
 0x2f9   : > { %v1921_v33 = vadd.f32 %v1920_v30, %v1902_v26 }
 0x2fa   : > { %v1885_v24 = vpop.f32.mrf.mxu1 }
 0x2fb   : > { %v1933_v40 = vmax.f32 %v1921_v33, 0.0  ;;  %v1886_v41 = vadd.f32 %v1885_v24, %v8719_v34 }
 0x2fd   : > { %v1951_v47 = vsel %vm8772_vm1, %v1933_v40, 0.0  ;;  %v1905_v52 = vadd.f32 %v1904_v36, %v1886_v41 }
 0x2fe   : > { %v1961_v49 = vpack.c.bf16 %v1951_v47, %v1951_v47 }
 0x300   : > { %v1923_v38 = vpop.f32.mrf.mxu2  ;;  %1982 = vrot.lane.b32.xlu1 %v1962_v16, %s11048_s17  ;;  %1980 = vrot.lane.b32.xlu2 %v1961_v49, %s11048_s17 }
 0x301   : > { %v1924_v44 = vadd.f32 %v1923_v38, %v1905_v52 }
 0x302   : > { %v1887_v53 = vpop.f32.mrf.mxu1 }
 0x303   : > { %v1936_v55 = vmax.f32 %v1924_v44, 0.0  ;;  %v1888_v59 = vadd.f32 %v1887_v53, %v8777_v18 }
 0x305   : > { %v1954_v60 = vsel %vm8772_vm1, %v1936_v55, 0.0  ;;  %v1907_v62 = vadd.f32 %v1906_v54, %v1888_v59 }
 0x306   : > { %v1963_v2 = vpack.c.bf16 %v1954_v60, %v1954_v60 }
 0x308   : > { %v1925_v6 = vpop.f32.mrf.mxu2  ;;  %1984 = vrot.lane.b32.xlu0 %v1963_v2, %s11048_s17  ;;  %1986 = vrot.lane.b32.xlu2 %v1964_v3, %s11048_s17 }
 0x309   : > { %v1926_v8 = vadd.f32 %v1925_v6, %v1907_v62 }
 0x30b   : > { %v1939_v9 = vmax.f32 %v1926_v8, 0.0 }
 0x30d   : > { %v1957_v25 = vsel %vm8772_vm1, %v1939_v9, 0.0 }
 0x30e   : > { %v1965_v10 = vpack.c.bf16 %v1957_v25, %v1957_v25 }
 0x310   : > { %1988 = vrot.lane.b32.xlu1 %v1965_v10, %s11048_s17 }
 0x334   : > { %v1975_v11 = vpop.permute.xlu2 %1974 }
 0x335   : > { %v1990_v15 = vrot.slane %v1975_v11, 4 }
 0x337   : > { %v1995_v5 = vsel %vm11053_vm4, %v1990_v15, %v1975_v11 }
 0x338   : > { %2014 = vst.msk [vmem:[#allocation2] sm:$0xff] %vm8808_vm12, %v1995_v5 }
 0x33f   : > { %v8815_v17 = vld [vmem:[#allocation2] sm:$0xff] }
 0x340   : > { %2183 = vrot.lane.b32.xlu1 %v8815_v17, %s8071_s12  ;;  %2119 = vrot.lane.b32.xlu0 %v8815_v17, %s8073_s10  ;;  %2031 = vst [vmem:[#allocation3] sm:$0xff] %v8815_v17 }
 0x341   : > { %2055 = vrot.lane.b32.xlu2 %v8815_v17, %s8075_s28 }
 0x348   : > { %2439 = vrot.lane.b32.xlu1 %v8815_v17, %s8072_s13  ;;  %2375 = vrot.lane.b32.xlu0 %v8815_v17, %s8074_s29 }
 0x354   : > { %v1979_v29 = vpop.permute.xlu0 %1978 }
 0x355   : > { %v1991_v13 = vrot.slane %v1979_v29, 4 }
 0x357   : > { %v1997_v19 = vsel %vm11053_vm4, %v1991_v13, %v1979_v29 }
 0x358   : > { %2017 = vst.msk [vmem:[#allocation2 + $0xc] sm:$0xff] %vm8808_vm12, %v1997_v19 }
 0x35a   : > { %v1981_v21 = vpop.permute.xlu2 %1980 }
 0x35b   : > { %v1998_v20 = vsel %vm11053_vm4, %v1991_v13, %v1981_v21 }
 0x35c   : > { %2018 = vst.msk [vmem:[#allocation2 + $0x14] sm:$0xf] %vm11052_vm0, %v1998_v20 }
 0x35f   : > { %v8833_v23 = vld [vmem:[#allocation2 + $0xc] sm:$0xff] }
 0x360   : > { %2059 = vrot.lane.b32.xlu1 %v8833_v23, %s8075_s28  ;;  %2187 = vrot.lane.b32.xlu0 %v8833_v23, %s8071_s12  ;;  %2033 = vst [vmem:[#allocation3 + $0xc] sm:$0xff] %v8833_v23 }
 0x361   : > { %2123 = vrot.lane.b32.xlu2 %v8833_v23, %s8073_s10 }
 0x362   : > { %v1987_v57 = vpop.permute.xlu2 %1986 }
 0x363   : > { %v1993_v26 = vrot.slane %v1987_v57, 4  ;;  %v2026_v30 = vld [vmem:[#allocation2 + $0x14] sm:$0xf] }
 0x364   : > { %2034 = vst.msk [vmem:[#allocation3 + $0x14] sm:$0xf] %vm811_vm14, %v2026_v30  ;;  %v2170_v44 = vld [vmem:[#allocation2 + $0x14] sm:$0xf] }
 0x365   : > { %v2001_v45 = vsel %vm11053_vm4, %v1993_v26, %v1987_v57  ;;  %v2106_v53 = vld [vmem:[#allocation2 + $0x14] sm:$0xf] }
 0x366   : > { %2021 = vst.msk [vmem:[#allocation2 + $0x24] sm:$0xff] %vm8808_vm12, %v2001_v45  ;;  %v2426_v48 = vld [vmem:[#allocation2 + $0x14] sm:$0xf] }
 0x367   : > { %v2042_v55 = vld [vmem:[#allocation2 + $0x14] sm:$0xf] }
 0x368   : > { %2443 = vrot.lane.b32.xlu0 %v8833_v23, %s8072_s13  ;;  %v2362_v9 = vld [vmem:[#allocation2 + $0x14] sm:$0xf] }
 0x369   : > { %2379 = vrot.lane.b32.xlu2 %v8833_v23, %s8074_s29  ;;  %v2298_v21 = vld [vmem:[#allocation2 + $0x14] sm:$0xf] }
 0x36a   : > { %v1977_v31 = vpop.permute.xlu1 %1976 }
 0x36b   : > { %v1996_v32 = vsel %vm11053_vm4, %v1990_v15, %v1977_v31 }
 0x36c   : > { %2016 = vst.msk [vmem:[#allocation2 + $0x8] sm:$0xf] %vm11052_vm0, %v1996_v32 }
 0x36d   : > { %v8852_v33 = vld [vmem:[#allocation2 + $0x24] sm:$0xff] }
 0x36e   : > { %2037 = vst [vmem:[#allocation3 + $0x24] sm:$0xff] %v8852_v33 }
 0x372   : > { %v1983_v24 = vpop.permute.xlu1 %1982 }
 0x373   : > { %v1992_v36 = vrot.slane %v1983_v24, 4  ;;  %v2104_v37 = vld [vmem:[#allocation2 + $0x8] sm:$0xf] }
 0x374   : > { %v2040_v28 = vld [vmem:[#allocation2 + $0x8] sm:$0xf]  ;;  %2121 = vrot.lane.b32.xlu1 %v2104_v37, %s8073_s10 }
 0x375   : > { %2057 = vrot.lane.b32.xlu0 %v2040_v28, %s8075_s28  ;;  %v2168_v40 = vld [vmem:[#allocation2 + $0x8] sm:$0xf]  ;;  %v1999_v41 = vsel %vm11053_vm4, %v1992_v36, %v1983_v24 }
 0x376   : > { %2185 = vrot.lane.b32.xlu2 %v2168_v40, %s8071_s12  ;;  %2019 = vst.msk [vmem:[#allocation2 + $0x18] sm:$0xff] %vm8808_vm12, %v1999_v41  ;;  %v2024_v51 = vld [vmem:[#allocation2 + $0x8] sm:$0xf] }
 0x377   : > { %2032 = vst.msk [vmem:[#allocation3 + $0x8] sm:$0xf] %vm811_vm14, %v2024_v51  ;;  %v2360_v16 = vld [vmem:[#allocation2 + $0x8] sm:$0xf] }
 0x378   : > { %v2424_v49 = vld [vmem:[#allocation2 + $0x8] sm:$0xf] }
 0x379   : > { %v2296_v5 = vld [vmem:[#allocation2 + $0x8] sm:$0xf] }
 0x37a   : > { %v1985_v46 = vpop.permute.xlu0 %1984 }
 0x37b   : > { %v2000_v47 = vsel %vm11053_vm4, %v1992_v36, %v1985_v46  ;;  %v2232_v46 = vld [vmem:[#allocation2 + $0x8] sm:$0xf] }
 0x37c   : > { %2020 = vst.msk [vmem:[#allocation2 + $0x20] sm:$0xf] %vm11052_vm0, %v2000_v47  ;;  %2377 = vrot.lane.b32.xlu1 %v2360_v16, %s8074_s29 }
 0x37d   : > { %v8866_v50 = vld [vmem:[#allocation2 + $0x18] sm:$0xff] }
 0x37e   : > { %2441 = vrot.lane.b32.xlu2 %v2424_v49, %s8072_s13  ;;  %2191 = vrot.lane.b32.xlu0 %v8866_v50, %s8071_s12  ;;  %2035 = vst [vmem:[#allocation3 + $0x18] sm:$0xff] %v8866_v50 }
 0x382   : > { %v1989_v52 = vpop.permute.xlu1 %1988 }
 0x383   : > { %v2002_v38 = vsel %vm11053_vm4, %v1993_v26, %v1989_v52  ;;  %v2028_v39 = vld [vmem:[#allocation2 + $0x20] sm:$0xf]  ;;  %vm11130_vm4 = vcmask 261120  }
 0x384   : > { %2022 = vst.msk [vmem:[#allocation2 + $0x2c] sm:$0xf] %vm11052_vm0, %v2002_v38  ;;  %2063 = vrot.lane.b32.xlu1 %v8866_v50, %s8075_s28  ;;  %v2108_v59 = vld [vmem:[#allocation2 + $0x20] sm:$0xf]  ;;  %vm11121_vm0 = vcmask 261120  }
 0x385   : > { %2036 = vst.msk [vmem:[#allocation3 + $0x20] sm:$0xf] %vm811_vm14, %v2028_v39  ;;  %v2364_v60 = vld [vmem:[#allocation2 + $0x20] sm:$0xf] }
 0x386   : > { %2127 = vrot.lane.b32.xlu2 %v8866_v50, %s8073_s10  ;;  %2447 = vrot.lane.b32.xlu0 %v8866_v50, %s8072_s13  ;;  %v2172_v62 = vld [vmem:[#allocation2 + $0x20] sm:$0xf] }
 0x387   : > { %v2044_v0 = vld [vmem:[#allocation2 + $0x20] sm:$0xf] }
 0x388   : > { %v2428_v3 = vld [vmem:[#allocation2 + $0x20] sm:$0xf] }
 0x389   : > { %v2300_v6 = vld [vmem:[#allocation2 + $0x20] sm:$0xf] }
 0x38a   : > { %v2236_v32 = vld [vmem:[#allocation2 + $0x20] sm:$0xf] }
 0x38b   : > { %v2030_v54 = vld [vmem:[#allocation2 + $0x2c] sm:$0xf] }
 0x38c   : > { %2189 = vrot.lane.b32.xlu1 %v2170_v44, %s8071_s12  ;;  %2038 = vst.msk [vmem:[#allocation3 + $0x2c] sm:$0xf] %vm811_vm14, %v2030_v54  ;;  %v2174_v2 = vld [vmem:[#allocation2 + $0x2c] sm:$0xf] }
 0x38d   : > { %v2046_v11 = vld [vmem:[#allocation2 + $0x2c] sm:$0xf] }
 0x38e   : > { %2383 = vrot.lane.b32.xlu2 %v8866_v50, %s8074_s29  ;;  %2125 = vrot.lane.b32.xlu0 %v2106_v53, %s8073_s10  ;;  %v2110_v15 = vld [vmem:[#allocation2 + $0x2c] sm:$0xf] }
 0x38f   : > { %v2430_v20 = vld [vmem:[#allocation2 + $0x2c] sm:$0xf] }
 0x390   : > { %v2302_v52 = vld [vmem:[#allocation2 + $0x2c] sm:$0xf] }
 0x391   : > { %v2366_v38 = vld [vmem:[#allocation2 + $0x2c] sm:$0xf] }
 0x392   : > { %v2238_v39 = vld [vmem:[#allocation2 + $0x2c] sm:$0xf] }
 0x394   : > { %2445 = vrot.lane.b32.xlu1 %v2426_v48, %s8072_s13 }
 0x396   : > { %2061 = vrot.lane.b32.xlu2 %v2042_v55, %s8075_s28  ;;  %2067 = vrot.lane.b32.xlu0 %v8852_v33, %s8075_s28 }
 0x39b   : > { %v8903_v8 = vpop.permute.xlu2 %2055 }
 0x39c   : > { %2131 = vrot.lane.b32.xlu1 %v8852_v33, %s8073_s10  ;;  %v2071_v54 = vrot.slane %v8903_v8, 4 }
 0x39e   : > { %2195 = vrot.lane.b32.xlu2 %v8852_v33, %s8071_s12  ;;  %2129 = vrot.lane.b32.xlu0 %v2108_v59, %s8073_s10 }
 0x3a4   : > { %2387 = vrot.lane.b32.xlu1 %v8852_v33, %s8074_s29 }
 0x3a6   : > { %2451 = vrot.lane.b32.xlu2 %v8852_v33, %s8072_s13  ;;  %2385 = vrot.lane.b32.xlu0 %v2364_v60, %s8074_s29 }
 0x3ac   : > { %2193 = vrot.lane.b32.xlu1 %v2172_v62, %s8071_s12 }
 0x3ae   : > { %2065 = vrot.lane.b32.xlu2 %v2044_v0, %s8075_s28  ;;  %2197 = vrot.lane.b32.xlu0 %v2174_v2, %s8071_s12 }
 0x3b2   : > { %v2120_v10 = vpop.permute.xlu0 %2119  ;;  %v2184_v13 = vpop.permute.xlu1 %2183 }
 0x3b3   : > { %v2199_v26 = vrot.slane %v2184_v13, 4  ;;  %v2135_v48 = vrot.slane %v2120_v10, 4 }
 0x3b4   : > { %2449 = vrot.lane.b32.xlu1 %v2428_v3, %s8072_s13 }
 0x3b6   : > { %2321 = vrot.lane.b32.xlu2 %v2300_v6, %s8076_s27  ;;  %2381 = vrot.lane.b32.xlu0 %v2362_v9, %s8074_s29  ;;  %v2234_v6 = vld [vmem:[#allocation2 + $0x14] sm:$0xf]  ;;  %v2492_v9 = vld [vmem:[#allocation2 + $0x20] sm:$0xf] }
 0x3ba   : > { %v8920_v19 = vpop.permute.xlu0 %2375  ;;  %v2440_v36 = vpop.permute.xlu1 %2439 }
 0x3bb   : > { %v8909_v25 = vpop.permute.xlu2 %2123  ;;  %v2455_v28 = vrot.slane %v2440_v36, 4 }
 0x3bc   : > { %2319 = vrot.lane.b32.xlu1 %v8866_v50, %s8076_s27 }
 0x3be   : > { %2311 = vrot.lane.b32.xlu2 %v8815_v17, %s8076_s27  ;;  %2323 = vrot.lane.b32.xlu0 %v8852_v33, %s8076_s27 }
 0x3c3   : > { %v8918_v29 = vpop.permute.xlu2 %2379 }
 0x3c4   : > { %2069 = vrot.lane.b32.xlu1 %v2046_v11, %s8075_s28 }
 0x3c6   : > { %2133 = vrot.lane.b32.xlu2 %v2110_v15, %s8073_s10  ;;  %2313 = vrot.lane.b32.xlu0 %v2296_v5, %s8076_s27  ;;  %v2391_v15 = vrot.slane %v8920_v19, 4 }
 0x3cc   : > { %2315 = vrot.lane.b32.xlu1 %v8833_v23, %s8076_s27 }
 0x3ce   : > { %2317 = vrot.lane.b32.xlu2 %v2298_v21, %s8076_s27  ;;  %2453 = vrot.lane.b32.xlu0 %v2430_v20, %s8072_s13 }
 0x3d0   : > { %v2186_v57 = vpop.permute.xlu2 %2185 }
 0x3d1   : > { %v2200_v45 = vrot.slane %v2186_v57, 4  ;;  %2224 = vst.msk [vmem:[#allocation3 + $0x98] sm:$0xf] %vm811_vm14, %v2186_v57 }
 0x3d2   : > { %v8929_v24 = vpop.permute.xlu0 %2187  ;;  %v2060_v47 = vpop.permute.xlu1 %2059 }
 0x3d3   : > { %v2207_v30 = vsel %vm859_vm6, %v2199_v26, %v2200_v45 }
 0x3d4   : > { %v2208_v31 = vsel %vm991_vm7, %v2184_v13, %v2207_v30  ;;  %2257 = vrot.lane.b32.xlu1 %v2236_v32, %s11050_s26  ;;  %v2073_v13 = vrot.slane %v2060_v47, 4  ;;  %v2488_v32 = vld [vmem:[#allocation2 + $0x8] sm:$0xf] }
 0x3d5   : > { %2223 = vst [vmem:[#allocation3 + $0x90] sm:$0xff] %v2208_v31 }
 0x3d6   : > { %2259 = vrot.lane.b32.xlu2 %v8852_v33, %s11050_s26  ;;  %2255 = vrot.lane.b32.xlu0 %v8866_v50, %s11050_s26 }
 0x3d8   : > { %v2442_v37 = vpop.permute.xlu2 %2441 }
 0x3d9   : > { %v2456_v40 = vrot.slane %v2442_v37, 4  ;;  %2480 = vst.msk [vmem:[#allocation3 + $0x158] sm:$0xf] %vm811_vm14, %v2442_v37 }
 0x3da   : > { %v8942_v16 = vpop.permute.xlu0 %2443 }
 0x3db   : > { %v2463_v41 = vsel %vm859_vm6, %v2455_v28, %v2456_v40  ;;  %v2137_v40 = vrot.slane %v8909_v25, 4 }
 0x3dc   : > { %v2464_v51 = vsel %vm11056_vm13, %v2440_v36, %v2463_v41  ;;  %2247 = vrot.lane.b32.xlu1 %v8815_v17, %s11050_s26 }
 0x3dd   : > { %2479 = vst [vmem:[#allocation3 + $0x150] sm:$0xff] %v2464_v51 }
 0x3de   : > { %2249 = vrot.lane.b32.xlu2 %v2232_v46, %s11050_s26  ;;  %2251 = vrot.lane.b32.xlu0 %v8833_v23, %s11050_s26  ;;  %v483_v46 = vld [vmem:[%s10996_s4 + $0x18] sm:$0xff] }
 0x3e0   : > { %v8946_v49 = vpop.permute.xlu2 %2127 }
 0x3e4   : > { %2325 = vrot.lane.b32.xlu1 %v2302_v52, %s8076_s27 }
 0x3e6   : > { %2389 = vrot.lane.b32.xlu2 %v2366_v38, %s8074_s29  ;;  %v2122_v44 = vpop.permute.xlu1 %2121  ;;  %2261 = vrot.lane.b32.xlu0 %v2238_v39, %s11050_s26  ;;  %v481_v38 = vld [vmem:[%s10996_s4 + $0x8] sm:$0xff] }
 0x3e7   : > { %v2058_v53 = vpop.permute.xlu0 %2057  ;;  %v2136_v55 = vrot.slane %v2122_v44, 4  ;;  %2160 = vst.msk [vmem:[#allocation3 + $0x68] sm:$0xf] %vm811_vm14, %v2122_v44  ;;  %v2494_v44 = vld [vmem:[#allocation2 + $0x2c] sm:$0xf] }
 0x3e8   : > { %v2072_v59 = vrot.slane %v2058_v53, 4  ;;  %v8953_v60 = vpop.permute.xlu2 %2383  ;;  %2096 = vst.msk [vmem:[#allocation3 + $0x38] sm:$0xf] %vm811_vm14, %v2058_v53 }
 0x3e9   : > { %v2143_v62 = vsel %vm859_vm6, %v2135_v48, %v2136_v55  ;;  %v7245_v55 = vld [vmem:[%s8156_s15 + $0x70] sm:$0xff] }
 0x3ea   : > { %v2079_v0 = vsel %vm859_vm6, %v2071_v54, %v2072_v59  ;;  %v2144_v2 = vsel %vm11055_vm15, %v2120_v10, %v2143_v62 }
 0x3eb   : > { %v2080_v3 = vsel %vm11054_vm11, %v8903_v8, %v2079_v0  ;;  %2159 = vst [vmem:[#allocation3 + $0x60] sm:$0xff] %v2144_v2  ;;  %v7243_v0 = vld [vmem:[%s8156_s15 + $0x60] sm:$0xff] }
 0x3ec   : > { %2095 = vst [vmem:[#allocation3 + $0x30] sm:$0xff] %v2080_v3  ;;  %2253 = vrot.lane.b32.xlu1 %v2234_v6, %s11050_s26  ;;  %v480_v3 = vld [vmem:[%s10996_s4] sm:$0xff]  ;;  %s11070_s26 = smov 104  }
 0x3ee   : > { %2511 = vrot.lane.b32.xlu2 %v8866_v50, %s8070_s14  ;;  %v2378_v11 = vpop.permute.xlu1 %2377  ;;  %2513 = vrot.lane.b32.xlu0 %v2492_v9, %s8070_s14 }
 0x3ef   : > { %v2392_v5 = vrot.slane %v2378_v11, 4  ;;  %2416 = vst.msk [vmem:[#allocation3 + $0x128] sm:$0xf] %vm811_vm14, %v2378_v11  ;;  %v9023_v11 = vpack.c.bf16 %v7245_v55, %v7245_v55  ;;  %v7241_v55 = vld [vmem:[%s8156_s15 + $0x50] sm:$0xff] }
 0x3f0   : > { %v2062_v10 = vpop.permute.xlu2 %2061  ;;  %v8968_v21 = vpop.permute.xlu0 %2191 }
 0x3f1   : > { %v2074_v8 = vrot.slane %v2062_v10, 4  ;;  %2098 = vst.msk [vmem:[#allocation3 + $0x44] sm:$0xf] %vm811_vm14, %v2062_v10  ;;  %v2399_v20 = vsel %vm859_vm6, %v2391_v15, %v2392_v5  ;;  %v9026_v5 = vpack.c.bf16 %v7243_v0, %v7243_v0 }
 0x3f2   : > { %v2400_v50 = vsel %vm11092_vm2, %v8920_v19, %v2399_v20  ;;  %v482_v19 = vld [vmem:[%s10996_s4 + $0x10] sm:$0xff] }
 0x3f3   : > { %v2081_v57 = vsel %vm859_vm6, %v2073_v13, %v2074_v8  ;;  %2415 = vst [vmem:[#allocation3 + $0x120] sm:$0xff] %v2400_v50  ;;  %v2139_v8 = vrot.slane %v8946_v49, 4 }
 0x3f4   : > { %v2082_v26 = vsel %vm11054_vm11, %v2060_v47, %v2081_v57  ;;  %2515 = vrot.lane.b32.xlu1 %v8852_v33, %s8070_s14  ;;  %v2490_v33 = vld [vmem:[#allocation2 + $0x14] sm:$0xf] }
 0x3f5   : > { %2097 = vst [vmem:[#allocation3 + $0x3c] sm:$0xff] %v2082_v26 }
 0x3f6   : > { %2507 = vrot.lane.b32.xlu2 %v8833_v23, %s8070_s14  ;;  %v2064_v45 = vpop.permute.xlu1 %2063  ;;  %2503 = vrot.lane.b32.xlu0 %v8815_v17, %s8070_s14  ;;  %v2201_v23 = vrot.slane %v8929_v24, 4 }
 0x3f7   : > { %v2075_v59 = vrot.slane %v2064_v45, 4 }
 0x3f8   : > { %v8981_v30 = vpop.permute.xlu2 %2195  ;;  %v8983_v31 = vpop.permute.xlu0 %2447 }
 0x3fc   : > { %2505 = vrot.lane.b32.xlu1 %v2488_v32, %s8070_s14  ;;  %v2395_v32 = vrot.slane %v8953_v60, 4 }
 0x3fe   : > { %2635 = vperm.xlu2 %7994, %v482_v19   ;;  %v2190_v36 = vpop.permute.xlu1 %2189  ;;  %2509 = vrot.lane.b32.xlu0 %v2490_v33, %s8070_s14 }
 0x3ff   : > { %v2202_v37 = vrot.slane %v2190_v36, 4  ;;  %2226 = vst.msk [vmem:[#allocation3 + $0xa4] sm:$0xf] %vm811_vm14, %v2190_v36 }
 0x400   : > { %v8992_v17 = vpop.permute.xlu2 %2451  ;;  %v2126_v28 = vpop.permute.xlu0 %2125 }
 0x401   : > { %v2209_v41 = vsel %vm859_vm6, %v2201_v23, %v2202_v37  ;;  %v2138_v51 = vrot.slane %v2126_v28, 4  ;;  %2162 = vst.msk [vmem:[#allocation3 + $0x74] sm:$0xf] %vm811_vm14, %v2126_v28  ;;  %v2203_v37 = vrot.slane %v8968_v21, 4 }
 0x402   : > { %v2210_v47 = vsel %vm991_vm7, %v8929_v24, %v2209_v41  ;;  %v2457_v24 = vrot.slane %v8942_v16, 4 }
 0x403   : > { %2225 = vst [vmem:[#allocation3 + $0x9c] sm:$0xff] %v2210_v47  ;;  %v2145_v52 = vsel %vm859_vm6, %v2137_v40, %v2138_v51  ;;  %v2205_v47 = vrot.slane %v8981_v30, 4 }
 0x404   : > { %v2146_v39 = vsel %vm11055_vm15, %v8909_v25, %v2145_v52  ;;  %2640 = vperm.xlu1 %7996, %v483_v46   ;;  %v7239_v46 = vld [vmem:[%s8156_s15 + $0x40] sm:$0xff] }
 0x405   : > { %2161 = vst [vmem:[#allocation3 + $0x6c] sm:$0xff] %v2146_v39 }
 0x406   : > { %2517 = vrot.lane.b32.xlu2 %v2494_v44, %s8070_s14  ;;  %v2446_v53 = vpop.permute.xlu1 %2445  ;;  %2630 = vperm.xlu0 %7995, %v481_v38  }
 0x407   : > { %v2458_v54 = vrot.slane %v2446_v53, 4  ;;  %2482 = vst.msk [vmem:[#allocation3 + $0x164] sm:$0xf] %vm811_vm14, %v2446_v53 }
 0x408   : > { %v2066_v48 = vpop.permute.xlu2 %2065  ;;  %v9013_v25 = vpop.permute.xlu0 %2067 }
 0x409   : > { %v2076_v62 = vrot.slane %v2066_v48, 4  ;;  %2100 = vst.msk [vmem:[#allocation3 + $0x50] sm:$0xf] %vm811_vm14, %v2066_v48  ;;  %v2465_v2 = vsel %vm859_vm6, %v2457_v24, %v2458_v54  ;;  %v9074_v54 = vpack.c.bf16 %v7239_v46, %v7239_v46 }
 0x40a   : > { %v2466_v6 = vsel %vm11056_vm13, %v8942_v16, %v2465_v2  ;;  %v9091_v2 = vpack.c.bf16 %v7241_v55, %v7241_v55  ;;  %v2077_v55 = vrot.slane %v9013_v25, 4 }
 0x40b   : > { %v2083_v9 = vsel %vm859_vm6, %v2075_v59, %v2076_v62  ;;  %2481 = vst [vmem:[#allocation3 + $0x15c] sm:$0xff] %v2466_v6  ;;  %v2459_v59 = vrot.slane %v8983_v31, 4 }
 0x40c   : > { %v2084_v15 = vsel %vm11054_vm11, %v2064_v45, %v2083_v9  ;;  %2625 = vperm.xlu1 %7996, %v480_v3   ;;  %v2393_v3 = vrot.slane %v8918_v29, 4 }
 0x40d   : > { %2099 = vst [vmem:[#allocation3 + $0x48] sm:$0xff] %v2084_v15 }
 0x40e   : > { %3679 = vrot.lane.b32.xlu2 %v9026_v5, %s11048_s17  ;;  %v2132_v10 = vpop.permute.xlu1 %2131  ;;  %3681 = vrot.lane.b32.xlu0 %v9023_v11, %s11048_s17 }
 0x40f   : > { %v2141_v41 = vrot.slane %v2132_v10, 4 }
 0x410   : > { %v9032_v13 = vpop.permute.xlu2 %2321  ;;  %v2130_v16 = vpop.permute.xlu0 %2129 }
 0x411   : > { %2356 = vst.msk [vmem:[#allocation3 + $0x110] sm:$0xf] %vm811_vm14, %v9032_v13  ;;  %v2140_v20 = vrot.slane %v2130_v16, 4 }
 0x412   : > { %2164 = vst.msk [vmem:[#allocation3 + $0x80] sm:$0xf] %vm811_vm14, %v2130_v16 }
 0x413   : > { %v2147_v50 = vsel %vm859_vm6, %v2139_v8, %v2140_v20 }
 0x414   : > { %v2148_v57 = vsel %vm11055_vm15, %v8946_v49, %v2147_v50  ;;  %3695 = vrot.lane.b32.xlu1 %v9026_v5, %s8053_s16 }
 0x415   : > { %2163 = vst [vmem:[#allocation3 + $0x78] sm:$0xff] %v2148_v57 }
 0x416   : > { %3711 = vrot.lane.b32.xlu2 %v9026_v5, %s8055_s18  ;;  %v9045_v26 = vpop.permute.xlu1 %2387  ;;  %3697 = vrot.lane.b32.xlu0 %v9023_v11, %s8053_s16 }
 0x418   : > { %v9049_v45 = vpop.permute.xlu2 %2311  ;;  %v2386_v19 = vpop.permute.xlu0 %2385 }
 0x419   : > { %v2396_v33 = vrot.slane %v2386_v19, 4  ;;  %2420 = vst.msk [vmem:[#allocation3 + $0x140] sm:$0xf] %vm811_vm14, %v2386_v19 }
 0x41b   : > { %v2403_v49 = vsel %vm859_vm6, %v2395_v32, %v2396_v33  ;;  %v7798_v33 = vld [vmem:[#allocation3 + $0x98] sm:$0xf0] }
 0x41c   : > { %v2404_v36 = vsel %vm11093_vm10, %v8953_v60, %v2403_v49  ;;  %3713 = vrot.lane.b32.xlu1 %v9023_v11, %s8055_s18  ;;  %v7083_v49 = vld [vmem:[#allocation3 + $0x9c] sm:$0xf0]  ;;  %vm11096_vm10 = vcmask 883712  }
 0x41d   : > { %2419 = vst [vmem:[#allocation3 + $0x138] sm:$0xff] %v2404_v36 }
 0x41e   : > { %3729 = vrot.lane.b32.xlu2 %v9023_v11, %s8056_s19  ;;  %v2194_v23 = vpop.permute.xlu1 %2193  ;;  %3727 = vrot.lane.b32.xlu0 %v9026_v5, %s8056_s19 }
 0x41f   : > { %v2204_v28 = vrot.slane %v2194_v23, 4  ;;  %2228 = vst.msk [vmem:[#allocation3 + $0xb0] sm:$0xf] %vm811_vm14, %v2194_v23 }
 0x420   : > { %v2134_v40 = vpop.permute.xlu2 %2133  ;;  %v2198_v60 = vpop.permute.xlu0 %2197 }
 0x421   : > { %v2142_v51 = vrot.slane %v2134_v40, 4  ;;  %2166 = vst.msk [vmem:[#allocation3 + $0x8c] sm:$0xf] %vm811_vm14, %v2134_v40  ;;  %v2211_v52 = vsel %vm859_vm6, %v2203_v37, %v2204_v28  ;;  %v2206_v38 = vrot.slane %v2198_v60, 4  ;;  %v7081_v28 = vld [vmem:[#allocation3 + $0x90] sm:$0xf] }
 0x422   : > { %2230 = vst.msk [vmem:[#allocation3 + $0xbc] sm:$0xf] %vm811_vm14, %v2198_v60  ;;  %v2212_v39 = vsel %vm991_vm7, %v8968_v21, %v2211_v52  ;;  %v7797_v40 = vld [vmem:[#allocation3 + $0x94] sm:$0xf] }
 0x423   : > { %v2149_v44 = vsel %vm859_vm6, %v2141_v41, %v2142_v51  ;;  %2227 = vst [vmem:[#allocation3 + $0xa8] sm:$0xff] %v2212_v39  ;;  %v2213_v24 = vsel %vm859_vm6, %v2205_v47, %v2206_v38  ;;  %v7082_v51 = vor.u32 %v7798_v33, %v7081_v28  ;;  %v7086_v60 = vor.u32 %v7797_v40, %v7083_v49  ;;  %v7794_v38 = vld [vmem:[#allocation3 + $0x7c] sm:$0xf]  ;;  %v7045_v28 = vld [vmem:[#allocation3 + $0x48] sm:$0xf] }
 0x424   : > { %v2150_v53 = vsel %vm11055_vm15, %v2132_v10, %v2149_v44  ;;  %v2214_v48 = vsel %vm991_vm7, %v8981_v30, %v2213_v24  ;;  %3775 = vrot.lane.b32.xlu1 %v9026_v5, %s11094_s22  ;;  %v2461_v49 = vrot.slane %v8992_v17, 4 }
 0x425   : > { %2165 = vst [vmem:[#allocation3 + $0x84] sm:$0xff] %v2150_v53  ;;  %v7792_v53 = vld [vmem:[#allocation3 + $0x68] sm:$0xf0] }
 0x426   : > { %2229 = vst [vmem:[#allocation3 + $0xb4] sm:$0xff] %v2214_v48  ;;  %3675 = vrot.lane.b32.xlu2 %v9074_v54, %s11048_s17  ;;  %v2450_v21 = vpop.permute.xlu1 %2449  ;;  %3777 = vrot.lane.b32.xlu0 %v9023_v11, %s11094_s22  ;;  %v7059_v48 = vld [vmem:[#allocation3 + $0x6c] sm:$0xf0] }
 0x427   : > { %v2460_v62 = vrot.slane %v2450_v21, 4  ;;  %2484 = vst.msk [vmem:[#allocation3 + $0x170] sm:$0xf] %vm811_vm14, %v2450_v21 }
 0x428   : > { %v9087_v0 = vpop.permute.xlu2 %2317  ;;  %v2382_v30 = vpop.permute.xlu0 %2381 }
 0x429   : > { %2354 = vst.msk [vmem:[#allocation3 + $0x104] sm:$0xf] %vm811_vm14, %v9087_v0  ;;  %v2467_v6 = vsel %vm859_vm6, %v2459_v59, %v2460_v62  ;;  %v2394_v9 = vrot.slane %v2382_v30, 4  ;;  %v7057_v62 = vld [vmem:[#allocation3 + $0x60] sm:$0xf] }
 0x42a   : > { %2418 = vst.msk [vmem:[#allocation3 + $0x134] sm:$0xf] %vm811_vm14, %v2382_v30  ;;  %v2468_v15 = vsel %vm11056_vm13, %v8983_v31, %v2467_v6  ;;  %v7093_v16 = vld [vmem:[#allocation3 + $0xa8] sm:$0xf]  ;;  %v7800_v50 = vld [vmem:[#allocation3 + $0xac] sm:$0xf] }
 0x42b   : > { %2483 = vst [vmem:[#allocation3 + $0x168] sm:$0xff] %v2468_v15  ;;  %v2401_v10 = vsel %vm859_vm6, %v2393_v3, %v2394_v9  ;;  %v7058_v3 = vor.u32 %v7792_v53, %v7057_v62  ;;  %v7791_v6 = vld [vmem:[#allocation3 + $0x64] sm:$0xf]  ;;  %v2327_v9 = vrot.slane %v9049_v45, 4  ;;  %v7021_v62 = vld [vmem:[#allocation3 + $0x18] sm:$0xf] }
 0x42c   : > { %v2402_v8 = vsel %vm11092_vm2, %v8918_v29, %v2401_v10  ;;  %3677 = vrot.lane.b32.xlu1 %v9091_v2, %s11048_s17  ;;  %v2332_v29 = vrot.slane %v9032_v13, 4  ;;  %v7795_v47 = vld [vmem:[#allocation3 + $0x80] sm:$0xf0]  ;;  %v7071_v52 = vld [vmem:[#allocation3 + $0x84] sm:$0xf0]  ;;  %vm11098_vm2 = vmmov %vm11096_vm10  ;;  %s11122_s17 = smov 43  }
 0x42d   : > { %v7801_v20 = vld [vmem:[#allocation3 + $0xb0] sm:$0xf0]  ;;  %v7095_v57 = vld [vmem:[#allocation3 + $0xb4] sm:$0xf0]  ;;  %2417 = vst [vmem:[#allocation3 + $0x12c] sm:$0xff] %v2402_v8  ;;  %v7074_v44 = vor.u32 %v7794_v38, %v7071_v52 }
 0x42e   : > { %v7094_v19 = vor.u32 %v7801_v20, %v7093_v16  ;;  %v7098_v32 = vor.u32 %v7800_v50, %v7095_v57  ;;  %3745 = vrot.lane.b32.xlu2 %v9023_v11, %s11095_s23  ;;  %v2320_v31 = vpop.permute.xlu1 %2319  ;;  %3743 = vrot.lane.b32.xlu0 %v9026_v5, %s11095_s23  ;;  %v7069_v13 = vld [vmem:[#allocation3 + $0x78] sm:$0xf]  ;;  %v7062_v16 = vor.u32 %v7791_v6, %v7059_v48 }
 0x42f   : > { %v2331_v36 = vrot.slane %v2320_v31, 4  ;;  %v7070_v39 = vor.u32 %v7795_v47, %v7069_v13 }
 0x430   : > { %v9108_v23 = vpop.permute.xlu2 %2259  ;;  %2967 = vmatpush.bf16.msra.mxu0 %v7094_v19  ;;  %3024 = vmatpush.bf16.msrb.mxu2 %v7098_v32  ;;  %v9110_v37 = vpop.permute.xlu0 %2323 }
 0x431   : > { %v2339_v41 = vsel %vm859_vm6, %v2331_v36, %v2332_v29 }
 0x432   : > { %v2340_v46 = vsel %vm11096_vm10, %v2320_v31, %v2339_v41  ;;  %v2397_v31 = vrot.slane %v9045_v26, 4  ;;  %vm11099_vm10 = vmmov %vm11098_vm2 }
 0x433   : > { %2355 = vst [vmem:[#allocation3 + $0x108] sm:$0xff] %v2340_v46 }
 0x434   : > { %2968 = vmatpush.bf16.msra.mxu0 %v7082_v51  ;;  %3025 = vmatpush.bf16.msrb.mxu2 %v7086_v60  ;;  %v7788_v51 = vld [vmem:[#allocation3 + $0x4c] sm:$0xf] }
 0x435   : > { %3691 = vrot.lane.b32.xlu1 %v9074_v54, %s8053_s16 }
 0x436   : > { %3759 = vrot.lane.b32.xlu2 %v9026_v5, %s11097_s20  ;;  %v2070_v24 = vpop.permute.xlu1 %2069  ;;  %3693 = vrot.lane.b32.xlu0 %v9091_v2, %s8053_s16  ;;  %s8088_s16 = smov 100  }
 0x437   : > { %v2078_v21 = vrot.slane %v2070_v24, 4  ;;  %2102 = vst.msk [vmem:[#allocation3 + $0x5c] sm:$0xf] %vm811_vm14, %v2070_v24  ;;  %v7785_v24 = vld [vmem:[#allocation3 + $0x34] sm:$0xf] }
 0x438   : > { %v9122_v59 = vpop.permute.xlu2 %2249  ;;  %2969 = vmatpush.bf16.msra.mxu0 %v7070_v39  ;;  %3026 = vmatpush.bf16.msrb.mxu2 %v7074_v44  ;;  %v2314_v30 = vpop.permute.xlu0 %2313  ;;  %v7786_v39 = vld [vmem:[#allocation3 + $0x38] sm:$0xf0]  ;;  %v7035_v44 = vld [vmem:[#allocation3 + $0x3c] sm:$0xf0] }
 0x439   : > { %2288 = vst.msk [vmem:[#allocation3 + $0xc8] sm:$0xf] %vm811_vm14, %v9122_v59  ;;  %v2085_v15 = vsel %vm859_vm6, %v2077_v55, %v2078_v21  ;;  %v2328_v10 = vrot.slane %v2314_v30, 4  ;;  %v7038_v55 = vor.u32 %v7785_v24, %v7035_v44  ;;  %v7823_v24 = vld [vmem:[#allocation3 + $0x160] sm:$0xf0] }
 0x43a   : > { %2352 = vst.msk [vmem:[#allocation3 + $0xf8] sm:$0xf] %vm811_vm14, %v2314_v30  ;;  %v2086_v8 = vsel %vm11054_vm11, %v9013_v25, %v2085_v15  ;;  %v2330_v25 = vrot.slane %v9087_v0, 4  ;;  %v7782_v30 = vld [vmem:[#allocation3 + $0x1c] sm:$0xf]  ;;  %vm11143_vm11 = vcmask 576952  }
 0x43b   : > { %2101 = vst [vmem:[#allocation3 + $0x54] sm:$0xff] %v2086_v8  ;;  %v2335_v20 = vsel %vm859_vm6, %v2327_v9, %v2328_v10  ;;  %v7783_v9 = vld [vmem:[#allocation3 + $0x20] sm:$0xf0]  ;;  %v7023_v15 = vld [vmem:[#allocation3 + $0x24] sm:$0xf0] }
 0x43c   : > { %2970 = vmatpush.bf16.msra.mxu0 %v7058_v3  ;;  %3027 = vmatpush.bf16.msrb.mxu2 %v7062_v16  ;;  %v2336_v50 = vsel %vm11098_vm2, %v9049_v45, %v2335_v20  ;;  %vm11100_vm2 = vcmask 752640   ;;  %v7022_v16 = vor.u32 %v7783_v9, %v7021_v62  ;;  %v7026_v8 = vor.u32 %v7782_v30, %v7023_v15  ;;  %v7189_v20 = vld [vmem:[#allocation3 + $0x168] sm:$0xf]  ;;  %v7185_v30 = vld [vmem:[#allocation3 + $0x158] sm:$0xf] }
 0x43d   : > { %3761 = vrot.lane.b32.xlu1 %v9023_v11, %s11097_s20  ;;  %2351 = vst [vmem:[#allocation3 + $0xf0] sm:$0xff] %v2336_v50  ;;  %v7780_v50 = vld [vmem:[#allocation3 + $0x8] sm:$0xf0] }
 0x43e   : > { %3709 = vrot.lane.b32.xlu2 %v9091_v2, %s8055_s18  ;;  %v2316_v57 = vpop.permute.xlu1 %2315  ;;  %3707 = vrot.lane.b32.xlu0 %v9074_v54, %s8055_s18  ;;  %s11113_s18 = smov 45  }
 0x43f   : > { %v2329_v19 = vrot.slane %v2316_v57, 4 }
 0x440   : > { %v2390_v32 = vpop.permute.xlu2 %2389  ;;  %v2454_v45 = vpop.permute.xlu0 %2453 }
 0x441   : > { %v2398_v33 = vrot.slane %v2390_v32, 4  ;;  %2422 = vst.msk [vmem:[#allocation3 + $0x14c] sm:$0xf] %vm811_vm14, %v2390_v32  ;;  %v2337_v29 = vsel %vm859_vm6, %v2329_v19, %v2330_v25  ;;  %v2462_v36 = vrot.slane %v2454_v45, 4  ;;  %v6985_v32 = vld [vmem:[%s10995_s3] sm:$0xf] }
 0x442   : > { %2486 = vst.msk [vmem:[#allocation3 + $0x17c] sm:$0xf] %vm811_vm14, %v2454_v45  ;;  %v2338_v40 = vsel %vm11099_vm10, %v2316_v57, %v2337_v29  ;;  %v7789_v41 = vld [vmem:[#allocation3 + $0x50] sm:$0xf0]  ;;  %v7047_v60 = vld [vmem:[#allocation3 + $0x54] sm:$0xf0] }
 0x443   : > { %v2405_v0 = vsel %vm859_vm6, %v2397_v31, %v2398_v33  ;;  %2353 = vst [vmem:[#allocation3 + $0xfc] sm:$0xff] %v2338_v40  ;;  %v2469_v47 = vsel %vm859_vm6, %v2461_v49, %v2462_v36  ;;  %v7046_v52 = vor.u32 %v7789_v41, %v7045_v28  ;;  %v7050_v13 = vor.u32 %v7788_v51, %v7047_v60  ;;  %v7011_v57 = vld [vmem:[#allocation3 + $0xc] sm:$0xf0]  ;;  %v7720_v31 = vld [vmem:[%s10995_s3 + $0x8] sm:$0xf0] }
 0x444   : > { %v2406_v46 = vsel %vm11100_vm2, %v9045_v26, %v2405_v0  ;;  %v2470_v38 = vsel %vm11056_vm13, %v8992_v17, %v2469_v47  ;;  %v7033_v26 = vld [vmem:[#allocation3 + $0x30] sm:$0xf]  ;;  %vm11101_vm10 = vcmask 891904   ;;  %v7009_v36 = vld [vmem:[#allocation3] sm:$0xf]  ;;  %v2264_v0 = vrot.slane %v9122_v59, 4 }
 0x445   : > { %2421 = vst [vmem:[#allocation3 + $0x144] sm:$0xff] %v2406_v46  ;;  %3723 = vrot.lane.b32.xlu1 %v9074_v54, %s8056_s19  ;;  %2971 = vmatpush.bf16.msra.mxu0 %v7046_v52  ;;  %v7034_v48 = vor.u32 %v7786_v39, %v7033_v26  ;;  %v7779_v28 = vld [vmem:[#allocation3 + $0x4] sm:$0xf]  ;;  %v7822_v40 = vld [vmem:[#allocation3 + $0x158] sm:$0xf0]  ;;  %v7010_v60 = vor.u32 %v7780_v50, %v7009_v36  ;;  %vm11104_vm2 = vmmov %vm11101_vm10  ;;  %vm11155_vm13 = vcmask 252928  }
 0x446   : > { %2485 = vst [vmem:[#allocation3 + $0x174] sm:$0xff] %v2470_v38  ;;  %3028 = vmatpush.bf16.msrb.mxu2 %v7050_v13  ;;  %v2258_v53 = vpop.permute.xlu1 %2257  ;;  %3725 = vrot.lane.b32.xlu0 %v9091_v2, %s8056_s19  ;;  %v7014_v46 = vor.u32 %v7779_v28, %v7011_v57  ;;  %v7824_v47 = vld [vmem:[#allocation3 + $0x16c] sm:$0xf]  ;;  %v7197_v52 = vld [vmem:[#allocation3 + $0x170] sm:$0xf]  ;;  %v9181_v44 = vor.u32 %v7720_v31, %v6985_v32  ;;  %v2333_v57 = vrot.slane %v9110_v37, 4 }
 0x447   : > { %3771 = vrot.lane.b32.xlu2 %v9074_v54, %s11094_s22  ;;  %2292 = vst.msk [vmem:[#allocation3 + $0xe0] sm:$0xf] %vm811_vm14, %v2258_v53  ;;  %v2268_v3 = vrot.slane %v2258_v53, 4  ;;  %v7177_v39 = vld [vmem:[#allocation3 + $0x150] sm:$0xf]  ;;  %v2269_v31 = vrot.slane %v9108_v23, 4 }
 0x448   : > { %v9160_v17 = vpop.permute.xlu2 %2511  ;;  %v2256_v21 = vpop.permute.xlu0 %2255  ;;  %11103 = vst [vmem:[#allocation4_spill] sm:$0xff] %v9181_v44  ;;  %v7178_v59 = vor.u32 %v7822_v40, %v7177_v39  ;;  %v7179_v53 = vld [vmem:[#allocation3 + $0x15c] sm:$0xf0]  ;;  %v7818_v32 = vld [vmem:[#allocation3 + $0x13c] sm:$0xf]  ;;  %s11111_s19 = smov 39  }
 0x449   : > { %v2267_v6 = vrot.slane %v2256_v21, 4  ;;  %2972 = vmatpush.bf16.msra.mxu0 %v7034_v48  ;;  %v7826_v49 = vld [vmem:[#allocation3 + $0x178] sm:$0xf0] }
 0x44a   : > { %3029 = vmatpush.bf16.msrb.mxu2 %v7038_v55  ;;  %v7821_v55 = vld [vmem:[#allocation3 + $0x154] sm:$0xf] }
 0x44b   : > { %v2275_v10 = vsel %vm859_vm6, %v2267_v6, %v2268_v3  ;;  %v7182_v62 = vor.u32 %v7821_v55, %v7179_v53  ;;  %v7165_v3 = vld [vmem:[#allocation3 + $0x138] sm:$0xf]  ;;  %v7186_v6 = vor.u32 %v7823_v24, %v7185_v30  ;;  %v7723_v53 = vld [vmem:[%s10995_s3 + $0x20] sm:$0xf0] }
 0x44c   : > { %v2276_v25 = vsel %vm11101_vm10, %v2256_v21, %v2275_v10  ;;  %v7819_v48 = vld [vmem:[#allocation3 + $0x140] sm:$0xf0]  ;;  %v7244_v21 = vld [vmem:[%s8156_s15 + $0x68] sm:$0xff]  ;;  %v7167_v15 = vld [vmem:[#allocation3 + $0x144] sm:$0xf0]  ;;  %vm11106_vm10 = vcmask 883712  }
 0x44d   : > { %3773 = vrot.lane.b32.xlu1 %v9091_v2, %s11094_s22  ;;  %v7825_v19 = vld [vmem:[#allocation3 + $0x170] sm:$0xf0]  ;;  %2291 = vst [vmem:[#allocation3 + $0xd8] sm:$0xff] %v2276_v25  ;;  %2973 = vmatpush.bf16.msra.mxu0 %v7022_v16  ;;  %v7191_v45 = vld [vmem:[#allocation3 + $0x174] sm:$0xf0]  ;;  %v7166_v9 = vor.u32 %v7819_v48, %v7165_v3  ;;  %v7246_v10 = vld [vmem:[%s8156_s15 + $0x78] sm:$0xff]  ;;  %v9193_v50 = vpack.c.bf16 %v7244_v21, %v7244_v21 }
 0x44e   : > { %3030 = vmatpush.bf16.msrb.mxu2 %v7026_v8  ;;  %v7190_v33 = vor.u32 %v7825_v19, %v7189_v20  ;;  %v2248_v29 = vpop.permute.xlu1 %2247  ;;  %3799 = vrot.lane.b32.xlu0 %v9026_v5, %s11102_s24  ;;  %v7194_v38 = vor.u32 %v7824_v47, %v7191_v45  ;;  %v7198_v5 = vor.u32 %v7826_v49, %v7197_v52  ;;  %v7820_v8 = vld [vmem:[#allocation3 + $0x148] sm:$0xf0]  ;;  %v7173_v49 = vld [vmem:[#allocation3 + $0x140] sm:$0xf]  ;;  %v7817_v47 = vld [vmem:[#allocation3 + $0x130] sm:$0xf0] }
 0x44f   : > { %3801 = vrot.lane.b32.xlu2 %v9023_v11, %s11102_s24  ;;  %v2263_v41 = vrot.slane %v2248_v29, 4  ;;  %v7816_v20 = vld [vmem:[#allocation3 + $0x128] sm:$0xf0]  ;;  %v7170_v45 = vor.u32 %v7818_v32, %v7167_v15  ;;  %v9200_v36 = vpack.c.bf16 %v7246_v10, %v7246_v10  ;;  %s11231_s22 = smov 19  }
 0x450   : > { %v9177_v51 = vpop.permute.xlu2 %2507  ;;  %2986 = vmatpush.bf16.msra.mxu1 %v7190_v33  ;;  %v9179_v13 = vpop.permute.xlu0 %2251 }
 0x451   : > { %v2271_v11 = vsel %vm859_vm6, %v2263_v41, %v2264_v0  ;;  %2974 = vmatpush.bf16.msra.mxu0 %v7010_v60  ;;  %v7174_v0 = vor.u32 %v7820_v8, %v7173_v49  ;;  %v7155_v60 = vld [vmem:[#allocation3 + $0x12c] sm:$0xf0]  ;;  %v2265_v48 = vrot.slane %v9179_v13, 4  ;;  %v7811_v49 = vld [vmem:[#allocation3 + $0x100] sm:$0xf0] }
 0x452   : > { %3031 = vmatpush.bf16.msrb.mxu2 %v7014_v46  ;;  %v2272_v26 = vsel %vm11104_vm2, %v2248_v29, %v2271_v11  ;;  %v7153_v29 = vld [vmem:[#allocation3 + $0x120] sm:$0xf]  ;;  %v7161_v11 = vld [vmem:[#allocation3 + $0x128] sm:$0xf] }
 0x453   : > { %2287 = vst [vmem:[#allocation3 + $0xc0] sm:$0xff] %v2272_v26  ;;  %v7154_v41 = vor.u32 %v7816_v20, %v7153_v29  ;;  %v7810_v29 = vld [vmem:[#allocation3 + $0xf8] sm:$0xf0] }
 0x454   : > { %2987 = vmatpush.bf16.msra.mxu1 %v7178_v59  ;;  %2975 = vmatmul.bf16.vlgmr.msra.gmra.mxu0 %v9181_v44  ;;  %v7162_v59 = vor.u32 %v7817_v47, %v7161_v11  ;;  %v7809_v47 = vld [vmem:[#allocation3 + $0xf4] sm:$0xf] }
 0x455   : > { %3043 = vmatpush.bf16.msrb.mxu0 %v7194_v38  ;;  %3739 = vrot.lane.b32.xlu1 %v9074_v54, %s11095_s23  ;;  %v7815_v38 = vld [vmem:[#allocation3 + $0x124] sm:$0xf] }
 0x456   : > { %3100 = vmatpush.bf16.msra.mxu2 %v7198_v5  ;;  %v2326_v16 = vpop.permute.xlu1 %2325  ;;  %3741 = vrot.lane.b32.xlu0 %v9091_v2, %s11095_s23  ;;  %v7158_v39 = vor.u32 %v7815_v38, %v7155_v60 }
 0x457   : > { %3032 = vmatmul.bf16.vlgmr.msrb.gmra.mxu2 %v9181_v44  ;;  %v2334_v25 = vrot.slane %v2326_v16, 4  ;;  %2358 = vst.msk [vmem:[#allocation3 + $0x11c] sm:$0xf] %vm811_vm14, %v2326_v16  ;;  %3823 = vrot.lane.b32.xlu2 %v9193_v50, %s11105_s25  ;;  %v7812_v16 = vld [vmem:[#allocation3 + $0x10c] sm:$0xf] }
 0x458   : > { %v9197_v19 = vpop.permute.xlu2 %2635  ;;  %2988 = vmatpush.bf16.msra.mxu1 %v7166_v9  ;;  %v2262_v33 = vpop.permute.xlu0 %2261  ;;  %v2523_v9 = vrot.slane %v9160_v17, 4 }
 0x459   : > { %3044 = vmatpush.bf16.msrb.mxu0 %v7182_v62  ;;  %v2341_v28 = vsel %vm859_vm6, %v2333_v57, %v2334_v25  ;;  %v2270_v40 = vrot.slane %v2262_v33, 4  ;;  %2294 = vst.msk [vmem:[#allocation3 + $0xec] sm:$0xf] %vm811_vm14, %v2262_v33  ;;  %v7137_v25 = vld [vmem:[#allocation3 + $0xf8] sm:$0xf] }
 0x45a   : > { %3101 = vmatpush.bf16.msra.mxu2 %v7186_v6  ;;  %v2342_v46 = vsel %vm11106_vm10, %v9110_v37, %v2341_v28  ;;  %v6997_v37 = vld [vmem:[%s10995_s3 + $0x18] sm:$0xf]  ;;  %vm11108_vm10 = vmmov %vm11104_vm2  ;;  %v7131_v28 = vld [vmem:[#allocation3 + $0xfc] sm:$0xf0] }
 0x45b   : > { %2357 = vst [vmem:[#allocation3 + $0x114] sm:$0xff] %v2342_v46  ;;  %v2277_v52 = vsel %vm859_vm6, %v2269_v31, %v2270_v40  ;;  %v9224_v3 = vor.u32 %v7723_v53, %v6997_v37  ;;  %v7141_v6 = vld [vmem:[#allocation3 + $0x108] sm:$0xf] }
 0x45c   : > { %2989 = vmatpush.bf16.msra.mxu1 %v7154_v41  ;;  %v2278_v5 = vsel %vm11104_vm2, %v9108_v23, %v2277_v52  ;;  %v7149_v23 = vld [vmem:[#allocation3 + $0x110] sm:$0xf]  ;;  %vm11109_vm2 = vcmask 736256  }
 0x45d   : > { %3045 = vmatpush.bf16.msrb.mxu0 %v7170_v45  ;;  %3825 = vrot.lane.b32.xlu1 %v9200_v36, %s11105_s25  ;;  %2293 = vst [vmem:[#allocation3 + $0xe4] sm:$0xff] %v2278_v5  ;;  %v7134_v5 = vor.u32 %v7809_v47, %v7131_v28  ;;  %v7799_v28 = vld [vmem:[#allocation3 + $0xa0] sm:$0xf0] }
 0x45e   : > { %3102 = vmatpush.bf16.msra.mxu2 %v7174_v0  ;;  %v2254_v26 = vpop.permute.xlu1 %2253  ;;  %3755 = vrot.lane.b32.xlu0 %v9074_v54, %s11097_s20  ;;  %v7814_v24 = vld [vmem:[#allocation3 + $0x118] sm:$0xf0]  ;;  %11107 = vst [vmem:[#allocation5_spill] sm:$0xff] %v9224_v3  ;;  %v7129_v0 = vld [vmem:[#allocation3 + $0xf0] sm:$0xf] }
 0x45f   : > { %v2266_v55 = vrot.slane %v2254_v26, 4  ;;  %2290 = vst.msk [vmem:[#allocation3 + $0xd4] sm:$0xf] %vm811_vm14, %v2254_v26  ;;  %v7150_v62 = vor.u32 %v7814_v24, %v7149_v23  ;;  %3757 = vrot.lane.b32.xlu2 %v9091_v2, %s11097_s20  ;;  %s11110_s20 = smov 37   ;;  %v7130_v46 = vor.u32 %v7810_v29, %v7129_v0  ;;  %v7117_v23 = vld [vmem:[#allocation3 + $0xd8] sm:$0xf] }
 0x460   : > { %v2518_v21 = vpop.permute.xlu2 %2517  ;;  %v2514_v30 = vpop.permute.xlu0 %2513  ;;  %v7101_v29 = vld [vmem:[#allocation3 + $0xb0] sm:$0xf] }
 0x461   : > { %3046 = vmatpush.bf16.msrb.mxu0 %v7158_v39  ;;  %2550 = vst.msk [vmem:[#allocation3 + $0x1ac] sm:$0xf] %vm811_vm14, %v2518_v21  ;;  %v2273_v15 = vsel %vm859_vm6, %v2265_v48, %v2266_v55  ;;  %v2524_v10 = vrot.slane %v2514_v30, 4  ;;  %v2526_v41 = vrot.slane %v2518_v21, 4  ;;  %v7125_v39 = vld [vmem:[#allocation3 + $0xe0] sm:$0xf] }
 0x462   : > { %3103 = vmatpush.bf16.msra.mxu2 %v7162_v59  ;;  %2548 = vst.msk [vmem:[#allocation3 + $0x1a0] sm:$0xf] %vm811_vm14, %v2514_v30  ;;  %v2274_v8 = vsel %vm11108_vm10, %v9179_v13, %v2273_v15  ;;  %v7813_v20 = vld [vmem:[#allocation3 + $0x110] sm:$0xf0]  ;;  %v7143_v57 = vld [vmem:[#allocation3 + $0x114] sm:$0xf0]  ;;  %v7138_v13 = vor.u32 %v7811_v49, %v7137_v25 }
 0x463   : > { %2289 = vst [vmem:[#allocation3 + $0xcc] sm:$0xff] %v2274_v8  ;;  %v2531_v32 = vsel %vm859_vm6, %v2523_v9, %v2524_v10  ;;  %v7142_v31 = vor.u32 %v7813_v20, %v7141_v6  ;;  %v7146_v33 = vor.u32 %v7812_v16, %v7143_v57  ;;  %vm11112_vm10 = vcmask 281752   ;;  %v7806_v55 = vld [vmem:[#allocation3 + $0xdc] sm:$0xf]  ;;  %v7719_v15 = vld [vmem:[%s10995_s3 + $0x4] sm:$0xf] }
 0x464   : > { %v2532_v45 = vsel %vm11109_vm2, %v9160_v17, %v2531_v32  ;;  %2980 = vmatmul.bf16.gmra.mxu0 %v9224_v3  ;;  %v7808_v17 = vld [vmem:[#allocation3 + $0xe8] sm:$0xf0]  ;;  %v7807_v11 = vld [vmem:[#allocation3 + $0xe0] sm:$0xf0]  ;;  %v7119_v53 = vld [vmem:[#allocation3 + $0xe4] sm:$0xf0] }
 0x465   : > { %3839 = vrot.lane.b32.xlu1 %v9193_v50, %s11110_s20  ;;  %2547 = vst [vmem:[#allocation3 + $0x198] sm:$0xff] %v2532_v45  ;;  %2990 = vmatpush.bf16.msra.mxu1 %v7142_v31  ;;  %v7126_v37 = vor.u32 %v7808_v17, %v7125_v39  ;;  %v7118_v48 = vor.u32 %v7807_v11, %v7117_v23  ;;  %v6987_v10 = vld [vmem:[%s10995_s3 + $0xc] sm:$0xf0]  ;;  %v7802_v20 = vld [vmem:[#allocation3 + $0xb8] sm:$0xf0] }
 0x466   : > { %3104 = vmatpush.bf16.msra.mxu2 %v7150_v62  ;;  %3047 = vmatpush.bf16.msrb.mxu0 %v7146_v33  ;;  %v2516_v40 = vpop.permute.xlu1 %2515  ;;  %v7805_v24 = vld [vmem:[#allocation3 + $0xd0] sm:$0xf0]  ;;  %v7122_v21 = vor.u32 %v7806_v55, %v7119_v53  ;;  %v7113_v62 = vld [vmem:[#allocation3 + $0xc8] sm:$0xf]  ;;  %v7105_v8 = vld [vmem:[#allocation3 + $0xc0] sm:$0xf] }
 0x467   : > { %3037 = vmatmul.bf16.gmra.mxu2 %v9224_v3  ;;  %3841 = vrot.lane.b32.xlu0 %v9200_v36, %s11110_s20  ;;  %v2525_v60 = vrot.slane %v2516_v40, 4  ;;  %v7114_v6 = vor.u32 %v7805_v24, %v7113_v62  ;;  %v7803_v31 = vld [vmem:[#allocation3 + $0xc4] sm:$0xf]  ;;  %v7796_v23 = vld [vmem:[#allocation3 + $0x88] sm:$0xf0] }
 0x468   : > { %v3680_v52 = vpop.permute.xlu2 %3679  ;;  %v2504_v38 = vpop.permute.xlu0 %2503  ;;  %3855 = vrot.lane.b32.xlu2 %v9193_v50, %s11111_s19  ;;  %v7065_v62 = vld [vmem:[#allocation3 + $0x68] sm:$0xf] }
 0x469   : > { %3689 = vst.msk [vmem:[#allocation2 + $0x18] sm:$0xf] %vm11112_vm10, %v3680_v52  ;;  %v2533_v59 = vsel %vm859_vm6, %v2525_v60, %v2526_v41  ;;  %2991 = vmatpush.bf16.msra.mxu1 %v7130_v46  ;;  %v2519_v57 = vrot.slane %v2504_v38, 4  ;;  %v7102_v41 = vor.u32 %v7802_v20, %v7101_v29  ;;  %vm11115_vm10 = vmmov %vm11109_vm2  ;;  %v7790_v29 = vld [vmem:[#allocation3 + $0x58] sm:$0xf0] }
 0x46a   : > { %3105 = vmatpush.bf16.msra.mxu2 %v7138_v13  ;;  %v2534_v26 = vsel %vm11109_vm2, %v2516_v40, %v2533_v59  ;;  %3048 = vmatpush.bf16.msrb.mxu0 %v7134_v5  ;;  %v7804_v30 = vld [vmem:[#allocation3 + $0xc8] sm:$0xf0]  ;;  %v7107_v9 = vld [vmem:[#allocation3 + $0xcc] sm:$0xf0]  ;;  %v9260_v13 = vor.u32 %v7719_v15, %v6987_v10  ;;  %v2521_v40 = vrot.slane %v9177_v51, 4 }
 0x46b   : > { %2549 = vst [vmem:[#allocation3 + $0x1a4] sm:$0xff] %v2534_v26  ;;  %v7106_v32 = vor.u32 %v7804_v30, %v7105_v8  ;;  %v7110_v49 = vor.u32 %v7803_v31, %v7107_v9  ;;  %v7793_v30 = vld [vmem:[#allocation3 + $0x70] sm:$0xf0]  ;;  %v7721_v9 = vld [vmem:[%s10995_s3 + $0x10] sm:$0xf0]  ;;  %v7242_v15 = vld [vmem:[%s8156_s15 + $0x58] sm:$0xff] }
 0x46c   : > { %11114 = vst [vmem:[#allocation6_spill] sm:$0xff] %v9260_v13  ;;  %v7213_v60 = vld [vmem:[#allocation3 + $0x198] sm:$0xf]  ;;  %v7830_v52 = vld [vmem:[#allocation3 + $0x19c] sm:$0xf]  ;;  %v7066_v20 = vor.u32 %v7793_v30, %v7065_v62 }
 0x46d   : > { %3857 = vrot.lane.b32.xlu1 %v9200_v36, %s11111_s19  ;;  %2992 = vmatpush.bf16.msra.mxu1 %v7118_v48  ;;  %v7077_v48 = vld [vmem:[#allocation3 + $0x80] sm:$0xf]  ;;  %v6999_v31 = vld [vmem:[%s10995_s3 + $0x24] sm:$0xf0]  ;;  %v7832_v62 = vld [vmem:[#allocation3 + $0x1a8] sm:$0xf0] }
 0x46e   : > { %3106 = vmatpush.bf16.msra.mxu2 %v7126_v37  ;;  %3049 = vmatpush.bf16.msrb.mxu0 %v7122_v21  ;;  %v2506_v16 = vpop.permute.xlu1 %2505  ;;  %v7078_v55 = vor.u32 %v7796_v23, %v7077_v48  ;;  %v7221_v23 = vld [vmem:[#allocation3 + $0x1a0] sm:$0xf]  ;;  %v7781_v48 = vld [vmem:[#allocation3 + $0x10] sm:$0xf0] }
 0x46f   : > { %3903 = vrot.lane.b32.xlu0 %v9193_v50, %s11113_s18  ;;  %v2520_v25 = vrot.slane %v2506_v16, 4  ;;  %2544 = vst.msk [vmem:[#allocation3 + $0x188] sm:$0xf] %vm811_vm14, %v2506_v16 }
 0x470   : > { %v9258_v33 = vpop.permute.xlu2 %3711  ;;  %v2510_v45 = vpop.permute.xlu0 %2509  ;;  %3905 = vrot.lane.b32.xlu2 %v9200_v36, %s11113_s18 }
 0x471   : > { %v2527_v0 = vsel %vm859_vm6, %v2519_v57, %v2520_v25  ;;  %v2522_v17 = vrot.slane %v2510_v45, 4  ;;  %2546 = vst.msk [vmem:[#allocation3 + $0x194] sm:$0xf] %vm811_vm14, %v2510_v45  ;;  %2993 = vmatpush.bf16.msra.mxu1 %v7106_v32  ;;  %v7722_v32 = vld [vmem:[%s10995_s3 + $0x1c] sm:$0xf] }
 0x472   : > { %3107 = vmatpush.bf16.msra.mxu2 %v7114_v6  ;;  %v2528_v46 = vsel %vm11115_vm10, %v2504_v38, %v2527_v0  ;;  %3050 = vmatpush.bf16.msrb.mxu0 %v7110_v49  ;;  %v7831_v47 = vld [vmem:[#allocation3 + $0x1a0] sm:$0xf0]  ;;  %v7215_v5 = vld [vmem:[#allocation3 + $0x1a4] sm:$0xf0]  ;;  %v7089_v38 = vld [vmem:[#allocation3 + $0x98] sm:$0xf] }
 0x473   : > { %2543 = vst [vmem:[#allocation3 + $0x180] sm:$0xff] %v2528_v46  ;;  %v2529_v39 = vsel %vm859_vm6, %v2521_v40, %v2522_v17  ;;  %v7214_v11 = vor.u32 %v7831_v47, %v7213_v60  ;;  %v7218_v59 = vor.u32 %v7830_v52, %v7215_v5  ;;  %v7090_v53 = vor.u32 %v7799_v28, %v7089_v38  ;;  %v7053_v17 = vld [vmem:[#allocation3 + $0x50] sm:$0xf]  ;;  %v7787_v47 = vld [vmem:[#allocation3 + $0x40] sm:$0xf0] }
 0x474   : > { %v2530_v37 = vsel %vm11109_vm2, %v9177_v51, %v2529_v39  ;;  %2994 = vmatmul.bf16.vlgmr.msra.gmra.mxu1 %v9260_v13  ;;  %v7240_v51 = vld [vmem:[%s8156_s15 + $0x48] sm:$0xff]  ;;  %v9310_v28 = vpack.c.bf16 %v7242_v15, %v7242_v15  ;;  %v9312_v60 = vor.u32 %v7722_v32, %v6999_v31  ;;  %vm11119_vm10 = vcmask 281752   ;;  %v7784_v39 = vld [vmem:[#allocation3 + $0x28] sm:$0xf0] }
 0x475   : > { %3795 = vrot.lane.b32.xlu1 %v9074_v54, %s11102_s24  ;;  %2545 = vst [vmem:[#allocation3 + $0x18c] sm:$0xff] %v2530_v37  ;;  %3051 = vmatmul.bf16.vlgmr.msrb.gmra.mxu0 %v9260_v13  ;;  %v9287_v21 = vpack.c.bf16 %v7240_v51, %v7240_v51  ;;  %vm11120_vm2 = vmmov %vm11119_vm10  ;;  %v7054_v46 = vor.u32 %v7790_v29, %v7053_v17  ;;  %v7029_v37 = vld [vmem:[#allocation3 + $0x20] sm:$0xf]  ;;  %v7005_v51 = vld [vmem:[%s10995_s3 + $0x20] sm:$0xf] }
 0x476   : > { %3081 = vmatpush.bf16.msra.mxu0 %v7102_v41  ;;  %3011 = vmatpush.bf16.msra.mxu3 %v7214_v11  ;;  %v9275_v26 = vpop.permute.xlu1 %2640  ;;  %11118 = vst [vmem:[#allocation8_spill] sm:$0xff] %v9312_v60  ;;  %v7030_v38 = vor.u32 %v7784_v39, %v7029_v37 }
 0x477   : > { %3068 = vmatpush.bf16.msrb.mxu1 %v7218_v59  ;;  %3797 = vrot.lane.b32.xlu0 %v9091_v2, %s11102_s24  ;;  %v6993_v2 = vld [vmem:[%s10995_s3 + $0x8] sm:$0xf]  ;;  %s8083_s24 = smov 114  }
 0x478   : > { %v9280_v24 = vpop.permute.xlu2 %3729  ;;  %3108 = vmatmul.bf16.vlgmr.msra.gmra.mxu2 %v9260_v13  ;;  %v9283_v54 = vpop.permute.xlu0 %2630  ;;  %3871 = vrot.lane.b32.xlu2 %v9193_v50, %s11116_s21  ;;  %v9308_v49 = vor.u32 %v7721_v9, %v6993_v2  ;;  %v7222_v2 = vor.u32 %v7832_v62, %v7221_v23  ;;  %v7829_v9 = vld [vmem:[#allocation3 + $0x190] sm:$0xf0] }
 0x47a   : > { %3082 = vmatpush.bf16.msra.mxu0 %v7090_v53  ;;  %v7201_v6 = vld [vmem:[#allocation3 + $0x180] sm:$0xf]  ;;  %v7827_v16 = vld [vmem:[#allocation3 + $0x184] sm:$0xf]  ;;  %11117 = vst [vmem:[#allocation7_spill] sm:$0xff] %v9308_v49 }
 0x47c   : > { %v7828_v10 = vld [vmem:[#allocation3 + $0x188] sm:$0xf0]  ;;  %v7203_v8 = vld [vmem:[#allocation3 + $0x18c] sm:$0xf0] }
 0x47d   : > { %3873 = vrot.lane.b32.xlu1 %v9200_v36, %s11116_s21  ;;  %v7202_v57 = vor.u32 %v7828_v10, %v7201_v6  ;;  %v7206_v25 = vor.u32 %v7827_v16, %v7203_v8  ;;  %v7209_v16 = vld [vmem:[#allocation3 + $0x188] sm:$0xf] }
 0x47e   : > { %3083 = vmatpush.bf16.msra.mxu0 %v7078_v55  ;;  %v9304_v45 = vpop.permute.xlu1 %2625  ;;  %v7210_v8 = vor.u32 %v7829_v9, %v7209_v16 }
 0x47f   : > { %3819 = vrot.lane.b32.xlu0 %v9287_v21, %s11105_s25  ;;  %3012 = vmatpush.bf16.msra.mxu3 %v7202_v57 }
 0x480   : > { %v3676_v40 = vpop.permute.xlu2 %3675  ;;  %3069 = vmatpush.bf16.msrb.mxu1 %v7206_v25  ;;  %v3682_v0 = vpop.permute.xlu0 %3681  ;;  %3821 = vrot.lane.b32.xlu2 %v9310_v28, %s11105_s25 }
 0x481   : > { %3687 = vst.msk [vmem:[#allocation2] sm:$0xf] %vm11119_vm10, %v3676_v40  ;;  %vm11123_vm10 = vcmask 429352  }
 0x482   : > { %3084 = vmatpush.bf16.msra.mxu0 %v7066_v20  ;;  %3690 = vst.msk [vmem:[#allocation2 + $0x24] sm:$0xf] %vm11120_vm2, %v3682_v0  ;;  %7223 = vmatmul.msk.bf16.vlgmr.msra.gmra.mxu3 %vm11121_vm0, %v9308_v49  ;;  %vm11124_vm0 = vcmask 576952   ;;  %vm11125_vm2 = vmmov %vm11123_vm10 }
 0x483   : > { %7941 = vmatpush.bf16.msrb.mxu3 %v7102_v41  ;;  %v7041_v41 = vld [vmem:[#allocation3 + $0x38] sm:$0xf] }
 0x484   : > { %2999 = vmatmul.bf16.gmra.mxu1 %v9312_v60  ;;  %v7042_v52 = vor.u32 %v7787_v47, %v7041_v41 }
 0x485   : > { %3887 = vrot.lane.b32.xlu1 %v9193_v50, %s11122_s17  ;;  %3056 = vmatmul.bf16.gmra.mxu0 %v9312_v60 }
 0x486   : > { %3085 = vmatpush.bf16.msra.mxu0 %v7054_v46  ;;  %v3696_v5 = vpop.permute.xlu1 %3695 }
 0x487   : > { %7942 = vmatpush.bf16.msrb.mxu3 %v7090_v53  ;;  %3889 = vrot.lane.b32.xlu0 %v9200_v36, %s11122_s17  ;;  %3705 = vst.msk [vmem:[#allocation2 + $0x18] sm:$0xf] %vm11123_vm10, %v3696_v5  ;;  %v7017_v53 = vld [vmem:[#allocation3 + $0x8] sm:$0xf]  ;;  %vm11127_vm10 = vmmov %vm11124_vm0 }
 0x488   : > { %v3746_v11 = vpop.permute.xlu2 %3745  ;;  %3113 = vmatmul.bf16.gmra.mxu2 %v9312_v60  ;;  %3721 = vst.msk [vmem:[#allocation2 + $0x18] sm:$0xf] %vm11124_vm0, %v9258_v33  ;;  %v3698_v59 = vpop.permute.xlu0 %3697  ;;  %3835 = vrot.lane.b32.xlu2 %v9287_v21, %s11110_s20  ;;  %v7724_v33 = vld [vmem:[%s10995_s3 + $0x28] sm:$0xf0]  ;;  %vm11128_vm0 = vcmask 724552  }
 0x489   : > { %3706 = vst.msk [vmem:[#allocation2 + $0x24] sm:$0xf] %vm11125_vm2, %v3698_v59  ;;  %v9343_v6 = vor.u32 %v7724_v33, %v7005_v51  ;;  %vm11129_vm2 = vmmov %vm11128_vm0 }
 0x48a   : > { %3086 = vmatpush.bf16.msra.mxu0 %v7042_v52 }
 0x48b   : > { %7943 = vmatpush.bf16.msrb.mxu3 %v7078_v55  ;;  %v7018_v55 = vor.u32 %v7781_v48, %v7017_v53  ;;  %11126 = vst [vmem:[#allocation9_spill] sm:$0xff] %v9343_v6 }
 0x48d   : > { %3837 = vrot.lane.b32.xlu1 %v9310_v28, %s11110_s20  ;;  %s11133_s20 = smov 47  }
 0x48e   : > { %3087 = vmatpush.bf16.msra.mxu0 %v7030_v38  ;;  %v3714_v30 = vpop.permute.xlu1 %3713 }
 0x48f   : > { %7944 = vmatpush.bf16.msrb.mxu3 %v7066_v20  ;;  %3851 = vrot.lane.b32.xlu0 %v9287_v21, %s11111_s19  ;;  %3722 = vst.msk [vmem:[#allocation2 + $0x24] sm:$0xf] %vm11127_vm10, %v3714_v30  ;;  %vm11131_vm10 = vcmask 872152  }
 0x490   : > { %v3760_v15 = vpop.permute.xlu2 %3759  ;;  %3738 = vst.msk [vmem:[#allocation2 + $0x24] sm:$0xf] %vm11128_vm0, %v9280_v24  ;;  %v3728_v10 = vpop.permute.xlu0 %3727  ;;  %3853 = vrot.lane.b32.xlu2 %v9310_v28, %s11111_s19  ;;  %vm11132_vm0 = vmmov %vm11130_vm4  ;;  %s11138_s19 = smov 49  }
 0x491   : > { %3737 = vst.msk [vmem:[#allocation2 + $0x18] sm:$0xf] %vm11129_vm2, %v3728_v10  ;;  %vm11135_vm2 = vmmov %vm11131_vm10 }
 0x492   : > { %3088 = vmatpush.bf16.msra.mxu0 %v7018_v55  ;;  %7224 = vmatmul.msk.bf16.gmra.mxu3 %vm11130_vm4, %v9343_v6  ;;  %3754 = vst.msk [vmem:[#allocation2 + $0x24] sm:$0xf] %vm11131_vm10, %v3746_v11  ;;  %vm11134_vm4 = vcmask 281752   ;;  %vm11136_vm10 = vcmask 252928  }
 0x493   : > { %7945 = vmatpush.bf16.msrb.mxu3 %v7054_v46 }
 0x494   : > { %7225 = vmatmul.msk.bf16.vlgmr.msrb.gmra.mxu1 %vm11132_vm0, %v9308_v49  ;;  %vm11137_vm0 = vcmask 1019752  }
 0x495   : > { %3899 = vrot.lane.b32.xlu1 %v9287_v21, %s11113_s18  ;;  %3089 = vmatmul.bf16.vlgmr.msra.gmra.mxu0 %v9181_v44 }
 0x496   : > { %3125 = vmatpush.bf16.msrb.mxu0 %v7222_v2  ;;  %v3776_v24 = vpop.permute.xlu1 %3775 }
 0x497   : > { %7946 = vmatpush.bf16.msrb.mxu3 %v7042_v52  ;;  %3901 = vrot.lane.b32.xlu0 %v9310_v28, %s11113_s18  ;;  %v3781_v25 = vrot.slane %v3776_v24, 4  ;;  %s11199_s18 = smov 109  }
 0x498   : > { %v3710_v20 = vpop.permute.xlu2 %3709  ;;  %v3778_v57 = vpop.permute.xlu0 %3777  ;;  %3927 = vrot.lane.b32.xlu2 %v9193_v50, %s11133_s20 }
 0x499   : > { %v3785_v40 = vsel %vm11136_vm10, %v3781_v25, %v3776_v24  ;;  %vm11141_vm10 = vcmask 429352  }
 0x49a   : > { %3126 = vmatpush.bf16.msrb.mxu0 %v7210_v8 }
 0x49b   : > { %7947 = vmatpush.bf16.msrb.mxu3 %v7030_v38 }
 0x49d   : > { %3929 = vrot.lane.b32.xlu1 %v9200_v36, %s11133_s20 }
 0x49e   : > { %v3678_v32 = vpop.permute.xlu1 %3677 }
 0x49f   : > { %7948 = vmatpush.bf16.msrb.mxu3 %v7018_v55  ;;  %3867 = vrot.lane.b32.xlu0 %v9287_v21, %s11116_s21  ;;  %3688 = vst.msk [vmem:[#allocation2 + $0xc] sm:$0xf] %vm11134_vm4, %v3678_v32  ;;  %vm11139_vm4 = vcmask 261120  }
 0x4a0   : > { %v3744_v31 = vpop.permute.xlu0 %3743  ;;  %3869 = vrot.lane.b32.xlu2 %v9310_v28, %s11116_s21  ;;  %s8082_s21 = smov 116  }
 0x4a1   : > { %v3772_v29 = vpop.permute.xlu2 %3771  ;;  %3753 = vst.msk [vmem:[#allocation2 + $0x18] sm:$0xf] %vm11135_vm2, %v3744_v31  ;;  %vm11140_vm2 = vmmov %vm11139_vm4 }
 0x4a2   : > { %3769 = vst.msk [vmem:[#allocation2 + $0x18] sm:$0xf] %vm11137_vm0, %v3760_v15  ;;  %3094 = vmatmul.bf16.vlgmr.msrb.gmra.mxu3 %v9224_v3  ;;  %vm11142_vm0 = vmmov %vm11141_vm10  ;;  %v3779_v33 = vrot.slane %v3772_v29, 4 }
 0x4a3   : > { %3793 = vst.msk [vmem:[#allocation2 + $0x18] sm:$0xff] %vm8277_vm8, %v3785_v40 }
 0x4a4   : > { %7226 = vmatmul.msk.bf16.gmra.mxu1 %vm11139_vm4, %v9343_v6  ;;  %vm11144_vm4 = vcmask 252928  }
 0x4a5   : > { %3943 = vrot.lane.b32.xlu1 %v9193_v50, %s11138_s19  ;;  %7227 = vmatmul.msk.bf16.vlgmr.msrb.gmra.mxu0 %vm11140_vm2, %v9308_v49  ;;  %v3782_v50 = vrot.slane %v3778_v57, 4  ;;  %vm11145_vm2 = vcmask 1019752  }
 0x4a7   : > { %v3692_v0 = vpop.permute.xlu1 %3691  ;;  %3945 = vrot.lane.b32.xlu0 %v9200_v36, %s11138_s19  ;;  %v3786_v36 = vsel %vm11144_vm4, %v3782_v50, %v3778_v57  ;;  %vm11149_vm4 = vcmask 724552  }
 0x4a8   : > { %3703 = vst.msk [vmem:[#allocation2] sm:$0xf] %vm11141_vm10, %v3692_v0  ;;  %v3694_v17 = vpop.permute.xlu0 %3693  ;;  %3883 = vrot.lane.b32.xlu2 %v9287_v21, %s11122_s17  ;;  %vm11146_vm10 = vmmov %vm11143_vm11 }
 0x4a9   : > { %v3802_v46 = vpop.permute.xlu2 %3801  ;;  %3704 = vst.msk [vmem:[#allocation2 + $0xc] sm:$0xf] %vm11142_vm0, %v3694_v17  ;;  %vm11148_vm0 = vcmask 261120  }
 0x4aa   : > { %3720 = vst.msk [vmem:[#allocation2 + $0xc] sm:$0xf] %vm11143_vm11, %v3710_v20  ;;  %vm11147_vm11 = vcmask 265352  }
 0x4ad   : > { %3885 = vrot.lane.b32.xlu1 %v9310_v28, %s11122_s17  ;;  %s8085_s17 = smov 106  }
 0x4af   : > { %v3762_v47 = vpop.permute.xlu1 %3761  ;;  %3923 = vrot.lane.b32.xlu0 %v9287_v21, %s11133_s20 }
 0x4b0   : > { %3770 = vst.msk [vmem:[#allocation2 + $0x24] sm:$0xf] %vm11145_vm2, %v3762_v47  ;;  %v3708_v41 = vpop.permute.xlu0 %3707  ;;  %3925 = vrot.lane.b32.xlu2 %v9310_v28, %s11133_s20  ;;  %vm11150_vm2 = vmmov %vm11149_vm4  ;;  %s11072_s20 = smov 98  }
 0x4b1   : > { %3794 = vst.msk [vmem:[#allocation2 + $0x24] sm:$0xff] %vm8277_vm8, %v3786_v36  ;;  %v3824_v52 = vpop.permute.xlu2 %3823 }
 0x4b2   : > { %3719 = vst.msk [vmem:[#allocation2] sm:$0xf] %vm11146_vm10, %v3708_v41  ;;  %vm11151_vm10 = vmmov %vm11147_vm11 }
 0x4b3   : > { %3810 = vst.msk [vmem:[#allocation2 + $0x28] sm:$0xf] %vm11147_vm11, %v3802_v46  ;;  %vm11152_vm11 = vcmask 412952  }
 0x4b5   : > { %3939 = vrot.lane.b32.xlu1 %v9287_v21, %s11138_s19  ;;  %7228 = vmatmul.msk.bf16.gmra.mxu0 %vm11148_vm0, %v9343_v6  ;;  %vm11153_vm0 = vcmask 872152  }
 0x4b6   : > { %vm11154_vm15 = vmmov %vm11153_vm0 }
 0x4b7   : > { %v3724_v5 = vpop.permute.xlu1 %3723  ;;  %3941 = vrot.lane.b32.xlu0 %v9310_v28, %s11138_s19  ;;  %s11293_s19 = sshll.u32 %s11312_s11, 6  ;;  %s11300_s11 = smov 102  }
 0x4b8   : > { %3735 = vst.msk [vmem:[#allocation2] sm:$0xf] %vm11149_vm4, %v3724_v5  ;;  %v3726_v39 = vpop.permute.xlu0 %3725  ;;  %vm11156_vm4 = vcmask 1019752  }
 0x4b9   : > { %3736 = vst.msk [vmem:[#allocation2 + $0xc] sm:$0xf] %vm11150_vm2, %v3726_v39  ;;  %v3758_v11 = vpop.permute.xlu2 %3757  ;;  %vm11157_vm2 = vmmov %vm11152_vm11 }
 0x4bf   : > { %v3774_v59 = vpop.permute.xlu1 %3773 }
 0x4c0   : > { %v3800_v37 = vpop.permute.xlu0 %3799  ;;  %v3780_v38 = vrot.slane %v3774_v59, 4 }
 0x4c1   : > { %3809 = vst.msk [vmem:[#allocation2 + $0x1c] sm:$0xf] %vm11151_vm10, %v3800_v37  ;;  %vm11158_vm10 = vmmov %vm11155_vm13 }
 0x4c2   : > { %3833 = vst.msk [vmem:[#allocation2 + $0x1c] sm:$0xf] %vm11152_vm11, %v3824_v52  ;;  %v3856_v21 = vpop.permute.xlu2 %3855  ;;  %v3784_v28 = vsel %vm11155_vm13, %v3780_v38, %v3774_v59  ;;  %v3783_v62 = vsel %vm11158_vm10, %v3779_v33, %v3772_v29  ;;  %vm11159_vm11 = vmmov %vm11156_vm4  ;;  %vm11161_vm13 = vcmask 708152  }
 0x4c7   : > { %v3740_v53 = vpop.permute.xlu1 %3739 }
 0x4c8   : > { %3751 = vst.msk [vmem:[#allocation2] sm:$0xf] %vm11153_vm0, %v3740_v53  ;;  %v3742_v23 = vpop.permute.xlu0 %3741 }
 0x4c9   : > { %3752 = vst.msk [vmem:[#allocation2 + $0xc] sm:$0xf] %vm11154_vm15, %v3742_v23  ;;  %vm11160_vm15 = vcmask 560552  }
 0x4ca   : > { %3768 = vst.msk [vmem:[#allocation2 + $0xc] sm:$0xf] %vm11156_vm4, %v3758_v11  ;;  %v3906_v51 = vpop.permute.xlu2 %3905  ;;  %vm11162_vm0 = vmmov %vm11160_vm15  ;;  %vm11163_vm4 = vcmask 855752  }
 0x4cb   : > { %3792 = vst.msk [vmem:[#allocation2 + $0xc] sm:$0xff] %vm8277_vm8, %v3784_v28  ;;  %v3910_v0 = vrot.slane %v3906_v51, 4 }
 0x4cf   : > { %v3826_v48 = vpop.permute.xlu1 %3825 }
 0x4d0   : > { %3834 = vst.msk [vmem:[#allocation2 + $0x28] sm:$0xf] %vm11157_vm2, %v3826_v48  ;;  %v3756_v55 = vpop.permute.xlu0 %3755  ;;  %vm11164_vm2 = vmmov %vm11161_vm13 }
 0x4d1   : > { %3767 = vst.msk [vmem:[#allocation2] sm:$0xf] %vm11159_vm11, %v3756_v55  ;;  %v9426_v10 = vpop.f32.mrf.mxu0  ;;  %vm11167_vm11 = vcmask 412952  }
 0x4d2   : > { %3791 = vst.msk [vmem:[#allocation2] sm:$0xff] %vm8277_vm8, %v3783_v62  ;;  %v3872_v30 = vpop.permute.xlu2 %3871  ;;  %vm11165_vm8 = vcmask 265352  }
 0x4d3   : > { %vm11166_vm10 = vmmov %vm11165_vm8 }
 0x4d7   : > { %v3840_v2 = vpop.permute.xlu1 %3839 }
 0x4d8   : > { %3849 = vst.msk [vmem:[#allocation2 + $0x1c] sm:$0xf] %vm11160_vm15, %v3840_v2  ;;  %vm11168_vm15 = vmmov %vm11163_vm4 }
 0x4d9   : > { %3865 = vst.msk [vmem:[#allocation2 + $0x1c] sm:$0xf] %vm11161_vm13, %v3856_v21  ;;  %v3842_v9 = vpop.permute.xlu0 %3841  ;;  %v9429_v24 = vpop.f32.mrf.mxu0  ;;  %vm11169_vm13 = vmmov %vm11167_vm11 }
 0x4da   : > { %3850 = vst.msk [vmem:[#allocation2 + $0x28] sm:$0xf] %vm11162_vm0, %v3842_v9  ;;  %v3822_v15 = vpop.permute.xlu2 %3821 }
 0x4db   : > { %3881 = vst.msk [vmem:[#allocation2 + $0x1c] sm:$0xf] %vm11163_vm4, %v3872_v30  ;;  %vm11170_vm4 = vcmask 367616  }
 0x4df   : > { %v3858_v16 = vpop.permute.xlu1 %3857 }
 0x4e0   : > { %3866 = vst.msk [vmem:[#allocation2 + $0x28] sm:$0xf] %vm11164_vm2, %v3858_v16  ;;  %vm11171_vm2 = vcmask 1003352   ;;  %v9478_v16 = vpop.f32.mrf.mxu2 }
 0x4e1   : > { %v3904_v8 = vpop.permute.xlu0 %3903  ;;  %v9435_v31 = vpop.f32.mrf.mxu0 }
 0x4e2   : > { %v3836_v35 = vpop.permute.xlu2 %3835  ;;  %v3909_v40 = vrot.slane %v3904_v8, 4  ;;  %v2982_v60 = vadd.f32 %v9435_v31, %v9197_v19  ;;  %v2979_v31 = vadd.f32 %v9429_v24, %v9283_v54 }
 0x4e4   : > { %v3913_v46 = vsel %vm11170_vm4, %v3909_v40, %v3904_v8 }
 0x4e7   : > { %v3796_v20 = vpop.permute.xlu1 %3795 }
 0x4e8   : > { %3807 = vst.msk [vmem:[#allocation2 + $0x4] sm:$0xf] %vm11165_vm8, %v3796_v20  ;;  %vm11172_vm8 = vmmov %vm11170_vm4  ;;  %vm11178_vm4 = vcmask 855752  }
 0x4e9   : > { %v3798_v57 = vpop.permute.xlu0 %3797  ;;  %v3914_v36 = vsel %vm11172_vm8, %v3910_v0, %v3906_v51  ;;  %v9445_v41 = vpop.f32.mrf.mxu0  ;;  %vm11180_vm8 = vmmov %vm11178_vm4 }
 0x4ea   : > { %3808 = vst.msk [vmem:[#allocation2 + $0x10] sm:$0xf] %vm11166_vm10, %v3798_v57  ;;  %v3854_v25 = vpop.permute.xlu2 %3853  ;;  %vm11173_vm10 = vmmov %vm11171_vm2 }
 0x4eb   : > { %3832 = vst.msk [vmem:[#allocation2 + $0x10] sm:$0xf] %vm11167_vm11, %v3822_v15  ;;  %vm11174_vm11 = vcmask 248952  }
 0x4ef   : > { %v3874_v32 = vpop.permute.xlu1 %3873 }
 0x4f0   : > { %3882 = vst.msk [vmem:[#allocation2 + $0x28] sm:$0xf] %vm11168_vm15, %v3874_v32  ;;  %vm11175_vm15 = vmmov %vm11162_vm0 }
 0x4f1   : > { %v3820_v29 = vpop.permute.xlu0 %3819  ;;  %v9475_v15 = vpop.f32.mrf.mxu1 }
 0x4f2   : > { %3831 = vst.msk [vmem:[#allocation2 + $0x4] sm:$0xf] %vm11169_vm13, %v3820_v29  ;;  %v3928_v50 = vpop.permute.xlu2 %3927  ;;  %vm11176_vm13 = vcmask 708152   ;;  %v9462_v38 = vpop.f32.mrf.mxu0 }
 0x4f3   : > { %3847 = vst.msk [vmem:[#allocation2 + $0x4] sm:$0xf] %vm11162_vm0, %v3836_v35  ;;  %vm11177_vm0 = vmmov %vm11176_vm13 }
 0x4f7   : > { %v3888_v17 = vpop.permute.xlu1 %3887 }
 0x4f8   : > { %3897 = vst.msk [vmem:[#allocation2 + $0x1c] sm:$0xf] %vm11171_vm2, %v3888_v17  ;;  %vm11179_vm2 = vmmov %vm11174_vm11 }
 0x4f9   : > { %3921 = vst.msk [vmem:[#allocation2 + $0x1c] sm:$0xff] %vm8336_vm9, %v3913_v46  ;;  %v3890_v47 = vpop.permute.xlu0 %3889  ;;  %v9494_v46 = vpop.f32.mrf.mxu1 }
 0x4fa   : > { %3898 = vst.msk [vmem:[#allocation2 + $0x28] sm:$0xf] %vm11173_vm10, %v3890_v47  ;;  %v3870_v37 = vpop.permute.xlu2 %3869  ;;  %v9464_v28 = vpop.f32.mrf.mxu0  ;;  %vm11181_vm10 = vcmask 367616  }
 0x4fb   : > { %3922 = vst.msk [vmem:[#allocation2 + $0x28] sm:$0xff] %vm8336_vm9, %v3914_v36 }
 0x4fc   : > { %3937 = vst.msk [vmem:[#allocation2 + $0x20] sm:$0xf] %vm11174_vm11, %v3928_v50  ;;  %vm11182_vm11 = vcmask 1003352   ;;  %v3035_v50 = vpop.f32.mrf.mxu2 }
 0x4ff   : > { %v3838_v52 = vpop.permute.xlu1 %3837 }
 0x500   : > { %3848 = vst.msk [vmem:[#allocation2 + $0x10] sm:$0xf] %vm11175_vm15, %v3838_v52  ;;  %v9451_v5 = vld [vmem:[#allocation2 + $0x18] sm:$0xff]  ;;  %vm11183_vm15 = vcmask 396552  }
 0x501   : > { %3864 = vst.msk [vmem:[#allocation2 + $0x10] sm:$0xf] %vm11176_vm13, %v3854_v25  ;;  %v3852_v39 = vpop.permute.xlu0 %3851  ;;  %4123 = vrot.lane.b32.xlu2 %v9451_v5, %s8071_s12  ;;  %v3959_v11 = vld [vmem:[#allocation2 + $0x18] sm:$0xff]  ;;  %vm11184_vm13 = vmmov %vm11183_vm15 }
 0x502   : > { %3863 = vst.msk [vmem:[#allocation2 + $0x4] sm:$0xf] %vm11177_vm0, %v3852_v39  ;;  %v9457_v59 = vld [vmem:[#allocation2 + $0x24] sm:$0xff]  ;;  %v3884_v48 = vpop.permute.xlu2 %3883  ;;  %v9473_v2 = vpop.f32.mrf.mxu0  ;;  %vm11185_vm0 = vmmov %vm11181_vm10 }
 0x503   : > { %v3961_v21 = vld [vmem:[#allocation2 + $0x24] sm:$0xff]  ;;  %4127 = vrot.lane.b32.xlu0 %v9457_v59, %s8071_s12  ;;  %3880 = vst.msk [vmem:[#allocation2 + $0x10] sm:$0xf] %vm11178_vm4, %v3870_v37  ;;  %vm11186_vm4 = vmmov %vm11182_vm11 }
 0x504   : > { %3967 = vst [vmem:[#allocation3 + $0x18] sm:$0xff] %v3959_v11 }
 0x505   : > { %3969 = vst [vmem:[#allocation3 + $0x24] sm:$0xff] %v3961_v21  ;;  %v9496_v36 = vpop.f32.mrf.mxu3  ;;  %v3000_v21 = vpop.f32.mrf.mxu1 }
 0x506   : > { %v3001_v49 = vadd.f32 %v3000_v21, %v2982_v60 }
 0x507   : > { %v3900_v53 = vpop.permute.xlu1 %3899 }
 0x508   : > { %v3907_v51 = vrot.slane %v3900_v53, 4 }
 0x509   : > { %v3902_v23 = vpop.permute.xlu0 %3901 }
 0x50a   : > { %v3911_v62 = vsel %vm11181_vm10, %v3907_v51, %v3900_v53  ;;  %v3908_v35 = vrot.slane %v3902_v23, 4  ;;  %v3926_v29 = vpop.permute.xlu2 %3925  ;;  %v9491_v17 = vpop.f32.mrf.mxu0 }
 0x50b   : > { %v3038_v53 = vpop.f32.mrf.mxu2 }
 0x50c   : > { %v3912_v32 = vsel %vm11185_vm0, %v3908_v35, %v3902_v23 }
 0x50f   : > { %v3930_v33 = vpop.permute.xlu1 %3929 }
 0x510   : > { %3938 = vst.msk [vmem:[#allocation2 + $0x2c] sm:$0xf] %vm11179_vm2, %v3930_v33  ;;  %v3016_v33 = vpop.f32.mrf.mxu3 }
 0x511   : > { %v3868_v55 = vpop.permute.xlu0 %3867 }
 0x512   : > { %3879 = vst.msk [vmem:[#allocation2 + $0x4] sm:$0xf] %vm11180_vm8, %v3868_v55  ;;  %vm11187_vm8 = vmmov %vm11179_vm2  ;;  %v3090_v37 = vpop.f32.mrf.mxu0 }
 0x513   : > { %3895 = vst.msk [vmem:[#allocation2 + $0x4] sm:$0xf] %vm11182_vm11, %v3884_v48  ;;  %v3040_v35 = vpop.f32.mrf.mxu2  ;;  %v3091_v3 = vadd.f32 %v3090_v37, %v9304_v45  ;;  %vm11190_vm11 = vcmask 261120  }
 0x514   : > { %3919 = vst.msk [vmem:[#allocation2 + $0x4] sm:$0xff] %vm8336_vm9, %v3911_v62  ;;  %vm11194_vm0 = vmmov %vm11190_vm11 }
 0x517   : > { %v3944_v30 = vpop.permute.xlu1 %3943 }
 0x518   : > { %3953 = vst.msk [vmem:[#allocation2 + $0x20] sm:$0xf] %vm11183_vm15, %v3944_v30  ;;  %vm11191_vm15 = vmmov %vm11190_vm11 }
 0x519   : > { %v3946_v9 = vpop.permute.xlu0 %3945 }
 0x51a   : > { %3954 = vst.msk [vmem:[#allocation2 + $0x2c] sm:$0xf] %vm11184_vm13, %v3946_v9  ;;  %v3092_v30 = vpop.f32.mrf.mxu0  ;;  %v9515_v9 = vpop.f32.mrf.mxu1 }
 0x51b   : > { %v9480_v8 = vld [vmem:[#allocation2] sm:$0xff] }
 0x51c   : > { %3963 = vst [vmem:[#allocation3] sm:$0xff] %v9480_v8 }
 0x51f   : > { %v3886_v20 = vpop.permute.xlu1 %3885  ;;  %v4424_v57 = vld [vmem:[#allocation2 + $0x20] sm:$0xf] }
 0x520   : > { %v4104_v25 = vld [vmem:[#allocation2 + $0x20] sm:$0xf]  ;;  %3896 = vst.msk [vmem:[#allocation2 + $0x10] sm:$0xf] %vm11186_vm4, %v3886_v20  ;;  %4445 = vrot.lane.b32.xlu0 %v4424_v57, %s8070_s14  ;;  %v3019_v20 = vpop.f32.mrf.mxu3  ;;  %vm11195_vm4 = vcmask 736256  }
 0x521   : > { %4125 = vrot.lane.b32.xlu1 %v4104_v25, %s8071_s12  ;;  %3920 = vst.msk [vmem:[#allocation2 + $0x10] sm:$0xff] %vm8336_vm9, %v3912_v32  ;;  %v3924_v40 = vpop.permute.xlu0 %3923  ;;  %v4106_v0 = vld [vmem:[#allocation2 + $0x2c] sm:$0xf]  ;;  %v3960_v47 = vld [vmem:[#allocation2 + $0x20] sm:$0xf]  ;;  %vm11188_vm9 = vmmov %vm11184_vm13  ;;  %v3109_v25 = vpop.f32.mrf.mxu2 }
 0x522   : > { %3935 = vst.msk [vmem:[#allocation2 + $0x8] sm:$0xf] %vm11179_vm2, %v3924_v40  ;;  %4129 = vrot.lane.b32.xlu2 %v4106_v0, %s8071_s12  ;;  %v3962_v39 = vld [vmem:[#allocation2 + $0x2c] sm:$0xf]  ;;  %vm11189_vm10 = vmmov %vm11188_vm9  ;;  %v4360_v57 = vld [vmem:[#allocation2 + $0x20] sm:$0xf]  ;;  %v3128_v32 = vpop.f32.mrf.mxu0  ;;  %v3071_v40 = vpop.f32.mrf.mxu1  ;;  %v3110_v37 = vadd.f32 %v3109_v25, %v3091_v3 }
 0x523   : > { %3936 = vst.msk [vmem:[#allocation2 + $0x14] sm:$0xf] %vm11187_vm8, %v3926_v29  ;;  %v4426_v23 = vld [vmem:[#allocation2 + $0x2c] sm:$0xf]  ;;  %vm11192_vm13 = vmmov %vm11190_vm11  ;;  %vm11197_vm8 = vcmask 744448  }
 0x524   : > { %3968 = vst.msk [vmem:[#allocation3 + $0x20] sm:$0xf] %vm811_vm14, %v3960_v47  ;;  %v4362_v29 = vld [vmem:[#allocation2 + $0x2c] sm:$0xf]  ;;  %v9564_v3 = vadd.f32 %v3128_v32, %v3110_v37  ;;  %vm11196_vm2 = vmmov %vm11195_vm4 }
 0x525   : > { %3970 = vst.msk [vmem:[#allocation3 + $0x2c] sm:$0xf] %vm811_vm14, %v3962_v39 }
 0x527   : > { %v3940_v52 = vpop.permute.xlu1 %3939 }
 0x528   : > { %4115 = vrot.lane.b32.xlu0 %v9480_v8, %s8071_s12  ;;  %3951 = vst.msk [vmem:[#allocation2 + $0x8] sm:$0xf] %vm11188_vm9, %v3940_v52  ;;  %v9504_v7 = vld [vmem:[#allocation2 + $0xc] sm:$0xff]  ;;  %v9526_v0 = vpop.f32.mrf.mxu3  ;;  %vm11198_vm9 = vmmov %vm11197_vm8 }
 0x529   : > { %4443 = vrot.lane.b32.xlu1 %v9451_v5, %s8070_s14  ;;  %v3942_v11 = vpop.permute.xlu0 %3941  ;;  %3965 = vst [vmem:[#allocation3 + $0xc] sm:$0xff] %v9504_v7  ;;  %v3111_v47 = vpop.f32.mrf.mxu2 }
 0x52a   : > { %3952 = vst.msk [vmem:[#allocation2 + $0x14] sm:$0xf] %vm11189_vm10, %v3942_v11  ;;  %4447 = vrot.lane.b32.xlu2 %v9457_v59, %s8070_s14  ;;  %v3130_v52 = vpop.f32.mrf.mxu0  ;;  %v3073_v39 = vpop.f32.mrf.mxu1  ;;  %vm11200_vm10 = vmmov %vm11194_vm0 }
 0x52f   : > { %v4100_v51 = vld [vmem:[#allocation2 + $0x8] sm:$0xf] }
 0x530   : > { %v3956_v55 = vld [vmem:[#allocation2 + $0x8] sm:$0xf]  ;;  %v3095_v11 = vpop.f32.mrf.mxu3 }
 0x531   : > { %4449 = vrot.lane.b32.xlu1 %v4426_v23, %s8070_s14  ;;  %v4102_v48 = vld [vmem:[#allocation2 + $0x14] sm:$0xf]  ;;  %3964 = vst.msk [vmem:[#allocation3 + $0x8] sm:$0xf] %vm811_vm14, %v3956_v55  ;;  %v3096_v23 = vadd.f32 %v3095_v11, %v9197_v19  ;;  %v3036_v11 = vadd.f32 %v3035_v50, %v9283_v54  ;;  %v2998_v50 = vadd.f32 %v9494_v46, %v2979_v31 }
 0x532   : > { %4117 = vrot.lane.b32.xlu2 %v4100_v51, %s8071_s12  ;;  %4121 = vrot.lane.b32.xlu0 %v4102_v48, %s8071_s12  ;;  %v3958_v62 = vld [vmem:[#allocation2 + $0x14] sm:$0xf]  ;;  %v3114_v51 = vpop.f32.mrf.mxu2  ;;  %v3039_v48 = vadd.f32 %v3038_v53, %v9197_v19  ;;  %v3133_v55 = vpop.f32.mrf.mxu0  ;;  %v9540_v53 = vadd.f32 %v3019_v20, %v3001_v49  ;;  %v2977_v49 = vadd.f32 %v9426_v10, %v9304_v45 }
 0x533   : > { %3966 = vst.msk [vmem:[#allocation3 + $0x14] sm:$0xf] %vm811_vm14, %v3958_v62  ;;  %v3076_v62 = vpop.f32.mrf.mxu1  ;;  %v3055_v60 = vadd.f32 %v9464_v28, %v3036_v11 }
 0x534   : > { %v3058_v6 = vadd.f32 %v9473_v2, %v3039_v48  ;;  %v3144_v20 = vsel %vm8751_vm5, %v9540_v53, 0.0 }
 0x535   : > { %v9562_v28 = vadd.f32 %v3073_v39, %v3055_v60 }
 0x536   : > { %v9537_v44 = vadd.f32 %v3076_v62, %v3058_v6  ;;  %v2984_v62 = vadd.f32 %v9445_v41, %v9275_v26 }
 0x538   : > { %v3145_v6 = vsel %vm8747_vm3, %v9537_v44, 0.0  ;;  %v3097_v21 = vpop.f32.mrf.mxu3  ;;  %v3003_v41 = vadd.f32 %v9515_v9, %v2984_v62 }
 0x539   : > { %4119 = vrot.lane.b32.xlu1 %v9504_v7, %s8071_s12  ;;  %v3098_v46 = vadd.f32 %v3097_v21, %v9275_v26 }
 0x53a   : > { %4379 = vrot.lane.b32.xlu2 %v9451_v5, %s8072_s13  ;;  %4383 = vrot.lane.b32.xlu0 %v9457_v59, %s8072_s13  ;;  %v3116_v32 = vpop.f32.mrf.mxu2 }
 0x541   : > { %4381 = vrot.lane.b32.xlu1 %v4360_v57, %s8072_s13  ;;  %v3115_v57 = vadd.f32 %v3114_v51, %v3096_v23  ;;  %v3034_v23 = vadd.f32 %v9478_v16, %v9304_v45  ;;  %v9570_v51 = vadd.f32 %v3016_v33, %v2998_v50  ;;  %v3140_v33 = vsel %vm8772_vm1, %v9564_v3, 0.0 }
 0x542   : > { %4385 = vrot.lane.b32.xlu2 %v4362_v29, %s8072_s13  ;;  %v3093_v29 = vadd.f32 %v3092_v30, %v9283_v54  ;;  %v9606_v50 = vadd.f32 %v9526_v0, %v3003_v41 }
 0x543   : > { %v9534_v13 = vadd.f32 %v3133_v55, %v3115_v57  ;;  %v3053_v16 = vadd.f32 %v9462_v38, %v3034_v23  ;;  %v3160_v38 = vadd.f32 %v3145_v6, %v3144_v20  ;;  %v3135_v55 = vpop.f32.mrf.mxu0  ;;  %v3141_v57 = vsel %vm8751_vm5, %v9570_v51, 0.0 }
 0x544   : > { %v3112_v2 = vadd.f32 %v3111_v47, %v3093_v29  ;;  %v2996_v47 = vadd.f32 %v9475_v15, %v2977_v49  ;;  %v3142_v15 = vsel %vm8747_vm3, %v9562_v28, 0.0  ;;  %v3078_v29 = vpop.f32.mrf.mxu1  ;;  %v3117_v23 = vadd.f32 %v3116_v32, %v3098_v46 }
 0x545   : > { %v3146_v30 = vsel %vm8772_vm1, %v9534_v13, 0.0  ;;  %v9568_v10 = vadd.f32 %v3071_v40, %v3053_v16  ;;  %v3041_v40 = vadd.f32 %v3040_v35, %v9275_v26  ;;  %v3147_v9 = vsel %vm8751_vm5, %v9606_v50, 0.0 }
 0x546   : > { %v9557_v24 = vadd.f32 %v3130_v52, %v3112_v2  ;;  %v3161_v25 = vsel %vm11190_vm11, %v3146_v30, 0.0  ;;  %v9574_v52 = vadd.f32 %v9496_v36, %v2996_v47  ;;  %v3155_v2 = vadd.f32 %v3142_v15, %v3141_v57  ;;  %vm11201_vm11 = vmmov %vm11196_vm2 }
 0x547   : > { %v3162_v48 = vadd.f32 %v3161_v25, %v3160_v38  ;;  %v3139_v36 = vsel %vm8747_vm3, %v9568_v10, 0.0  ;;  %v3060_v31 = vadd.f32 %v9491_v17, %v3041_v40  ;;  %v3151_v30 = vsel %vm11192_vm13, %v3140_v33, 0.0  ;;  %v4420_v38 = vld [vmem:[#allocation2 + $0x8] sm:$0xf]  ;;  %vm11203_vm13 = vmmov %vm11196_vm2 }
 0x548   : > { %v3143_v39 = vsel %vm8772_vm1, %v9557_v24, 0.0  ;;  %v3138_v35 = vsel %vm8751_vm5, %v9574_v52, 0.0  ;;  %v9600_v37 = vadd.f32 %v3135_v55, %v3117_v23  ;;  %v4422_v55 = vld [vmem:[#allocation2 + $0x14] sm:$0xf] }
 0x549   : > { %v3156_v11 = vsel %vm11191_vm15, %v3143_v39, 0.0  ;;  %v3150_v60 = vadd.f32 %v3139_v36, %v3138_v35  ;;  %v9603_v6 = vadd.f32 %v3078_v29, %v3060_v31  ;;  %v4042_v36 = vld [vmem:[#allocation2 + $0x2c] sm:$0xf]  ;;  %vm11202_vm15 = vcmask 1031168  }
 0x54a   : > { %11193 = vst [vmem:[#allocation10_spill] sm:$0xff] %v9600_v37  ;;  %v3157_v49 = vadd.f32 %v3156_v11, %v3155_v2  ;;  %v3149_v17 = vsel %vm8772_vm1, %v9600_v37, 0.0  ;;  %v4040_v11 = vld [vmem:[#allocation2 + $0x20] sm:$0xf] }
 0x54b   : > { %v3152_v16 = vadd.f32 %v3151_v30, %v3150_v60  ;;  %v3148_v21 = vsel %vm8747_vm3, %v9603_v6, 0.0  ;;  %v3166_v20 = vsel %vm11194_vm0, %v3149_v17, 0.0  ;;  %v4036_v60 = vld [vmem:[#allocation2 + $0x8] sm:$0xf]  ;;  %vm11204_vm0 = vmmov %vm11202_vm15 }
 0x54c   : > { %v3165_v25 = vadd.f32 %v3148_v21, %v3147_v9 }
 0x54e   : > { %v3167_v47 = vadd.f32 %v3166_v20, %v3165_v25 }
 0x55b   : > { %v4124_v0 = vpop.permute.xlu2 %4123 }
 0x55c   : > { %v4135_v23 = vrot.slane %v4124_v0, 4 }
 0x564   : > { %3163 = vadd.xlane.f32.xlu0 %v3162_v48 }
 0x56b   : > { %3158 = vadd.xlane.f32.xlu1 %v3157_v49  ;;  %3153 = vadd.xlane.f32.xlu2 %v3152_v16  ;;  %v4356_v16 = vld [vmem:[#allocation2 + $0x8] sm:$0xf] }
 0x573   : > { %3168 = vadd.xlane.f32.xlu2 %v3167_v47 }
 0x575   : > { %v4128_v46 = vpop.permute.xlu0 %4127 }
 0x576   : > { %v4137_v32 = vrot.slane %v4128_v46, 4 }
 0x578   : > { %4437 = vrot.lane.b32.xlu0 %v4420_v38, %s8070_s14 }
 0x57c   : > { %v4130_v39 = vpop.permute.xlu2 %4129 }
 0x57d   : > { %v4138_v48 = vrot.slane %v4130_v39, 4  ;;  %4162 = vst.msk [vmem:[#allocation3 + $0xbc] sm:$0xf] %vm811_vm14, %v4130_v39 }
 0x57f   : > { %v4145_v15 = vsel %vm859_vm6, %v4137_v32, %v4138_v48 }
 0x580   : > { %v4146_v33 = vsel %vm991_vm7, %v4128_v46, %v4145_v15  ;;  %4059 = vrot.lane.b32.xlu0 %v9451_v5, %s8073_s10 }
 0x581   : > { %4161 = vst [vmem:[#allocation3 + $0xb4] sm:$0xff] %v4146_v33  ;;  %v4358_v33 = vld [vmem:[#allocation2 + $0x14] sm:$0xf] }
 0x584   : > { %4435 = vrot.lane.b32.xlu1 %v9480_v8, %s8070_s14  ;;  %v4448_v40 = vpop.permute.xlu2 %4447 }
 0x588   : > { %4065 = vrot.lane.b32.xlu0 %v4042_v36, %s8073_s10  ;;  %v7855_v32 = vld [vmem:[#allocation3 + $0xb0] sm:$0xf0]  ;;  %v4457_v36 = vrot.slane %v4448_v40, 4 }
 0x58b   : > { %4439 = vrot.lane.b32.xlu2 %v9504_v7, %s8070_s14 }
 0x58c   : > { %4441 = vrot.lane.b32.xlu1 %v4422_v55, %s8070_s14  ;;  %v4118_v62 = vpop.permute.xlu2 %4117 }
 0x58d   : > { %4156 = vst.msk [vmem:[#allocation3 + $0x98] sm:$0xf] %vm811_vm14, %v4118_v62  ;;  %v4132_v17 = vrot.slane %v4118_v62, 4 }
 0x590   : > { %4375 = vrot.lane.b32.xlu0 %v9504_v7, %s8072_s13 }
 0x592   : > { %v4446_v57 = vpop.permute.xlu0 %4445 }
 0x593   : > { %v4126_v29 = vpop.permute.xlu1 %4125  ;;  %4480 = vst.msk [vmem:[#allocation3 + $0x1a0] sm:$0xf] %vm811_vm14, %v4446_v57  ;;  %4061 = vrot.lane.b32.xlu2 %v4040_v11, %s8073_s10  ;;  %v4456_v21 = vrot.slane %v4446_v57, 4  ;;  %v4298_v11 = vld [vmem:[#allocation2 + $0x2c] sm:$0xf] }
 0x594   : > { %v4136_v35 = vrot.slane %v4126_v29, 4  ;;  %4063 = vrot.lane.b32.xlu1 %v9457_v59, %s8073_s10  ;;  %4160 = vst.msk [vmem:[#allocation3 + $0xb0] sm:$0xf] %vm811_vm14, %v4126_v29  ;;  %v9638_v31 = vpop.permute.xlu2 %4379 }
 0x596   : > { %v4143_v2 = vsel %vm859_vm6, %v4135_v23, %v4136_v35 }
 0x597   : > { %v4144_v30 = vsel %vm991_vm7, %v4124_v0, %v4143_v2  ;;  %v4038_v2 = vld [vmem:[#allocation2 + $0x14] sm:$0xf] }
 0x598   : > { %4159 = vst [vmem:[#allocation3 + $0xa8] sm:$0xff] %v4144_v30  ;;  %4053 = vrot.lane.b32.xlu0 %v4036_v60, %s8073_s10 }
 0x59a   : > { %v4116_v49 = vpop.permute.xlu0 %4115 }
 0x59b   : > { %v4444_v41 = vpop.permute.xlu1 %4443  ;;  %v4131_v20 = vrot.slane %v4116_v49, 4  ;;  %4371 = vrot.lane.b32.xlu2 %v9480_v8, %s8072_s13 }
 0x59c   : > { %v4455_v9 = vrot.slane %v4444_v41, 4  ;;  %4373 = vrot.lane.b32.xlu1 %v4356_v16, %s8072_s13  ;;  %v4386_v25 = vpop.permute.xlu2 %4385 }
 0x59d   : > { %v4139_v0 = vsel %vm859_vm6, %v4131_v20, %v4132_v17  ;;  %4418 = vst.msk [vmem:[#allocation3 + $0x17c] sm:$0xf] %vm811_vm14, %v4386_v25  ;;  %v4296_v20 = vld [vmem:[#allocation2 + $0x20] sm:$0xf] }
 0x59e   : > { %v4463_v47 = vsel %vm859_vm6, %v4455_v9, %v4456_v21  ;;  %v4140_v46 = vsel %vm991_vm7, %v4116_v49, %v4139_v0 }
 0x59f   : > { %v4464_v38 = vsel %vm11195_vm4, %v4444_v41, %v4463_v47  ;;  %v7333_v39 = vld [vmem:[#allocation3 + $0xa8] sm:$0xf]  ;;  %4155 = vst [vmem:[#allocation3 + $0x90] sm:$0xff] %v4140_v46  ;;  %v4394_v41 = vrot.slane %v4386_v25, 4  ;;  %v4391_v47 = vrot.slane %v9638_v31, 4  ;;  %vm11205_vm4 = vmmov %vm11197_vm8 }
 0x5a0   : > { %4479 = vst [vmem:[#allocation3 + $0x198] sm:$0xff] %v4464_v38  ;;  %v7334_v48 = vor.u32 %v7855_v32, %v7333_v39  ;;  %4315 = vrot.lane.b32.xlu0 %v9451_v5, %s8074_s29  ;;  %v4292_v32 = vld [vmem:[#allocation2 + $0x8] sm:$0xf] }
 0x5a2   : > { %4843 = vmatpush.bf16.msrb.mxu2 %v7334_v48 }
 0x5a3   : > { %v4450_v15 = vpop.permute.xlu1 %4449  ;;  %4377 = vrot.lane.b32.xlu2 %v4358_v33, %s8072_s13 }
 0x5a4   : > { %v4458_v55 = vrot.slane %v4450_v15, 4  ;;  %4482 = vst.msk [vmem:[#allocation3 + $0x1ac] sm:$0xf] %vm811_vm14, %v4450_v15  ;;  %4051 = vrot.lane.b32.xlu1 %v9480_v8, %s8073_s10  ;;  %v4122_v62 = vpop.permute.xlu0 %4121  ;;  %v3976_v15 = vld [vmem:[#allocation2 + $0x20] sm:$0xf] }
 0x5a5   : > { %4158 = vst.msk [vmem:[#allocation3 + $0xa4] sm:$0xf] %vm811_vm14, %v4122_v62  ;;  %v4134_v23 = vrot.slane %v4122_v62, 4  ;;  %v3974_v62 = vld [vmem:[#allocation2 + $0x14] sm:$0xf] }
 0x5a6   : > { %v4465_v57 = vsel %vm859_vm6, %v4457_v36, %v4458_v55  ;;  %v7321_v46 = vld [vmem:[#allocation3 + $0x90] sm:$0xf] }
 0x5a7   : > { %v4466_v29 = vsel %vm11196_vm2, %v4448_v40, %v4465_v57  ;;  %v4294_v57 = vld [vmem:[#allocation2 + $0x14] sm:$0xf]  ;;  %vm11206_vm2 = vmmov %vm11200_vm10 }
 0x5a8   : > { %4481 = vst [vmem:[#allocation3 + $0x1a4] sm:$0xff] %v4466_v29  ;;  %4321 = vrot.lane.b32.xlu0 %v4298_v11, %s8074_s29  ;;  %v3972_v29 = vld [vmem:[#allocation2 + $0x8] sm:$0xf] }
 0x5a9   : > { %v4228_v11 = vld [vmem:[#allocation2 + $0x8] sm:$0xf] }
 0x5ab   : > { %v4120_v35 = vpop.permute.xlu1 %4119  ;;  %4055 = vrot.lane.b32.xlu2 %v9504_v7, %s8073_s10 }
 0x5ac   : > { %v4133_v30 = vrot.slane %v4120_v35, 4  ;;  %4057 = vrot.lane.b32.xlu1 %v4038_v2, %s8073_s10  ;;  %v4384_v60 = vpop.permute.xlu0 %4383 }
 0x5ad   : > { %v4393_v16 = vrot.slane %v4384_v60, 4 }
 0x5ae   : > { %v4141_v49 = vsel %vm859_vm6, %v4133_v30, %v4134_v23  ;;  %v4232_v23 = vld [vmem:[#allocation2 + $0x20] sm:$0xf]  ;;  %v4234_v30 = vld [vmem:[#allocation2 + $0x2c] sm:$0xf] }
 0x5af   : > { %v4142_v40 = vsel %vm991_vm7, %v4120_v35, %v4141_v49  ;;  %v4401_v17 = vsel %vm859_vm6, %v4393_v16, %v4394_v41  ;;  %v4170_v49 = vld [vmem:[#allocation2 + $0x2c] sm:$0xf] }
 0x5b0   : > { %4157 = vst [vmem:[#allocation3 + $0x9c] sm:$0xff] %v4142_v40  ;;  %v4402_v21 = vsel %vm11197_vm8, %v4384_v60, %v4401_v17  ;;  %3999 = vrot.lane.b32.xlu0 %v9457_v59, %s8075_s28  ;;  %vm11207_vm8 = vmmov %vm11205_vm4 }
 0x5b1   : > { %4417 = vst [vmem:[#allocation3 + $0x174] sm:$0xff] %v4402_v21  ;;  %v4230_v21 = vld [vmem:[#allocation2 + $0x14] sm:$0xf] }
 0x5b3   : > { %v4382_v9 = vpop.permute.xlu1 %4381  ;;  %4317 = vrot.lane.b32.xlu2 %v4296_v20, %s8074_s29 }
 0x5b4   : > { %v4392_v0 = vrot.slane %v4382_v9, 4  ;;  %4416 = vst.msk [vmem:[#allocation3 + $0x170] sm:$0xf] %vm811_vm14, %v4382_v9  ;;  %4319 = vrot.lane.b32.xlu1 %v9457_v59, %s8074_s29  ;;  %v7885_v9 = vld [vmem:[#allocation3 + $0x1a0] sm:$0xf0] }
 0x5b6   : > { %v4399_v25 = vsel %vm859_vm6, %v4391_v47, %v4392_v0  ;;  %v3174_v0 = vld [vmem:[%s10997_s5] sm:$0x3] }
 0x5b7   : > { %v4400_v38 = vsel %vm11198_vm9, %v9638_v31, %v4399_v25  ;;  %v7852_v39 = vld [vmem:[#allocation3 + $0x98] sm:$0xf0]  ;;  %v7453_v25 = vld [vmem:[#allocation3 + $0x198] sm:$0xf]  ;;  %vm11208_vm9 = vmmov %vm11204_vm0 }
 0x5b8   : > { %4415 = vst [vmem:[#allocation3 + $0x168] sm:$0xff] %v4400_v38  ;;  %v7322_v48 = vor.u32 %v7852_v39, %v7321_v46  ;;  %4309 = vrot.lane.b32.xlu0 %v4292_v32, %s8074_s29  ;;  %v7879_v36 = vld [vmem:[#allocation3 + $0x170] sm:$0xf0]  ;;  %v3978_v31 = vld [vmem:[#allocation2 + $0x2c] sm:$0xf]  ;;  %v7454_v38 = vor.u32 %v7885_v9, %v7453_v25 }
 0x5b9   : > { %v4168_v39 = vld [vmem:[#allocation2 + $0x20] sm:$0xf] }
 0x5ba   : > { %4844 = vmatpush.bf16.msrb.mxu2 %v7322_v48 }
 0x5bb   : > { %3995 = vrot.lane.b32.xlu2 %v9451_v5, %s8075_s28 }
 0x5bc   : > { %3997 = vrot.lane.b32.xlu1 %v3976_v15, %s8075_s28 }
 0x5bf   : > { %v7429_v33 = vld [vmem:[#allocation3 + $0x168] sm:$0xf] }
 0x5c0   : > { %v7430_v55 = vor.u32 %v7879_v36, %v7429_v33  ;;  %3987 = vrot.lane.b32.xlu0 %v9480_v8, %s8075_s28 }
 0x5c2   : > { %4862 = vmatpush.bf16.msra.mxu0 %v7430_v55 }
 0x5c3   : > { %4001 = vrot.lane.b32.xlu2 %v3978_v31, %s8075_s28 }
 0x5c4   : > { %4307 = vrot.lane.b32.xlu1 %v9480_v8, %s8074_s29 }
 0x5c8   : > { %3993 = vrot.lane.b32.xlu0 %v3974_v62, %s8075_s28 }
 0x5cb   : > { %4311 = vrot.lane.b32.xlu2 %v9504_v7, %s8074_s29 }
 0x5cc   : > { %4313 = vrot.lane.b32.xlu1 %v4294_v57, %s8074_s29 }
 0x5d0   : > { %4255 = vrot.lane.b32.xlu0 %v9457_v59, %s8076_s27 }
 0x5d3   : > { %3989 = vrot.lane.b32.xlu2 %v3972_v29, %s8075_s28 }
 0x5d4   : > { %3991 = vrot.lane.b32.xlu1 %v9504_v7, %s8075_s28 }
 0x5d7   : > { %v3164_v2 = vpop.xlane.xlu0 %3163 }
 0x5d8   : > { %4245 = vrot.lane.b32.xlu0 %v4228_v11, %s8076_s27  ;;  %v3172_v40 = vmul.f32 0.00390625, %v3164_v2  ;;  %v4164_v11 = vld [vmem:[#allocation2 + $0x8] sm:$0xf] }
 0x5db   : > { %4251 = vrot.lane.b32.xlu2 %v9451_v5, %s8076_s27 }
 0x5dc   : > { %4253 = vrot.lane.b32.xlu1 %v4232_v23, %s8076_s27 }
 0x5de   : > { %v3154_v35 = vpop.xlane.xlu2 %3153  ;;  %v3159_v16 = vpop.xlane.xlu1 %3158 }
 0x5df   : > { %v3170_v20 = vmul.f32 0.00390625, %v3154_v35 }
 0x5e0   : > { %4187 = vrot.lane.b32.xlu0 %v9451_v5, %s11199_s18  ;;  %v3171_v5 = vmul.f32 0.00390625, %v3159_v16 }
 0x5e3   : > { %4257 = vrot.lane.b32.xlu2 %v4234_v30, %s8076_s27 }
 0x5e4   : > { %4243 = vrot.lane.b32.xlu1 %v9480_v8, %s8076_s27 }
 0x5e6   : > { %v3169_v60 = vpop.xlane.xlu2 %3168 }
 0x5e7   : > { %v3173_v41 = vmul.f32 0.00390625, %v3169_v60 }
 0x5e8   : > { %4193 = vrot.lane.b32.xlu0 %v4170_v49, %s11199_s18  ;;  %v4166_v49 = vld [vmem:[#allocation2 + $0x14] sm:$0xf] }
 0x5e9   : > { %3191 = vmatpush.msra.mxu1 %v3173_v41 }
 0x5ea   : > { %v4438_v17 = vpop.permute.xlu0 %4437 }
 0x5eb   : > { %4476 = vst.msk [vmem:[#allocation3 + $0x188] sm:$0xf] %vm811_vm14, %v4438_v17  ;;  %4247 = vrot.lane.b32.xlu2 %v9504_v7, %s8076_s27  ;;  %3192 = vmatpush.msra.mxu1 %v3172_v40  ;;  %v4452_v48 = vrot.slane %v4438_v17, 4 }
 0x5ec   : > { %4249 = vrot.lane.b32.xlu1 %v4230_v21, %s8076_s27 }
 0x5ed   : > { %3193 = vmatpush.msra.mxu1 %v3171_v5 }
 0x5ee   : > { %v4440_v47 = vpop.permute.xlu2 %4439 }
 0x5ef   : > { %3194 = vmatpush.msra.mxu1 %v3170_v20  ;;  %v4453_v23 = vrot.slane %v4440_v47, 4  ;;  %v7878_v20 = vld [vmem:[#allocation3 + $0x16c] sm:$0xf] }
 0x5f0   : > { %4183 = vrot.lane.b32.xlu0 %v9504_v7, %s11199_s18  ;;  %7229 = vmatmul.msk.f32.vlgmr.msra.gmra.mxu1 %vm11200_vm10, %v3174_v0  ;;  %vm11209_vm10 = vcmask 752640  }
 0x5f1   : > { %4887 = vmatpush.bf16.msrb.mxu1 %v7454_v38 }
 0x5f2   : > { %v4060_v46 = vpop.permute.xlu0 %4059 }
 0x5f3   : > { %4189 = vrot.lane.b32.xlu2 %v4168_v39, %s11199_s18  ;;  %v4071_v36 = vrot.slane %v4060_v46, 4 }
 0x5f4   : > { %4191 = vrot.lane.b32.xlu1 %v9457_v59, %s11199_s18 }
 0x5f6   : > { %v4436_v32 = vpop.permute.xlu1 %4435  ;;  %v4062_v33 = vpop.permute.xlu2 %4061 }
 0x5f7   : > { %v4451_v15 = vrot.slane %v4436_v32, 4  ;;  %v4072_v55 = vrot.slane %v4062_v33, 4  ;;  %4096 = vst.msk [vmem:[#allocation3 + $0x80] sm:$0xf] %vm811_vm14, %v4062_v33 }
 0x5f9   : > { %v4459_v7 = vsel %vm859_vm6, %v4451_v15, %v4452_v48  ;;  %v4079_v62 = vsel %vm859_vm6, %v4071_v36, %v4072_v55  ;;  %v7431_v48 = vld [vmem:[#allocation3 + $0x174] sm:$0xf0] }
 0x5fa   : > { %v4460_v31 = vsel %vm11201_vm11, %v4436_v32, %v4459_v7  ;;  %v4080_v57 = vsel %vm11202_vm15, %v4060_v46, %v4079_v62  ;;  %v4066_v29 = vpop.permute.xlu0 %4065  ;;  %v7434_v15 = vor.u32 %v7878_v20, %v7431_v48  ;;  %vm11210_vm11 = vmmov %vm11206_vm2 }
 0x5fb   : > { %4475 = vst [vmem:[#allocation3 + $0x180] sm:$0xff] %v4460_v31  ;;  %4179 = vrot.lane.b32.xlu2 %v9480_v8, %s11199_s18  ;;  %v4074_v16 = vrot.slane %v4066_v29, 4  ;;  %vm11211_vm15 = vmmov %vm11204_vm0 }
 0x5fc   : > { %4095 = vst [vmem:[#allocation3 + $0x78] sm:$0xff] %v4080_v57  ;;  %4181 = vrot.lane.b32.xlu1 %v4164_v11, %s11199_s18 }
 0x5fd   : > { %4098 = vst.msk [vmem:[#allocation3 + $0x8c] sm:$0xf] %vm811_vm14, %v4066_v29 }
 0x5fe   : > { %v4442_v59 = vpop.permute.xlu1 %4441  ;;  %v4372_v2 = vpop.permute.xlu2 %4371 }
 0x5ff   : > { %v4454_v35 = vrot.slane %v4442_v59, 4  ;;  %4478 = vst.msk [vmem:[#allocation3 + $0x194] sm:$0xf] %vm811_vm14, %v4442_v59  ;;  %v4387_v36 = vrot.slane %v4372_v2, 4 }
 0x601   : > { %v4461_v30 = vsel %vm859_vm6, %v4453_v23, %v4454_v35 }
 0x602   : > { %v4462_v60 = vsel %vm11203_vm13, %v4440_v47, %v4461_v30  ;;  %v4376_v41 = vpop.permute.xlu0 %4375  ;;  %v7441_v25 = vld [vmem:[#allocation3 + $0x180] sm:$0xf]  ;;  %vm11212_vm13 = vmmov %vm11209_vm10 }
 0x603   : > { %4477 = vst [vmem:[#allocation3 + $0x18c] sm:$0xff] %v4462_v60  ;;  %4185 = vrot.lane.b32.xlu2 %v4166_v49, %s11199_s18  ;;  %v4389_v21 = vrot.slane %v4376_v41, 4  ;;  %v7309_v57 = vld [vmem:[#allocation3 + $0x78] sm:$0xf] }
 0x606   : > { %v4064_v8 = vpop.permute.xlu1 %4063  ;;  %v4378_v17 = vpop.permute.xlu2 %4377 }
 0x607   : > { %v4073_v40 = vrot.slane %v4064_v8, 4  ;;  %v4390_v5 = vrot.slane %v4378_v17, 4  ;;  %4414 = vst.msk [vmem:[#allocation3 + $0x164] sm:$0xf] %vm811_vm14, %v4378_v17 }
 0x609   : > { %v4081_v9 = vsel %vm859_vm6, %v4073_v40, %v4074_v16  ;;  %v4397_v47 = vsel %vm859_vm6, %v4389_v21, %v4390_v5 }
 0x60a   : > { %v4082_v0 = vsel %vm11204_vm0, %v4064_v8, %v4081_v9  ;;  %v7882_v38 = vld [vmem:[#allocation3 + $0x188] sm:$0xf0]  ;;  %v4398_v46 = vsel %vm11205_vm4, %v4376_v41, %v4397_v47  ;;  %v4054_v39 = vpop.permute.xlu0 %4053  ;;  %vm11213_vm0 = vcmask 1039360  }
 0x60b   : > { %4097 = vst [vmem:[#allocation3 + $0x84] sm:$0xff] %v4082_v0  ;;  %v7442_v32 = vor.u32 %v7882_v38, %v7441_v25  ;;  %v4068_v35 = vrot.slane %v4054_v39, 4  ;;  %vm11214_vm4 = vmmov %vm11213_vm0 }
 0x60c   : > { %4413 = vst [vmem:[#allocation3 + $0x15c] sm:$0xff] %v4398_v46 }
 0x60d   : > { %4092 = vst.msk [vmem:[#allocation3 + $0x68] sm:$0xf] %vm811_vm14, %v4054_v39  ;;  %4888 = vmatpush.bf16.msrb.mxu1 %v7442_v32 }
 0x60e   : > { %v4374_v33 = vpop.permute.xlu1 %4373  ;;  %v4056_v7 = vpop.permute.xlu2 %4055 }
 0x60f   : > { %v4388_v55 = vrot.slane %v4374_v33, 4  ;;  %4412 = vst.msk [vmem:[#allocation3 + $0x158] sm:$0xf] %vm811_vm14, %v4374_v33  ;;  %v4069_v38 = vrot.slane %v4056_v7, 4 }
 0x610   : > { %7463 = vmatmul.msk.bf16.vlgmr.msrb.gmra.mxu1 %vm11206_vm2, %v8582_v27  ;;  %vm11215_vm2 = vmmov %vm11209_vm10 }
 0x611   : > { %4919 = vmatpush.bf16.msra.mxu1 %v7434_v15  ;;  %v4395_v31 = vsel %vm859_vm6, %v4387_v36, %v4388_v55 }
 0x612   : > { %v4396_v62 = vsel %vm11207_vm8, %v4372_v2, %v4395_v31  ;;  %v7849_v29 = vld [vmem:[#allocation3 + $0x80] sm:$0xf0]  ;;  %v4316_v11 = vpop.permute.xlu0 %4315  ;;  %vm11216_vm8 = vmmov %vm11213_vm0 }
 0x613   : > { %4411 = vst [vmem:[#allocation3 + $0x150] sm:$0xff] %v4396_v62  ;;  %v7310_v59 = vor.u32 %v7849_v29, %v7309_v57  ;;  %v4327_v41 = vrot.slane %v4316_v11, 4  ;;  %v7876_v16 = vld [vmem:[#allocation3 + $0x158] sm:$0xf0]  ;;  %v7419_v5 = vld [vmem:[#allocation3 + $0x15c] sm:$0xf0] }
 0x615   : > { %4845 = vmatpush.bf16.msrb.mxu2 %v7310_v59 }
 0x616   : > { %v4052_v23 = vpop.permute.xlu1 %4051  ;;  %v4318_v60 = vpop.permute.xlu2 %4317 }
 0x617   : > { %v4067_v30 = vrot.slane %v4052_v23, 4  ;;  %v4328_v49 = vrot.slane %v4318_v60, 4  ;;  %4352 = vst.msk [vmem:[#allocation3 + $0x140] sm:$0xf] %vm811_vm14, %v4318_v60 }
 0x619   : > { %v4075_v8 = vsel %vm859_vm6, %v4067_v30, %v4068_v35  ;;  %v4335_v2 = vsel %vm859_vm6, %v4327_v41, %v4328_v49 }
 0x61a   : > { %v4076_v40 = vsel %vm11208_vm9, %v4052_v23, %v4075_v8  ;;  %v7417_v17 = vld [vmem:[#allocation3 + $0x150] sm:$0xf]  ;;  %v7875_v21 = vld [vmem:[#allocation3 + $0x154] sm:$0xf]  ;;  %v4336_v9 = vsel %vm11209_vm10, %v4316_v11, %v4335_v2  ;;  %v4322_v20 = vpop.permute.xlu0 %4321  ;;  %vm11217_vm9 = vmmov %vm11215_vm2 }
 0x61b   : > { %4091 = vst [vmem:[#allocation3 + $0x60] sm:$0xff] %v4076_v40  ;;  %v7418_v0 = vor.u32 %v7876_v16, %v7417_v17  ;;  %v7422_v47 = vor.u32 %v7875_v21, %v7419_v5  ;;  %v4330_v36 = vrot.slane %v4322_v20, 4  ;;  %vm11218_vm10 = vmmov %vm11213_vm0 }
 0x61c   : > { %4351 = vst [vmem:[#allocation3 + $0x138] sm:$0xff] %v4336_v9 }
 0x61d   : > { %4354 = vst.msk [vmem:[#allocation3 + $0x14c] sm:$0xf] %vm811_vm14, %v4322_v20  ;;  %4863 = vmatpush.bf16.msra.mxu0 %v7418_v0  ;;  %4920 = vmatpush.bf16.msra.mxu1 %v7422_v47 }
 0x61e   : > { %v4058_v25 = vpop.permute.xlu1 %4057  ;;  %v3996_v39 = vpop.permute.xlu2 %3995 }
 0x61f   : > { %v4070_v46 = vrot.slane %v4058_v25, 4  ;;  %4094 = vst.msk [vmem:[#allocation3 + $0x74] sm:$0xf] %vm811_vm14, %v4058_v25  ;;  %v4007_v49 = vrot.slane %v3996_v39, 4 }
 0x620   : > { %7464 = vmatmul.msk.bf16.gmra.mxu1 %vm11210_vm11, %v8605_v56  ;;  %vm11219_vm11 = vcmask 883712  }
 0x621   : > { %v4077_v32 = vsel %vm859_vm6, %v4069_v38, %v4070_v46 }
 0x622   : > { %v4078_v48 = vsel %vm11211_vm15, %v4056_v7, %v4077_v32  ;;  %v4000_v15 = vpop.permute.xlu0 %3999  ;;  %v7297_v23 = vld [vmem:[#allocation3 + $0x60] sm:$0xf]  ;;  %vm11220_vm15 = vmmov %vm11219_vm11 }
 0x623   : > { %4093 = vst [vmem:[#allocation3 + $0x6c] sm:$0xff] %v4078_v48  ;;  %v4009_v62 = vrot.slane %v4000_v15, 4  ;;  %v7405_v2 = vld [vmem:[#allocation3 + $0x138] sm:$0xf]  ;;  %v7872_v5 = vld [vmem:[#allocation3 + $0x13c] sm:$0xf] }
 0x626   : > { %v4320_v33 = vpop.permute.xlu1 %4319  ;;  %v4002_v31 = vpop.permute.xlu2 %4001 }
 0x627   : > { %v4329_v55 = vrot.slane %v4320_v33, 4  ;;  %v4010_v57 = vrot.slane %v4002_v31, 4  ;;  %4034 = vst.msk [vmem:[#allocation3 + $0x5c] sm:$0xf] %vm811_vm14, %v4002_v31 }
 0x629   : > { %v4337_v29 = vsel %vm859_vm6, %v4329_v55, %v4330_v36  ;;  %v4017_v59 = vsel %vm859_vm6, %v4009_v62, %v4010_v57 }
 0x62a   : > { %v4338_v11 = vsel %vm11212_vm13, %v4320_v33, %v4337_v29  ;;  %v7846_v35 = vld [vmem:[#allocation3 + $0x68] sm:$0xf0]  ;;  %v4018_v7 = vsel %vm11213_vm0, %v4000_v15, %v4017_v59  ;;  %v4310_v30 = vpop.permute.xlu0 %4309  ;;  %vm11221_vm13 = vmmov %vm11219_vm11  ;;  %vm11222_vm0 = vcmask 891904  }
 0x62b   : > { %4353 = vst [vmem:[#allocation3 + $0x144] sm:$0xff] %v4338_v11  ;;  %v7298_v60 = vor.u32 %v7846_v35, %v7297_v23  ;;  %v4324_v38 = vrot.slane %v4310_v30, 4 }
 0x62c   : > { %4033 = vst [vmem:[#allocation3 + $0x54] sm:$0xff] %v4018_v7 }
 0x62d   : > { %4348 = vst.msk [vmem:[#allocation3 + $0x128] sm:$0xf] %vm811_vm14, %v4310_v30  ;;  %4846 = vmatpush.bf16.msrb.mxu2 %v7298_v60 }
 0x62e   : > { %v3998_v41 = vpop.permute.xlu1 %3997  ;;  %v4312_v16 = vpop.permute.xlu2 %4311 }
 0x62f   : > { %v4008_v8 = vrot.slane %v3998_v41, 4  ;;  %4032 = vst.msk [vmem:[#allocation3 + $0x50] sm:$0xf] %vm811_vm14, %v3998_v41  ;;  %v4325_v59 = vrot.slane %v4312_v16, 4 }
 0x631   : > { %v4015_v40 = vsel %vm859_vm6, %v4007_v49, %v4008_v8 }
 0x632   : > { %v4016_v17 = vsel %vm11214_vm4, %v3996_v39, %v4015_v40  ;;  %v7873_v21 = vld [vmem:[#allocation3 + $0x140] sm:$0xf0]  ;;  %v7407_v9 = vld [vmem:[#allocation3 + $0x144] sm:$0xf0]  ;;  %v3988_v20 = vpop.permute.xlu0 %3987  ;;  %vm11223_vm4 = vmmov %vm11219_vm11 }
 0x633   : > { %4031 = vst [vmem:[#allocation3 + $0x48] sm:$0xff] %v4016_v17  ;;  %v7406_v0 = vor.u32 %v7873_v21, %v7405_v2  ;;  %v7410_v47 = vor.u32 %v7872_v5, %v7407_v9  ;;  %v4003_v48 = vrot.slane %v3988_v20, 4  ;;  %v7843_v31 = vld [vmem:[#allocation3 + $0x50] sm:$0xf0] }
 0x635   : > { %4864 = vmatpush.bf16.msra.mxu0 %v7406_v0  ;;  %4921 = vmatpush.bf16.msra.mxu1 %v7410_v47 }
 0x636   : > { %v4308_v25 = vpop.permute.xlu1 %4307  ;;  %v3990_v32 = vpop.permute.xlu2 %3989 }
 0x637   : > { %v4323_v46 = vrot.slane %v4308_v25, 4  ;;  %v4004_v15 = vrot.slane %v3990_v32, 4  ;;  %4028 = vst.msk [vmem:[#allocation3 + $0x38] sm:$0xf] %vm811_vm14, %v3990_v32 }
 0x639   : > { %v4331_v33 = vsel %vm859_vm6, %v4323_v46, %v4324_v38  ;;  %v4011_v36 = vsel %vm859_vm6, %v4003_v48, %v4004_v15 }
 0x63a   : > { %v4332_v39 = vsel %vm11215_vm2, %v4308_v25, %v4331_v33  ;;  %v7285_v55 = vld [vmem:[#allocation3 + $0x48] sm:$0xf]  ;;  %v4012_v62 = vsel %vm11216_vm8, %v3988_v20, %v4011_v36  ;;  %v3994_v57 = vpop.permute.xlu0 %3993  ;;  %vm11224_vm2 = vmmov %vm11222_vm0 }
 0x63b   : > { %4347 = vst [vmem:[#allocation3 + $0x120] sm:$0xff] %v4332_v39  ;;  %v7286_v29 = vor.u32 %v7843_v31, %v7285_v55  ;;  %v4006_v49 = vrot.slane %v3994_v57, 4  ;;  %vm11225_vm8 = vmmov %vm11222_vm0 }
 0x63c   : > { %4027 = vst [vmem:[#allocation3 + $0x30] sm:$0xff] %v4012_v62 }
 0x63d   : > { %4030 = vst.msk [vmem:[#allocation3 + $0x44] sm:$0xf] %vm811_vm14, %v3994_v57  ;;  %4847 = vmatpush.bf16.msrb.mxu2 %v7286_v29 }
 0x63e   : > { %v4314_v11 = vpop.permute.xlu1 %4313  ;;  %v4252_v35 = vpop.permute.xlu2 %4251 }
 0x63f   : > { %v4326_v23 = vrot.slane %v4314_v11, 4  ;;  %4350 = vst.msk [vmem:[#allocation3 + $0x134] sm:$0xf] %vm811_vm14, %v4314_v11  ;;  %v4263_v15 = vrot.slane %v4252_v35, 4  ;;  %v7837_v11 = vld [vmem:[#allocation3 + $0x20] sm:$0xf0] }
 0x641   : > { %v4333_v7 = vsel %vm859_vm6, %v4325_v59, %v4326_v23  ;;  %v7261_v23 = vld [vmem:[#allocation3 + $0x18] sm:$0xf] }
 0x642   : > { %v4334_v30 = vsel %vm11217_vm9, %v4312_v16, %v4333_v7  ;;  %v4256_v60 = vpop.permute.xlu0 %4255  ;;  %v7393_v5 = vld [vmem:[#allocation3 + $0x120] sm:$0xf]  ;;  %v7869_v47 = vld [vmem:[#allocation3 + $0x124] sm:$0xf]  ;;  %vm3221_vm9 = vcmask 1041408  }
 0x643   : > { %4349 = vst [vmem:[#allocation3 + $0x12c] sm:$0xff] %v4334_v30  ;;  %v4265_v2 = vrot.slane %v4256_v60, 4  ;;  %v7273_v31 = vld [vmem:[#allocation3 + $0x30] sm:$0xf] }
 0x646   : > { %v3992_v41 = vpop.permute.xlu1 %3991  ;;  %v4258_v40 = vpop.permute.xlu2 %4257 }
 0x647   : > { %v4005_v8 = vrot.slane %v3992_v41, 4  ;;  %v4266_v17 = vrot.slane %v4258_v40, 4  ;;  %4290 = vst.msk [vmem:[#allocation3 + $0x11c] sm:$0xf] %vm811_vm14, %v4258_v40  ;;  %v7834_v40 = vld [vmem:[#allocation3 + $0x8] sm:$0xf0] }
 0x649   : > { %v4013_v21 = vsel %vm859_vm6, %v4005_v8, %v4006_v49  ;;  %v4273_v20 = vsel %vm859_vm6, %v4265_v2, %v4266_v17  ;;  %v7249_v2 = vld [vmem:[#allocation3] sm:$0xf] }
 0x64a   : > { %v4014_v9 = vsel %vm11218_vm10, %v3992_v41, %v4013_v21  ;;  %v7870_v0 = vld [vmem:[#allocation3 + $0x128] sm:$0xf0]  ;;  %v7395_v16 = vld [vmem:[#allocation3 + $0x12c] sm:$0xf0]  ;;  %v4274_v25 = vsel %vm11219_vm11, %v4256_v60, %v4273_v20  ;;  %v4246_v38 = vpop.permute.xlu0 %4245  ;;  %v7262_v41 = vor.u32 %v7837_v11, %v7261_v23  ;;  %v7455_v21 = vld [vmem:[#allocation3 + $0x1a4] sm:$0xf0] }
 0x64b   : > { %4029 = vst [vmem:[#allocation3 + $0x3c] sm:$0xff] %v4014_v9  ;;  %v7394_v46 = vor.u32 %v7870_v0, %v7393_v5  ;;  %v7398_v32 = vor.u32 %v7869_v47, %v7395_v16  ;;  %v4260_v7 = vrot.slane %v4246_v38, 4  ;;  %vm11226_vm10 = vmmov %vm11222_vm0  ;;  %vm3208_vm11 = vcmask 15360  }
 0x64c   : > { %4289 = vst [vmem:[#allocation3 + $0x114] sm:$0xff] %v4274_v25 }
 0x64d   : > { %4284 = vst.msk [vmem:[#allocation3 + $0xf8] sm:$0xf] %vm811_vm14, %v4246_v38  ;;  %4865 = vmatpush.bf16.msra.mxu0 %v7394_v46  ;;  %4922 = vmatpush.bf16.msra.mxu1 %v7398_v32  ;;  %v7250_v38 = vor.u32 %v7834_v40, %v7249_v2 }
 0x64e   : > { %v4254_v48 = vpop.permute.xlu1 %4253  ;;  %v4248_v39 = vpop.permute.xlu2 %4247 }
 0x64f   : > { %v4264_v33 = vrot.slane %v4254_v48, 4  ;;  %4288 = vst.msk [vmem:[#allocation3 + $0x110] sm:$0xf] %vm811_vm14, %v4254_v48  ;;  %v7884_v48 = vld [vmem:[#allocation3 + $0x19c] sm:$0xf] }
 0x651   : > { %v4271_v36 = vsel %vm859_vm6, %v4263_v15, %v4264_v33  ;;  %v7458_v15 = vor.u32 %v7884_v48, %v7455_v21  ;;  %v7443_v33 = vld [vmem:[#allocation3 + $0x18c] sm:$0xf0]  ;;  %v7854_v48 = vld [vmem:[#allocation3 + $0xac] sm:$0xf] }
 0x652   : > { %v4272_v55 = vsel %vm11220_vm15, %v4252_v35, %v4271_v36  ;;  %v7840_v62 = vld [vmem:[#allocation3 + $0x38] sm:$0xf0]  ;;  %v4188_v57 = vpop.permute.xlu0 %4187  ;;  %vm11227_vm15 = vcmask 261120  }
 0x653   : > { %4287 = vst [vmem:[#allocation3 + $0x108] sm:$0xff] %v4272_v55  ;;  %v7274_v29 = vor.u32 %v7840_v62, %v7273_v31  ;;  %v4199_v49 = vrot.slane %v4188_v57, 4  ;;  %v7867_v17 = vld [vmem:[#allocation3 + $0x110] sm:$0xf0]  ;;  %v7383_v47 = vld [vmem:[#allocation3 + $0x114] sm:$0xf0] }
 0x654   : > { %v4261_v55 = vrot.slane %v4248_v39, 4 }
 0x655   : > { %4848 = vmatpush.bf16.msrb.mxu2 %v7274_v29 }
 0x656   : > { %v4244_v59 = vpop.permute.xlu1 %4243  ;;  %v4190_v60 = vpop.permute.xlu2 %4189 }
 0x657   : > { %v4259_v30 = vrot.slane %v4244_v59, 4  ;;  %v4200_v8 = vrot.slane %v4190_v60, 4  ;;  %4224 = vst.msk [vmem:[#allocation3 + $0xe0] sm:$0xf] %vm811_vm14, %v4190_v60 }
 0x659   : > { %v4267_v35 = vsel %vm859_vm6, %v4259_v30, %v4260_v7  ;;  %4849 = vmatpush.bf16.msrb.mxu2 %v7262_v41  ;;  %v4207_v9 = vsel %vm859_vm6, %v4199_v49, %v4200_v8 }
 0x65a   : > { %v4268_v5 = vsel %vm11221_vm13, %v4244_v59, %v4267_v35  ;;  %v7381_v20 = vld [vmem:[#allocation3 + $0x108] sm:$0xf]  ;;  %v7866_v0 = vld [vmem:[#allocation3 + $0x10c] sm:$0xf]  ;;  %v4208_v16 = vsel %vm11222_vm0, %v4188_v57, %v4207_v9  ;;  %v4194_v25 = vpop.permute.xlu0 %4193  ;;  %v7881_v57 = vld [vmem:[#allocation3 + $0x184] sm:$0xf] }
 0x65b   : > { %4283 = vst [vmem:[#allocation3 + $0xf0] sm:$0xff] %v4268_v5  ;;  %v7382_v46 = vor.u32 %v7867_v17, %v7381_v20  ;;  %v7386_v32 = vor.u32 %v7866_v0, %v7383_v47  ;;  %v7446_v29 = vor.u32 %v7881_v57, %v7443_v33  ;;  %v4202_v30 = vrot.slane %v4194_v25, 4  ;;  %v3175_v47 = vld [vmem:[%s10998_s6] sm:$0x3]  ;;  %vm11228_vm13 = vmmov %vm11227_vm15 }
 0x65c   : > { %4223 = vst [vmem:[#allocation3 + $0xd8] sm:$0xff] %v4208_v16  ;;  %v3200_v33 = vld [vmem:[%s10999_s7] sm:$0xff]  ;;  %vm11229_vm0 = vmmov %vm11228_vm13 }
 0x65d   : > { %4226 = vst.msk [vmem:[#allocation3 + $0xec] sm:$0xf] %vm811_vm14, %v4194_v25  ;;  %4850 = vmatpush.bf16.msrb.mxu2 %v7250_v38  ;;  %4866 = vmatpush.bf16.msra.mxu0 %v7382_v46 }
 0x65e   : > { %4923 = vmatpush.bf16.msra.mxu1 %v7386_v32  ;;  %v4250_v36 = vpop.permute.xlu1 %4249  ;;  %v4180_v62 = vpop.permute.xlu2 %4179 }
 0x65f   : > { %v4262_v31 = vrot.slane %v4250_v36, 4  ;;  %4286 = vst.msk [vmem:[#allocation3 + $0x104] sm:$0xf] %vm811_vm14, %v4250_v36  ;;  %v4195_v25 = vrot.slane %v4180_v62, 4 }
 0x660   : > { %4851 = vmatmul.bf16.vlgmr.msrb.gmra.mxu2 %v8637_v61 }
 0x661   : > { %4944 = vmatpush.bf16.msra.mxu2 %v7458_v15  ;;  %v4269_v11 = vsel %vm859_vm6, %v4261_v55, %v4262_v31 }
 0x662   : > { %v4270_v59 = vsel %vm11223_vm4, %v4248_v39, %v4269_v11  ;;  %v4184_v23 = vpop.permute.xlu0 %4183  ;;  %v7369_v35 = vld [vmem:[#allocation3 + $0xf0] sm:$0xf]  ;;  %v7863_v39 = vld [vmem:[#allocation3 + $0xf4] sm:$0xf]  ;;  %vm11230_vm4 = vmmov %vm11229_vm0 }
 0x663   : > { %4285 = vst [vmem:[#allocation3 + $0xfc] sm:$0xff] %v4270_v59  ;;  %v4197_v49 = vrot.slane %v4184_v23, 4  ;;  %v7357_v36 = vld [vmem:[#allocation3 + $0xd8] sm:$0xf]  ;;  %v7860_v55 = vld [vmem:[#allocation3 + $0xdc] sm:$0xf] }
 0x664   : > { %v7335_v59 = vld [vmem:[#allocation3 + $0xb4] sm:$0xf0] }
 0x665   : > { %4945 = vmatpush.bf16.msra.mxu2 %v7446_v29 }
 0x666   : > { %v4192_v7 = vpop.permute.xlu1 %4191  ;;  %v4186_v41 = vpop.permute.xlu2 %4185 }
 0x667   : > { %v4201_v60 = vrot.slane %v4192_v7, 4  ;;  %v4198_v8 = vrot.slane %v4186_v41, 4  ;;  %4222 = vst.msk [vmem:[#allocation3 + $0xd4] sm:$0xf] %vm811_vm14, %v4186_v41  ;;  %v7851_v41 = vld [vmem:[#allocation3 + $0x94] sm:$0xf] }
 0x669   : > { %v4209_v40 = vsel %vm859_vm6, %v4201_v60, %v4202_v30  ;;  %v4205_v17 = vsel %vm859_vm6, %v4197_v49, %v4198_v8  ;;  %v7338_v30 = vor.u32 %v7854_v48, %v7335_v59  ;;  %v7323_v60 = vld [vmem:[#allocation3 + $0x9c] sm:$0xf0]  ;;  %v7886_v8 = vld [vmem:[#allocation3 + $0x1a8] sm:$0xf0]  ;;  %v7883_v48 = vld [vmem:[#allocation3 + $0x190] sm:$0xf0] }
 0x66a   : > { %v4210_v2 = vsel %vm11224_vm2, %v4192_v7, %v4209_v40  ;;  %v7864_v21 = vld [vmem:[#allocation3 + $0xf8] sm:$0xf0]  ;;  %v7371_v5 = vld [vmem:[#allocation3 + $0xfc] sm:$0xf0]  ;;  %v4206_v9 = vsel %vm11225_vm8, %v4184_v23, %v4205_v17  ;;  %v7326_v49 = vor.u32 %v7851_v41, %v7323_v60  ;;  %v7850_v59 = vld [vmem:[#allocation3 + $0x88] sm:$0xf0] }
 0x66b   : > { %4225 = vst [vmem:[#allocation3 + $0xe4] sm:$0xff] %v4210_v2  ;;  %v7370_v20 = vor.u32 %v7864_v21, %v7369_v35  ;;  %v7374_v0 = vor.u32 %v7863_v39, %v7371_v5  ;;  %v3201_v40 = vld [vmem:[%s10999_s7 + $0x8] sm:$0xff]  ;;  %v7311_v35 = vld [vmem:[#allocation3 + $0x84] sm:$0xf0]  ;;  %v7275_v41 = vld [vmem:[#allocation3 + $0x3c] sm:$0xf0] }
 0x66c   : > { %4221 = vst [vmem:[#allocation3 + $0xcc] sm:$0xff] %v4206_v9  ;;  %v7848_v5 = vld [vmem:[#allocation3 + $0x7c] sm:$0xf]  ;;  %vm11232_vm2 = vcmask 154624  }
 0x66d   : > { %4867 = vmatpush.bf16.msra.mxu0 %v7370_v20  ;;  %4924 = vmatpush.bf16.msra.mxu1 %v7374_v0  ;;  %v3196_v46 = vpop.f32.mrf.mxu1  ;;  %v7314_v0 = vor.u32 %v7848_v5, %v7311_v35  ;;  %vm11233_vm8 = vmmov %vm11232_vm2 }
 0x66e   : > { %v4182_v16 = vpop.permute.xlu1 %4181  ;;  %v3197_v32 = vadd.f32 %v3196_v46, %v3175_v47  ;;  %v7856_v47 = vld [vmem:[#allocation3 + $0xb8] sm:$0xf0]  ;;  %v7299_v46 = vld [vmem:[#allocation3 + $0x6c] sm:$0xf0] }
 0x66f   : > { %v4196_v38 = vrot.slane %v4182_v16, 4  ;;  %4220 = vst.msk [vmem:[#allocation3 + $0xc8] sm:$0xf] %vm811_vm14, %v4182_v16  ;;  %v7461_v16 = vld [vmem:[#allocation3 + $0x1a0] sm:$0xf] }
 0x670   : > { %4856 = vmatmul.bf16.gmra.mxu2 %v8667_v43  ;;  %v3199_v57 = vmax.f32 %v3197_v32, 0.0  ;;  %v7853_v32 = vld [vmem:[#allocation3 + $0xa0] sm:$0xf0] }
 0x671   : > { %v4203_v15 = vsel %vm859_vm6, %v4195_v25, %v4196_v38  ;;  %v7462_v38 = vor.u32 %v7886_v8, %v7461_v16  ;;  %v7841_v16 = vld [vmem:[#allocation3 + $0x40] sm:$0xf0] }
 0x672   : > { %v4204_v31 = vsel %vm11226_vm10, %v4180_v62, %v4203_v15  ;;  %v7861_v29 = vld [vmem:[#allocation3 + $0xe0] sm:$0xf0]  ;;  %v7359_v11 = vld [vmem:[#allocation3 + $0xe4] sm:$0xf0]  ;;  %7230 = vmatpush.msk.msra.mxu3 %vm3221_vm9, %v3199_v57  ;;  %v7341_v62 = vld [vmem:[#allocation3 + $0xb0] sm:$0xf] }
 0x673   : > { %4219 = vst [vmem:[#allocation3 + $0xc0] sm:$0xff] %v4204_v31  ;;  %v7358_v23 = vor.u32 %v7861_v29, %v7357_v36  ;;  %v7362_v7 = vor.u32 %v7860_v55, %v7359_v11  ;;  %7231 = vmatmul.msk.f32.vlgmr.msra.gmra.mxu3 %vm3208_vm11, %v3200_v33  ;;  %v7858_v2 = vld [vmem:[#allocation3 + $0xc8] sm:$0xf0]  ;;  %v7347_v39 = vld [vmem:[#allocation3 + $0xcc] sm:$0xf0]  ;;  %v7342_v25 = vor.u32 %v7856_v47, %v7341_v62  ;;  %v3202_v11 = vld [vmem:[%s10999_s7 + $0x10] sm:$0xff] }
 0x674   : > { %4900 = vmatpush.bf16.msrb.mxu3 %v7338_v30  ;;  %v7845_v15 = vld [vmem:[#allocation3 + $0x64] sm:$0xf]  ;;  %v7329_v36 = vld [vmem:[#allocation3 + $0x98] sm:$0xf]  ;;  %v7449_v55 = vld [vmem:[#allocation3 + $0x188] sm:$0xf] }
 0x675   : > { %4868 = vmatpush.bf16.msra.mxu0 %v7358_v23  ;;  %4925 = vmatpush.bf16.msra.mxu1 %v7362_v7  ;;  %v7302_v33 = vor.u32 %v7845_v15, %v7299_v46  ;;  %v7330_v31 = vor.u32 %v7853_v32, %v7329_v36  ;;  %v7450_v57 = vor.u32 %v7883_v48, %v7449_v55  ;;  %v7842_v29 = vld [vmem:[#allocation3 + $0x4c] sm:$0xf]  ;;  %v7287_v23 = vld [vmem:[#allocation3 + $0x54] sm:$0xf0]  ;;  %v7317_v30 = vld [vmem:[#allocation3 + $0x80] sm:$0xf] }
 0x676   : > { %v7290_v7 = vor.u32 %v7842_v29, %v7287_v23  ;;  %v7318_v60 = vor.u32 %v7850_v59, %v7317_v30  ;;  %v7839_v62 = vld [vmem:[#allocation3 + $0x34] sm:$0xf]  ;;  %v7437_v47 = vld [vmem:[#allocation3 + $0x170] sm:$0xf]  ;;  %v7880_v46 = vld [vmem:[#allocation3 + $0x178] sm:$0xf0] }
 0x677   : > { %v7278_v8 = vor.u32 %v7839_v62, %v7275_v41  ;;  %v7281_v32 = vld [vmem:[#allocation3 + $0x38] sm:$0xf]  ;;  %v7438_v48 = vor.u32 %v7880_v46, %v7437_v47  ;;  %v7269_v36 = vld [vmem:[#allocation3 + $0x20] sm:$0xf]  ;;  %v7838_v55 = vld [vmem:[#allocation3 + $0x28] sm:$0xf0] }
 0x678   : > { %4901 = vmatpush.bf16.msrb.mxu3 %v7326_v49  ;;  %v7847_v49 = vld [vmem:[#allocation3 + $0x70] sm:$0xf0]  ;;  %v7282_v15 = vor.u32 %v7841_v16, %v7281_v32  ;;  %v7270_v29 = vor.u32 %v7838_v55, %v7269_v36  ;;  %v7257_v59 = vld [vmem:[#allocation3 + $0x8] sm:$0xf]  ;;  %vm11234_vm10 = vmmov %vm11232_vm2 }
 0x679   : > { %v7835_v23 = vld [vmem:[#allocation3 + $0x10] sm:$0xf0] }
 0x67a   : > { %v7345_v17 = vld [vmem:[#allocation3 + $0xc0] sm:$0xf]  ;;  %v7857_v21 = vld [vmem:[#allocation3 + $0xc4] sm:$0xf]  ;;  %v7871_v41 = vld [vmem:[#allocation3 + $0x130] sm:$0xf0] }
 0x67b   : > { %v7346_v9 = vor.u32 %v7858_v2, %v7345_v17  ;;  %v7350_v20 = vor.u32 %v7857_v21, %v7347_v39  ;;  %7232 = vmatmul.msk.f32.gmra.mxu3 %vm3208_vm11, %v3201_v40  ;;  %v7305_v40 = vld [vmem:[#allocation3 + $0x68] sm:$0xf]  ;;  %v7293_v21 = vld [vmem:[#allocation3 + $0x50] sm:$0xf]  ;;  %v7836_v39 = vld [vmem:[#allocation3 + $0x1c] sm:$0xf] }
 0x67c   : > { %4902 = vmatpush.bf16.msrb.mxu3 %v7314_v0  ;;  %v7306_v35 = vor.u32 %v7847_v49, %v7305_v40  ;;  %v7263_v2 = vld [vmem:[#allocation3 + $0x24] sm:$0xf0]  ;;  %v7251_v0 = vld [vmem:[#allocation3 + $0xc] sm:$0xf0]  ;;  %v7868_v40 = vld [vmem:[#allocation3 + $0x118] sm:$0xf0] }
 0x67d   : > { %4869 = vmatpush.bf16.msra.mxu0 %v7346_v9  ;;  %4926 = vmatpush.bf16.msra.mxu1 %v7350_v20  ;;  %v3203_v17 = vld [vmem:[%s10999_s7 + $0x18] sm:$0xff]  ;;  %v7266_v5 = vor.u32 %v7836_v39, %v7263_v2  ;;  %v7844_v9 = vld [vmem:[#allocation3 + $0x58] sm:$0xf0]  ;;  %v7865_v2 = vld [vmem:[#allocation3 + $0x100] sm:$0xf0] }
 0x67e   : > { %v7294_v20 = vor.u32 %v7844_v9, %v7293_v21  ;;  %v7401_v49 = vld [vmem:[#allocation3 + $0x128] sm:$0xf]  ;;  %v7862_v39 = vld [vmem:[#allocation3 + $0xe8] sm:$0xf0] }
 0x67f   : > { %v7402_v62 = vor.u32 %v7871_v41, %v7401_v49 }
 0x680   : > { %4870 = vmatmul.bf16.vlgmr.msra.gmra.mxu0 %v8677_v4  ;;  %7465 = vmatmul.msk.bf16.vlgmr.msra.gmra.mxu2 %vm11227_vm15, %v8582_v27  ;;  %vm11235_vm15 = vmmov %vm11232_vm2 }
 0x681   : > { %4957 = vmatpush.bf16.msrb.mxu0 %v7342_v25  ;;  %5001 = vmatpush.bf16.msrb.mxu1 %v7462_v38  ;;  %v7833_v25 = vld [vmem:[#allocation3 + $0x4] sm:$0xf] }
 0x682   : > { %4927 = vmatmul.bf16.vlgmr.msra.gmra.mxu1 %v8677_v4  ;;  %4903 = vmatpush.bf16.msrb.mxu3 %v7302_v33  ;;  %v7254_v38 = vor.u32 %v7833_v25, %v7251_v0  ;;  %v7425_v33 = vld [vmem:[#allocation3 + $0x158] sm:$0xf]  ;;  %v7859_v0 = vld [vmem:[#allocation3 + $0xd0] sm:$0xf0] }
 0x683   : > { %7233 = vmatmul.msk.f32.gmra.mxu3 %vm3208_vm11, %v3202_v11  ;;  %v7874_v11 = vld [vmem:[#allocation3 + $0x148] sm:$0xf0] }
 0x685   : > { %4958 = vmatpush.bf16.msrb.mxu0 %v7330_v31  ;;  %5002 = vmatpush.bf16.msrb.mxu1 %v7450_v57  ;;  %v7877_v31 = vld [vmem:[#allocation3 + $0x160] sm:$0xf0] }
 0x686   : > { %4904 = vmatpush.bf16.msrb.mxu3 %v7290_v7  ;;  %v7426_v57 = vor.u32 %v7877_v31, %v7425_v33  ;;  %v7413_v7 = vld [vmem:[#allocation3 + $0x140] sm:$0xf] }
 0x687   : > { %v7414_v30 = vor.u32 %v7874_v11, %v7413_v7 }
 0x689   : > { %4959 = vmatpush.bf16.msrb.mxu0 %v7318_v60  ;;  %v7258_v60 = vor.u32 %v7835_v23, %v7257_v59 }
 0x68a   : > { %4905 = vmatpush.bf16.msrb.mxu3 %v7278_v8  ;;  %v7389_v8 = vld [vmem:[#allocation3 + $0x110] sm:$0xf] }
 0x68b   : > { %7234 = vmatmul.msk.f32.gmra.mxu3 %vm3208_vm11, %v3203_v17  ;;  %v7377_v17 = vld [vmem:[#allocation3 + $0xf8] sm:$0xf] }
 0x68c   : > { %v7378_v21 = vor.u32 %v7865_v2, %v7377_v17 }
 0x68d   : > { %4960 = vmatpush.bf16.msrb.mxu0 %v7306_v35  ;;  %v7390_v35 = vor.u32 %v7868_v40, %v7389_v8 }
 0x68e   : > { %4906 = vmatpush.bf16.msrb.mxu3 %v7266_v5  ;;  %v7365_v5 = vld [vmem:[#allocation3 + $0xe0] sm:$0xf] }
 0x68f   : > { %v7366_v9 = vor.u32 %v7862_v39, %v7365_v5 }
 0x690   : > { %4875 = vmatmul.bf16.gmra.mxu0 %v8690_v22  ;;  %7466 = vmatmul.msk.bf16.gmra.mxu2 %vm11228_vm13, %v8605_v56  ;;  %vm11236_vm13 = vcmask 412672  }
 0x691   : > { %4961 = vmatpush.bf16.msrb.mxu0 %v7294_v20  ;;  %v7353_v20 = vld [vmem:[#allocation3 + $0xc8] sm:$0xf] }
 0x692   : > { %4932 = vmatmul.bf16.gmra.mxu1 %v8690_v22  ;;  %4907 = vmatpush.bf16.msrb.mxu3 %v7254_v38  ;;  %v7354_v47 = vor.u32 %v7859_v0, %v7353_v20 }
 0x695   : > { %4962 = vmatpush.bf16.msrb.mxu0 %v7282_v15  ;;  %4908 = vmatmul.bf16.vlgmr.msrb.gmra.mxu3 %v8637_v61 }
 0x696   : > { %4976 = vmatpush.bf16.msra.mxu3 %v7438_v48 }
 0x699   : > { %4963 = vmatpush.bf16.msrb.mxu0 %v7270_v29 }
 0x69a   : > { %4977 = vmatpush.bf16.msra.mxu3 %v7426_v57 }
 0x69d   : > { %4964 = vmatpush.bf16.msrb.mxu0 %v7258_v60 }
 0x69e   : > { %4978 = vmatpush.bf16.msra.mxu3 %v7414_v30 }
 0x6a0   : > { %4965 = vmatmul.bf16.vlgmr.msrb.gmra.mxu0 %v8637_v61 }
 0x6a2   : > { %4979 = vmatpush.bf16.msra.mxu3 %v7402_v62  ;;  %7467 = vmatmul.msk.bf16.vlgmr.msrb.gmra.mxu1 %vm11229_vm0, %v8582_v27  ;;  %v4890_v27 = vpop.f32.mrf.mxu1  ;;  %vm11237_vm0 = vmmov %vm11232_vm2 }
 0x6a5   : > { %4913 = vmatmul.bf16.gmra.mxu3 %v8667_v43 }
 0x6a6   : > { %4980 = vmatpush.bf16.msra.mxu3 %v7390_v35 }
 0x6aa   : > { %4981 = vmatpush.bf16.msra.mxu3 %v7378_v21  ;;  %v4892_v61 = vpop.f32.mrf.mxu1 }
 0x6ae   : > { %4982 = vmatpush.bf16.msra.mxu3 %v7366_v9 }
 0x6b0   : > { %4970 = vmatmul.bf16.gmra.mxu0 %v8667_v43 }
 0x6b2   : > { %4983 = vmatpush.bf16.msra.mxu3 %v7354_v47  ;;  %7468 = vmatmul.msk.bf16.gmra.mxu1 %vm11230_vm4, %v8605_v56  ;;  %v4895_v38 = vpop.f32.mrf.mxu1  ;;  %vm11238_vm4 = vmmov %vm11237_vm0 }
 0x6b5   : > { %4984 = vmatmul.bf16.vlgmr.msra.gmra.mxu3 %v8677_v4 }
 0x6ba   : > { %v4897_v48 = vpop.f32.mrf.mxu1 }
 0x6c5   : > { %4989 = vmatmul.bf16.gmra.mxu3 %v8690_v22 }
 0x6e3   : > { %v4852_v16 = vpop.f32.mrf.mxu2 }
 0x6e4   : > { %v4853_v22 = vadd.f32 %v4852_v16, %v8721_v42 }
 0x6eb   : > { %v4854_v46 = vpop.f32.mrf.mxu2 }
 0x6ec   : > { %v4855_v30 = vadd.f32 %v4854_v46, %v8738_v63 }
 0x6f3   : > { %v4857_v15 = vpop.f32.mrf.mxu2 }
 0x6f4   : > { %v4858_v20 = vadd.f32 %v4857_v15, %v8719_v34 }
 0x6f6   : > { %v9838_v25 = vpop.f32.mrf.mxu3 }
 0x6fb   : > { %v4859_v56 = vpop.f32.mrf.mxu2 }
 0x6fd   : > { %v4871_v33 = vpop.f32.mrf.mxu0 }
 0x6fe   : > { %v9840_v32 = vpop.f32.mrf.mxu3  ;;  %v4872_v31 = vadd.f32 %v4871_v33, %v4853_v22 }
 0x6ff   : > { %v4928_v36 = vpop.f32.mrf.mxu1 }
 0x700   : > { %v4891_v59 = vadd.f32 %v4890_v27, %v4872_v31 }
 0x702   : > { %v5014_v41 = vmax.f32 %v4891_v59, 0.0 }
 0x703   : > { %v4947_v57 = vpop.f32.mrf.mxu2 }
 0x704   : > { %v5026_v17 = vsel %vm8751_vm5, %v5014_v41, 0.0 }
 0x705   : > { %v4873_v55 = vpop.f32.mrf.mxu0 }
 0x706   : > { %v9842_v43 = vpop.f32.mrf.mxu3  ;;  %v4874_v49 = vadd.f32 %v4873_v55, %v4855_v30 }
 0x707   : > { %v4930_v29 = vpop.f32.mrf.mxu1 }
 0x708   : > { %v4893_v21 = vadd.f32 %v4892_v61, %v4874_v49 }
 0x70a   : > { %v5017_v27 = vmax.f32 %v4893_v21, 0.0 }
 0x70b   : > { %v4949_v35 = vpop.f32.mrf.mxu2 }
 0x70c   : > { %v5029_v61 = vsel %vm8751_vm5, %v5017_v27, 0.0 }
 0x70d   : > { %v4876_v7 = vpop.f32.mrf.mxu0 }
 0x70e   : > { %v9844_v4 = vpop.f32.mrf.mxu3  ;;  %v4877_v16 = vadd.f32 %v4876_v7, %v4858_v20 }
 0x70f   : > { %v4933_v8 = vpop.f32.mrf.mxu1 }
 0x710   : > { %v4896_v31 = vadd.f32 %v4895_v38, %v4877_v16 }
 0x715   : > { %v4878_v47 = vpop.f32.mrf.mxu0 }
 0x717   : > { %v4935_v22 = vpop.f32.mrf.mxu1 }
 0x718   : > { %v4909_v11 = vpop.f32.mrf.mxu3 }
 0x719   : > { %v4910_v23 = vadd.f32 %v4909_v11, %v8721_v42  ;;  %v4860_v11 = vadd.f32 %v4859_v56, %v8777_v18 }
 0x71b   : > { %v4929_v60 = vadd.f32 %v4928_v36, %v4910_v23  ;;  %v4952_v36 = vpop.f32.mrf.mxu2  ;;  %v5020_v23 = vmax.f32 %v4896_v31, 0.0  ;;  %v4879_v7 = vadd.f32 %v4878_v47, %v4860_v11 }
 0x71d   : > { %v4948_v62 = vadd.f32 %v4947_v57, %v4929_v60  ;;  %v4966_v60 = vpop.f32.mrf.mxu0  ;;  %v5032_v38 = vsel %vm8751_vm5, %v5020_v23, 0.0 }
 0x71f   : > { %v5015_v40 = vmax.f32 %v4948_v62, 0.0  ;;  %v4898_v62 = vadd.f32 %v4897_v48, %v4879_v7 }
 0x720   : > { %v4911_v2 = vpop.f32.mrf.mxu3 }
 0x721   : > { %v5027_v39 = vsel %vm8747_vm3, %v5015_v40, 0.0  ;;  %v4912_v5 = vadd.f32 %v4911_v2, %v8738_v63  ;;  %v5023_v21 = vmax.f32 %v4898_v62, 0.0 }
 0x722   : > { %v5038_v9 = vpack.c.bf16 %v5027_v39, %v5026_v17 }
 0x723   : > { %v4931_v0 = vadd.f32 %v4930_v29, %v4912_v5  ;;  %v4954_v56 = vpop.f32.mrf.mxu2  ;;  %v4967_v5 = vadd.f32 %v4966_v60, %v8721_v42 }
 0x724   : > { %5054 = vrot.lane.b32.xlu0 %v5038_v9, %s11231_s22 }
 0x725   : > { %v4950_v46 = vadd.f32 %v4949_v35, %v4931_v0  ;;  %v4968_v48 = vpop.f32.mrf.mxu0  ;;  %v5035_v0 = vsel %vm8751_vm5, %v5023_v21, 0.0 }
 0x727   : > { %v5018_v33 = vmax.f32 %v4950_v46, 0.0 }
 0x728   : > { %v4914_v55 = vpop.f32.mrf.mxu3 }
 0x729   : > { %v5030_v57 = vsel %vm8747_vm3, %v5018_v33, 0.0  ;;  %v4915_v15 = vadd.f32 %v4914_v55, %v8719_v34  ;;  %v4969_v55 = vadd.f32 %v4968_v48, %v8738_v63 }
 0x72a   : > { %v5040_v29 = vpack.c.bf16 %v5030_v57, %v5029_v61 }
 0x72b   : > { %v4934_v59 = vadd.f32 %v4933_v8, %v4915_v15  ;;  %v5004_v8 = vpop.f32.mrf.mxu1 }
 0x72c   : > { %5058 = vrot.lane.b32.xlu2 %v5040_v29, %s11231_s22 }
 0x72d   : > { %v4953_v30 = vadd.f32 %v4952_v36, %v4934_v59  ;;  %v4971_v57 = vpop.f32.mrf.mxu0 }
 0x72e   : > { %v4972_v59 = vadd.f32 %v4971_v57, %v8719_v34 }
 0x72f   : > { %v5021_v41 = vmax.f32 %v4953_v30, 0.0 }
 0x730   : > { %v4916_v49 = vpop.f32.mrf.mxu3 }
 0x731   : > { %v5033_v40 = vsel %vm8747_vm3, %v5021_v41, 0.0  ;;  %v4917_v35 = vadd.f32 %v4916_v49, %v8777_v18 }
 0x732   : > { %v5042_v2 = vpack.c.bf16 %v5033_v40, %v5032_v38 }
 0x733   : > { %v4936_v17 = vadd.f32 %v4935_v22, %v4917_v35  ;;  %v5006_v33 = vpop.f32.mrf.mxu1 }
 0x734   : > { %5062 = vrot.lane.b32.xlu1 %v5042_v2, %s11231_s22 }
 0x735   : > { %v4955_v39 = vadd.f32 %v4954_v56, %v4936_v17  ;;  %v4973_v41 = vpop.f32.mrf.mxu0 }
 0x736   : > { %v4974_v62 = vadd.f32 %v4973_v41, %v8777_v18 }
 0x737   : > { %v5024_v9 = vmax.f32 %v4955_v39, 0.0 }
 0x738   : > { %v4985_v20 = vpop.f32.mrf.mxu3 }
 0x739   : > { %v5036_v47 = vsel %vm8747_vm3, %v5024_v9, 0.0  ;;  %v4986_v27 = vadd.f32 %v4985_v20, %v4967_v5 }
 0x73a   : > { %v5044_v16 = vpack.c.bf16 %v5036_v47, %v5035_v0 }
 0x73b   : > { %v5005_v46 = vadd.f32 %v5004_v8, %v4986_v27  ;;  %v5009_v11 = vpop.f32.mrf.mxu1 }
 0x73c   : > { %5066 = vrot.lane.b32.xlu0 %v5044_v16, %s11231_s22 }
 0x73d   : > { %v5016_v36 = vmax.f32 %v5005_v46, 0.0 }
 0x73f   : > { %v5028_v42 = vsel %vm8772_vm1, %v5016_v36, 0.0 }
 0x740   : > { %v5039_v22 = vpack.c.bf16 %v5028_v42, %v5028_v42  ;;  %v4987_v61 = vpop.f32.mrf.mxu3 }
 0x741   : > { %v4988_v31 = vadd.f32 %v4987_v61, %v4969_v55 }
 0x742   : > { %5056 = vrot.lane.b32.xlu1 %v5039_v22, %s11231_s22 }
 0x743   : > { %v5007_v15 = vadd.f32 %v5006_v33, %v4988_v31  ;;  %v5011_v2 = vpop.f32.mrf.mxu1 }
 0x745   : > { %v5019_v29 = vmax.f32 %v5007_v15, 0.0 }
 0x747   : > { %v5031_v23 = vsel %vm8772_vm1, %v5019_v29, 0.0 }
 0x748   : > { %v5041_v7 = vpack.c.bf16 %v5031_v23, %v5031_v23  ;;  %v4990_v30 = vpop.f32.mrf.mxu3 }
 0x749   : > { %v4991_v63 = vadd.f32 %v4990_v30, %v4972_v59 }
 0x74a   : > { %5060 = vrot.lane.b32.xlu0 %v5041_v7, %s11231_s22 }
 0x74b   : > { %v5010_v60 = vadd.f32 %v5009_v11, %v4991_v63 }
 0x74d   : > { %v5022_v49 = vmax.f32 %v5010_v60, 0.0 }
 0x74f   : > { %v5034_v38 = vsel %vm8772_vm1, %v5022_v49, 0.0 }
 0x750   : > { %v5043_v40 = vpack.c.bf16 %v5034_v38, %v5034_v38  ;;  %v4992_v35 = vpop.f32.mrf.mxu3 }
 0x751   : > { %v4993_v34 = vadd.f32 %v4992_v35, %v4974_v62 }
 0x752   : > { %5064 = vrot.lane.b32.xlu2 %v5043_v40, %s11231_s22 }
 0x753   : > { %v5012_v56 = vadd.f32 %v5011_v2, %v4993_v34 }
 0x755   : > { %v5025_v8 = vmax.f32 %v5012_v56, 0.0 }
 0x757   : > { %v5037_v17 = vsel %vm8772_vm1, %v5025_v8, 0.0 }
 0x758   : > { %v5045_v21 = vpack.c.bf16 %v5037_v17, %v5037_v17 }
 0x75a   : > { %5068 = vrot.lane.b32.xlu1 %v5045_v21, %s11231_s22  ;;  %s8084_s22 = smov 112  }
 0x786   : > { %v5059_v39 = vpop.permute.xlu2 %5058 }
 0x787   : > { %v5071_v5 = vrot.slane %v5059_v39, 4 }
 0x789   : > { %v5076_v18 = vsel %vm11232_vm2, %v5071_v5, %v5059_v39  ;;  %vm11239_vm2 = vmmov %vm11236_vm13 }
 0x78a   : > { %5092 = vst.msk [vmem:[#allocation2 + $0xc] sm:$0xff] %vm8808_vm12, %v5076_v18 }
 0x791   : > { %v9893_v9 = vld [vmem:[#allocation2 + $0xc] sm:$0xff] }
 0x792   : > { %5108 = vst [vmem:[#allocation3 + $0xc] sm:$0xff] %v9893_v9 }
 0x796   : > { %v5055_v48 = vpop.permute.xlu0 %5054 }
 0x797   : > { %v5070_v20 = vrot.slane %v5055_v48, 4 }
 0x799   : > { %v5074_v0 = vsel %vm11233_vm8, %v5070_v20, %v5055_v48  ;;  %vm11241_vm8 = vmmov %vm11239_vm2 }
 0x79a   : > { %5090 = vst.msk [vmem:[#allocation2] sm:$0xff] %vm8808_vm12, %v5074_v0 }
 0x7a1   : > { %v9899_v47 = vld [vmem:[#allocation2] sm:$0xff] }
 0x7a2   : > { %5258 = vrot.lane.b32.xlu1 %v9899_v47, %s8071_s12  ;;  %5194 = vrot.lane.b32.xlu2 %v9899_v47, %s8073_s10  ;;  %5106 = vst [vmem:[#allocation3] sm:$0xff] %v9899_v47 }
 0x7a3   : > { %5130 = vrot.lane.b32.xlu0 %v9899_v47, %s8075_s28 }
 0x7a6   : > { %v5063_v27 = vpop.permute.xlu1 %5062 }
 0x7a7   : > { %v5072_v16 = vrot.slane %v5063_v27, 4 }
 0x7a9   : > { %v5078_v46 = vsel %vm11234_vm10, %v5072_v16, %v5063_v27  ;;  %vm11242_vm10 = vmmov %vm11237_vm0 }
 0x7aa   : > { %5094 = vst.msk [vmem:[#allocation2 + $0x18] sm:$0xff] %vm8808_vm12, %v5078_v46  ;;  %5514 = vrot.lane.b32.xlu1 %v9899_v47, %s8072_s13  ;;  %5450 = vrot.lane.b32.xlu2 %v9899_v47, %s8074_s29 }
 0x7ab   : > { %5386 = vrot.lane.b32.xlu0 %v9899_v47, %s8076_s27 }
 0x7ac   : > { %v5065_v33 = vpop.permute.xlu2 %5064 }
 0x7ad   : > { %v5079_v36 = vsel %vm11235_vm15, %v5072_v16, %v5065_v33  ;;  %vm11243_vm15 = vmmov %vm11239_vm2 }
 0x7ae   : > { %5095 = vst.msk [vmem:[#allocation2 + $0x20] sm:$0xf] %vm11236_vm13, %v5079_v36  ;;  %v5067_v55 = vpop.permute.xlu0 %5066  ;;  %vm11244_vm13 = vcmask 1039360  }
 0x7af   : > { %v5073_v42 = vrot.slane %v5067_v55, 4 }
 0x7b1   : > { %v5080_v22 = vsel %vm11237_vm0, %v5073_v42, %v5067_v55  ;;  %v9920_v61 = vld [vmem:[#allocation2 + $0x18] sm:$0xff] }
 0x7b2   : > { %5096 = vst.msk [vmem:[#allocation2 + $0x24] sm:$0xff] %vm8808_vm12, %v5080_v22  ;;  %5134 = vrot.lane.b32.xlu1 %v9893_v9, %s8075_s28  ;;  %5262 = vrot.lane.b32.xlu2 %v9893_v9, %s8071_s12  ;;  %vm11240_vm12 = vmmov %vm11237_vm0  ;;  %v3204_v22 = vld [vmem:[%s11000_s8] sm:$0xff] }
 0x7b3   : > { %5198 = vrot.lane.b32.xlu0 %v9893_v9, %s8073_s10  ;;  %5110 = vst [vmem:[#allocation3 + $0x18] sm:$0xff] %v9920_v61 }
 0x7b4   : > { %v5057_v31 = vpop.permute.xlu1 %5056 }
 0x7b5   : > { %v5075_v57 = vsel %vm11238_vm4, %v5070_v20, %v5057_v31  ;;  %v5103_v15 = vld [vmem:[#allocation2 + $0x20] sm:$0xf] }
 0x7b6   : > { %5091 = vst.msk [vmem:[#allocation2 + $0x8] sm:$0xf] %vm11239_vm2, %v5075_v57  ;;  %v5247_v8 = vld [vmem:[#allocation2 + $0x20] sm:$0xf]  ;;  %v3205_v57 = vld [vmem:[%s11000_s8 + $0x8] sm:$0xff] }
 0x7b7   : > { %5111 = vst.msk [vmem:[#allocation3 + $0x20] sm:$0xf] %vm811_vm14, %v5103_v15  ;;  %v5183_v17 = vld [vmem:[#allocation2 + $0x20] sm:$0xf]  ;;  %v3243_v15 = vadd.f32 %v9838_v25, %v3204_v22 }
 0x7b8   : > { %v5119_v21 = vld [vmem:[#allocation2 + $0x20] sm:$0xf] }
 0x7b9   : > { %v9933_v29 = vld [vmem:[#allocation2 + $0x24] sm:$0xff]  ;;  %v5439_v18 = vld [vmem:[#allocation2 + $0x20] sm:$0xf] }
 0x7ba   : > { %5138 = vrot.lane.b32.xlu1 %v9920_v61, %s8075_s28  ;;  %5518 = vrot.lane.b32.xlu2 %v9893_v9, %s8072_s13  ;;  %5112 = vst [vmem:[#allocation3 + $0x24] sm:$0xff] %v9933_v29  ;;  %v5375_v48 = vld [vmem:[#allocation2 + $0x20] sm:$0xf] }
 0x7bb   : > { %5454 = vrot.lane.b32.xlu0 %v9893_v9, %s8074_s29 }
 0x7bc   : > { %v5061_v1 = vpop.permute.xlu0 %5060 }
 0x7bd   : > { %v5077_v11 = vsel %vm11240_vm12, %v5071_v5, %v5061_v1  ;;  %v5099_v59 = vld [vmem:[#allocation2 + $0x8] sm:$0xf]  ;;  %v5503_v5 = vld [vmem:[#allocation2 + $0x20] sm:$0xf]  ;;  %v3246_v1 = vadd.f32 %v9840_v32, %v3205_v57  ;;  %v3207_v32 = vld [vmem:[%s11000_s8 + $0x18] sm:$0xff] }
 0x7be   : > { %5093 = vst.msk [vmem:[#allocation2 + $0x14] sm:$0xf] %vm11241_vm8, %v5077_v11  ;;  %v5179_v60 = vld [vmem:[#allocation2 + $0x8] sm:$0xf]  ;;  %v5567_v11 = vld [vmem:[#allocation2 + $0x20] sm:$0xf] }
 0x7bf   : > { %5107 = vst.msk [vmem:[#allocation3 + $0x8] sm:$0xf] %vm811_vm14, %v5099_v59  ;;  %v5435_v41 = vld [vmem:[#allocation2 + $0x8] sm:$0xf]  ;;  %v7235_v59 = vmul.f32 -1.442695, %v3243_v15 }
 0x7c0   : > { %v5115_v49 = vld [vmem:[#allocation2 + $0x8] sm:$0xf]  ;;  %v7236_v25 = vmul.f32 -1.442695, %v3246_v1 }
 0x7c1   : > { %v5243_v62 = vld [vmem:[#allocation2 + $0x8] sm:$0xf]  ;;  %7997 = vpow2.f32 %v7235_v59 }
 0x7c2   : > { %5394 = vrot.lane.b32.xlu1 %v9920_v61, %s8076_s27  ;;  %5266 = vrot.lane.b32.xlu2 %v9920_v61, %s8071_s12  ;;  %v5499_v35 = vld [vmem:[#allocation2 + $0x8] sm:$0xf]  ;;  %7999 = vpow2.f32 %v7236_v25 }
 0x7c3   : > { %5202 = vrot.lane.b32.xlu0 %v9920_v61, %s8073_s10  ;;  %v5371_v33 = vld [vmem:[#allocation2 + $0x8] sm:$0xf] }
 0x7c5   : > { %v5101_v23 = vld [vmem:[#allocation2 + $0x14] sm:$0xf] }
 0x7c6   : > { %5109 = vst.msk [vmem:[#allocation3 + $0x14] sm:$0xf] %vm811_vm14, %v5101_v23  ;;  %v5245_v38 = vld [vmem:[#allocation2 + $0x14] sm:$0xf] }
 0x7c7   : > { %v5181_v40 = vld [vmem:[#allocation2 + $0x14] sm:$0xf] }
 0x7c8   : > { %v5501_v2 = vld [vmem:[#allocation2 + $0x14] sm:$0xf] }
 0x7c9   : > { %v5437_v34 = vld [vmem:[#allocation2 + $0x14] sm:$0xf] }
 0x7ca   : > { %5522 = vrot.lane.b32.xlu2 %v9920_v61, %s8072_s13  ;;  %5206 = vrot.lane.b32.xlu1 %v9933_v29, %s8073_s10  ;;  %v5117_v56 = vld [vmem:[#allocation2 + $0x14] sm:$0xf] }
 0x7cb   : > { %5458 = vrot.lane.b32.xlu0 %v9920_v61, %s8074_s29  ;;  %v5373_v36 = vld [vmem:[#allocation2 + $0x14] sm:$0xf] }
 0x7cc   : > { %v5069_v7 = vpop.permute.xlu1 %5068  ;;  %v3206_v23 = vld [vmem:[%s11000_s8 + $0x10] sm:$0xff] }
 0x7cd   : > { %v5081_v30 = vsel %vm11242_vm10, %v5073_v42, %v5069_v7  ;;  %v5565_v25 = vld [vmem:[#allocation2 + $0x14] sm:$0xf] }
 0x7ce   : > { %5097 = vst.msk [vmem:[#allocation2 + $0x2c] sm:$0xf] %vm11243_vm15, %v5081_v30  ;;  %vm11247_vm15 = vcmask 1031168   ;;  %v5309_v37 = vld [vmem:[#allocation2 + $0x14] sm:$0xf] }
 0x7d2   : > { %5462 = vrot.lane.b32.xlu1 %v9933_v29, %s8074_s29  ;;  %5142 = vrot.lane.b32.xlu2 %v9933_v29, %s8075_s28 }
 0x7d3   : > { %5270 = vrot.lane.b32.xlu0 %v9933_v29, %s8071_s12 }
 0x7d5   : > { %v5105_v63 = vld [vmem:[#allocation2 + $0x2c] sm:$0xf] }
 0x7d6   : > { %5113 = vst.msk [vmem:[#allocation3 + $0x2c] sm:$0xf] %vm811_vm14, %v5105_v63  ;;  %v5249_v0 = vld [vmem:[#allocation2 + $0x2c] sm:$0xf] }
 0x7d7   : > { %v5185_v27 = vld [vmem:[#allocation2 + $0x2c] sm:$0xf] }
 0x7d8   : > { %v5121_v46 = vld [vmem:[#allocation2 + $0x2c] sm:$0xf] }
 0x7d9   : > { %v5313_v59 = vld [vmem:[#allocation2 + $0x2c] sm:$0xf] }
 0x7da   : > { %5196 = vrot.lane.b32.xlu1 %v5179_v60, %s8073_s10  ;;  %5398 = vrot.lane.b32.xlu2 %v9933_v29, %s8076_s27  ;;  %v3249_v60 = vadd.f32 %v9842_v43, %v3206_v23 }
 0x7db   : > { %5526 = vrot.lane.b32.xlu0 %v9933_v29, %s8072_s13 }
 0x7e2   : > { %5452 = vrot.lane.b32.xlu1 %v5435_v41, %s8074_s29  ;;  %5132 = vrot.lane.b32.xlu2 %v5115_v49, %s8075_s28  ;;  %v3252_v41 = vadd.f32 %v9844_v4, %v3207_v32  ;;  %v5311_v49 = vld [vmem:[#allocation2 + $0x20] sm:$0xf] }
 0x7e3   : > { %5260 = vrot.lane.b32.xlu0 %v5243_v62, %s8071_s12  ;;  %v7237_v62 = vmul.f32 -1.442695, %v3249_v60 }
 0x7e5   : > { %8001 = vpow2.f32 %v7237_v62 }
 0x7ea   : > { %5264 = vrot.lane.b32.xlu1 %v5245_v38, %s8071_s12  ;;  %5200 = vrot.lane.b32.xlu2 %v5181_v40, %s8073_s10  ;;  %v7238_v38 = vmul.f32 -1.442695, %v3252_v41 }
 0x7eb   : > { %5516 = vrot.lane.b32.xlu0 %v5499_v35, %s8072_s13 }
 0x7ec   : > { %8003 = vpow2.f32 %v7238_v38 }
 0x7f2   : > { %5520 = vrot.lane.b32.xlu1 %v5501_v2, %s8072_s13  ;;  %5456 = vrot.lane.b32.xlu2 %v5437_v34, %s8074_s29  ;;  %v7998_v2 = vpop.eup %7997 }
 0x7f3   : > { %5136 = vrot.lane.b32.xlu0 %v5117_v56, %s8075_s28  ;;  %v8000_v4 = vpop.eup %7999  ;;  %v10045_v34 = vadd.f32 1.0, %v7998_v2 }
 0x7f4   : > { %v10047_v56 = vadd.f32 1.0, %v8000_v4 }
 0x7f5   : > { %8005 = vrcp.f32 %v10045_v34  ;;  %vm3275_vm2 = vweird.f32 %v10045_v34 }
 0x7f6   : > { %8007 = vrcp.f32 %v10047_v56  ;;  %vm3290_vm8 = vweird.f32 %v10047_v56 }
 0x7fa   : > { %5268 = vrot.lane.b32.xlu1 %v5247_v8, %s8071_s12  ;;  %5204 = vrot.lane.b32.xlu2 %v5183_v17, %s8073_s10 }
 0x7fb   : > { %5140 = vrot.lane.b32.xlu0 %v5119_v21, %s8075_s28  ;;  %v8002_v21 = vpop.eup %8001 }
 0x7fc   : > { %v9985_v39 = vpop.permute.xlu2 %5194 }
 0x802   : > { %5524 = vrot.lane.b32.xlu1 %v5503_v5, %s8072_s13  ;;  %5460 = vrot.lane.b32.xlu2 %v5439_v18, %s8074_s29  ;;  %v8004_v18 = vpop.eup %8003 }
 0x803   : > { %5396 = vrot.lane.b32.xlu0 %v5375_v48, %s8076_s27  ;;  %v10061_v48 = vadd.f32 1.0, %v8002_v21 }
 0x804   : > { %v9990_v20 = vpop.permute.xlu2 %5450 }
 0x805   : > { %8009 = vrcp.f32 %v10061_v48 }
 0x80a   : > { %5390 = vrot.lane.b32.xlu1 %v9893_v9, %s8076_s27  ;;  %5272 = vrot.lane.b32.xlu2 %v5249_v0, %s8071_s12  ;;  %v10063_v0 = vadd.f32 1.0, %v8004_v18 }
 0x80b   : > { %5208 = vrot.lane.b32.xlu0 %v5185_v27, %s8073_s10  ;;  %v5377_v27 = vld [vmem:[#allocation2 + $0x2c] sm:$0xf] }
 0x80c   : > { %v9996_v16 = vpop.permute.xlu2 %5262  ;;  %8011 = vrcp.f32 %v10063_v0 }
 0x812   : > { %5144 = vrot.lane.b32.xlu1 %v5121_v46, %s8075_s28  ;;  %5388 = vrot.lane.b32.xlu2 %v5371_v33, %s8076_s27  ;;  %v5563_v46 = vld [vmem:[#allocation2 + $0x8] sm:$0xf]  ;;  %v10067_v33 = vpop.eup %8005  ;;  %s11074_s28 = smov 102  }
 0x813   : > { %5392 = vrot.lane.b32.xlu0 %v5373_v36, %s8076_s27  ;;  %v10071_v36 = vpop.eup %8007  ;;  %v3271_v1 = vmul.f32 %v10067_v33, %v10045_v34  ;;  %vm3276_vm0 = vweird.f32 %v10067_v33 }
 0x814   : > { %v10001_v55 = vpop.permute.xlu1 %5258  ;;  %v10003_v42 = vpop.permute.xlu2 %5518  ;;  %vm3291_vm4 = vweird.f32 %v10071_v36  ;;  %vm3277_vm12 = vmor %vm3275_vm2, %vm3276_vm0 }
 0x815   : > { %v10008_v31 = vpop.permute.xlu0 %5130  ;;  %v10085_v23 = vpop.eup %8009  ;;  %v3272_v32 = vsub.f32 1.0, %v3271_v1  ;;  %v5569_v1 = vld [vmem:[#allocation2 + $0x2c] sm:$0xf]  ;;  %vm10131_vm10 = vmor %vm3290_vm8, %vm3291_vm4  ;;  %vm3320_vm8 = vweird.f32 %v10063_v0 }
 0x816   : > { %v10090_v60 = vpop.eup %8011  ;;  %v5146_v38 = vrot.slane %v10008_v31, 4  ;;  %vm3306_vm4 = vweird.f32 %v10085_v23 }
 0x817   : > { %vm3321_vm2 = vweird.f32 %v10090_v60 }
 0x81a   : > { %5588 = vrot.lane.b32.xlu1 %v5567_v11, %s8070_s14  ;;  %5586 = vrot.lane.b32.xlu2 %v9920_v61, %s8070_s14  ;;  %v3286_v11 = vmul.f32 %v10071_v36, %v10047_v56 }
 0x81b   : > { %5590 = vrot.lane.b32.xlu0 %v9933_v29, %s8070_s14 }
 0x81c   : > { %v10023_v7 = vpop.permute.xlu1 %5514  ;;  %v10025_v30 = vpop.permute.xlu2 %5266  ;;  %v3287_v41 = vsub.f32 1.0, %v3286_v11 }
 0x81d   : > { %v10030_v63 = vpop.permute.xlu0 %5386 }
 0x81e   : > { %v3288_v18 = vmul.f32 %v10071_v36, %v3287_v41 }
 0x822   : > { %5330 = vrot.lane.b32.xlu1 %v9920_v61, %s11199_s18  ;;  %5334 = vrot.lane.b32.xlu2 %v9933_v29, %s11199_s18  ;;  %v5505_v61 = vld [vmem:[#allocation2 + $0x2c] sm:$0xf] }
 0x823   : > { %5332 = vrot.lane.b32.xlu0 %v5311_v49, %s11199_s18  ;;  %v5441_v29 = vld [vmem:[#allocation2 + $0x2c] sm:$0xf] }
 0x824   : > { %v10039_v40 = vpop.permute.xlu1 %5134  ;;  %v10041_v35 = vpop.permute.xlu2 %5522 }
 0x825   : > { %v10043_v43 = vpop.permute.xlu0 %5198 }
 0x82a   : > { %5582 = vrot.lane.b32.xlu1 %v9893_v9, %s8070_s14  ;;  %5528 = vrot.lane.b32.xlu2 %v5505_v61, %s8072_s13  ;;  %v3273_v61 = vmul.f32 %v10067_v33, %v3272_v32  ;;  %v3281_v32 = vand.u32 2147483648, %v10045_v34  ;;  %s8079_s13 = smov 122  }
 0x82b   : > { %5464 = vrot.lane.b32.xlu0 %v5441_v29, %s8074_s29  ;;  %v3301_v29 = vmul.f32 %v10085_v23, %v10061_v48  ;;  %s8078_s29 = smov 124  }
 0x82c   : > { %v10053_v8 = vpop.permute.xlu1 %5138  ;;  %v10055_v17 = vpop.permute.xlu2 %5142  ;;  %v3274_v11 = vadd.f32 %v10067_v33, %v3273_v61  ;;  %v5212_v61 = vrot.slane %v10043_v43, 4 }
 0x82d   : > { %v10058_v5 = vpop.permute.xlu0 %5454 }
 0x832   : > { %5400 = vrot.lane.b32.xlu1 %v5377_v27, %s8076_s27  ;;  %5580 = vrot.lane.b32.xlu2 %v5563_v46, %s8070_s14  ;;  %v5307_v46 = vld [vmem:[#allocation2 + $0x8] sm:$0xf] }
 0x833   : > { %5578 = vrot.lane.b32.xlu0 %v9899_v47, %s8070_s14 }
 0x834   : > { %v10074_v22 = vpop.permute.xlu1 %5394  ;;  %v10076_v57 = vpop.permute.xlu2 %5398 }
 0x835   : > { %v10079_v15 = vpop.permute.xlu0 %5202 }
 0x83a   : > { %5336 = vrot.lane.b32.xlu1 %v5313_v59, %s11199_s18  ;;  %5322 = vrot.lane.b32.xlu2 %v9899_v47, %s11199_s18  ;;  %v3316_v47 = vmul.f32 %v10090_v60, %v10063_v0 }
 0x83b   : > { %5584 = vrot.lane.b32.xlu0 %v5565_v25, %s8070_s14  ;;  %v3302_v25 = vsub.f32 1.0, %v3301_v29  ;;  %v3294_v29 = vand.u32 2147483647, %v10047_v56 }
 0x83c   : > { %v10093_v49 = vpop.permute.xlu1 %5206  ;;  %v5133_v62 = vpop.permute.xlu2 %5132  ;;  %v3317_v59 = vsub.f32 1.0, %v3316_v47 }
 0x83d   : > { %v5147_v2 = vrot.slane %v5133_v62, 4  ;;  %5171 = vst.msk [vmem:[#allocation3 + $0x38] sm:$0xf] %vm811_vm14, %v5133_v62  ;;  %v10097_v4 = vpop.permute.xlu0 %5458  ;;  %vm3295_vm0 = vcmp.eq.f32.partialorder %v3294_v29, 8.507059e+37  ;;  %v5468_v29 = vrot.slane %v10058_v5, 4 }
 0x83f   : > { %v5154_v21 = vsel %vm859_vm6, %v5146_v38, %v5147_v2  ;;  %v3279_v38 = vand.u32 2147483647, %v10045_v34  ;;  %v3296_v2 = vand.u32 2147483648, %v10047_v56 }
 0x840   : > { %v5155_v27 = vsel %vm11244_vm13, %v10008_v31, %v5154_v21  ;;  %v3289_v31 = vadd.f32 %v10071_v36, %v3288_v18  ;;  %v3278_v21 = vsel %vm3277_vm12, %v10067_v33, %v3274_v11  ;;  %v3318_v18 = vmul.f32 %v10090_v60, %v3317_v59 }
 0x841   : > { %5170 = vst [vmem:[#allocation3 + $0x30] sm:$0xff] %v5155_v27  ;;  %v3303_v27 = vmul.f32 %v10085_v23, %v3302_v25  ;;  %vm3280_vm13 = vcmp.eq.f32.partialorder %v3279_v38, 8.507059e+37  ;;  %v3297_v33 = vor.u32 1.1754944e-38, %v3296_v2  ;;  %vm3305_vm12 = vweird.f32 %v10061_v48 }
 0x842   : > { %5324 = vrot.lane.b32.xlu1 %v5307_v46, %s11199_s18  ;;  %5592 = vrot.lane.b32.xlu2 %v5569_v1, %s8070_s14  ;;  %v3282_v1 = vor.u32 1.1754944e-38, %v3281_v32  ;;  %v3319_v25 = vadd.f32 %v10090_v60, %v3318_v18  ;;  %v3311_v32 = vand.u32 2147483648, %v10061_v48  ;;  %s8080_s14 = smov 120  }
 0x843   : > { %5326 = vrot.lane.b32.xlu0 %v9893_v9, %s11199_s18 }
 0x844   : > { %v10117_v41 = vpop.permute.xlu1 %5462  ;;  %v5201_v62 = vpop.permute.xlu2 %5200  ;;  %v3283_v11 = vsel %vm3280_vm13, %v3282_v1, %v3278_v21  ;;  %vm11250_vm13 = vcmask 1031168  }
 0x845   : > { %v5213_v47 = vrot.slane %v5201_v62, 4  ;;  %5237 = vst.msk [vmem:[#allocation3 + $0x74] sm:$0xf] %vm811_vm14, %v5201_v62  ;;  %v10124_v9 = vpop.permute.xlu0 %5270  ;;  %v3293_v62 = vsel %vm10131_vm10, %v10071_v36, %v3289_v31  ;;  %v3304_v36 = vadd.f32 %v10085_v23, %v3303_v27  ;;  %vm10155_vm10 = vmor %vm3305_vm12, %vm3306_vm4 }
 0x846   : > { %v3298_v59 = vsel %vm3295_vm0, %v3297_v33, %v3293_v62  ;;  %v3312_v62 = vor.u32 1.1754944e-38, %v3311_v32  ;;  %vm11251_vm0 = vcmask 752640  }
 0x847   : > { %v5220_v46 = vsel %vm859_vm6, %v5212_v61, %v5213_v47  ;;  %v3309_v61 = vand.u32 2147483647, %v10061_v48  ;;  %v5210_v47 = vrot.slane %v9985_v39, 4  ;;  %v3308_v48 = vsel %vm10155_vm10, %v10085_v23, %v3304_v36  ;;  %vm11252_vm12 = vmmov %vm11251_vm0 }
 0x848   : > { %v5221_v56 = vsel %vm11247_vm15, %v10043_v43, %v5220_v46  ;;  %v3326_v43 = vand.u32 2147483648, %v10063_v0  ;;  %vm3322_vm15 = vmor %vm3320_vm8, %vm3321_vm2  ;;  %v5214_v36 = vrot.slane %v10079_v15, 4 }
 0x849   : > { %5236 = vst [vmem:[#allocation3 + $0x6c] sm:$0xff] %v5221_v56  ;;  %vm3310_vm2 = vcmp.eq.f32.partialorder %v3309_v61, 8.507059e+37  ;;  %vm11253_vm8 = vmmov %vm11250_vm13 }
 0x84a   : > { %3332 = vperm.xlu1 %7996, %v3283_v11   ;;  %5328 = vrot.lane.b32.xlu2 %v5309_v37, %s11199_s18  ;;  %v3324_v37 = vand.u32 2147483647, %v10063_v0  ;;  %v3323_v0 = vsel %vm3322_vm15, %v10090_v60, %v3319_v25  ;;  %v3327_v1 = vor.u32 1.1754944e-38, %v3326_v43  ;;  %v3313_v11 = vsel %vm3310_vm2, %v3312_v62, %v3308_v48  ;;  %vm11254_vm10 = vmmov %vm11251_vm0  ;;  %s8081_s18 = smov 118  }
 0x84b   : > { %3337 = vperm.xlu0 %7995, %v3298_v59   ;;  %v5466_v25 = vrot.slane %v9990_v20, 4  ;;  %v5470_v48 = vrot.slane %v10097_v4, 4  ;;  %vm11255_vm15 = vcmask 744448  }
 0x84c   : > { %v5197_v31 = vpop.permute.xlu1 %5196  ;;  %v5457_v38 = vpop.permute.xlu2 %5456  ;;  %vm3325_vm4 = vcmp.eq.f32.partialorder %v3324_v37, 8.507059e+37 }
 0x84d   : > { %v5211_v21 = vrot.slane %v5197_v31, 4  ;;  %5235 = vst.msk [vmem:[#allocation3 + $0x68] sm:$0xf] %vm811_vm14, %v5197_v31  ;;  %v5469_v34 = vrot.slane %v5457_v38, 4  ;;  %v10163_v18 = vpop.permute.xlu0 %5526  ;;  %v3328_v60 = vsel %vm3325_vm4, %v3327_v1, %v3323_v0  ;;  %v5276_v0 = vrot.slane %v9996_v16, 4 }
 0x84e   : > { %5493 = vst.msk [vmem:[#allocation3 + $0x134] sm:$0xf] %vm811_vm14, %v5457_v38  ;;  %vm11258_vm4 = vcmask 883712  }
 0x84f   : > { %v5218_v27 = vsel %vm859_vm6, %v5210_v47, %v5211_v21  ;;  %v5476_v46 = vsel %vm859_vm6, %v5468_v29, %v5469_v34 }
 0x850   : > { %v5219_v56 = vsel %vm11250_vm13, %v9985_v39, %v5218_v27  ;;  %v5477_v33 = vsel %vm11251_vm0, %v10058_v5, %v5476_v46  ;;  %v5274_v5 = vrot.slane %v10001_v55, 4  ;;  %vm11256_vm13 = vmmov %vm11255_vm15  ;;  %vm11257_vm0 = vcmask 1039360  }
 0x851   : > { %5234 = vst [vmem:[#allocation3 + $0x60] sm:$0xff] %v5219_v56  ;;  %vm11259_vm2 = vmmov %vm11257_vm0 }
 0x852   : > { %5492 = vst [vmem:[#allocation3 + $0x12c] sm:$0xff] %v5477_v33  ;;  %3347 = vperm.xlu1 %7996, %v3328_v60   ;;  %3342 = vperm.xlu2 %7994, %v3313_v11  }
 0x854   : > { %v5453_v23 = vpop.permute.xlu1 %5452  ;;  %v5205_v59 = vpop.permute.xlu2 %5204 }
 0x855   : > { %v5467_v43 = vrot.slane %v5453_v23, 4  ;;  %5491 = vst.msk [vmem:[#allocation3 + $0x128] sm:$0xf] %vm811_vm14, %v5453_v23  ;;  %v5215_v39 = vrot.slane %v5205_v59, 4  ;;  %v5261_v32 = vpop.permute.xlu0 %5260 }
 0x856   : > { %5239 = vst.msk [vmem:[#allocation3 + $0x80] sm:$0xf] %vm811_vm14, %v5205_v59  ;;  %v5275_v31 = vrot.slane %v5261_v32, 4 }
 0x857   : > { %v5474_v38 = vsel %vm859_vm6, %v5466_v25, %v5467_v43  ;;  %v5222_v37 = vsel %vm859_vm6, %v5214_v36, %v5215_v39  ;;  %5299 = vst.msk [vmem:[#allocation3 + $0x98] sm:$0xf] %vm811_vm14, %v5261_v32  ;;  %v5532_v25 = vrot.slane %v10003_v42, 4  ;;  %v5280_v36 = vrot.slane %v10124_v9, 4 }
 0x858   : > { %v5475_v2 = vsel %vm11252_vm12, %v9990_v20, %v5474_v38  ;;  %v5223_v61 = vsel %vm11253_vm8, %v10079_v15, %v5222_v37  ;;  %v5282_v47 = vsel %vm859_vm6, %v5274_v5, %v5275_v31  ;;  %v5530_v15 = vrot.slane %v10023_v7, 4  ;;  %vm11261_vm12 = vmmov %vm11258_vm4 }
 0x859   : > { %5490 = vst [vmem:[#allocation3 + $0x120] sm:$0xff] %v5475_v2  ;;  %v5283_v29 = vsel %vm991_vm7, %v10001_v55, %v5282_v47 }
 0x85a   : > { %5238 = vst [vmem:[#allocation3 + $0x78] sm:$0xff] %v5223_v61 }
 0x85b   : > { %5298 = vst [vmem:[#allocation3 + $0x90] sm:$0xff] %v5283_v29  ;;  %v5278_v29 = vrot.slane %v10025_v30, 4 }
 0x85c   : > { %v5265_v21 = vpop.permute.xlu1 %5264  ;;  %v5461_v34 = vpop.permute.xlu2 %5460 }
 0x85d   : > { %v5277_v27 = vrot.slane %v5265_v21, 4  ;;  %5301 = vst.msk [vmem:[#allocation3 + $0xa4] sm:$0xf] %vm811_vm14, %v5265_v21  ;;  %v5471_v20 = vrot.slane %v5461_v34, 4  ;;  %v5517_v46 = vpop.permute.xlu0 %5516  ;;  %v5402_v21 = vrot.slane %v10030_v63, 4 }
 0x85e   : > { %5495 = vst.msk [vmem:[#allocation3 + $0x140] sm:$0xf] %vm811_vm14, %v5461_v34  ;;  %v5531_v1 = vrot.slane %v5517_v46, 4 }
 0x85f   : > { %v5284_v55 = vsel %vm859_vm6, %v5276_v0, %v5277_v27  ;;  %v5478_v62 = vsel %vm859_vm6, %v5470_v48, %v5471_v20  ;;  %5555 = vst.msk [vmem:[#allocation3 + $0x158] sm:$0xf] %vm811_vm14, %v5517_v46 }
 0x860   : > { %v5285_v56 = vsel %vm991_vm7, %v9996_v16, %v5284_v55  ;;  %v5479_v33 = vsel %vm11254_vm10, %v10097_v4, %v5478_v62  ;;  %v5538_v60 = vsel %vm859_vm6, %v5530_v15, %v5531_v1  ;;  %v5148_v4 = vrot.slane %v10039_v40, 4  ;;  %vm11262_vm10 = vmmov %vm11257_vm0 }
 0x861   : > { %5300 = vst [vmem:[#allocation3 + $0x9c] sm:$0xff] %v5285_v56  ;;  %v5539_v11 = vsel %vm11255_vm15, %v10023_v7, %v5538_v60  ;;  %v5534_v56 = vrot.slane %v10041_v35, 4  ;;  %v5406_v60 = vrot.slane %v10074_v22, 4 }
 0x862   : > { %5494 = vst [vmem:[#allocation3 + $0x138] sm:$0xff] %v5479_v33 }
 0x863   : > { %5554 = vst [vmem:[#allocation3 + $0x150] sm:$0xff] %v5539_v11 }
 0x864   : > { %v5521_v23 = vpop.permute.xlu1 %5520  ;;  %v5273_v59 = vpop.permute.xlu2 %5272 }
 0x865   : > { %v5533_v43 = vrot.slane %v5521_v23, 4  ;;  %5557 = vst.msk [vmem:[#allocation3 + $0x164] sm:$0xf] %vm811_vm14, %v5521_v23  ;;  %v5281_v16 = vrot.slane %v5273_v59, 4  ;;  %v5137_v39 = vpop.permute.xlu0 %5136 }
 0x866   : > { %5305 = vst.msk [vmem:[#allocation3 + $0xbc] sm:$0xf] %vm811_vm14, %v5273_v59  ;;  %v5149_v32 = vrot.slane %v5137_v39, 4 }
 0x867   : > { %v5540_v7 = vsel %vm859_vm6, %v5532_v25, %v5533_v43  ;;  %v5288_v5 = vsel %vm859_vm6, %v5280_v36, %v5281_v16  ;;  %5173 = vst.msk [vmem:[#allocation3 + $0x44] sm:$0xf] %vm811_vm14, %v5137_v39 }
 0x868   : > { %v5541_v31 = vsel %vm11256_vm13, %v10003_v42, %v5540_v7  ;;  %v5289_v38 = vsel %vm991_vm7, %v10124_v9, %v5288_v5  ;;  %v5156_v37 = vsel %vm859_vm6, %v5148_v4, %v5149_v32  ;;  %v5150_v9 = vrot.slane %v10053_v8, 4  ;;  %v7906_v32 = vld [vmem:[#allocation3 + $0x98] sm:$0xf0]  ;;  %v7545_v7 = vld [vmem:[#allocation3 + $0x9c] sm:$0xf0] }
 0x869   : > { %5556 = vst [vmem:[#allocation3 + $0x15c] sm:$0xff] %v5541_v31  ;;  %v5157_v2 = vsel %vm11257_vm0, %v10039_v40, %v5156_v37  ;;  %vm11265_vm0 = vcmask 736256  }
 0x86a   : > { %5304 = vst [vmem:[#allocation3 + $0xb4] sm:$0xff] %v5289_v38  ;;  %v7905_v38 = vld [vmem:[#allocation3 + $0x94] sm:$0xf] }
 0x86b   : > { %5172 = vst [vmem:[#allocation3 + $0x3c] sm:$0xff] %v5157_v2 }
 0x86c   : > { %v5269_v61 = vpop.permute.xlu1 %5268  ;;  %v5389_v47 = vpop.permute.xlu2 %5388 }
 0x86d   : > { %v5279_v34 = vrot.slane %v5269_v61, 4  ;;  %5303 = vst.msk [vmem:[#allocation3 + $0xb0] sm:$0xf] %vm811_vm14, %v5269_v61  ;;  %v5403_v42 = vrot.slane %v5389_v47, 4  ;;  %v5141_v0 = vpop.permute.xlu0 %5140  ;;  %v7548_v61 = vor.u32 %v7905_v38, %v7545_v7 }
 0x86e   : > { %5427 = vst.msk [vmem:[#allocation3 + $0xf8] sm:$0xf] %vm811_vm14, %v5389_v47  ;;  %v5151_v48 = vrot.slane %v5141_v0, 4  ;;  %v5216_v47 = vrot.slane %v10093_v49, 4 }
 0x86f   : > { %v5286_v40 = vsel %vm859_vm6, %v5278_v29, %v5279_v34  ;;  %v5410_v27 = vsel %vm859_vm6, %v5402_v21, %v5403_v42  ;;  %5175 = vst.msk [vmem:[#allocation3 + $0x50] sm:$0xf] %vm811_vm14, %v5141_v0  ;;  %v5152_v0 = vrot.slane %v10055_v17, 4 }
 0x870   : > { %v5287_v20 = vsel %vm991_vm7, %v10025_v30, %v5286_v40  ;;  %v5411_v46 = vsel %vm11258_vm4, %v10030_v63, %v5410_v27  ;;  %v5158_v15 = vsel %vm859_vm6, %v5150_v9, %v5151_v48  ;;  %vm11260_vm7 = vmmov %vm11256_vm13  ;;  %v5536_v9 = vrot.slane %v10163_v18, 4 }
 0x871   : > { %5302 = vst [vmem:[#allocation3 + $0xa8] sm:$0xff] %v5287_v20  ;;  %v5159_v1 = vsel %vm11259_vm2, %v10053_v8, %v5158_v15  ;;  %v7909_v23 = vld [vmem:[#allocation3 + $0xb0] sm:$0xf0]  ;;  %v7557_v43 = vld [vmem:[#allocation3 + $0xb4] sm:$0xf0]  ;;  %vm11263_vm15 = vmmov %vm11260_vm7 }
 0x872   : > { %5426 = vst [vmem:[#allocation3 + $0xf0] sm:$0xff] %v5411_v46  ;;  %vm11264_vm13 = vmmov %vm11258_vm4  ;;  %vm11266_vm4 = vcmask 891904  }
 0x873   : > { %5174 = vst [vmem:[#allocation3 + $0x48] sm:$0xff] %v5159_v1  ;;  %vm11267_vm2 = vmmov %vm11265_vm0 }
 0x874   : > { %v5525_v55 = vpop.permute.xlu1 %5524  ;;  %v10238_v62 = vpop.permute.xlu2 %5586 }
 0x875   : > { %v5535_v33 = vrot.slane %v5525_v55, 4  ;;  %5559 = vst.msk [vmem:[#allocation3 + $0x170] sm:$0xf] %vm811_vm14, %v5525_v55  ;;  %v5397_v30 = vpop.permute.xlu0 %5396 }
 0x876   : > { %v5407_v63 = vrot.slane %v5397_v30, 4  ;;  %5431 = vst.msk [vmem:[#allocation3 + $0x110] sm:$0xf] %vm811_vm14, %v5397_v30  ;;  %v7902_v30 = vld [vmem:[#allocation3 + $0x7c] sm:$0xf] }
 0x877   : > { %v5542_v11 = vsel %vm859_vm6, %v5534_v56, %v5535_v33  ;;  %v7531_v33 = vld [vmem:[#allocation3 + $0x78] sm:$0xf] }
 0x878   : > { %v5543_v8 = vsel %vm11260_vm7, %v10041_v35, %v5542_v11  ;;  %v5414_v59 = vsel %vm859_vm6, %v5406_v60, %v5407_v63  ;;  %v7555_v25 = vld [vmem:[#allocation3 + $0xa8] sm:$0xf]  ;;  %v7908_v36 = vld [vmem:[#allocation3 + $0xac] sm:$0xf]  ;;  %v7543_v35 = vld [vmem:[#allocation3 + $0x90] sm:$0xf] }
 0x879   : > { %5558 = vst [vmem:[#allocation3 + $0x168] sm:$0xff] %v5543_v8  ;;  %v5415_v16 = vsel %vm11261_vm12, %v10074_v22, %v5414_v59  ;;  %v7556_v39 = vor.u32 %v7909_v23, %v7555_v25  ;;  %v7560_v4 = vor.u32 %v7908_v36, %v7557_v43  ;;  %v7544_v2 = vor.u32 %v7906_v32, %v7543_v35  ;;  %v7519_v59 = vld [vmem:[#allocation3 + $0x60] sm:$0xf]  ;;  %v7899_v25 = vld [vmem:[#allocation3 + $0x64] sm:$0xf] }
 0x87a   : > { %5430 = vst [vmem:[#allocation3 + $0x108] sm:$0xff] %v5415_v16  ;;  %v5598_v43 = vrot.slane %v10238_v62, 4  ;;  %v7507_v35 = vld [vmem:[#allocation3 + $0x48] sm:$0xf]  ;;  %vm11268_vm7 = vcmask 752640  }
 0x87b   : > { %5986 = vmatpush.bf16.msrb.mxu2 %v7556_v39  ;;  %6043 = vmatpush.bf16.msra.mxu1 %v7560_v4  ;;  %v7521_v4 = vld [vmem:[#allocation3 + $0x6c] sm:$0xf0] }
 0x87c   : > { %v5391_v5 = vpop.permute.xlu1 %5390  ;;  %v10250_v31 = vpop.permute.xlu2 %5334  ;;  %v7524_v7 = vor.u32 %v7899_v25, %v7521_v4  ;;  %v7471_v25 = vld [vmem:[#allocation3] sm:$0xf]  ;;  %v7473_v4 = vld [vmem:[#allocation3 + $0xc] sm:$0xf0] }
 0x87d   : > { %v5209_v37 = vpop.permute.xlu0 %5208  ;;  %v5404_v20 = vrot.slane %v5391_v5, 4 }
 0x87e   : > { %v5217_v29 = vrot.slane %v5209_v37, 4  ;;  %5241 = vst.msk [vmem:[#allocation3 + $0x8c] sm:$0xf] %vm811_vm14, %v5209_v37 }
 0x87f   : > { %5987 = vmatpush.bf16.msrb.mxu2 %v7544_v2  ;;  %6044 = vmatpush.bf16.msra.mxu1 %v7548_v61  ;;  %v7896_v2 = vld [vmem:[#allocation3 + $0x4c] sm:$0xf] }
 0x880   : > { %v5224_v22 = vsel %vm859_vm6, %v5216_v47, %v5217_v29  ;;  %v7651_v29 = vld [vmem:[#allocation3 + $0x168] sm:$0xf] }
 0x881   : > { %v5225_v21 = vsel %vm11253_vm8, %v10093_v49, %v5224_v22  ;;  %vm11270_vm8 = vmmov %vm11265_vm0 }
 0x882   : > { %5240 = vst [vmem:[#allocation3 + $0x84] sm:$0xff] %v5225_v21 }
 0x884   : > { %v5145_v34 = vpop.permute.xlu1 %5144  ;;  %v5529_v42 = vpop.permute.xlu2 %5528 }
 0x885   : > { %v5153_v48 = vrot.slane %v5145_v34, 4  ;;  %5177 = vst.msk [vmem:[#allocation3 + $0x5c] sm:$0xf] %vm811_vm14, %v5145_v34  ;;  %v5537_v40 = vrot.slane %v5529_v42, 4  ;;  %v5393_v27 = vpop.permute.xlu0 %5392 }
 0x886   : > { %5561 = vst.msk [vmem:[#allocation3 + $0x17c] sm:$0xf] %vm811_vm14, %v5529_v42  ;;  %v5405_v46 = vrot.slane %v5393_v27, 4  ;;  %v7894_v42 = vld [vmem:[#allocation3 + $0x38] sm:$0xf0] }
 0x887   : > { %v5160_v15 = vsel %vm859_vm6, %v5152_v0, %v5153_v48  ;;  %v5544_v49 = vsel %vm859_vm6, %v5536_v9, %v5537_v40  ;;  %5429 = vst.msk [vmem:[#allocation3 + $0x104] sm:$0xf] %vm811_vm14, %v5393_v27  ;;  %v7930_v0 = vld [vmem:[#allocation3 + $0x158] sm:$0xf0]  ;;  %v7497_v40 = vld [vmem:[#allocation3 + $0x3c] sm:$0xf0] }
 0x888   : > { %v5161_v1 = vsel %vm11262_vm10, %v10055_v17, %v5160_v15  ;;  %v5545_v55 = vsel %vm11263_vm15, %v10163_v18, %v5544_v49  ;;  %v5412_v56 = vsel %vm859_vm6, %v5404_v20, %v5405_v46  ;;  %v7900_v18 = vld [vmem:[#allocation3 + $0x68] sm:$0xf0]  ;;  %v7495_v20 = vld [vmem:[#allocation3 + $0x30] sm:$0xf]  ;;  %vm11271_vm10 = vmmov %vm11266_vm4 }
 0x889   : > { %5176 = vst [vmem:[#allocation3 + $0x54] sm:$0xff] %v5161_v1  ;;  %v5413_v60 = vsel %vm11264_vm13, %v5391_v5, %v5412_v56  ;;  %v7903_v63 = vld [vmem:[#allocation3 + $0x80] sm:$0xf0]  ;;  %v7533_v11 = vld [vmem:[#allocation3 + $0x84] sm:$0xf0]  ;;  %v7520_v32 = vor.u32 %v7900_v18, %v7519_v59  ;;  %v7496_v49 = vor.u32 %v7894_v42, %v7495_v20  ;;  %vm11272_vm15 = vmmov %vm11265_vm0 }
 0x88a   : > { %5560 = vst [vmem:[#allocation3 + $0x174] sm:$0xff] %v5545_v55  ;;  %v7532_v23 = vor.u32 %v7903_v63, %v7531_v33  ;;  %v7536_v8 = vor.u32 %v7902_v30, %v7533_v11  ;;  %v7639_v46 = vld [vmem:[#allocation3 + $0x150] sm:$0xf]  ;;  %v7893_v55 = vld [vmem:[#allocation3 + $0x34] sm:$0xf]  ;;  %vm11274_vm13 = vmmov %vm11266_vm4 }
 0x88b   : > { %5428 = vst [vmem:[#allocation3 + $0xfc] sm:$0xff] %v5413_v60  ;;  %v7640_v1 = vor.u32 %v7930_v0, %v7639_v46  ;;  %v7500_v56 = vor.u32 %v7893_v55, %v7497_v40  ;;  %v7891_v33 = vld [vmem:[#allocation3 + $0x20] sm:$0xf0]  ;;  %v7485_v60 = vld [vmem:[#allocation3 + $0x24] sm:$0xf0]  ;;  %v11269_v46 = vld [vmem:[#allocation4_spill] sm:$0xff] }
 0x88c   : > { %5988 = vmatpush.bf16.msrb.mxu2 %v7532_v23  ;;  %6045 = vmatpush.bf16.msra.mxu1 %v7536_v8  ;;  %v5589_v17 = vpop.permute.xlu1 %5588  ;;  %v10270_v36 = vpop.permute.xlu2 %5580  ;;  %v7483_v11 = vld [vmem:[#allocation3 + $0x18] sm:$0xf]  ;;  %v7890_v8 = vld [vmem:[#allocation3 + $0x1c] sm:$0xf]  ;;  %v7641_v40 = vld [vmem:[#allocation3 + $0x15c] sm:$0xf0] }
 0x88d   : > { %v5599_v16 = vrot.slane %v5589_v17, 4  ;;  %5623 = vst.msk [vmem:[#allocation3 + $0x1a0] sm:$0xf] %vm811_vm14, %v5589_v17  ;;  %v10274_v39 = vpop.permute.xlu0 %5590  ;;  %v7484_v23 = vor.u32 %v7891_v33, %v7483_v11  ;;  %v7488_v59 = vor.u32 %v7890_v8, %v7485_v60  ;;  %v7888_v17 = vld [vmem:[#allocation3 + $0x8] sm:$0xf0]  ;;  %v5408_v33 = vrot.slane %v10076_v57, 4 }
 0x88e   : > { %5619 = vst.msk [vmem:[#allocation3 + $0x188] sm:$0xf] %vm811_vm14, %v10270_v36  ;;  %v7929_v20 = vld [vmem:[#allocation3 + $0x154] sm:$0xf] }
 0x88f   : > { %v5606_v5 = vsel %vm859_vm6, %v5598_v43, %v5599_v16  ;;  %v7887_v16 = vld [vmem:[#allocation3 + $0x4] sm:$0xf] }
 0x890   : > { %v5607_v38 = vsel %vm11265_vm0, %v10238_v62, %v5606_v5  ;;  %5989 = vmatpush.bf16.msrb.mxu2 %v7520_v32  ;;  %6046 = vmatpush.bf16.msra.mxu1 %v7524_v7  ;;  %v7897_v37 = vld [vmem:[#allocation3 + $0x50] sm:$0xf0]  ;;  %v7509_v61 = vld [vmem:[#allocation3 + $0x54] sm:$0xf0]  ;;  %v5600_v7 = vrot.slane %v10274_v39, 4 }
 0x891   : > { %5622 = vst [vmem:[#allocation3 + $0x198] sm:$0xff] %v5607_v38  ;;  %v7508_v47 = vor.u32 %v7897_v37, %v7507_v35  ;;  %v7933_v22 = vld [vmem:[#allocation3 + $0x170] sm:$0xf0]  ;;  %v7512_v21 = vor.u32 %v7896_v2, %v7509_v61  ;;  %v7653_v32 = vld [vmem:[#allocation3 + $0x174] sm:$0xf0]  ;;  %v5472_v37 = vrot.slane %v10117_v41, 4  ;;  %v7472_v61 = vor.u32 %v7888_v17, %v7471_v25 }
 0x892   : > { %v7652_v34 = vor.u32 %v7933_v22, %v7651_v29  ;;  %v7934_v38 = vld [vmem:[#allocation3 + $0x178] sm:$0xf0]  ;;  %v7476_v22 = vor.u32 %v7887_v16, %v7473_v4  ;;  %v7623_v25 = vld [vmem:[#allocation3 + $0x128] sm:$0xf] }
 0x894   : > { %5990 = vmatpush.bf16.msrb.mxu2 %v7508_v47  ;;  %6005 = vmatpush.bf16.msra.mxu0 %v7652_v34  ;;  %v5331_v9 = vpop.permute.xlu1 %5330  ;;  %v10281_v48 = vpop.permute.xlu2 %5322  ;;  %v7932_v47 = vld [vmem:[#allocation3 + $0x16c] sm:$0xf]  ;;  %v7659_v34 = vld [vmem:[#allocation3 + $0x170] sm:$0xf] }
 0x895   : > { %6047 = vmatpush.bf16.msra.mxu1 %v7512_v21  ;;  %v5342_v62 = vrot.slane %v5331_v9, 4  ;;  %v5333_v27 = vpop.permute.xlu0 %5332  ;;  %v7656_v21 = vor.u32 %v7932_v47, %v7653_v32  ;;  %v7926_v32 = vld [vmem:[#allocation3 + $0x13c] sm:$0xf]  ;;  %v7923_v47 = vld [vmem:[#allocation3 + $0x124] sm:$0xf] }
 0x896   : > { %v5343_v15 = vrot.slane %v5333_v27, 4  ;;  %5367 = vst.msk [vmem:[#allocation3 + $0xe0] sm:$0xf] %vm811_vm14, %v5333_v27  ;;  %v7931_v27 = vld [vmem:[#allocation3 + $0x160] sm:$0xf0] }
 0x898   : > { %v5350_v30 = vsel %vm859_vm6, %v5342_v62, %v5343_v15  ;;  %5991 = vmatpush.bf16.msrb.mxu2 %v7496_v49  ;;  %6006 = vmatpush.bf16.msra.mxu0 %v7640_v1  ;;  %v7644_v15 = vor.u32 %v7929_v20, %v7641_v40  ;;  %v7647_v49 = vld [vmem:[#allocation3 + $0x158] sm:$0xf]  ;;  %v7611_v20 = vld [vmem:[#allocation3 + $0x110] sm:$0xf] }
 0x899   : > { %v5351_v63 = vsel %vm11266_vm4, %v5331_v9, %v5350_v30  ;;  %6048 = vmatpush.bf16.msra.mxu1 %v7500_v56  ;;  %v7660_v9 = vor.u32 %v7934_v38, %v7659_v34  ;;  %v7648_v55 = vor.u32 %v7931_v27, %v7647_v49  ;;  %v7635_v56 = vld [vmem:[#allocation3 + $0x140] sm:$0xf]  ;;  %v7675_v16 = vld [vmem:[#allocation3 + $0x198] sm:$0xf]  ;;  %v7617_v34 = vld [vmem:[#allocation3 + $0x12c] sm:$0xf0] }
 0x89a   : > { %5366 = vst [vmem:[#allocation3 + $0xd8] sm:$0xff] %v5351_v63  ;;  %v5595_v63 = vrot.slane %v10270_v36, 4 }
 0x89c   : > { %5992 = vmatpush.bf16.msrb.mxu2 %v7484_v23  ;;  %v10286_v18 = vpop.permute.xlu1 %5582  ;;  %v5593_v43 = vpop.permute.xlu2 %5592 }
 0x89d   : > { %6049 = vmatpush.bf16.msra.mxu1 %v7488_v59  ;;  %v5601_v5 = vrot.slane %v5593_v43, 4  ;;  %5625 = vst.msk [vmem:[#allocation3 + $0x1ac] sm:$0xf] %vm811_vm14, %v5593_v43  ;;  %v5465_v35 = vpop.permute.xlu0 %5464  ;;  %v7627_v59 = vld [vmem:[#allocation3 + $0x138] sm:$0xf] }
 0x89e   : > { %v5473_v2 = vrot.slane %v5465_v35, 4  ;;  %5497 = vst.msk [vmem:[#allocation3 + $0x14c] sm:$0xf] %vm811_vm14, %v5465_v35 }
 0x89f   : > { %v5608_v29 = vsel %vm859_vm6, %v5600_v7, %v5601_v5 }
 0x8a0   : > { %v5609_v42 = vsel %vm11267_vm2, %v10274_v39, %v5608_v29  ;;  %v5480_v0 = vsel %vm859_vm6, %v5472_v37, %v5473_v2  ;;  %5993 = vmatpush.bf16.msrb.mxu2 %v7472_v61  ;;  %v7615_v2 = vld [vmem:[#allocation3 + $0x120] sm:$0xf]  ;;  %v7925_v61 = vld [vmem:[#allocation3 + $0x130] sm:$0xf0] }
 0x8a1   : > { %5624 = vst [vmem:[#allocation3 + $0x1a4] sm:$0xff] %v5609_v42  ;;  %v5481_v62 = vsel %vm11268_vm7, %v10117_v41, %v5480_v0  ;;  %6050 = vmatpush.bf16.msra.mxu1 %v7476_v22  ;;  %v7624_v22 = vor.u32 %v7925_v61, %v7623_v25  ;;  %v5344_v0 = vrot.slane %v10250_v31, 4  ;;  %v11273_v25 = vld [vmem:[#allocation5_spill] sm:$0xff]  ;;  %v7917_v61 = vld [vmem:[#allocation3 + $0xf4] sm:$0xf] }
 0x8a2   : > { %5496 = vst [vmem:[#allocation3 + $0x144] sm:$0xff] %v5481_v62 }
 0x8a3   : > { %5994 = vmatmul.bf16.vlgmr.msrb.gmra.mxu2 %v11269_v46 }
 0x8a4   : > { %6062 = vmatpush.bf16.msra.mxu2 %v7656_v21  ;;  %6051 = vmatmul.bf16.vlgmr.msra.gmra.mxu1 %v11269_v46  ;;  %v5401_v39 = vpop.permute.xlu1 %5400  ;;  %v10300_v1 = vpop.permute.xlu2 %5328  ;;  %v7924_v21 = vld [vmem:[#allocation3 + $0x128] sm:$0xf0] }
 0x8a5   : > { %6119 = vmatpush.bf16.msrb.mxu1 %v7660_v9  ;;  %v5409_v41 = vrot.slane %v5401_v39, 4  ;;  %5433 = vst.msk [vmem:[#allocation3 + $0x11c] sm:$0xf] %vm811_vm14, %v5401_v39  ;;  %v5579_v30 = vpop.permute.xlu0 %5578  ;;  %v7928_v60 = vld [vmem:[#allocation3 + $0x148] sm:$0xf0]  ;;  %v7616_v27 = vor.u32 %v7924_v21, %v7615_v2  ;;  %v7620_v39 = vor.u32 %v7923_v47, %v7617_v34 }
 0x8a6   : > { %5365 = vst.msk [vmem:[#allocation3 + $0xd4] sm:$0xf] %vm811_vm14, %v10300_v1  ;;  %v5594_v11 = vrot.slane %v5579_v30, 4  ;;  %v7636_v23 = vor.u32 %v7928_v60, %v7635_v56  ;;  %v7920_v60 = vld [vmem:[#allocation3 + $0x10c] sm:$0xf] }
 0x8a7   : > { %v5416_v8 = vsel %vm859_vm6, %v5408_v33, %v5409_v41  ;;  %v7603_v33 = vld [vmem:[#allocation3 + $0x108] sm:$0xf]  ;;  %v7579_v21 = vld [vmem:[#allocation3 + $0xd8] sm:$0xf]  ;;  %v7563_v34 = vld [vmem:[#allocation3 + $0xb0] sm:$0xf] }
 0x8a8   : > { %6063 = vmatpush.bf16.msra.mxu2 %v7644_v15  ;;  %v5417_v17 = vsel %vm11261_vm12, %v10076_v57, %v5416_v8  ;;  %v5602_v43 = vsel %vm859_vm6, %v5594_v11, %v5595_v63  ;;  %v7939_v4 = vld [vmem:[#allocation3 + $0x1a0] sm:$0xf0]  ;;  %v5596_v15 = vrot.slane %v10286_v18, 4 }
 0x8a9   : > { %6120 = vmatpush.bf16.msrb.mxu1 %v7648_v55  ;;  %5432 = vst [vmem:[#allocation3 + $0x114] sm:$0xff] %v5417_v17  ;;  %v5603_v36 = vsel %vm11270_vm8, %v5579_v30, %v5602_v43  ;;  %v7927_v7 = vld [vmem:[#allocation3 + $0x140] sm:$0xf0]  ;;  %v7676_v5 = vor.u32 %v7939_v4, %v7675_v16  ;;  %v7629_v35 = vld [vmem:[#allocation3 + $0x144] sm:$0xf0] }
 0x8aa   : > { %5618 = vst [vmem:[#allocation3 + $0x180] sm:$0xff] %v5603_v36  ;;  %v7628_v38 = vor.u32 %v7927_v7, %v7627_v59  ;;  %v7632_v37 = vor.u32 %v7926_v32, %v7629_v35  ;;  %v7919_v59 = vld [vmem:[#allocation3 + $0x100] sm:$0xf0]  ;;  %v7599_v17 = vld [vmem:[#allocation3 + $0xf8] sm:$0xf]  ;;  %v5338_v7 = vrot.slane %v10281_v48, 4 }
 0x8ab   : > { %6030 = vmatpush.bf16.msrb.mxu3 %v7676_v5  ;;  %v7600_v16 = vor.u32 %v7919_v59, %v7599_v17  ;;  %v7591_v4 = vld [vmem:[#allocation3 + $0xf0] sm:$0xf]  ;;  %v7593_v32 = vld [vmem:[#allocation3 + $0xfc] sm:$0xf0]  ;;  %v11276_v59 = vld [vmem:[#allocation7_spill] sm:$0xff] }
 0x8ac   : > { %6007 = vmatpush.bf16.msra.mxu0 %v7628_v38  ;;  %6064 = vmatpush.bf16.msra.mxu2 %v7632_v37  ;;  %v5337_v57 = vpop.permute.xlu1 %5336  ;;  %v10312_v29 = vpop.permute.xlu2 %3342  ;;  %v7922_v42 = vld [vmem:[#allocation3 + $0x118] sm:$0xf0]  ;;  %v7587_v35 = vld [vmem:[#allocation3 + $0xe0] sm:$0xf]  ;;  %v5341_v38 = vrot.slane %v10300_v1, 4 }
 0x8ad   : > { %6121 = vmatpush.bf16.msrb.mxu1 %v7636_v23  ;;  %v5345_v9 = vrot.slane %v5337_v57, 4  ;;  %5369 = vst.msk [vmem:[#allocation3 + $0xec] sm:$0xf] %vm811_vm14, %v5337_v57  ;;  %v10318_v40 = vmul.f32 %v10312_v29, %v9540_v53  ;;  %v5585_v62 = vpop.permute.xlu0 %5584  ;;  %v7612_v55 = vor.u32 %v7922_v42, %v7611_v20  ;;  %v10527_v14 = vmul.f32 %v10312_v29, %v9537_v44 }
 0x8ae   : > { %v5597_v49 = vrot.slane %v5585_v62, 4  ;;  %5621 = vst.msk [vmem:[#allocation3 + $0x194] sm:$0xf] %vm811_vm14, %v5585_v62  ;;  %v7914_v62 = vld [vmem:[#allocation3 + $0xdc] sm:$0xf] }
 0x8af   : > { %v5352_v56 = vsel %vm859_vm6, %v5344_v0, %v5345_v9  ;;  %3370 = vrot.lane.b32.xlu1 %v10318_v40, %s8073_s10 }
 0x8b0   : > { %v5353_v53 = vsel %vm11271_vm10, %v10250_v31, %v5352_v56  ;;  %v5604_v41 = vsel %vm859_vm6, %v5596_v15, %v5597_v49  ;;  %6008 = vmatpush.bf16.msra.mxu0 %v7616_v27  ;;  %6065 = vmatpush.bf16.msra.mxu2 %v7620_v39  ;;  %v7921_v30 = vld [vmem:[#allocation3 + $0x110] sm:$0xf0]  ;;  %v7605_v63 = vld [vmem:[#allocation3 + $0x114] sm:$0xf0]  ;;  %v7918_v31 = vld [vmem:[#allocation3 + $0xf8] sm:$0xf0] }
 0x8b1   : > { %6122 = vmatpush.bf16.msrb.mxu1 %v7624_v22  ;;  %5368 = vst [vmem:[#allocation3 + $0xe4] sm:$0xff] %v5353_v53  ;;  %v5605_v11 = vsel %vm11272_vm15, %v10286_v18, %v5604_v41  ;;  %v7604_v23 = vor.u32 %v7921_v30, %v7603_v33  ;;  %v7608_v8 = vor.u32 %v7920_v60, %v7605_v63  ;;  %v7663_v15 = vld [vmem:[#allocation3 + $0x180] sm:$0xf]  ;;  %v7910_v56 = vld [vmem:[#allocation3 + $0xb8] sm:$0xf0] }
 0x8b2   : > { %5620 = vst [vmem:[#allocation3 + $0x18c] sm:$0xff] %v5605_v11  ;;  %v7592_v2 = vor.u32 %v7918_v31, %v7591_v4  ;;  %v7596_v22 = vor.u32 %v7917_v61, %v7593_v32  ;;  %v7564_v33 = vor.u32 %v7910_v56, %v7563_v34  ;;  %v7907_v41 = vld [vmem:[#allocation3 + $0xa0] sm:$0xf0]  ;;  %v7913_v63 = vld [vmem:[#allocation3 + $0xd0] sm:$0xf0] }
 0x8b3   : > { %5999 = vmatmul.bf16.gmra.mxu2 %v11273_v25  ;;  %v7904_v31 = vld [vmem:[#allocation3 + $0x88] sm:$0xf0]  ;;  %v7935_v34 = vld [vmem:[#allocation3 + $0x184] sm:$0xf] }
 0x8b4   : > { %6056 = vmatmul.bf16.gmra.mxu1 %v11273_v25  ;;  %6009 = vmatpush.bf16.msra.mxu0 %v7604_v23  ;;  %v5325_v43 = vpop.permute.xlu1 %5324  ;;  %v7916_v36 = vld [vmem:[#allocation3 + $0xe8] sm:$0xf0] }
 0x8b5   : > { %6123 = vmatpush.bf16.msrb.mxu1 %v7612_v55  ;;  %6066 = vmatpush.bf16.msra.mxu2 %v7608_v8  ;;  %v5339_v18 = vrot.slane %v5325_v43, 4  ;;  %5363 = vst.msk [vmem:[#allocation3 + $0xc8] sm:$0xf] %vm811_vm14, %v5325_v43  ;;  %v5327_v5 = vpop.permute.xlu0 %5326  ;;  %v7588_v47 = vor.u32 %v7916_v36, %v7587_v35  ;;  %vm11275_vm14 = vmmov %vm11266_vm4  ;;  %v7551_v8 = vld [vmem:[#allocation3 + $0x98] sm:$0xf] }
 0x8b6   : > { %v5340_v37 = vrot.slane %v5327_v5, 4  ;;  %v7552_v17 = vor.u32 %v7907_v41, %v7551_v8  ;;  %v7940_v32 = vld [vmem:[#allocation3 + $0x1a8] sm:$0xf0]  ;;  %v11281_v8 = vld [vmem:[#allocation8_spill] sm:$0xff] }
 0x8b7   : > { %v5346_v57 = vsel %vm859_vm6, %v5338_v7, %v5339_v18  ;;  %v7938_v18 = vld [vmem:[#allocation3 + $0x19c] sm:$0xf] }
 0x8b8   : > { %v5347_v42 = vsel %vm11274_vm13, %v10281_v48, %v5346_v57  ;;  %v5348_v0 = vsel %vm859_vm6, %v5340_v37, %v5341_v38  ;;  %6010 = vmatpush.bf16.msra.mxu0 %v7592_v2  ;;  %v7915_v9 = vld [vmem:[#allocation3 + $0xe0] sm:$0xf0]  ;;  %v7581_v27 = vld [vmem:[#allocation3 + $0xe4] sm:$0xf0]  ;;  %vm11277_vm6 = vcmask 261120  }
 0x8b9   : > { %6124 = vmatpush.bf16.msrb.mxu1 %v7600_v16  ;;  %5362 = vst [vmem:[#allocation3 + $0xc0] sm:$0xff] %v5347_v42  ;;  %v5349_v1 = vsel %vm11275_vm14, %v5327_v5, %v5348_v0  ;;  %6067 = vmatpush.bf16.msra.mxu2 %v7596_v22  ;;  %v7580_v20 = vor.u32 %v7915_v9, %v7579_v21  ;;  %v7936_v49 = vld [vmem:[#allocation3 + $0x188] sm:$0xf0]  ;;  %v7677_v16 = vld [vmem:[#allocation3 + $0x1a4] sm:$0xf0]  ;;  %v11278_v0 = vld [vmem:[#allocation6_spill] sm:$0xff] }
 0x8ba   : > { %v7584_v39 = vor.u32 %v7914_v62, %v7581_v27  ;;  %5364 = vst [vmem:[#allocation3 + $0xcc] sm:$0xff] %v5349_v1  ;;  %v7664_v55 = vor.u32 %v7936_v49, %v7663_v15  ;;  %v7539_v5 = vld [vmem:[#allocation3 + $0x80] sm:$0xf]  ;;  %v7680_v35 = vor.u32 %v7938_v18, %v7677_v16  ;;  %v7527_v57 = vld [vmem:[#allocation3 + $0x68] sm:$0xf]  ;;  %vm11280_vm0 = vmmov %vm11277_vm6  ;;  %vm3589_vm14 = vcmask 392192  }
 0x8bb   : > { %v7540_v38 = vor.u32 %v7904_v31, %v7539_v5  ;;  %v7683_v37 = vld [vmem:[#allocation3 + $0x1a0] sm:$0xf]  ;;  %v7937_v21 = vld [vmem:[#allocation3 + $0x190] sm:$0xf0]  ;;  %v7671_v27 = vld [vmem:[#allocation3 + $0x188] sm:$0xf] }
 0x8bc   : > { %6011 = vmatpush.bf16.msra.mxu0 %v7580_v20  ;;  %6031 = vmatpush.bf16.msrb.mxu3 %v7664_v55  ;;  %v10340_v48 = vpop.permute.xlu1 %3332  ;;  %v7575_v53 = vld [vmem:[#allocation3 + $0xc8] sm:$0xf]  ;;  %v7684_v61 = vor.u32 %v7940_v32, %v7683_v37  ;;  %v7901_v42 = vld [vmem:[#allocation3 + $0x70] sm:$0xf0]  ;;  %v7898_v1 = vld [vmem:[#allocation3 + $0x58] sm:$0xf0] }
 0x8bd   : > { %6125 = vmatpush.bf16.msrb.mxu1 %v7588_v47  ;;  %6068 = vmatpush.bf16.msra.mxu2 %v7584_v39  ;;  %v10344_v30 = vmul.f32 %v10340_v48, %v9574_v52  ;;  %v10346_v60 = vpop.permute.xlu0 %3337  ;;  %v7576_v23 = vor.u32 %v7913_v63, %v7575_v53  ;;  %v7665_v47 = vld [vmem:[#allocation3 + $0x18c] sm:$0xf0]  ;;  %v7528_v62 = vor.u32 %v7901_v42, %v7527_v57  ;;  %v7895_v49 = vld [vmem:[#allocation3 + $0x40] sm:$0xf0]  ;;  %v7503_v39 = vld [vmem:[#allocation3 + $0x38] sm:$0xf] }
 0x8be   : > { %v10350_v11 = vmul.f32 %v10346_v60, %v9570_v51  ;;  %v7668_v9 = vor.u32 %v7935_v34, %v7665_v47  ;;  %v7515_v20 = vld [vmem:[#allocation3 + $0x50] sm:$0xf]  ;;  %v11279_v55 = vld [vmem:[#allocation9_spill] sm:$0xff]  ;;  %v7504_v56 = vor.u32 %v7895_v49, %v7503_v39  ;;  %v7491_v53 = vld [vmem:[#allocation3 + $0x20] sm:$0xf]  ;;  %v10505_v12 = vmul.f32 %v10340_v48, %v9568_v10 }
 0x8bf   : > { %7685 = vmatmul.msk.bf16.vlgmr.msrb.gmra.mxu3 %vm11277_vm6, %v11276_v59  ;;  %3366 = vrot.lane.b32.xlu0 %v10344_v30, %s8073_s10  ;;  %v7516_v15 = vor.u32 %v7898_v1, %v7515_v20  ;;  %v7889_v63 = vld [vmem:[#allocation3 + $0x10] sm:$0xf0]  ;;  %vm11282_vm4 = vmmov %vm11280_vm0  ;;  %v3354_v10 = vmul.f32 %v10346_v60, %v9562_v28  ;;  %vm3599_vm6 = vcmask 654336  }
 0x8c0   : > { %6100 = vmatpush.bf16.msra.mxu3 %v7564_v33  ;;  %3368 = vrot.lane.b32.xlu2 %v10350_v11, %s8073_s10  ;;  %v7567_v52 = vld [vmem:[#allocation3 + $0xc0] sm:$0xf]  ;;  %v7911_v43 = vld [vmem:[#allocation3 + $0xc4] sm:$0xf]  ;;  %v7892_v33 = vld [vmem:[#allocation3 + $0x28] sm:$0xf0] }
 0x8c1   : > { %6126 = vmatpush.bf16.msrb.mxu1 %v7576_v23  ;;  %v7912_v51 = vld [vmem:[#allocation3 + $0xc8] sm:$0xf0]  ;;  %v7569_v4 = vld [vmem:[#allocation3 + $0xcc] sm:$0xf0]  ;;  %v7492_v41 = vor.u32 %v7892_v33, %v7491_v53  ;;  %v7479_v23 = vld [vmem:[#allocation3 + $0x8] sm:$0xf] }
 0x8c2   : > { %v7568_v36 = vor.u32 %v7912_v51, %v7567_v52  ;;  %v7572_v7 = vor.u32 %v7911_v43, %v7569_v4  ;;  %vm11283_vm2 = vmmov %vm11280_vm0 }
 0x8c3   : > { %vm11284_vm7 = vmmov %vm11280_vm0 }
 0x8c4   : > { %6101 = vmatpush.bf16.msra.mxu3 %v7552_v17  ;;  %6012 = vmatpush.bf16.msra.mxu0 %v7568_v36  ;;  %v10358_v2 = vpop.permute.xlu1 %3347  ;;  %v7480_v17 = vor.u32 %v7889_v63, %v7479_v23  ;;  %vm11285_vm12 = vmmov %vm11280_vm0 }
 0x8c5   : > { %6069 = vmatpush.bf16.msra.mxu2 %v7572_v7  ;;  %v10362_v22 = vmul.f32 %v10358_v2, %v9606_v50  ;;  %6127 = vmatmul.bf16.vlgmr.msrb.gmra.mxu1 %v11278_v0  ;;  %v7672_v50 = vor.u32 %v7937_v21, %v7671_v27  ;;  %vm11286_vm8 = vmmov %vm11280_vm0  ;;  %v10521_v58 = vmul.f32 %v10358_v2, %v9603_v6 }
 0x8c6   : > { %vm11287_vm10 = vmmov %vm11280_vm0 }
 0x8c7   : > { %6013 = vmatmul.bf16.vlgmr.msra.gmra.mxu0 %v11278_v0  ;;  %3372 = vrot.lane.b32.xlu0 %v10362_v22, %s8073_s10  ;;  %vm11288_vm15 = vmmov %vm11280_vm0 }
 0x8c8   : > { %6087 = vmatpush.bf16.msrb.mxu0 %v7680_v35  ;;  %6102 = vmatpush.bf16.msra.mxu3 %v7540_v38  ;;  %vm11289_vm13 = vmmov %vm11280_vm0 }
 0x8c9   : > { %6144 = vmatpush.bf16.msrb.mxu2 %v7684_v61 }
 0x8ca   : > { %6070 = vmatmul.bf16.vlgmr.msra.gmra.mxu2 %v11278_v0 }
 0x8cc   : > { %6088 = vmatpush.bf16.msrb.mxu0 %v7668_v9  ;;  %6103 = vmatpush.bf16.msra.mxu3 %v7528_v62 }
 0x8cd   : > { %6145 = vmatpush.bf16.msrb.mxu2 %v7672_v50 }
 0x8cf   : > { %7686 = vmatmul.msk.bf16.gmra.mxu3 %vm11280_vm0, %v11279_v55 }
 0x8d0   : > { %6104 = vmatpush.bf16.msra.mxu3 %v7516_v15 }
 0x8d4   : > { %6105 = vmatpush.bf16.msra.mxu3 %v7504_v56 }
 0x8d5   : > { %6132 = vmatmul.bf16.gmra.mxu1 %v11281_v8 }
 0x8d7   : > { %6018 = vmatmul.bf16.gmra.mxu0 %v11281_v8 }
 0x8d8   : > { %6106 = vmatpush.bf16.msra.mxu3 %v7492_v41 }
 0x8da   : > { %6075 = vmatmul.bf16.gmra.mxu2 %v11281_v8 }
 0x8dc   : > { %6107 = vmatpush.bf16.msra.mxu3 %v7480_v17 }
 0x8df   : > { %6108 = vmatmul.bf16.vlgmr.msra.gmra.mxu3 %v11269_v46 }
 0x8e7   : > { %7687 = vmatmul.msk.bf16.vlgmr.msrb.gmra.mxu0 %vm11282_vm4, %v11276_v59  ;;  %vm3458_vm4 = vcmask 932864  }
 0x8ea   : > { %7689 = vmatmul.msk.bf16.vlgmr.msrb.gmra.mxu2 %vm11283_vm2, %v11276_v59  ;;  %vm3609_vm2 = vcmask 916480  }
 0x8ef   : > { %6113 = vmatmul.bf16.gmra.mxu3 %v11273_v25 }
 0x8f7   : > { %7688 = vmatmul.msk.bf16.gmra.mxu0 %vm11284_vm7, %v11279_v55  ;;  %vm3604_vm7 = vcmask 785408  }
 0x8fa   : > { %7690 = vmatmul.msk.bf16.gmra.mxu2 %vm11285_vm12, %v11279_v55 }
 0x91a   : > { %v10554_v28 = vpop.permute.xlu2 %3368 }
 0x921   : > { %v10384_v16 = vpop.f32.mrf.mxu1 }
 0x926   : > { %v5995_v31 = vpop.f32.mrf.mxu2 }
 0x927   : > { %v5996_v4 = vadd.f32 %v5995_v31, %v9304_v45 }
 0x929   : > { %v6054_v36 = vpop.f32.mrf.mxu1 }
 0x92a   : > { %v6055_v27 = vadd.f32 %v6054_v36, %v9283_v54 }
 0x92e   : > { %v5997_v52 = vpop.f32.mrf.mxu2 }
 0x92f   : > { %v5998_v50 = vadd.f32 %v5997_v52, %v9283_v54 }
 0x931   : > { %v6057_v35 = vpop.f32.mrf.mxu1  ;;  %v10540_v44 = vpop.permute.xlu0 %3366 }
 0x932   : > { %v6058_v63 = vadd.f32 %v6057_v35, %v9197_v19 }
 0x936   : > { %v6000_v43 = vpop.f32.mrf.mxu2 }
 0x937   : > { %v6001_v23 = vadd.f32 %v6000_v43, %v9197_v19 }
 0x939   : > { %v6059_v47 = vpop.f32.mrf.mxu1  ;;  %v10549_v6 = vpop.permute.xlu0 %3372 }
 0x93e   : > { %v6002_v46 = vpop.f32.mrf.mxu2 }
 0x942   : > { %v6033_v51 = vpop.f32.mrf.mxu3  ;;  %v6128_v42 = vpop.f32.mrf.mxu1 }
 0x944   : > { %v6014_v32 = vpop.f32.mrf.mxu0 }
 0x945   : > { %v6015_v59 = vadd.f32 %v6014_v32, %v5996_v4 }
 0x947   : > { %v10387_v7 = vadd.f32 %v6033_v51, %v6015_v59 }
 0x94a   : > { %v6035_v25 = vpop.f32.mrf.mxu3  ;;  %v6130_v39 = vpop.f32.mrf.mxu1 }
 0x94c   : > { %v6016_v5 = vpop.f32.mrf.mxu0 }
 0x94d   : > { %v10389_v18 = vpop.f32.mrf.mxu2  ;;  %v6017_v15 = vadd.f32 %v6016_v5, %v5998_v50  ;;  %v6003_v50 = vadd.f32 %v6002_v46, %v9275_v26 }
 0x94f   : > { %v10398_v53 = vadd.f32 %v6035_v25, %v6017_v15 }
 0x952   : > { %v6038_v38 = vpop.f32.mrf.mxu3  ;;  %v6133_v25 = vpop.f32.mrf.mxu1 }
 0x954   : > { %v6019_v61 = vpop.f32.mrf.mxu0 }
 0x955   : > { %v6073_v37 = vpop.f32.mrf.mxu2  ;;  %v6020_v51 = vadd.f32 %v6019_v61, %v6001_v23 }
 0x956   : > { %v6074_v49 = vadd.f32 %v6073_v37, %v6055_v27  ;;  %v6060_v27 = vadd.f32 %v6059_v47, %v9275_v26 }
 0x957   : > { %v10417_v61 = vadd.f32 %v6038_v38, %v6020_v51  ;;  %v6053_v51 = vadd.f32 %v10384_v16, %v9304_v45 }
 0x959   : > { %v6163_v38 = vsel %vm8751_vm5, %v10417_v61, 0.0 }
 0x95a   : > { %v6040_v57 = vpop.f32.mrf.mxu3 }
 0x95c   : > { %v6021_v34 = vpop.f32.mrf.mxu0 }
 0x95d   : > { %v6076_v21 = vpop.f32.mrf.mxu2 }
 0x95e   : > { %v6077_v4 = vadd.f32 %v6076_v21, %v6058_v63 }
 0x962   : > { %v6109_v9 = vpop.f32.mrf.mxu3 }
 0x964   : > { %v10391_v62 = vpop.f32.mrf.mxu0 }
 0x965   : > { %v6078_v0 = vpop.f32.mrf.mxu2 }
 0x96a   : > { %v6111_v1 = vpop.f32.mrf.mxu3 }
 0x96b   : > { %v6112_v56 = vadd.f32 %v6111_v1, %v9283_v54  ;;  %v6160_v54 = vsel %vm8751_vm5, %v10398_v53, 0.0 }
 0x96c   : > { %v6092_v55 = vpop.f32.mrf.mxu0 }
 0x96d   : > { %v6147_v20 = vpop.f32.mrf.mxu2  ;;  %v10396_v33 = vadd.f32 %v6092_v55, %v6074_v49  ;;  %v6131_v41 = vadd.f32 %v6130_v39, %v6112_v56  ;;  %v6022_v39 = vadd.f32 %v6021_v34, %v6003_v50  ;;  %v6079_v55 = vadd.f32 %v6078_v0, %v6060_v27 }
 0x96f   : > { %v6161_v8 = vsel %vm8747_vm3, %v10396_v33, 0.0  ;;  %v10437_v0 = vadd.f32 %v6040_v57, %v6022_v39 }
 0x970   : > { %v6174_v36 = vadd.f32 %v6161_v8, %v6160_v54  ;;  %v6110_v8 = vadd.f32 %v6109_v9, %v9304_v45 }
 0x971   : > { %v6166_v57 = vsel %vm8751_vm5, %v10437_v0, 0.0 }
 0x972   : > { %v6114_v17 = vpop.f32.mrf.mxu3  ;;  %v6129_v54 = vadd.f32 %v6128_v42, %v6110_v8 }
 0x973   : > { %v6115_v59 = vadd.f32 %v6114_v17, %v9197_v19  ;;  %v6135_v17 = vpop.f32.mrf.mxu1 }
 0x974   : > { %v6095_v32 = vpop.f32.mrf.mxu0  ;;  %v10450_v9 = vadd.f32 %v6147_v20, %v6129_v54  ;;  %v10605_v54 = vmul.f32 %v10312_v29, %v9534_v13  ;;  %v3352_v13 = vmul.f32 %v10340_v48, %v9564_v3 }
 0x975   : > { %v6149_v31 = vpop.f32.mrf.mxu2  ;;  %v10415_v35 = vadd.f32 %v6095_v32, %v6077_v4  ;;  %v6134_v21 = vadd.f32 %v6133_v25, %v6115_v59  ;;  %v6157_v25 = vsel %vm8751_vm5, %v10387_v7, 0.0  ;;  %vm3580_vm5 = vcmask 130048  }
 0x976   : > { %v10405_v52 = vadd.f32 %v6149_v31, %v6131_v41  ;;  %v3581_v48 = vsel %vm3580_vm5, %v10344_v30, %v10540_v44 }
 0x977   : > { %v6164_v19 = vsel %vm8747_vm3, %v10415_v35, 0.0 }
 0x978   : > { %v6162_v43 = vsel %vm8772_vm1, %v10405_v52, 0.0  ;;  %v6179_v41 = vadd.f32 %v6164_v19, %v6163_v38 }
 0x979   : > { %v6175_v5 = vsel %vm11286_vm8, %v6162_v43, 0.0 }
 0x97a   : > { %v6176_v37 = vadd.f32 %v6175_v5, %v6174_v36  ;;  %v6116_v1 = vpop.f32.mrf.mxu3  ;;  %v6072_v36 = vadd.f32 %v10389_v18, %v6053_v51  ;;  %v6159_v18 = vsel %vm8772_vm1, %v10450_v9, 0.0 }
 0x97b   : > { %v6117_v47 = vadd.f32 %v6116_v1, %v9275_v26  ;;  %v6170_v5 = vsel %vm11289_vm13, %v6159_v18, 0.0 }
 0x97c   : > { %6177 = vadd.xlane.f32.xlu0 %v6176_v37  ;;  %v6097_v56 = vpop.f32.mrf.mxu0  ;;  %v10456_v16 = vadd.f32 %v10391_v62, %v6072_v36 }
 0x97d   : > { %v6152_v15 = vpop.f32.mrf.mxu2  ;;  %v10434_v23 = vadd.f32 %v6097_v56, %v6079_v55  ;;  %v6136_v31 = vadd.f32 %v6135_v17, %v6117_v47 }
 0x97e   : > { %v10424_v49 = vadd.f32 %v6152_v15, %v6134_v21  ;;  %v6158_v20 = vsel %vm8747_vm3, %v10456_v16, 0.0  ;;  %v10556_v21 = vpop.permute.xlu1 %3370 }
 0x97f   : > { %v6167_v26 = vsel %vm8747_vm3, %v10434_v23, 0.0  ;;  %v6169_v62 = vadd.f32 %v6158_v20, %v6157_v25  ;;  %vm11290_vm3 = vmmov %vm11280_vm0 }
 0x980   : > { %v6165_v46 = vsel %vm8772_vm1, %v10424_v49, 0.0  ;;  %v6184_v59 = vadd.f32 %v6167_v26, %v6166_v57 }
 0x981   : > { %v6180_v63 = vsel %vm11287_vm10, %v6165_v46, 0.0  ;;  %v6171_v37 = vadd.f32 %v6170_v5, %v6169_v62 }
 0x982   : > { %v6181_v34 = vadd.f32 %v6180_v63, %v6179_v41  ;;  %v6193_v41 = vld [vmem:[%s10997_s5] sm:$0x3] }
 0x984   : > { %6182 = vadd.xlane.f32.xlu1 %v6181_v34 }
 0x985   : > { %v6154_v4 = vpop.f32.mrf.mxu2 }
 0x986   : > { %v10444_v32 = vadd.f32 %v6154_v4, %v6136_v31 }
 0x988   : > { %v6168_v45 = vsel %vm8772_vm1, %v10444_v32, 0.0  ;;  %vm11292_vm1 = vmmov %vm11280_vm0  ;;  %vm3594_vm0 = vcmask 523264  }
 0x989   : > { %v6185_v42 = vsel %vm11288_vm15, %v6168_v45, 0.0  ;;  %v3355_v45 = vmul.f32 %v10346_v60, %v9557_v24  ;;  %v11291_v24 = vld [vmem:[#allocation10_spill] sm:$0xff]  ;;  %vm11294_vm12 = vmmov %vm11292_vm1 }
 0x98a   : > { %v6186_v43 = vadd.f32 %v6185_v42, %v6184_v59  ;;  %v3361_v60 = vmul.f32 %v10358_v2, %v11291_v24  ;;  %vm11295_vm8 = vmmov %vm11292_vm1  ;;  %v8031_v24 = vld [vmem:[%s8156_s15 + $0x20] sm:$0xff] }
 0x98b   : > { %vm11296_vm10 = vmmov %vm11292_vm1 }
 0x98c   : > { %6187 = vadd.xlane.f32.xlu2 %v6186_v43  ;;  %vm11297_vm15 = vmmov %vm11292_vm1 }
 0x98d   : > { %vm11298_vm13 = vmmov %vm11292_vm1 }
 0x990   : > { %3380 = vrot.lane.b32.xlu0 %v10350_v11, %s8078_s29 }
 0x994   : > { %6172 = vadd.xlane.f32.xlu2 %v6171_v37 }
 0x998   : > { %3384 = vrot.lane.b32.xlu0 %v10362_v22, %s8078_s29 }
 0x99d   : > { %3378 = vrot.lane.b32.xlu1 %v10344_v30, %s8078_s29 }
 0x9a0   : > { %3394 = vrot.lane.b32.xlu0 %v10318_v40, %s8079_s13 }
 0x9a5   : > { %3390 = vrot.lane.b32.xlu1 %v10344_v30, %s8079_s13 }
 0x9a8   : > { %3404 = vrot.lane.b32.xlu0 %v10350_v11, %s8080_s14 }
 0x9ac   : > { %3382 = vrot.lane.b32.xlu2 %v10318_v40, %s8078_s29 }
 0x9ad   : > { %3396 = vrot.lane.b32.xlu1 %v10362_v22, %s8079_s13 }
 0x9b0   : > { %3414 = vrot.lane.b32.xlu0 %v10344_v30, %s8081_s18 }
 0x9b4   : > { %3392 = vrot.lane.b32.xlu2 %v10350_v11, %s8079_s13 }
 0x9b5   : > { %3406 = vrot.lane.b32.xlu1 %v10318_v40, %s8080_s14 }
 0x9b8   : > { %3420 = vrot.lane.b32.xlu0 %v10362_v22, %s8081_s18 }
 0x9bc   : > { %3402 = vrot.lane.b32.xlu2 %v10344_v30, %s8080_s14 }
 0x9bd   : > { %3416 = vrot.lane.b32.xlu1 %v10350_v11, %s8081_s18 }
 0x9c0   : > { %3430 = vrot.lane.b32.xlu0 %v10318_v40, %s8082_s21 }
 0x9c4   : > { %3408 = vrot.lane.b32.xlu2 %v10362_v22, %s8080_s14 }
 0x9c5   : > { %3426 = vrot.lane.b32.xlu1 %v10344_v30, %s8082_s21 }
 0x9c8   : > { %3444 = vrot.lane.b32.xlu0 %v10505_v12, %s8083_s24 }
 0x9cc   : > { %3418 = vrot.lane.b32.xlu2 %v10318_v40, %s8081_s18 }
 0x9cd   : > { %3432 = vrot.lane.b32.xlu1 %v10362_v22, %s8082_s21 }
 0x9d0   : > { %3450 = vrot.lane.b32.xlu0 %v10318_v40, %s8083_s24 }
 0x9d4   : > { %3428 = vrot.lane.b32.xlu2 %v10350_v11, %s8082_s21 }
 0x9d5   : > { %3446 = vrot.lane.b32.xlu1 %v10350_v11, %s8083_s24 }
 0x9d8   : > { %3456 = vrot.lane.b32.xlu0 %v10521_v58, %s8083_s24 }
 0x9dc   : > { %3442 = vrot.lane.b32.xlu2 %v10344_v30, %s8083_s24 }
 0x9dd   : > { %3452 = vrot.lane.b32.xlu1 %v10527_v14, %s8083_s24 }
 0x9e0   : > { %3471 = vrot.lane.b32.xlu0 %v10527_v14, %s8084_s22 }
 0x9e4   : > { %3448 = vrot.lane.b32.xlu2 %v3354_v10, %s8083_s24 }
 0x9e5   : > { %3467 = vrot.lane.b32.xlu1 %v10505_v12, %s8084_s22 }
 0x9e8   : > { %3481 = vrot.lane.b32.xlu0 %v3354_v10, %s8071_s12 }
 0x9ec   : > { %3454 = vrot.lane.b32.xlu2 %v10362_v22, %s8083_s24 }
 0x9ed   : > { %3473 = vrot.lane.b32.xlu1 %v10521_v58, %s8084_s22 }
 0x9ef   : > { %v6178_v27 = vpop.xlane.xlu0 %6177 }
 0x9f0   : > { %3491 = vrot.lane.b32.xlu0 %v10505_v12, %s8076_s27  ;;  %v6190_v55 = vmul.f32 0.00390625, %v6178_v27 }
 0x9f4   : > { %3469 = vrot.lane.b32.xlu2 %v3354_v10, %s8084_s22 }
 0x9f5   : > { %3483 = vrot.lane.b32.xlu1 %v10527_v14, %s8071_s12 }
 0x9f7   : > { %v6183_v50 = vpop.xlane.xlu1 %6182 }
 0x9f8   : > { %3497 = vrot.lane.b32.xlu0 %v10521_v58, %s8076_s27  ;;  %v6191_v15 = vmul.f32 0.00390625, %v6183_v50  ;;  %v3582_v50 = vsel %vm3580_vm5, %v10350_v11, %v10554_v28  ;;  %v8030_v28 = vld [vmem:[%s8156_s15 + $0x10] sm:$0xff] }
 0x9fc   : > { %3479 = vrot.lane.b32.xlu2 %v10505_v12, %s8071_s12 }
 0x9fd   : > { %3493 = vrot.lane.b32.xlu1 %v3354_v10, %s8076_s27 }
 0x9ff   : > { %v6188_v19 = vpop.xlane.xlu2 %6187 }
 0xa00   : > { %v6192_v1 = vmul.f32 0.00390625, %v6188_v19  ;;  %3507 = vrot.lane.b32.xlu0 %v10527_v14, %s8085_s17 }
 0xa02   : > { %6210 = vmatpush.msra.mxu1 %v6192_v1  ;;  %v10565_v39 = vpop.permute.xlu0 %3380 }
 0xa03   : > { %v3586_v19 = vsel %vm11294_vm12, %v3582_v50, %v10565_v39 }
 0xa04   : > { %3485 = vrot.lane.b32.xlu2 %v10521_v58, %s8071_s12  ;;  %6211 = vmatpush.msra.mxu1 %v6191_v15 }
 0xa05   : > { %3503 = vrot.lane.b32.xlu1 %v10505_v12, %s8085_s17 }
 0xa06   : > { %6212 = vmatpush.msra.mxu1 %v6190_v55 }
 0xa07   : > { %v6173_v38 = vpop.xlane.xlu2 %6172 }
 0xa08   : > { %v6189_v56 = vmul.f32 0.00390625, %v6173_v38  ;;  %3517 = vrot.lane.b32.xlu0 %v3354_v10, %s11070_s26 }
 0xa0a   : > { %6213 = vmatpush.msra.mxu1 %v6189_v56  ;;  %v10575_v47 = vpop.permute.xlu0 %3384 }
 0xa0b   : > { %7691 = vmatmul.msk.f32.vlgmr.msra.gmra.mxu1 %vm11290_vm3, %v6193_v41  ;;  %vm11299_vm3 = vmmov %vm11292_vm1 }
 0xa0c   : > { %3495 = vrot.lane.b32.xlu2 %v10527_v14, %s8076_s27 }
 0xa0d   : > { %3509 = vrot.lane.b32.xlu1 %v10521_v58, %s8085_s17 }
 0xa0f   : > { %v3379_v46 = vpop.permute.xlu1 %3378  ;;  %v10582_v63 = vpop.permute.xlu2 %3382 }
 0xa10   : > { %3527 = vrot.lane.b32.xlu0 %v10505_v12, %s11074_s28  ;;  %v3585_v25 = vsel %vm11292_vm1, %v3581_v48, %v3379_v46 }
 0xa12   : > { %v10586_v8 = vpop.permute.xlu0 %3394 }
 0xa14   : > { %3505 = vrot.lane.b32.xlu2 %v3354_v10, %s8085_s17 }
 0xa15   : > { %3519 = vrot.lane.b32.xlu1 %v10527_v14, %s11070_s26 }
 0xa17   : > { %v3391_v34 = vpop.permute.xlu1 %3390  ;;  %v3393_v17 = vpop.permute.xlu2 %3392 }
 0xa18   : > { %3533 = vrot.lane.b32.xlu0 %v10521_v58, %s11074_s28  ;;  %v3590_v2 = vsel %vm3589_vm14, %v3585_v25, %v3391_v34  ;;  %v3591_v1 = vsel %vm3589_vm14, %v3586_v19, %v3393_v17  ;;  %v3584_v17 = vsel %vm3580_vm5, %v10362_v22, %v10549_v6 }
 0xa1a   : > { %v3405_v31 = vpop.permute.xlu0 %3404 }
 0xa1b   : > { %v3596_v15 = vsel %vm3594_vm0, %v3591_v1, %v3405_v31  ;;  %v3588_v31 = vsel %vm11295_vm8, %v3584_v17, %v10575_v47 }
 0xa1c   : > { %3515 = vrot.lane.b32.xlu2 %v10505_v12, %s11070_s26 }
 0xa1d   : > { %3529 = vrot.lane.b32.xlu1 %v3354_v10, %s11074_s28 }
 0xa1f   : > { %v10596_v51 = vpop.permute.xlu1 %3396  ;;  %v3403_v26 = vpop.permute.xlu2 %3402 }
 0xa20   : > { %3547 = vrot.lane.b32.xlu0 %v3354_v10, %s8088_s16  ;;  %v3595_v5 = vsel %vm3594_vm0, %v3590_v2, %v3403_v26  ;;  %v8029_v10 = vld [vmem:[%s8156_s15] sm:$0xff]  ;;  %v3583_v26 = vsel %vm3580_vm5, %v10318_v40, %v10556_v21  ;;  %v3593_v40 = vsel %vm3589_vm14, %v3588_v31, %v10596_v51  ;;  %v6220_v31 = vld [vmem:[%s10999_s7 + $0x8] sm:$0xff] }
 0xa22   : > { %v3415_v4 = vpop.permute.xlu0 %3414 }
 0xa23   : > { %v3600_v30 = vsel %vm3599_vm6, %v3595_v5, %v3415_v4  ;;  %v3587_v4 = vsel %vm11296_vm10, %v3583_v26, %v10582_v63 }
 0xa24   : > { %3521 = vrot.lane.b32.xlu2 %v10521_v58, %s11070_s26  ;;  %s10646_s26 = scalar_lea.vmem %s11001_s9, %s11293_s19  ;;  %s11301_s19 = smov 104  }
 0xa25   : > { %3543 = vrot.lane.b32.xlu1 %v10505_v12, %s8088_s16 }
 0xa27   : > { %v10607_v36 = vpop.permute.xlu1 %3406  ;;  %v10609_v57 = vpop.permute.xlu2 %3408 }
 0xa28   : > { %3553 = vrot.lane.b32.xlu0 %v10605_v54, %s8088_s16  ;;  %v3598_v6 = vsel %vm3594_vm0, %v3593_v40, %v10609_v57 }
 0xa2a   : > { %v10613_v59 = vpop.permute.xlu0 %3420 }
 0xa2b   : > { %v3603_v21 = vsel %vm3599_vm6, %v3598_v6, %v10613_v59  ;;  %v8032_v59 = vld [vmem:[%s8156_s15 + $0x30] sm:$0xff] }
 0xa2c   : > { %3531 = vrot.lane.b32.xlu2 %v10527_v14, %s11074_s28  ;;  %s11302_s28 = smov 98  }
 0xa2d   : > { %3549 = vrot.lane.b32.xlu1 %v3355_v45, %s8088_s16 }
 0xa2f   : > { %v3417_v29 = vpop.permute.xlu1 %3416  ;;  %v3419_v42 = vpop.permute.xlu2 %3418 }
 0xa30   : > { %3568 = vrot.lane.b32.xlu0 %v3352_v13, %s11072_s20  ;;  %v3601_v55 = vsel %vm3599_vm6, %v3596_v15, %v3417_v29 }
 0xa32   : > { %v3431_v43 = vpop.permute.xlu0 %3430 }
 0xa34   : > { %3545 = vrot.lane.b32.xlu2 %v3352_v13, %s8088_s16 }
 0xa35   : > { %3555 = vrot.lane.b32.xlu1 %v10521_v58, %s8088_s16 }
 0xa37   : > { %v3427_v18 = vpop.permute.xlu1 %3426  ;;  %v3429_v20 = vpop.permute.xlu2 %3428 }
 0xa38   : > { %3574 = vrot.lane.b32.xlu0 %v3361_v60, %s11072_s20  ;;  %v3605_v12 = vsel %vm3604_vm7, %v3600_v30, %v3427_v18  ;;  %v3606_v41 = vsel %vm3604_vm7, %v3601_v55, %v3429_v20  ;;  %v6194_v55 = vld [vmem:[%s10998_s6] sm:$0x3] }
 0xa3a   : > { %v3445_v3 = vpop.permute.xlu0 %3444 }
 0xa3c   : > { %3551 = vrot.lane.b32.xlu2 %v10527_v14, %s8088_s16 }
 0xa3d   : > { %3570 = vrot.lane.b32.xlu1 %v3355_v45, %s11072_s20  ;;  %v3592_v45 = vsel %vm3589_vm14, %v3587_v4, %v10586_v8 }
 0xa3e   : > { %v3597_v22 = vsel %vm3594_vm0, %v3592_v45, %v10607_v36 }
 0xa3f   : > { %v3433_v62 = vpop.permute.xlu1 %3432  ;;  %v3443_v37 = vpop.permute.xlu2 %3442  ;;  %v3602_v47 = vsel %vm3599_vm6, %v3597_v22, %v3419_v42  ;;  %v6221_v22 = vld [vmem:[%s10999_s7 + $0x10] sm:$0xff] }
 0xa40   : > { %v3459_v58 = vsel %vm3458_vm4, %v3443_v37, %v3445_v3  ;;  %v3607_v8 = vsel %vm3604_vm7, %v3602_v47, %v3431_v43  ;;  %v3608_v13 = vsel %vm3604_vm7, %v3603_v21, %v3433_v62 }
 0xa41   : > { %v3610_v14 = vsel %vm3609_vm2, %v3605_v12, %v3459_v58 }
 0xa42   : > { %v3642_v44 = vadd.f32 %v8029_v10, %v3610_v14  ;;  %v3451_v27 = vpop.permute.xlu0 %3450 }
 0xa44   : > { %3650 = vst [vmem:[%s10646_s26] sm:$0xff] %v3642_v44  ;;  %3557 = vrot.lane.b32.xlu2 %v3361_v60, %s8088_s16 }
 0xa47   : > { %v3447_v38 = vpop.permute.xlu1 %3446  ;;  %v3449_v56 = vpop.permute.xlu2 %3448 }
 0xa48   : > { %v3460_v46 = vsel %vm3458_vm4, %v3447_v38, %v3449_v56 }
 0xa49   : > { %v3611_v11 = vsel %vm3609_vm2, %v3606_v41, %v3460_v46 }
 0xa4a   : > { %v3644_v39 = vadd.f32 %v8030_v28, %v3611_v11  ;;  %v3457_v34 = vpop.permute.xlu0 %3456 }
 0xa4c   : > { %3652 = vst [vmem:[%s10646_s26 + $0x10] sm:$0xff] %v3644_v39  ;;  %3572 = vrot.lane.b32.xlu2 %v10605_v54, %s11072_s20  ;;  %v6219_v39 = vld [vmem:[%s10999_s7] sm:$0xff] }
 0xa4f   : > { %v3453_v63 = vpop.permute.xlu1 %3452  ;;  %v3455_v54 = vpop.permute.xlu2 %3454 }
 0xa50   : > { %v3461_v51 = vsel %vm3458_vm4, %v3451_v27, %v3453_v63  ;;  %v3462_v36 = vsel %vm3458_vm4, %v3455_v54, %v3457_v34 }
 0xa51   : > { %v3612_v29 = vsel %vm3609_vm2, %v3607_v8, %v3461_v51  ;;  %v3613_v57 = vsel %vm3609_vm2, %v3608_v13, %v3462_v36 }
 0xa52   : > { %v3646_v60 = vadd.f32 %v8031_v24, %v3612_v29  ;;  %v3648_v18 = vadd.f32 %v8032_v59, %v3613_v57  ;;  %v3472_v20 = vpop.permute.xlu0 %3471  ;;  %v6222_v24 = vld [vmem:[%s10999_s7 + $0x18] sm:$0xff]  ;;  %v8033_v59 = vld [vmem:[%s8156_s15 + $0x8] sm:$0xff] }
 0xa54   : > { %3654 = vst [vmem:[%s10646_s26 + $0x20] sm:$0xff] %v3646_v60 }
 0xa55   : > { %3656 = vst [vmem:[%s10646_s26 + $0x30] sm:$0xff] %v3648_v18 }
 0xa57   : > { %v3468_v42 = vpop.permute.xlu1 %3467  ;;  %v3470_v3 = vpop.permute.xlu2 %3469 }
 0xa5a   : > { %v3482_v43 = vpop.permute.xlu0 %3481 }
 0xa5b   : > { %v10699_v48 = vsel %vm3580_vm5, %v3470_v3, %v3482_v43 }
 0xa5f   : > { %v3474_v25 = vpop.permute.xlu1 %3473  ;;  %v3480_v2 = vpop.permute.xlu2 %3479 }
 0xa60   : > { %v3614_v6 = vsel %vm3580_vm5, %v3468_v42, %v3480_v2 }
 0xa62   : > { %v3492_v5 = vpop.permute.xlu0 %3491 }
 0xa63   : > { %v3618_v21 = vsel %vm11297_vm15, %v3614_v6, %v3492_v5 }
 0xa67   : > { %v3484_v30 = vpop.permute.xlu1 %3483  ;;  %v3486_v62 = vpop.permute.xlu2 %3485 }
 0xa68   : > { %v3616_v37 = vsel %vm3580_vm5, %v3472_v20, %v3484_v30  ;;  %v3617_v60 = vsel %vm3580_vm5, %v3474_v25, %v3486_v62 }
 0xa6a   : > { %v3498_v12 = vpop.permute.xlu0 %3497 }
 0xa6b   : > { %v3621_v20 = vsel %vm11298_vm13, %v3617_v60, %v3498_v12 }
 0xa6f   : > { %v3494_v58 = vpop.permute.xlu1 %3493  ;;  %v3496_v14 = vpop.permute.xlu2 %3495 }
 0xa70   : > { %v3620_v62 = vsel %vm11299_vm3, %v3616_v37, %v3496_v14 }
 0xa72   : > { %v3508_v10 = vpop.permute.xlu0 %3507 }
 0xa77   : > { %v3504_v44 = vpop.permute.xlu1 %3503  ;;  %v3506_v27 = vpop.permute.xlu2 %3505 }
 0xa78   : > { %v3622_v47 = vsel %vm3589_vm14, %v3618_v21, %v3504_v44  ;;  %v3619_v44 = vsel %vm11292_vm1, %v10699_v48, %v3494_v58 }
 0xa7a   : > { %v3518_v50 = vpop.permute.xlu0 %3517 }
 0xa7f   : > { %v3510_v19 = vpop.permute.xlu1 %3509  ;;  %v3516_v1 = vpop.permute.xlu2 %3515 }
 0xa80   : > { %v3626_v13 = vsel %vm3594_vm0, %v3622_v47, %v3516_v1  ;;  %v3625_v42 = vsel %vm3589_vm14, %v3621_v20, %v3510_v19  ;;  %v3624_v19 = vsel %vm3589_vm14, %v3620_v62, %v3508_v10 }
 0xa82   : > { %v3528_v15 = vpop.permute.xlu0 %3527 }
 0xa83   : > { %v3630_v51 = vsel %vm3599_vm6, %v3626_v13, %v3528_v15  ;;  %v3623_v15 = vsel %vm3589_vm14, %v3619_v44, %v3506_v27 }
 0xa84   : > { %v3627_v37 = vsel %vm3594_vm0, %v3623_v15, %v3518_v50 }
 0xa87   : > { %v3520_v38 = vpop.permute.xlu1 %3519  ;;  %v3522_v56 = vpop.permute.xlu2 %3521 }
 0xa88   : > { %v6215_v41 = vpop.f32.mrf.mxu1  ;;  %v3629_v3 = vsel %vm3594_vm0, %v3625_v42, %v3522_v56  ;;  %v3628_v48 = vsel %vm3594_vm0, %v3624_v19, %v3520_v38  ;;  %v6223_v38 = vld [vmem:[%s11000_s8] sm:$0xff] }
 0xa89   : > { %v6216_v46 = vadd.f32 %v6215_v41, %v6194_v55  ;;  %v8034_v41 = vld [vmem:[%s8156_s15 + $0x38] sm:$0xff] }
 0xa8a   : > { %v3534_v11 = vpop.permute.xlu0 %3533 }
 0xa8b   : > { %v6218_v28 = vmax.f32 %v6216_v46, 0.0  ;;  %v3633_v5 = vsel %vm3599_vm6, %v3629_v3, %v3534_v11 }
 0xa8d   : > { %7692 = vmatpush.msk.msrb.mxu3 %vm3221_vm9, %v6218_v28  ;;  %vm3559_vm9 = vcmask 818176  }
 0xa8e   : > { %7693 = vmatmul.msk.f32.vlgmr.msrb.gmra.mxu3 %vm3208_vm11, %v6219_v39 }
 0xa8f   : > { %v3530_v34 = vpop.permute.xlu1 %3529  ;;  %v3532_v26 = vpop.permute.xlu2 %3531 }
 0xa90   : > { %v3631_v58 = vsel %vm3599_vm6, %v3627_v37, %v3530_v34  ;;  %v3632_v14 = vsel %vm3599_vm6, %v3628_v48, %v3532_v26 }
 0xa92   : > { %v3548_v17 = vpop.permute.xlu0 %3547 }
 0xa96   : > { %7694 = vmatmul.msk.f32.gmra.mxu3 %vm3208_vm11, %v6220_v31  ;;  %v8035_v31 = vld [vmem:[%s8156_s15 + $0x18] sm:$0xff] }
 0xa97   : > { %v3544_v4 = vpop.permute.xlu1 %3543  ;;  %v3546_v45 = vpop.permute.xlu2 %3545 }
 0xa98   : > { %v3560_v63 = vsel %vm3559_vm9, %v3544_v4, %v3546_v45  ;;  %v8036_v4 = vld [vmem:[%s8156_s15 + $0x28] sm:$0xff] }
 0xa99   : > { %v3634_v36 = vsel %vm3604_vm7, %v3630_v51, %v3560_v63 }
 0xa9a   : > { %v3554_v40 = vpop.permute.xlu0 %3553 }
 0xa9e   : > { %7695 = vmatmul.msk.f32.gmra.mxu3 %vm3208_vm11, %v6221_v22  ;;  %v6224_v22 = vld [vmem:[%s11000_s8 + $0x8] sm:$0xff] }
 0xa9f   : > { %v3550_v54 = vpop.permute.xlu1 %3549  ;;  %v3552_v8 = vpop.permute.xlu2 %3551 }
 0xaa0   : > { %v3561_v55 = vsel %vm3559_vm9, %v3548_v17, %v3550_v54  ;;  %v3562_v56 = vsel %vm3559_vm9, %v3552_v8, %v3554_v40  ;;  %v6225_v8 = vld [vmem:[%s11000_s8 + $0x10] sm:$0xff] }
 0xaa1   : > { %v3635_v27 = vsel %vm3604_vm7, %v3631_v58, %v3561_v55  ;;  %v3636_v28 = vsel %vm3604_vm7, %v3632_v14, %v3562_v56 }
 0xaa2   : > { %v3569_v29 = vpop.permute.xlu0 %3568 }
 0xaa3   : > { %v3638_v57 = vsel %vm3609_vm2, %v3634_v36, %v3569_v29 }
 0xaa4   : > { %v3643_v18 = vadd.f32 %v8033_v59, %v3638_v57  ;;  %v6226_v59 = vld [vmem:[%s11000_s8 + $0x18] sm:$0xff] }
 0xaa6   : > { %3651 = vst [vmem:[%s10646_s26 + $0x8] sm:$0xff] %v3643_v18  ;;  %7696 = vmatmul.msk.f32.gmra.mxu3 %vm3208_vm11, %v6222_v24 }
 0xaa7   : > { %v3556_v43 = vpop.permute.xlu1 %3555  ;;  %v3558_v2 = vpop.permute.xlu2 %3557 }
 0xaa8   : > { %v3563_v30 = vsel %vm3559_vm9, %v3556_v43, %v3558_v2 }
 0xaa9   : > { %v3637_v25 = vsel %vm3604_vm7, %v3633_v5, %v3563_v30 }
 0xaaa   : > { %v3575_v12 = vpop.permute.xlu0 %3574 }
 0xaab   : > { %v3641_v1 = vsel %vm3609_vm2, %v3637_v25, %v3575_v12 }
 0xaac   : > { %v3649_v46 = vadd.f32 %v8034_v41, %v3641_v1 }
 0xaae   : > { %3657 = vst [vmem:[%s10646_s26 + $0x38] sm:$0xff] %v3649_v46 }
 0xaaf   : > { %v3571_v10 = vpop.permute.xlu1 %3570  ;;  %v3573_v11 = vpop.permute.xlu2 %3572 }
 0xab0   : > { %v3639_v39 = vsel %vm3609_vm2, %v3635_v27, %v3571_v10  ;;  %v3640_v17 = vsel %vm3609_vm2, %v3636_v28, %v3573_v11 }
 0xab1   : > { %v3645_v50 = vadd.f32 %v8035_v31, %v3639_v39  ;;  %v3647_v45 = vadd.f32 %v8036_v4, %v3640_v17 }
 0xab3   : > { %3653 = vst [vmem:[%s10646_s26 + $0x18] sm:$0xff] %v3645_v50 }
 0xab4   : > { %3655 = vst [vmem:[%s10646_s26 + $0x28] sm:$0xff] %v3647_v45 }
 0xb11   : > { %v6259_v34 = vpop.f32.mrf.mxu3 }
 0xb12   : > { %v6260_v26 = vadd.f32 %v6259_v34, %v6223_v38 }
 0xb14   : > { %v7697_v40 = vmul.f32 -1.442695, %v6260_v26 }
 0xb16   : > { %8013 = vpow2.f32 %v7697_v40 }
 0xb19   : > { %v6262_v6 = vpop.f32.mrf.mxu3 }
 0xb1a   : > { %v6263_v21 = vadd.f32 %v6262_v6, %v6224_v22 }
 0xb1c   : > { %v8014_v47 = vpop.eup %8013  ;;  %v7698_v63 = vmul.f32 -1.442695, %v6263_v21 }
 0xb1d   : > { %v6283_v54 = vadd.f32 1.0, %v8014_v47 }
 0xb1e   : > { %8015 = vpow2.f32 %v7698_v63 }
 0xb1f   : > { %8017 = vrcp.f32 %v6283_v54  ;;  %v6298_v42 = vand.u32 2147483648, %v6283_v54  ;;  %v6296_v2 = vand.u32 2147483647, %v6283_v54  ;;  %vm6292_vm12 = vweird.f32 %v6283_v54 }
 0xb21   : > { %v6265_v13 = vpop.f32.mrf.mxu3  ;;  %v6299_v44 = vor.u32 1.1754944e-38, %v6298_v42  ;;  %vm6297_vm10 = vcmp.eq.f32.partialorder %v6296_v2, 8.507059e+37 }
 0xb22   : > { %v6266_v51 = vadd.f32 %v6265_v13, %v6225_v8 }
 0xb24   : > { %v8016_v36 = vpop.eup %8015  ;;  %v7699_v29 = vmul.f32 -1.442695, %v6266_v51 }
 0xb25   : > { %v8018_v57 = vpop.eup %8017  ;;  %v6284_v24 = vadd.f32 1.0, %v8016_v36 }
 0xb26   : > { %8019 = vpow2.f32 %v7699_v29  ;;  %v6288_v60 = vmul.f32 %v8018_v57, %v6283_v54  ;;  %vm6293_vm11 = vweird.f32 %v8018_v57 }
 0xb27   : > { %8021 = vrcp.f32 %v6284_v24  ;;  %vm6294_vm8 = vmor %vm6292_vm12, %vm6293_vm11  ;;  %v6313_v55 = vand.u32 2147483648, %v6284_v24  ;;  %vm6307_vm15 = vweird.f32 %v6284_v24  ;;  %v6311_v41 = vand.u32 2147483647, %v6284_v24 }
 0xb28   : > { %v6289_v18 = vsub.f32 1.0, %v6288_v60 }
 0xb29   : > { %v6268_v20 = vpop.f32.mrf.mxu3  ;;  %v6314_v37 = vor.u32 1.1754944e-38, %v6313_v55  ;;  %vm6312_vm1 = vcmp.eq.f32.partialorder %v6311_v41, 8.507059e+37  ;;  %v8037_v41 = vld [vmem:[%s8156_s15 + $0x40] sm:$0xff] }
 0xb2a   : > { %v6269_v3 = vadd.f32 %v6268_v20, %v6226_v59  ;;  %v6290_v43 = vmul.f32 %v8018_v57, %v6289_v18 }
 0xb2c   : > { %v8020_v5 = vpop.eup %8019  ;;  %v7700_v30 = vmul.f32 -1.442695, %v6269_v3  ;;  %v6291_v25 = vadd.f32 %v8018_v57, %v6290_v43 }
 0xb2d   : > { %v8022_v62 = vpop.eup %8021  ;;  %v6285_v12 = vadd.f32 1.0, %v8020_v5 }
 0xb2e   : > { %8023 = vpow2.f32 %v7700_v30  ;;  %v6295_v19 = vsel %vm6294_vm8, %v8018_v57, %v6291_v25  ;;  %v6303_v1 = vmul.f32 %v8022_v62, %v6284_v24  ;;  %vm6308_vm13 = vweird.f32 %v8022_v62 }
 0xb2f   : > { %8025 = vrcp.f32 %v6285_v12  ;;  %v6300_v15 = vsel %vm6297_vm10, %v6299_v44, %v6295_v19  ;;  %vm6309_vm3 = vmor %vm6307_vm15, %vm6308_vm13  ;;  %v6328_v39 = vand.u32 2147483648, %v6285_v12  ;;  %vm6322_vm11 = vweird.f32 %v6285_v12 }
 0xb30   : > { %6349 = vperm.xlu1 %7996, %v6300_v15   ;;  %v6304_v56 = vsub.f32 1.0, %v6303_v1  ;;  %v6326_v31 = vand.u32 2147483647, %v6285_v12 }
 0xb31   : > { %v6329_v4 = vor.u32 1.1754944e-38, %v6328_v39 }
 0xb32   : > { %v6305_v46 = vmul.f32 %v8022_v62, %v6304_v56  ;;  %vm6327_vm10 = vcmp.eq.f32.partialorder %v6326_v31, 8.507059e+37 }
 0xb34   : > { %v8024_v48 = vpop.eup %8023  ;;  %v6306_v58 = vadd.f32 %v8022_v62, %v6305_v46 }
 0xb35   : > { %v8026_v14 = vpop.eup %8025  ;;  %v6286_v10 = vadd.f32 1.0, %v8024_v48 }
 0xb36   : > { %v6310_v27 = vsel %vm6309_vm3, %v8022_v62, %v6306_v58  ;;  %v6318_v11 = vmul.f32 %v8026_v14, %v6285_v12  ;;  %vm6323_vm12 = vweird.f32 %v8026_v14 }
 0xb37   : > { %8027 = vrcp.f32 %v6286_v10  ;;  %v6315_v28 = vsel %vm6312_vm1, %v6314_v37, %v6310_v27  ;;  %vm6324_vm8 = vmor %vm6322_vm11, %vm6323_vm12  ;;  %v6343_v22 = vand.u32 2147483648, %v6286_v10  ;;  %vm6337_vm15 = vweird.f32 %v6286_v10 }
 0xb38   : > { %6354 = vperm.xlu2 %7994, %v6315_v28   ;;  %v6319_v17 = vsub.f32 1.0, %v6318_v11  ;;  %v6341_v21 = vand.u32 2147483647, %v6286_v10  ;;  %vm11303_vm11 = vcmask 261120  }
 0xb39   : > { %v6344_v63 = vor.u32 1.1754944e-38, %v6343_v22  ;;  %vm11304_vm12 = vmmov %vm11303_vm11 }
 0xb3a   : > { %v6320_v50 = vmul.f32 %v8026_v14, %v6319_v17  ;;  %vm6342_vm1 = vcmp.eq.f32.partialorder %v6341_v21, 8.507059e+37 }
 0xb3c   : > { %v6321_v45 = vadd.f32 %v8026_v14, %v6320_v50 }
 0xb3d   : > { %v8028_v38 = vpop.eup %8027 }
 0xb3e   : > { %v6325_v34 = vsel %vm6324_vm8, %v8026_v14, %v6321_v45  ;;  %v6333_v26 = vmul.f32 %v8028_v38, %v6286_v10  ;;  %vm6338_vm13 = vweird.f32 %v8028_v38  ;;  %vm11305_vm8 = vmmov %vm11303_vm11 }
 0xb3f   : > { %v6330_v40 = vsel %vm6327_vm10, %v6329_v4, %v6325_v34  ;;  %vm6339_vm3 = vmor %vm6337_vm15, %vm6338_vm13 }
 0xb40   : > { %6359 = vperm.xlu0 %7995, %v6330_v40   ;;  %v6334_v6 = vsub.f32 1.0, %v6333_v26  ;;  %v8038_v40 = vld [vmem:[%s8156_s15 + $0x48] sm:$0xff]  ;;  %vm11306_vm10 = vmmov %vm11305_vm8 }
 0xb41   : > { %vm11307_vm15 = vmmov %vm11305_vm8 }
 0xb42   : > { %v6335_v47 = vmul.f32 %v8028_v38, %v6334_v6  ;;  %vm11308_vm13 = vmmov %vm11305_vm8 }
 0xb44   : > { %v6336_v54 = vadd.f32 %v8028_v38, %v6335_v47 }
 0xb46   : > { %v6340_v8 = vsel %vm6339_vm3, %v8028_v38, %v6336_v54  ;;  %vm11309_vm3 = vmmov %vm11305_vm8 }
 0xb47   : > { %v6345_v13 = vsel %vm6342_vm1, %v6344_v63, %v6340_v8  ;;  %vm11310_vm1 = vmmov %vm11309_vm3 }
 0xb48   : > { %6364 = vperm.xlu1 %7996, %v6345_v13  }
 0xba2   : > { %v6350_v51 = vpop.permute.xlu1 %6349 }
 0xba3   : > { %v10774_v36 = vmul.f32 %v6350_v51, %v10387_v7  ;;  %v6368_v7 = vmul.f32 %v6350_v51, %v10456_v16  ;;  %v6355_v16 = vpop.permute.xlu2 %6354  ;;  %v6369_v57 = vmul.f32 %v6350_v51, %v10450_v9 }
 0xba4   : > { %v10800_v29 = vmul.f32 %v6355_v16, %v10398_v53  ;;  %v6371_v53 = vmul.f32 %v6355_v16, %v10396_v33  ;;  %v10827_v9 = vmul.f32 %v6355_v16, %v10405_v52 }
 0xba5   : > { %6407 = vrot.lane.b32.xlu1 %v10774_v36, %s8079_s13  ;;  %6395 = vrot.lane.b32.xlu0 %v10774_v36, %s8078_s29 }
 0xba6   : > { %6383 = vrot.lane.b32.xlu2 %v10774_v36, %s8073_s10 }
 0xbad   : > { %6443 = vrot.lane.b32.xlu1 %v10774_v36, %s8082_s21  ;;  %6431 = vrot.lane.b32.xlu0 %v10774_v36, %s8081_s18 }
 0xbae   : > { %6419 = vrot.lane.b32.xlu2 %v10774_v36, %s8080_s14 }
 0xbb2   : > { %v6360_v33 = vpop.permute.xlu0 %6359 }
 0xbb3   : > { %v10834_v24 = vmul.f32 %v6360_v33, %v10417_v61  ;;  %v6374_v60 = vmul.f32 %v6360_v33, %v10415_v35  ;;  %v10866_v62 = vmul.f32 %v6360_v33, %v10424_v49  ;;  %v8039_v33 = vld [vmem:[%s8156_s15 + $0x50] sm:$0xff] }
 0xbb5   : > { %6483 = vrot.lane.b32.xlu1 %v6368_v7, %s8084_s22  ;;  %6461 = vrot.lane.b32.xlu0 %v6368_v7, %s8083_s24 }
 0xbb6   : > { %6459 = vrot.lane.b32.xlu2 %v10774_v36, %s8083_s24 }
 0xbba   : > { %v10853_v59 = vpop.permute.xlu1 %6364 }
 0xbbb   : > { %v10870_v12 = vmul.f32 %v10853_v59, %v10437_v0  ;;  %v6377_v14 = vmul.f32 %v10853_v59, %v10434_v23  ;;  %v6378_v54 = vmul.f32 %v10853_v59, %v10444_v32 }
 0xbbd   : > { %6519 = vrot.lane.b32.xlu1 %v6368_v7, %s8085_s17  ;;  %6507 = vrot.lane.b32.xlu0 %v6368_v7, %s8076_s27 }
 0xbbe   : > { %6495 = vrot.lane.b32.xlu2 %v6368_v7, %s8071_s12 }
 0xbc5   : > { %6559 = vrot.lane.b32.xlu1 %v6368_v7, %s8088_s16  ;;  %6543 = vrot.lane.b32.xlu0 %v6368_v7, %s11300_s11 }
 0xbc6   : > { %6531 = vrot.lane.b32.xlu2 %v6368_v7, %s11301_s19 }
 0xbcd   : > { %6397 = vrot.lane.b32.xlu1 %v10800_v29, %s8078_s29  ;;  %6583 = vrot.lane.b32.xlu0 %v6369_v57, %s11302_s28 }
 0xbce   : > { %6561 = vrot.lane.b32.xlu2 %v6369_v57, %s8088_s16 }
 0xbd5   : > { %6433 = vrot.lane.b32.xlu1 %v10800_v29, %s8081_s18  ;;  %6385 = vrot.lane.b32.xlu0 %v10800_v29, %s8073_s10 }
 0xbd6   : > { %6409 = vrot.lane.b32.xlu2 %v10800_v29, %s8079_s13 }
 0xbdd   : > { %6463 = vrot.lane.b32.xlu1 %v10800_v29, %s8083_s24  ;;  %6421 = vrot.lane.b32.xlu0 %v10800_v29, %s8080_s14 }
 0xbde   : > { %6445 = vrot.lane.b32.xlu2 %v10800_v29, %s8082_s21 }
 0xbe5   : > { %6509 = vrot.lane.b32.xlu1 %v6371_v53, %s8076_s27  ;;  %6497 = vrot.lane.b32.xlu0 %v6371_v53, %s8071_s12 }
 0xbe6   : > { %6465 = vrot.lane.b32.xlu2 %v6371_v53, %s8083_s24 }
 0xbed   : > { %6545 = vrot.lane.b32.xlu1 %v6371_v53, %s11300_s11  ;;  %6533 = vrot.lane.b32.xlu0 %v6371_v53, %s11301_s19 }
 0xbee   : > { %6485 = vrot.lane.b32.xlu2 %v6371_v53, %s8084_s22 }
 0xbf5   : > { %6565 = vrot.lane.b32.xlu1 %v10827_v9, %s8088_s16  ;;  %6563 = vrot.lane.b32.xlu0 %v6371_v53, %s8088_s16 }
 0xbf6   : > { %6521 = vrot.lane.b32.xlu2 %v6371_v53, %s8085_s17 }
 0xbfd   : > { %6411 = vrot.lane.b32.xlu0 %v10834_v24, %s8079_s13  ;;  %6387 = vrot.lane.b32.xlu1 %v10834_v24, %s8073_s10 }
 0xbfe   : > { %6399 = vrot.lane.b32.xlu2 %v10834_v24, %s8078_s29 }
 0xc00   : > { %v6384_v52 = vpop.permute.xlu2 %6383 }
 0xc01   : > { %v6595_v35 = vsel %vm3580_vm5, %v10774_v36, %v6384_v52 }
 0xc05   : > { %6447 = vrot.lane.b32.xlu0 %v10834_v24, %s8082_s21  ;;  %6423 = vrot.lane.b32.xlu1 %v10834_v24, %s8080_s14 }
 0xc06   : > { %6435 = vrot.lane.b32.xlu2 %v10834_v24, %s8081_s18 }
 0xc08   : > { %v6420_v61 = vpop.permute.xlu2 %6419 }
 0xc0d   : > { %6467 = vrot.lane.b32.xlu0 %v10834_v24, %s8083_s24  ;;  %6469 = vrot.lane.b32.xlu1 %v6374_v60, %s8083_s24 }
 0xc0e   : > { %6511 = vrot.lane.b32.xlu2 %v6374_v60, %s8076_s27 }
 0xc10   : > { %v6460_v18 = vpop.permute.xlu2 %6459 }
 0xc15   : > { %6487 = vrot.lane.b32.xlu0 %v6374_v60, %s8084_s22  ;;  %6499 = vrot.lane.b32.xlu1 %v6374_v60, %s8071_s12 }
 0xc16   : > { %6547 = vrot.lane.b32.xlu2 %v6374_v60, %s11300_s11 }
 0xc17   : > { %v6408_v20 = vpop.permute.xlu1 %6407  ;;  %v6396_v42 = vpop.permute.xlu0 %6395 }
 0xc18   : > { %v6496_v3 = vpop.permute.xlu2 %6495  ;;  %v6599_v43 = vsel %vm11303_vm11, %v6595_v35, %v6396_v42 }
 0xc19   : > { %v6603_v25 = vsel %vm3589_vm14, %v6599_v43, %v6408_v20 }
 0xc1a   : > { %v6607_v44 = vsel %vm3594_vm0, %v6603_v25, %v6420_v61 }
 0xc1d   : > { %6523 = vrot.lane.b32.xlu0 %v6374_v60, %s8085_s17  ;;  %6535 = vrot.lane.b32.xlu1 %v6374_v60, %s11301_s19 }
 0xc1e   : > { %6567 = vrot.lane.b32.xlu2 %v6374_v60, %s8088_s16 }
 0xc1f   : > { %v6444_v2 = vpop.permute.xlu1 %6443  ;;  %v6432_v5 = vpop.permute.xlu0 %6431 }
 0xc20   : > { %v6532_v30 = vpop.permute.xlu2 %6531  ;;  %v6611_v19 = vsel %vm3599_vm6, %v6607_v44, %v6432_v5 }
 0xc21   : > { %v6615_v15 = vsel %vm3604_vm7, %v6611_v19, %v6444_v2 }
 0xc25   : > { %6569 = vrot.lane.b32.xlu0 %v10866_v62, %s8088_s16  ;;  %6413 = vrot.lane.b32.xlu1 %v10870_v12, %s8079_s13 }
 0xc26   : > { %6389 = vrot.lane.b32.xlu2 %v10870_v12, %s8073_s10 }
 0xc27   : > { %v6484_v1 = vpop.permute.xlu1 %6483  ;;  %v6462_v49 = vpop.permute.xlu0 %6461 }
 0xc28   : > { %v6562_v55 = vpop.permute.xlu2 %6561  ;;  %v6475_v0 = vsel %vm3458_vm4, %v6460_v18, %v6462_v49  ;;  %v6623_v10 = vsel %vm3580_vm5, %v6484_v1, %v6496_v3 }
 0xc29   : > { %v6619_v56 = vsel %vm3609_vm2, %v6615_v15, %v6475_v0 }
 0xc2a   : > { %v6651_v46 = vadd.f32 %v8037_v41, %v6619_v56 }
 0xc2c   : > { %7701 = vst [vmem:[%s10646_s26 + $0x40] sm:$0xff] %v6651_v46 }
 0xc2d   : > { %6401 = vrot.lane.b32.xlu0 %v10870_v12, %s8078_s29  ;;  %6449 = vrot.lane.b32.xlu1 %v10870_v12, %s8082_s21 }
 0xc2e   : > { %6425 = vrot.lane.b32.xlu2 %v10870_v12, %s8080_s14 }
 0xc2f   : > { %v6520_v37 = vpop.permute.xlu1 %6519  ;;  %v6508_v48 = vpop.permute.xlu0 %6507 }
 0xc30   : > { %v6410_v58 = vpop.permute.xlu2 %6409  ;;  %v6627_v27 = vsel %vm11304_vm12, %v6623_v10, %v6508_v48 }
 0xc31   : > { %v6631_v39 = vsel %vm3589_vm14, %v6627_v27, %v6520_v37 }
 0xc32   : > { %v6635_v23 = vsel %vm3594_vm0, %v6631_v39, %v6532_v30 }
 0xc35   : > { %6437 = vrot.lane.b32.xlu0 %v10870_v12, %s8081_s18  ;;  %6489 = vrot.lane.b32.xlu1 %v6377_v14, %s8084_s22 }
 0xc36   : > { %6471 = vrot.lane.b32.xlu2 %v10870_v12, %s8083_s24 }
 0xc37   : > { %v6560_v11 = vpop.permute.xlu1 %6559  ;;  %v6544_v28 = vpop.permute.xlu0 %6543 }
 0xc38   : > { %v6446_v17 = vpop.permute.xlu2 %6445  ;;  %v6575_v31 = vsel %vm3559_vm9, %v6560_v11, %v6562_v55  ;;  %v6639_v50 = vsel %vm3599_vm6, %v6635_v23, %v6544_v28  ;;  %v8040_v28 = vld [vmem:[%s8156_s15 + $0x60] sm:$0xff] }
 0xc39   : > { %v6643_v45 = vsel %vm3604_vm7, %v6639_v50, %v6575_v31 }
 0xc3d   : > { %6473 = vrot.lane.b32.xlu0 %v6377_v14, %s8083_s24  ;;  %6525 = vrot.lane.b32.xlu1 %v6377_v14, %s8085_s17 }
 0xc3e   : > { %6501 = vrot.lane.b32.xlu2 %v6377_v14, %s8071_s12 }
 0xc3f   : > { %v6398_v4 = vpop.permute.xlu1 %6397  ;;  %v6584_v38 = vpop.permute.xlu0 %6583 }
 0xc40   : > { %v6466_v34 = vpop.permute.xlu2 %6465  ;;  %v6647_v26 = vsel %vm3609_vm2, %v6643_v45, %v6584_v38 }
 0xc41   : > { %v6652_v22 = vadd.f32 %v8038_v40, %v6647_v26 }
 0xc43   : > { %7702 = vst [vmem:[%s10646_s26 + $0x48] sm:$0xff] %v6652_v22 }
 0xc45   : > { %6513 = vrot.lane.b32.xlu0 %v6377_v14, %s8076_s27  ;;  %6571 = vrot.lane.b32.xlu1 %v6377_v14, %s8088_s16 }
 0xc46   : > { %6537 = vrot.lane.b32.xlu2 %v6377_v14, %s11301_s19 }
 0xc47   : > { %v6434_v6 = vpop.permute.xlu1 %6433  ;;  %v6386_v21 = vpop.permute.xlu0 %6385 }
 0xc48   : > { %v6486_v47 = vpop.permute.xlu2 %6485  ;;  %v6596_v63 = vsel %vm3580_vm5, %v10800_v29, %v6386_v21 }
 0xc49   : > { %v6600_v8 = vsel %vm11305_vm8, %v6596_v63, %v6398_v4 }
 0xc4a   : > { %v6604_v51 = vsel %vm3589_vm14, %v6600_v8, %v6410_v58 }
 0xc4d   : > { %6549 = vrot.lane.b32.xlu0 %v6377_v14, %s11300_s11  ;;  %6585 = vrot.lane.b32.xlu1 %v10827_v9, %s11302_s28 }
 0xc4e   : > { %6573 = vrot.lane.b32.xlu2 %v6378_v54, %s8088_s16 }
 0xc4f   : > { %v6464_v13 = vpop.permute.xlu1 %6463  ;;  %v6422_v36 = vpop.permute.xlu0 %6421 }
 0xc50   : > { %v6522_v7 = vpop.permute.xlu2 %6521  ;;  %v6608_v16 = vsel %vm3594_vm0, %v6604_v51, %v6422_v36  ;;  %v6476_v32 = vsel %vm3458_vm4, %v6464_v13, %v6466_v34 }
 0xc51   : > { %v6612_v29 = vsel %vm3599_vm6, %v6608_v16, %v6434_v6 }
 0xc52   : > { %v6616_v57 = vsel %vm3604_vm7, %v6612_v29, %v6446_v17 }
 0xc53   : > { %v6620_v53 = vsel %vm3609_vm2, %v6616_v57, %v6476_v32 }
 0xc54   : > { %v6653_v52 = vadd.f32 %v8039_v33, %v6620_v53 }
 0xc55   : > { %6589 = vrot.lane.b32.xlu0 %v6378_v54, %s11302_s28 }
 0xc56   : > { %7703 = vst [vmem:[%s10646_s26 + $0x50] sm:$0xff] %v6653_v52  ;;  %6587 = vrot.lane.b32.xlu2 %v10866_v62, %s11302_s28 }
 0xc57   : > { %v6510_v9 = vpop.permute.xlu1 %6509  ;;  %v6498_v61 = vpop.permute.xlu0 %6497 }
 0xc58   : > { %v6400_v60 = vpop.permute.xlu2 %6399  ;;  %v6624_v59 = vsel %vm3580_vm5, %v6486_v47, %v6498_v61 }
 0xc59   : > { %v6628_v18 = vsel %vm11306_vm10, %v6624_v59, %v6510_v9 }
 0xc5a   : > { %v6632_v20 = vsel %vm3589_vm14, %v6628_v18, %v6522_v7 }
 0xc5f   : > { %v6546_v42 = vpop.permute.xlu1 %6545  ;;  %v6534_v3 = vpop.permute.xlu0 %6533 }
 0xc60   : > { %v6436_v35 = vpop.permute.xlu2 %6435  ;;  %v6636_v43 = vsel %vm3594_vm0, %v6632_v20, %v6534_v3  ;;  %v8041_v20 = vld [vmem:[%s8156_s15 + $0x68] sm:$0xff]  ;;  %v8042_v3 = vld [vmem:[%s8156_s15 + $0x70] sm:$0xff] }
 0xc61   : > { %v6640_v2 = vsel %vm3599_vm6, %v6636_v43, %v6546_v42 }
 0xc67   : > { %v6566_v5 = vpop.permute.xlu1 %6565  ;;  %v6564_v30 = vpop.permute.xlu0 %6563 }
 0xc68   : > { %v6512_v25 = vpop.permute.xlu2 %6511  ;;  %v6576_v62 = vsel %vm3559_vm9, %v6564_v30, %v6566_v5 }
 0xc69   : > { %v10941_v44 = vsel %vm3604_vm7, %v6640_v2, %v6576_v62 }
 0xc6f   : > { %v6388_v19 = vpop.permute.xlu1 %6387  ;;  %v6412_v1 = vpop.permute.xlu0 %6411 }
 0xc70   : > { %v6548_v49 = vpop.permute.xlu2 %6547  ;;  %v6597_v15 = vsel %vm3580_vm5, %v10834_v24, %v6388_v19 }
 0xc71   : > { %v6601_v55 = vsel %vm11307_vm15, %v6597_v15, %v6400_v60 }
 0xc72   : > { %v6605_v46 = vsel %vm3589_vm14, %v6601_v55, %v6412_v1 }
 0xc77   : > { %v6424_v0 = vpop.permute.xlu1 %6423  ;;  %v6448_v56 = vpop.permute.xlu0 %6447 }
 0xc78   : > { %v6568_v41 = vpop.permute.xlu2 %6567  ;;  %v6609_v37 = vsel %vm3594_vm0, %v6605_v46, %v6424_v0 }
 0xc79   : > { %v6613_v48 = vsel %vm3599_vm6, %v6609_v37, %v6436_v35 }
 0xc7a   : > { %v6617_v10 = vsel %vm3604_vm7, %v6613_v48, %v6448_v56  ;;  %v8044_v48 = vld [vmem:[%s8156_s15 + $0x78] sm:$0xff] }
 0xc7f   : > { %v6470_v58 = vpop.permute.xlu1 %6469  ;;  %v6468_v14 = vpop.permute.xlu0 %6467 }
 0xc80   : > { %v6390_v27 = vpop.permute.xlu2 %6389  ;;  %v6477_v11 = vsel %vm3458_vm4, %v6468_v14, %v6470_v58 }
 0xc81   : > { %v6621_v24 = vsel %vm3609_vm2, %v6617_v10, %v6477_v11  ;;  %v6598_v21 = vsel %vm3580_vm5, %v10870_v12, %v6390_v27 }
 0xc82   : > { %v6655_v39 = vadd.f32 %v8040_v28, %v6621_v24 }
 0xc84   : > { %7705 = vst [vmem:[%s10646_s26 + $0x60] sm:$0xff] %v6655_v39 }
 0xc87   : > { %v6500_v17 = vpop.permute.xlu1 %6499  ;;  %v6488_v23 = vpop.permute.xlu0 %6487 }
 0xc88   : > { %v6426_v31 = vpop.permute.xlu2 %6425  ;;  %v6625_v47 = vsel %vm3580_vm5, %v6488_v23, %v6500_v17 }
 0xc89   : > { %v6629_v13 = vsel %vm11309_vm3, %v6625_v47, %v6512_v25 }
 0xc8f   : > { %v6536_v50 = vpop.permute.xlu1 %6535  ;;  %v6524_v4 = vpop.permute.xlu0 %6523 }
 0xc90   : > { %v6472_v45 = vpop.permute.xlu2 %6471  ;;  %v6633_v36 = vsel %vm3589_vm14, %v6629_v13, %v6524_v4 }
 0xc91   : > { %v6637_v16 = vsel %vm3594_vm0, %v6633_v36, %v6536_v50 }
 0xc92   : > { %v6641_v57 = vsel %vm3599_vm6, %v6637_v16, %v6548_v49  ;;  %v8043_v49 = vld [vmem:[%s8156_s15 + $0x58] sm:$0xff] }
 0xc97   : > { %v6414_v38 = vpop.permute.xlu1 %6413  ;;  %v6570_v34 = vpop.permute.xlu0 %6569 }
 0xc98   : > { %v6502_v26 = vpop.permute.xlu2 %6501  ;;  %v6577_v12 = vsel %vm3559_vm9, %v6568_v41, %v6570_v34 }
 0xc99   : > { %v6645_v61 = vsel %vm3604_vm7, %v6641_v57, %v6577_v12 }
 0xc9f   : > { %v6450_v40 = vpop.permute.xlu1 %6449  ;;  %v6402_v22 = vpop.permute.xlu0 %6401 }
 0xca0   : > { %v6538_v6 = vpop.permute.xlu2 %6537  ;;  %v6602_v63 = vsel %vm11308_vm13, %v6598_v21, %v6402_v22 }
 0xca1   : > { %v6606_v7 = vsel %vm3589_vm14, %v6602_v63, %v6414_v38 }
 0xca2   : > { %v6610_v29 = vsel %vm3594_vm0, %v6606_v7, %v6426_v31 }
 0xca7   : > { %v6490_v54 = vpop.permute.xlu1 %6489  ;;  %v6438_v8 = vpop.permute.xlu0 %6437 }
 0xca8   : > { %v6574_v51 = vpop.permute.xlu2 %6573  ;;  %v6614_v32 = vsel %vm3599_vm6, %v6610_v29, %v6438_v8  ;;  %v6626_v5 = vsel %vm3580_vm5, %v6490_v54, %v6502_v26 }
 0xca9   : > { %v6618_v52 = vsel %vm3604_vm7, %v6614_v32, %v6450_v40 }
 0xcaf   : > { %v6526_v53 = vpop.permute.xlu1 %6525  ;;  %v6474_v33 = vpop.permute.xlu0 %6473 }
 0xcb0   : > { %v6588_v9 = vpop.permute.xlu2 %6587  ;;  %v6478_v60 = vsel %vm3458_vm4, %v6472_v45, %v6474_v33 }
 0xcb1   : > { %v6649_v59 = vsel %vm3609_vm2, %v6645_v61, %v6588_v9  ;;  %v6622_v18 = vsel %vm3609_vm2, %v6618_v52, %v6478_v60 }
 0xcb2   : > { %v6656_v42 = vadd.f32 %v8041_v20, %v6649_v59  ;;  %v6657_v35 = vadd.f32 %v8042_v3, %v6622_v18 }
 0xcb4   : > { %7706 = vst [vmem:[%s10646_s26 + $0x68] sm:$0xff] %v6656_v42 }
 0xcb5   : > { %7707 = vst [vmem:[%s10646_s26 + $0x70] sm:$0xff] %v6657_v35 }
 0xcb7   : > { %v6572_v43 = vpop.permute.xlu1 %6571  ;;  %v6514_v2 = vpop.permute.xlu0 %6513 }
 0xcb8   : > { %v6630_v30 = vsel %vm11310_vm1, %v6626_v5, %v6514_v2  ;;  %v6578_v56 = vsel %vm3559_vm9, %v6572_v43, %v6574_v51 }
 0xcb9   : > { %v6634_v19 = vsel %vm3589_vm14, %v6630_v30, %v6526_v53 }
 0xcba   : > { %v6638_v55 = vsel %vm3594_vm0, %v6634_v19, %v6538_v6 }
 0xcbf   : > { %v6586_v25 = vpop.permute.xlu1 %6585  ;;  %v6550_v62 = vpop.permute.xlu0 %6549 }
 0xcc0   : > { %v6648_v1 = vsel %vm3609_vm2, %v10941_v44, %v6586_v25  ;;  %v6642_v0 = vsel %vm3599_vm6, %v6638_v55, %v6550_v62 }
 0xcc1   : > { %v6654_v15 = vadd.f32 %v8043_v49, %v6648_v1  ;;  %v6646_v41 = vsel %vm3604_vm7, %v6642_v0, %v6578_v56 }
 0xcc3   : > { %7704 = vst [vmem:[%s10646_s26 + $0x58] sm:$0xff] %v6654_v15 }
 0xcc7   : > { %v6590_v46 = vpop.permute.xlu0 %6589 }
 0xcc8   : > { %v6650_v37 = vsel %vm3609_vm2, %v6646_v41, %v6590_v46 }
 0xcc9   : > { %v6658_v58 = vadd.f32 %v8044_v48, %v6650_v37 }
 0xccb   : > { %7708 = vst [vmem:[%s10646_s26 + $0x78] sm:$0xff] %v6658_v58 }
 0xccc PF: > { %s19_s30 = sadd.s32 1, %s8051_s30  }
 0xccd   : > { %p16_p4 = scmp.ge.s32.totalorder %s19_s30, 4  }
 0xccf   :  { %18 = sbr.rel (!%p16_p4) target bundleno = 1 (0x1), region = 88 }

</bundles_post_ra>
